<compile_context>
chip_gen: v7x
topology: tpu7x:2x2x1
jax: 0.10.0
libtpu: 0.0.40
codegen_flags: <defaults>
</compile_context>

<pallas_src>
import math
import jax
import jax.numpy as jnp
from jax.experimental import pallas as pl
from jax.experimental.pallas import tpu as pltpu

# ---------------------------------------------------------------------------
# Model hyper-parameters (small, consistent with a tiny BERT config)
# ---------------------------------------------------------------------------
HIDDEN = 32          # hidden size H
NUM_HEADS = 4
HEAD_DIM = HIDDEN // NUM_HEADS
FFN = 64             # intermediate size
SEQ = 8              # tokens per node
NUM_NEI = 3          # neighbors per center node
BATCH = 2
VOCAB = 100
NUM_LAYERS = 2
LN_EPS = 1e-12
NEG_INF = -1e9


def _layer_norm(x, g, b, eps=LN_EPS):
    mu = jnp.mean(x, axis=-1, keepdims=True)
    var = jnp.mean((x - mu) ** 2, axis=-1, keepdims=True)
    return (x - mu) * jax.lax.rsqrt(var + eps) * g + b


def _gelu(x):
    # tanh-approx GELU (EUP-friendly)
    c = math.sqrt(2.0 / math.pi)
    return 0.5 * x * (1.0 + jnp.tanh(c * (x + 0.044715 * x * x * x)))


def _softmax_rows(s):
    # masked entries carry a -1e9 additive bias -> exp underflows to 0
    s = s - jnp.max(s, axis=-1, keepdims=True)
    e = jnp.exp(s)
    inv = pl.reciprocal(jnp.sum(e, axis=-1, keepdims=True), approx=True)
    return e * inv


# ---------------------------------------------------------------------------
# Single fused kernel: embedding output -> 2 GraphFormers layers -> center CLS
# ---------------------------------------------------------------------------
def fused_encoder_kernel(hid_ref, sel_cls_ref, sel_out_ref, gbias_ref, nbias_ref,
                         g_wqkv_ref, g_bqkv_ref, g_wo_ref, g_bo_ref,
                         wqkv_ref, bqkv_ref, wo_ref, bo_ref,
                         ln1g_ref, ln1b_ref, w1_ref, b1_ref,
                         w2_ref, b2_ref, ln2g_ref, ln2b_ref,
                         out_ref):
    h = HIDDEN
    scale = 1.0 / math.sqrt(HEAD_DIM)
    tl = sel_cls_ref.shape[1]            # total tokens = B * M * L

    x = hid_ref[...]                     # [TL, H]  all nodes' tokens (VMEM resident)
    sel_cls = sel_cls_ref[...]           # [T, TL]  CLS-row selector (one-hot rows)
    g_bias = gbias_ref[...]              # [T, T]   graph-attention mask bias
    n_bias = nbias_ref[...]              # [TL, TL+T] block-diag token/station bias

    for l in range(NUM_LAYERS):
        # -------- graph ("station") attention over CLS tokens of all nodes ----
        cls = jnp.dot(sel_cls, x, preferred_element_type=jnp.float32)           # [T, H]
        gqkv = jnp.dot(cls, g_wqkv_ref[l],
                       preferred_element_type=jnp.float32) + g_bqkv_ref[l]      # [T, 3H]
        gq, gk, gv = gqkv[:, 0:h], gqkv[:, h:2 * h], gqkv[:, 2 * h:3 * h]
        gk_t = gk.T                                                              # [H, T]
        g_ctx = []
        for hd in range(NUM_HEADS):
            sl = slice(hd * HEAD_DIM, (hd + 1) * HEAD_DIM)
            s = jnp.dot(gq[:, sl], gk_t[sl, :],
                        preferred_element_type=jnp.float32) * scale + g_bias
            p = _softmax_rows(s)
            g_ctx.append(jnp.dot(p, gv[:, sl], preferred_element_type=jnp.float32))
        station = jnp.dot(jnp.concatenate(g_ctx, axis=-1), g_wo_ref[l],
                          preferred_element_type=jnp.float32) + g_bo_ref[l]      # [T, H]

        # -------- per-node token self-attention, K/V extended by own station --
        x_kv = jnp.concatenate([x, station], axis=0)                             # [TL+T, H]
        qkv = jnp.dot(x_kv, wqkv_ref[l],
                      preferred_element_type=jnp.float32) + bqkv_ref[l]          # [TL+T, 3H]
        q = qkv[0:tl, 0:h]                                                       # [TL, H]
        k = qkv[:, h:2 * h]                                                      # [TL+T, H]
        v = qkv[:, 2 * h:3 * h]                                                  # [TL+T, H]
        k_t = k.T                                                                # [H, TL+T]
        ctx = []
        for hd in range(NUM_HEADS):
            sl = slice(hd * HEAD_DIM, (hd + 1) * HEAD_DIM)
            s = jnp.dot(q[:, sl], k_t[sl, :],
                        preferred_element_type=jnp.float32) * scale + n_bias     # [TL, TL+T]
            p = _softmax_rows(s)
            ctx.append(jnp.dot(p, v[:, sl], preferred_element_type=jnp.float32))
        attn = jnp.dot(jnp.concatenate(ctx, axis=-1), wo_ref[l],
                       preferred_element_type=jnp.float32) + bo_ref[l]           # [TL, H]

        # -------- BERT-style post-LN residual blocks -------------------------
        x1 = _layer_norm(x + attn, ln1g_ref[l], ln1b_ref[l])
        ff = jnp.dot(_gelu(jnp.dot(x1, w1_ref[l],
                                   preferred_element_type=jnp.float32) + b1_ref[l]),
                     w2_ref[l], preferred_element_type=jnp.float32) + b2_ref[l]
        x = _layer_norm(x1 + ff, ln2g_ref[l], ln2b_ref[l])

    # center-node CLS rows picked inside the kernel -> directly the module output
    out_ref[...] = jnp.dot(sel_out_ref[...], x, preferred_element_type=jnp.float32)


# ---------------------------------------------------------------------------
# Parameter init (deterministic, synthetic; weights stacked over layers)
# ---------------------------------------------------------------------------
def init_params(key):
    keys = iter(jax.random.split(key, 16))

    def w(shape):
        return jax.random.normal(next(keys), shape, jnp.float32) * 0.02

    return {
        "tok_emb": w((VOCAB, HIDDEN)),
        "pos_emb": w((SEQ, HIDDEN)),
        "emb_ln_g": jnp.ones((HIDDEN,), jnp.float32),
        "emb_ln_b": jnp.zeros((HIDDEN,), jnp.float32),
        # graph (station) attention
        "g_wqkv": w((NUM_LAYERS, HIDDEN, 3 * HIDDEN)),
        "g_bqkv": jnp.zeros((NUM_LAYERS, 1, 3 * HIDDEN), jnp.float32),
        "g_wo": w((NUM_LAYERS, HIDDEN, HIDDEN)),
        "g_bo": jnp.zeros((NUM_LAYERS, 1, HIDDEN), jnp.float32),
        # token-level self-attention
        "wqkv": w((NUM_LAYERS, HIDDEN, 3 * HIDDEN)),
        "bqkv": jnp.zeros((NUM_LAYERS, 1, 3 * HIDDEN), jnp.float32),
        "wo": w((NUM_LAYERS, HIDDEN, HIDDEN)),
        "bo": jnp.zeros((NUM_LAYERS, 1, HIDDEN), jnp.float32),
        "ln1_g": jnp.ones((NUM_LAYERS, 1, HIDDEN), jnp.float32),
        "ln1_b": jnp.zeros((NUM_LAYERS, 1, HIDDEN), jnp.float32),
        # FFN
        "w1": w((NUM_LAYERS, HIDDEN, FFN)),
        "b1": jnp.zeros((NUM_LAYERS, 1, FFN), jnp.float32),
        "w2": w((NUM_LAYERS, FFN, HIDDEN)),
        "b2": jnp.zeros((NUM_LAYERS, 1, HIDDEN), jnp.float32),
        "ln2_g": jnp.ones((NUM_LAYERS, 1, HIDDEN), jnp.float32),
        "ln2_b": jnp.zeros((NUM_LAYERS, 1, HIDDEN), jnp.float32),
    }


# ---------------------------------------------------------------------------
# Full forward pass == GraphEncoder.forward (returns last_hidden_state[:, 0, :])
# ---------------------------------------------------------------------------
def graph_encoder_forward(params, center_input, neighbor_input, neighbor_mask):
    b_, l_ = center_input.shape
    n_ = neighbor_input.shape[1]
    m_ = n_ + 1
    t_ = b_ * m_
    tl_ = t_ * l_

    # -- embedding (XLA glue: gather + LN) --
    all_ids = jnp.concatenate([center_input[:, None, :], neighbor_input], axis=1)   # [B, M, L]
    x = params["tok_emb"][all_ids] + params["pos_emb"][None, None, :l_, :]
    x = _layer_norm(x, params["emb_ln_g"], params["emb_ln_b"])
    hidden0 = x.reshape(tl_, HIDDEN).astype(jnp.float32)

    # selector matrices: CLS row of every node; CLS row of every center node
    rows = jnp.arange(tl_)
    sel_cls = (rows[None, :] == (jnp.arange(t_) * l_)[:, None]).astype(jnp.float32)       # [T, TL]
    sel_out = (rows[None, :] == (jnp.arange(b_) * m_ * l_)[:, None]).astype(jnp.float32)  # [B, TL]

    # graph-attention bias: attend only within the same batch & to valid neighbors (keys)
    node_batch = jnp.arange(t_) // m_
    valid = jnp.concatenate([jnp.ones((b_, 1), jnp.float32),
                             neighbor_mask.astype(jnp.float32)], axis=1).reshape(t_)
    g_bias = jnp.where((node_batch[:, None] == node_batch[None, :]) & (valid[None, :] > 0.5),
                       0.0, NEG_INF).astype(jnp.float32)                                  # [T, T]

    # node-attention bias: block-diagonal (same node's tokens) + own station key
    q_node = jnp.arange(tl_) // l_
    k_node = jnp.concatenate([q_node, jnp.arange(t_)])
    n_bias = jnp.where(q_node[:, None] == k_node[None, :],
                       0.0, NEG_INF).astype(jnp.float32)                                  # [TL, TL+T]

    args = (hidden0, sel_cls, sel_out, g_bias, n_bias,
            params["g_wqkv"], params["g_bqkv"], params["g_wo"], params["g_bo"],
            params["wqkv"], params["bqkv"], params["wo"], params["bo"],
            params["ln1_g"], params["ln1_b"], params["w1"], params["b1"],
            params["w2"], params["b2"], params["ln2_g"], params["ln2_b"])

    def full_spec(shape):
        nd = len(shape)
        return pl.BlockSpec(tuple(shape), lambda i, _nd=nd: (0,) * _nd)

    out = pl.pallas_call(
        fused_encoder_kernel,
        out_shape=jax.ShapeDtypeStruct((b_, HIDDEN), jnp.float32),
        grid=(1,),
        in_specs=[full_spec(a.shape) for a in args],
        out_specs=full_spec((b_, HIDDEN)),
        compiler_params=pltpu.CompilerParams(dimension_semantics=("arbitrary",)),
    )(*args)
    return out                                                                            # [B, H]


if __name__ == "__main__":
    key = jax.random.PRNGKey(0)
    k_p, k_c, k_n = jax.random.split(key, 3)

    params = init_params(k_p)
    center_input = jax.random.randint(k_c, (BATCH, SEQ), 0, VOCAB, dtype=jnp.int32)
    neighbor_input = jax.random.randint(k_n, (BATCH, NUM_NEI, SEQ), 0, VOCAB, dtype=jnp.int32)
    neighbor_mask = jnp.array([[1, 1, 0], [1, 0, 0]], dtype=jnp.float32)

    fwd = jax.jit(graph_encoder_forward)
    out = fwd(params, center_input, neighbor_input, neighbor_mask)
    out = jax.block_until_ready(out)
    assert out.shape == (BATCH, HIDDEN) and out.dtype == jnp.float32
    assert bool(jnp.all(jnp.isfinite(out)))
    print("KERNEL_OK")
</pallas_src>

<mosaic_0001>
module attributes {stable_mosaic.version = 11 : i64} {
  func.func @fused_encoder_kernel(%arg0: i32, %arg1: memref<64x32xf32, #tpu.memory_space<vmem>>, %arg2: memref<8x64xf32, #tpu.memory_space<vmem>>, %arg3: memref<2x64xf32, #tpu.memory_space<vmem>>, %arg4: memref<8x8xf32, #tpu.memory_space<vmem>>, %arg5: memref<64x72xf32, #tpu.memory_space<vmem>>, %arg6: memref<2x32x96xf32, #tpu.memory_space<vmem>>, %arg7: memref<2x1x96xf32, #tpu.memory_space<vmem>>, %arg8: memref<2x32x32xf32, #tpu.memory_space<vmem>>, %arg9: memref<2x1x32xf32, #tpu.memory_space<vmem>>, %arg10: memref<2x32x96xf32, #tpu.memory_space<vmem>>, %arg11: memref<2x1x96xf32, #tpu.memory_space<vmem>>, %arg12: memref<2x32x32xf32, #tpu.memory_space<vmem>>, %arg13: memref<2x1x32xf32, #tpu.memory_space<vmem>>, %arg14: memref<2x1x32xf32, #tpu.memory_space<vmem>>, %arg15: memref<2x1x32xf32, #tpu.memory_space<vmem>>, %arg16: memref<2x32x64xf32, #tpu.memory_space<vmem>>, %arg17: memref<2x1x64xf32, #tpu.memory_space<vmem>>, %arg18: memref<2x64x32xf32, #tpu.memory_space<vmem>>, %arg19: memref<2x1x32xf32, #tpu.memory_space<vmem>>, %arg20: memref<2x1x32xf32, #tpu.memory_space<vmem>>, %arg21: memref<2x1x32xf32, #tpu.memory_space<vmem>>, %arg22: memref<2x32xf32, #tpu.memory_space<vmem>>) attributes {dimension_semantics = [#tpu.dimension_semantics<arbitrary>], iteration_bounds = array<i64: 1>, scalar_prefetch = 0 : i64, scratch_operands = 0 : i64, tpu.core_type = #tpu.core_type<tc>, window_params = [{pipeline_mode = #tpu.pipeline_mode<synchronous>, transform_indices = @transform_0, window_bounds = array<i64: 64, 32>}, {pipeline_mode = #tpu.pipeline_mode<synchronous>, transform_indices = @transform_1, window_bounds = array<i64: 8, 64>}, {pipeline_mode = #tpu.pipeline_mode<synchronous>, transform_indices = @transform_2, window_bounds = array<i64: 2, 64>}, {pipeline_mode = #tpu.pipeline_mode<synchronous>, transform_indices = @transform_3, window_bounds = array<i64: 8, 8>}, {pipeline_mode = #tpu.pipeline_mode<synchronous>, transform_indices = @transform_4, window_bounds = array<i64: 64, 72>}, {pipeline_mode = #tpu.pipeline_mode<synchronous>, transform_indices = @transform_5, window_bounds = array<i64: 2, 32, 96>}, {pipeline_mode = #tpu.pipeline_mode<synchronous>, transform_indices = @transform_6, window_bounds = array<i64: 2, 1, 96>}, {pipeline_mode = #tpu.pipeline_mode<synchronous>, transform_indices = @transform_7, window_bounds = array<i64: 2, 32, 32>}, {pipeline_mode = #tpu.pipeline_mode<synchronous>, transform_indices = @transform_8, window_bounds = array<i64: 2, 1, 32>}, {pipeline_mode = #tpu.pipeline_mode<synchronous>, transform_indices = @transform_9, window_bounds = array<i64: 2, 32, 96>}, {pipeline_mode = #tpu.pipeline_mode<synchronous>, transform_indices = @transform_10, window_bounds = array<i64: 2, 1, 96>}, {pipeline_mode = #tpu.pipeline_mode<synchronous>, transform_indices = @transform_11, window_bounds = array<i64: 2, 32, 32>}, {pipeline_mode = #tpu.pipeline_mode<synchronous>, transform_indices = @transform_12, window_bounds = array<i64: 2, 1, 32>}, {pipeline_mode = #tpu.pipeline_mode<synchronous>, transform_indices = @transform_13, window_bounds = array<i64: 2, 1, 32>}, {pipeline_mode = #tpu.pipeline_mode<synchronous>, transform_indices = @transform_14, window_bounds = array<i64: 2, 1, 32>}, {pipeline_mode = #tpu.pipeline_mode<synchronous>, transform_indices = @transform_15, window_bounds = array<i64: 2, 32, 64>}, {pipeline_mode = #tpu.pipeline_mode<synchronous>, transform_indices = @transform_16, window_bounds = array<i64: 2, 1, 64>}, {pipeline_mode = #tpu.pipeline_mode<synchronous>, transform_indices = @transform_17, window_bounds = array<i64: 2, 64, 32>}, {pipeline_mode = #tpu.pipeline_mode<synchronous>, transform_indices = @transform_18, window_bounds = array<i64: 2, 1, 32>}, {pipeline_mode = #tpu.pipeline_mode<synchronous>, transform_indices = @transform_19, window_bounds = array<i64: 2, 1, 32>}, {pipeline_mode = #tpu.pipeline_mode<synchronous>, transform_indices = @transform_20, window_bounds = array<i64: 2, 1, 32>}, {pipeline_mode = #tpu.pipeline_mode<synchronous>, transform_indices = @transform_21, window_bounds = array<i64: 2, 32>}]} {
    %c0 = arith.constant 0 : index
    %c0_0 = arith.constant 0 : index
    %0 = vector.load %arg1[%c0, %c0_0] : memref<64x32xf32, #tpu.memory_space<vmem>>, vector<64x32xf32>
    %c0_1 = arith.constant 0 : index
    %c0_2 = arith.constant 0 : index
    %1 = vector.load %arg2[%c0_1, %c0_2] : memref<8x64xf32, #tpu.memory_space<vmem>>, vector<8x64xf32>
    %c0_3 = arith.constant 0 : index
    %c0_4 = arith.constant 0 : index
    %2 = vector.load %arg4[%c0_3, %c0_4] : memref<8x8xf32, #tpu.memory_space<vmem>>, vector<8x8xf32>
    %c0_5 = arith.constant 0 : index
    %c0_6 = arith.constant 0 : index
    %3 = vector.load %arg5[%c0_5, %c0_6] : memref<64x72xf32, #tpu.memory_space<vmem>>, vector<64x72xf32>
    %cst = arith.constant dense<0.000000e+00> : vector<8x32xf32>
    %4 = tpu.matmul %1, %0, %cst {dimension_numbers = #tpu.dot_dimension_numbers<[1], [0], [0], [1], [0, 0, 1, 1], [], []>} : vector<8x64xf32>, vector<64x32xf32>, vector<8x32xf32> -> vector<8x32xf32>
    %c0_7 = arith.constant 0 : index
    %c0_8 = arith.constant 0 : index
    %c0_9 = arith.constant 0 : index
    %5 = vector.load %arg6[%c0_7, %c0_8, %c0_9] : memref<2x32x96xf32, #tpu.memory_space<vmem>>, vector<1x32x96xf32>
    %6 = vector.shape_cast %5 : vector<1x32x96xf32> to vector<32x96xf32>
    %cst_10 = arith.constant dense<0.000000e+00> : vector<8x96xf32>
    %7 = tpu.matmul %4, %6, %cst_10 {dimension_numbers = #tpu.dot_dimension_numbers<[1], [0], [0], [1], [0, 0, 1, 1], [], []>} : vector<8x32xf32>, vector<32x96xf32>, vector<8x96xf32> -> vector<8x96xf32>
    %c0_11 = arith.constant 0 : index
    %c0_12 = arith.constant 0 : index
    %c0_13 = arith.constant 0 : index
    %8 = vector.load %arg7[%c0_11, %c0_12, %c0_13] : memref<2x1x96xf32, #tpu.memory_space<vmem>>, vector<1x1x96xf32>
    %9 = vector.shape_cast %8 : vector<1x1x96xf32> to vector<1x96xf32>
    %10 = vector.broadcast %9 : vector<1x96xf32> to vector<8x96xf32>
    %11 = arith.addf %7, %10 : vector<8x96xf32>
    %12 = vector.extract_strided_slice %11 {offsets = [0, 0], sizes = [8, 32], strides = [1, 1]} : vector<8x96xf32> to vector<8x32xf32>
    %13 = vector.extract_strided_slice %11 {offsets = [0, 32], sizes = [8, 32], strides = [1, 1]} : vector<8x96xf32> to vector<8x32xf32>
    %14 = vector.extract_strided_slice %11 {offsets = [0, 64], sizes = [8, 32], strides = [1, 1]} : vector<8x96xf32> to vector<8x32xf32>
    %15 = tpu.transpose %13, [1, 0] : vector<8x32xf32> -> vector<32x8xf32>
    %16 = vector.extract_strided_slice %12 {offsets = [0, 0], sizes = [8, 8], strides = [1, 1]} : vector<8x32xf32> to vector<8x8xf32>
    %17 = vector.extract_strided_slice %15 {offsets = [0, 0], sizes = [8, 8], strides = [1, 1]} : vector<32x8xf32> to vector<8x8xf32>
    %cst_14 = arith.constant dense<0.000000e+00> : vector<8x8xf32>
    %18 = tpu.matmul %16, %17, %cst_14 {dimension_numbers = #tpu.dot_dimension_numbers<[1], [0], [0], [1], [0, 0, 1, 1], [], []>} : vector<8x8xf32>, vector<8x8xf32>, vector<8x8xf32> -> vector<8x8xf32>
    %cst_15 = arith.constant 0.353553385 : f32
    %19 = vector.broadcast %cst_15 : f32 to vector<8x8xf32>
    %20 = arith.mulf %18, %19 : vector<8x8xf32>
    %21 = arith.addf %20, %2 : vector<8x8xf32>
    %cst_16 = arith.constant dense<0xFF800000> : vector<8xf32>
    %22 = vector.multi_reduction <maximumf>, %21, %cst_16 [1] : vector<8x8xf32> to vector<8xf32>
    %23 = vector.shape_cast %22 : vector<8xf32> to vector<8x1xf32>
    %24 = vector.broadcast %23 : vector<8x1xf32> to vector<8x8xf32>
    %25 = arith.subf %21, %24 : vector<8x8xf32>
    %26 = math.exp %25 : vector<8x8xf32>
    %cst_17 = arith.constant dense<0.000000e+00> : vector<8xf32>
    %27 = vector.multi_reduction <add>, %26, %cst_17 [1] : vector<8x8xf32> to vector<8xf32>
    %28 = vector.shape_cast %27 : vector<8xf32> to vector<8x1xf32>
    %29 = tpu.reciprocal %28 {approx = true} : vector<8x1xf32> -> vector<8x1xf32>
    %30 = vector.broadcast %29 : vector<8x1xf32> to vector<8x8xf32>
    %31 = arith.mulf %26, %30 : vector<8x8xf32>
    %32 = vector.extract_strided_slice %14 {offsets = [0, 0], sizes = [8, 8], strides = [1, 1]} : vector<8x32xf32> to vector<8x8xf32>
    %cst_18 = arith.constant dense<0.000000e+00> : vector<8x8xf32>
    %33 = tpu.matmul %31, %32, %cst_18 {dimension_numbers = #tpu.dot_dimension_numbers<[1], [0], [0], [1], [0, 0, 1, 1], [], []>} : vector<8x8xf32>, vector<8x8xf32>, vector<8x8xf32> -> vector<8x8xf32>
    %34 = vector.extract_strided_slice %12 {offsets = [0, 8], sizes = [8, 8], strides = [1, 1]} : vector<8x32xf32> to vector<8x8xf32>
    %35 = vector.extract_strided_slice %15 {offsets = [8, 0], sizes = [8, 8], strides = [1, 1]} : vector<32x8xf32> to vector<8x8xf32>
    %cst_19 = arith.constant dense<0.000000e+00> : vector<8x8xf32>
    %36 = tpu.matmul %34, %35, %cst_19 {dimension_numbers = #tpu.dot_dimension_numbers<[1], [0], [0], [1], [0, 0, 1, 1], [], []>} : vector<8x8xf32>, vector<8x8xf32>, vector<8x8xf32> -> vector<8x8xf32>
    %cst_20 = arith.constant 0.353553385 : f32
    %37 = vector.broadcast %cst_20 : f32 to vector<8x8xf32>
    %38 = arith.mulf %36, %37 : vector<8x8xf32>
    %39 = arith.addf %38, %2 : vector<8x8xf32>
    %cst_21 = arith.constant dense<0xFF800000> : vector<8xf32>
    %40 = vector.multi_reduction <maximumf>, %39, %cst_21 [1] : vector<8x8xf32> to vector<8xf32>
    %41 = vector.shape_cast %40 : vector<8xf32> to vector<8x1xf32>
    %42 = vector.broadcast %41 : vector<8x1xf32> to vector<8x8xf32>
    %43 = arith.subf %39, %42 : vector<8x8xf32>
    %44 = math.exp %43 : vector<8x8xf32>
    %cst_22 = arith.constant dense<0.000000e+00> : vector<8xf32>
    %45 = vector.multi_reduction <add>, %44, %cst_22 [1] : vector<8x8xf32> to vector<8xf32>
    %46 = vector.shape_cast %45 : vector<8xf32> to vector<8x1xf32>
    %47 = tpu.reciprocal %46 {approx = true} : vector<8x1xf32> -> vector<8x1xf32>
    %48 = vector.broadcast %47 : vector<8x1xf32> to vector<8x8xf32>
    %49 = arith.mulf %44, %48 : vector<8x8xf32>
    %50 = vector.extract_strided_slice %14 {offsets = [0, 8], sizes = [8, 8], strides = [1, 1]} : vector<8x32xf32> to vector<8x8xf32>
    %cst_23 = arith.constant dense<0.000000e+00> : vector<8x8xf32>
    %51 = tpu.matmul %49, %50, %cst_23 {dimension_numbers = #tpu.dot_dimension_numbers<[1], [0], [0], [1], [0, 0, 1, 1], [], []>} : vector<8x8xf32>, vector<8x8xf32>, vector<8x8xf32> -> vector<8x8xf32>
    %52 = vector.extract_strided_slice %12 {offsets = [0, 16], sizes = [8, 8], strides = [1, 1]} : vector<8x32xf32> to vector<8x8xf32>
    %53 = vector.extract_strided_slice %15 {offsets = [16, 0], sizes = [8, 8], strides = [1, 1]} : vector<32x8xf32> to vector<8x8xf32>
    %cst_24 = arith.constant dense<0.000000e+00> : vector<8x8xf32>
    %54 = tpu.matmul %52, %53, %cst_24 {dimension_numbers = #tpu.dot_dimension_numbers<[1], [0], [0], [1], [0, 0, 1, 1], [], []>} : vector<8x8xf32>, vector<8x8xf32>, vector<8x8xf32> -> vector<8x8xf32>
    %cst_25 = arith.constant 0.353553385 : f32
    %55 = vector.broadcast %cst_25 : f32 to vector<8x8xf32>
    %56 = arith.mulf %54, %55 : vector<8x8xf32>
    %57 = arith.addf %56, %2 : vector<8x8xf32>
    %cst_26 = arith.constant dense<0xFF800000> : vector<8xf32>
    %58 = vector.multi_reduction <maximumf>, %57, %cst_26 [1] : vector<8x8xf32> to vector<8xf32>
    %59 = vector.shape_cast %58 : vector<8xf32> to vector<8x1xf32>
    %60 = vector.broadcast %59 : vector<8x1xf32> to vector<8x8xf32>
    %61 = arith.subf %57, %60 : vector<8x8xf32>
    %62 = math.exp %61 : vector<8x8xf32>
    %cst_27 = arith.constant dense<0.000000e+00> : vector<8xf32>
    %63 = vector.multi_reduction <add>, %62, %cst_27 [1] : vector<8x8xf32> to vector<8xf32>
    %64 = vector.shape_cast %63 : vector<8xf32> to vector<8x1xf32>
    %65 = tpu.reciprocal %64 {approx = true} : vector<8x1xf32> -> vector<8x1xf32>
    %66 = vector.broadcast %65 : vector<8x1xf32> to vector<8x8xf32>
    %67 = arith.mulf %62, %66 : vector<8x8xf32>
    %68 = vector.extract_strided_slice %14 {offsets = [0, 16], sizes = [8, 8], strides = [1, 1]} : vector<8x32xf32> to vector<8x8xf32>
    %cst_28 = arith.constant dense<0.000000e+00> : vector<8x8xf32>
    %69 = tpu.matmul %67, %68, %cst_28 {dimension_numbers = #tpu.dot_dimension_numbers<[1], [0], [0], [1], [0, 0, 1, 1], [], []>} : vector<8x8xf32>, vector<8x8xf32>, vector<8x8xf32> -> vector<8x8xf32>
    %70 = vector.extract_strided_slice %12 {offsets = [0, 24], sizes = [8, 8], strides = [1, 1]} : vector<8x32xf32> to vector<8x8xf32>
    %71 = vector.extract_strided_slice %15 {offsets = [24, 0], sizes = [8, 8], strides = [1, 1]} : vector<32x8xf32> to vector<8x8xf32>
    %cst_29 = arith.constant dense<0.000000e+00> : vector<8x8xf32>
    %72 = tpu.matmul %70, %71, %cst_29 {dimension_numbers = #tpu.dot_dimension_numbers<[1], [0], [0], [1], [0, 0, 1, 1], [], []>} : vector<8x8xf32>, vector<8x8xf32>, vector<8x8xf32> -> vector<8x8xf32>
    %cst_30 = arith.constant 0.353553385 : f32
    %73 = vector.broadcast %cst_30 : f32 to vector<8x8xf32>
    %74 = arith.mulf %72, %73 : vector<8x8xf32>
    %75 = arith.addf %74, %2 : vector<8x8xf32>
    %cst_31 = arith.constant dense<0xFF800000> : vector<8xf32>
    %76 = vector.multi_reduction <maximumf>, %75, %cst_31 [1] : vector<8x8xf32> to vector<8xf32>
    %77 = vector.shape_cast %76 : vector<8xf32> to vector<8x1xf32>
    %78 = vector.broadcast %77 : vector<8x1xf32> to vector<8x8xf32>
    %79 = arith.subf %75, %78 : vector<8x8xf32>
    %80 = math.exp %79 : vector<8x8xf32>
    %cst_32 = arith.constant dense<0.000000e+00> : vector<8xf32>
    %81 = vector.multi_reduction <add>, %80, %cst_32 [1] : vector<8x8xf32> to vector<8xf32>
    %82 = vector.shape_cast %81 : vector<8xf32> to vector<8x1xf32>
    %83 = tpu.reciprocal %82 {approx = true} : vector<8x1xf32> -> vector<8x1xf32>
    %84 = vector.broadcast %83 : vector<8x1xf32> to vector<8x8xf32>
    %85 = arith.mulf %80, %84 : vector<8x8xf32>
    %86 = vector.extract_strided_slice %14 {offsets = [0, 24], sizes = [8, 8], strides = [1, 1]} : vector<8x32xf32> to vector<8x8xf32>
    %cst_33 = arith.constant dense<0.000000e+00> : vector<8x8xf32>
    %87 = tpu.matmul %85, %86, %cst_33 {dimension_numbers = #tpu.dot_dimension_numbers<[1], [0], [0], [1], [0, 0, 1, 1], [], []>} : vector<8x8xf32>, vector<8x8xf32>, vector<8x8xf32> -> vector<8x8xf32>
    %88 = tpu.concatenate %33, %51, %69, %87 in 1 : vector<8x8xf32>, vector<8x8xf32>, vector<8x8xf32>, vector<8x8xf32> -> vector<8x32xf32>
    %c0_34 = arith.constant 0 : index
    %c0_35 = arith.constant 0 : index
    %c0_36 = arith.constant 0 : index
    %89 = vector.load %arg8[%c0_34, %c0_35, %c0_36] : memref<2x32x32xf32, #tpu.memory_space<vmem>>, vector<1x32x32xf32>
    %90 = vector.shape_cast %89 : vector<1x32x32xf32> to vector<32x32xf32>
    %cst_37 = arith.constant dense<0.000000e+00> : vector<8x32xf32>
    %91 = tpu.matmul %88, %90, %cst_37 {dimension_numbers = #tpu.dot_dimension_numbers<[1], [0], [0], [1], [0, 0, 1, 1], [], []>} : vector<8x32xf32>, vector<32x32xf32>, vector<8x32xf32> -> vector<8x32xf32>
    %c0_38 = arith.constant 0 : index
    %c0_39 = arith.constant 0 : index
    %c0_40 = arith.constant 0 : index
    %92 = vector.load %arg9[%c0_38, %c0_39, %c0_40] : memref<2x1x32xf32, #tpu.memory_space<vmem>>, vector<1x1x32xf32>
    %93 = vector.shape_cast %92 : vector<1x1x32xf32> to vector<1x32xf32>
    %94 = vector.broadcast %93 : vector<1x32xf32> to vector<8x32xf32>
    %95 = arith.addf %91, %94 : vector<8x32xf32>
    %96 = tpu.concatenate %0, %95 in 0 : vector<64x32xf32>, vector<8x32xf32> -> vector<72x32xf32>
    %c0_41 = arith.constant 0 : index
    %c0_42 = arith.constant 0 : index
    %c0_43 = arith.constant 0 : index
    %97 = vector.load %arg10[%c0_41, %c0_42, %c0_43] : memref<2x32x96xf32, #tpu.memory_space<vmem>>, vector<1x32x96xf32>
    %98 = vector.shape_cast %97 : vector<1x32x96xf32> to vector<32x96xf32>
    %cst_44 = arith.constant dense<0.000000e+00> : vector<72x96xf32>
    %99 = tpu.matmul %96, %98, %cst_44 {dimension_numbers = #tpu.dot_dimension_numbers<[1], [0], [0], [1], [0, 0, 1, 1], [], []>} : vector<72x32xf32>, vector<32x96xf32>, vector<72x96xf32> -> vector<72x96xf32>
    %c0_45 = arith.constant 0 : index
    %c0_46 = arith.constant 0 : index
    %c0_47 = arith.constant 0 : index
    %100 = vector.load %arg11[%c0_45, %c0_46, %c0_47] : memref<2x1x96xf32, #tpu.memory_space<vmem>>, vector<1x1x96xf32>
    %101 = vector.shape_cast %100 : vector<1x1x96xf32> to vector<1x96xf32>
    %102 = vector.broadcast %101 : vector<1x96xf32> to vector<72x96xf32>
    %103 = arith.addf %99, %102 : vector<72x96xf32>
    %104 = vector.extract_strided_slice %103 {offsets = [0, 0], sizes = [64, 32], strides = [1, 1]} : vector<72x96xf32> to vector<64x32xf32>
    %105 = vector.extract_strided_slice %103 {offsets = [0, 32], sizes = [72, 32], strides = [1, 1]} : vector<72x96xf32> to vector<72x32xf32>
    %106 = vector.extract_strided_slice %103 {offsets = [0, 64], sizes = [72, 32], strides = [1, 1]} : vector<72x96xf32> to vector<72x32xf32>
    %107 = tpu.transpose %105, [1, 0] : vector<72x32xf32> -> vector<32x72xf32>
    %108 = vector.extract_strided_slice %104 {offsets = [0, 0], sizes = [64, 8], strides = [1, 1]} : vector<64x32xf32> to vector<64x8xf32>
    %109 = vector.extract_strided_slice %107 {offsets = [0, 0], sizes = [8, 72], strides = [1, 1]} : vector<32x72xf32> to vector<8x72xf32>
    %cst_48 = arith.constant dense<0.000000e+00> : vector<64x72xf32>
    %110 = tpu.matmul %108, %109, %cst_48 {dimension_numbers = #tpu.dot_dimension_numbers<[1], [0], [0], [1], [0, 0, 1, 1], [], []>} : vector<64x8xf32>, vector<8x72xf32>, vector<64x72xf32> -> vector<64x72xf32>
    %cst_49 = arith.constant 0.353553385 : f32
    %111 = vector.broadcast %cst_49 : f32 to vector<64x72xf32>
    %112 = arith.mulf %110, %111 : vector<64x72xf32>
    %113 = arith.addf %112, %3 : vector<64x72xf32>
    %cst_50 = arith.constant dense<0xFF800000> : vector<64xf32>
    %114 = vector.multi_reduction <maximumf>, %113, %cst_50 [1] : vector<64x72xf32> to vector<64xf32>
    %115 = vector.shape_cast %114 : vector<64xf32> to vector<64x1xf32>
    %116 = vector.broadcast %115 : vector<64x1xf32> to vector<64x72xf32>
    %117 = arith.subf %113, %116 : vector<64x72xf32>
    %118 = math.exp %117 : vector<64x72xf32>
    %cst_51 = arith.constant dense<0.000000e+00> : vector<64xf32>
    %119 = vector.multi_reduction <add>, %118, %cst_51 [1] : vector<64x72xf32> to vector<64xf32>
    %120 = vector.shape_cast %119 : vector<64xf32> to vector<64x1xf32>
    %121 = tpu.reciprocal %120 {approx = true} : vector<64x1xf32> -> vector<64x1xf32>
    %122 = vector.broadcast %121 : vector<64x1xf32> to vector<64x72xf32>
    %123 = arith.mulf %118, %122 : vector<64x72xf32>
    %124 = vector.extract_strided_slice %106 {offsets = [0, 0], sizes = [72, 8], strides = [1, 1]} : vector<72x32xf32> to vector<72x8xf32>
    %cst_52 = arith.constant dense<0.000000e+00> : vector<64x8xf32>
    %125 = tpu.matmul %123, %124, %cst_52 {dimension_numbers = #tpu.dot_dimension_numbers<[1], [0], [0], [1], [0, 0, 1, 1], [], []>} : vector<64x72xf32>, vector<72x8xf32>, vector<64x8xf32> -> vector<64x8xf32>
    %126 = vector.extract_strided_slice %104 {offsets = [0, 8], sizes = [64, 8], strides = [1, 1]} : vector<64x32xf32> to vector<64x8xf32>
    %127 = vector.extract_strided_slice %107 {offsets = [8, 0], sizes = [8, 72], strides = [1, 1]} : vector<32x72xf32> to vector<8x72xf32>
    %cst_53 = arith.constant dense<0.000000e+00> : vector<64x72xf32>
    %128 = tpu.matmul %126, %127, %cst_53 {dimension_numbers = #tpu.dot_dimension_numbers<[1], [0], [0], [1], [0, 0, 1, 1], [], []>} : vector<64x8xf32>, vector<8x72xf32>, vector<64x72xf32> -> vector<64x72xf32>
    %cst_54 = arith.constant 0.353553385 : f32
    %129 = vector.broadcast %cst_54 : f32 to vector<64x72xf32>
    %130 = arith.mulf %128, %129 : vector<64x72xf32>
    %131 = arith.addf %130, %3 : vector<64x72xf32>
    %cst_55 = arith.constant dense<0xFF800000> : vector<64xf32>
    %132 = vector.multi_reduction <maximumf>, %131, %cst_55 [1] : vector<64x72xf32> to vector<64xf32>
    %133 = vector.shape_cast %132 : vector<64xf32> to vector<64x1xf32>
    %134 = vector.broadcast %133 : vector<64x1xf32> to vector<64x72xf32>
    %135 = arith.subf %131, %134 : vector<64x72xf32>
    %136 = math.exp %135 : vector<64x72xf32>
    %cst_56 = arith.constant dense<0.000000e+00> : vector<64xf32>
    %137 = vector.multi_reduction <add>, %136, %cst_56 [1] : vector<64x72xf32> to vector<64xf32>
    %138 = vector.shape_cast %137 : vector<64xf32> to vector<64x1xf32>
    %139 = tpu.reciprocal %138 {approx = true} : vector<64x1xf32> -> vector<64x1xf32>
    %140 = vector.broadcast %139 : vector<64x1xf32> to vector<64x72xf32>
    %141 = arith.mulf %136, %140 : vector<64x72xf32>
    %142 = vector.extract_strided_slice %106 {offsets = [0, 8], sizes = [72, 8], strides = [1, 1]} : vector<72x32xf32> to vector<72x8xf32>
    %cst_57 = arith.constant dense<0.000000e+00> : vector<64x8xf32>
    %143 = tpu.matmul %141, %142, %cst_57 {dimension_numbers = #tpu.dot_dimension_numbers<[1], [0], [0], [1], [0, 0, 1, 1], [], []>} : vector<64x72xf32>, vector<72x8xf32>, vector<64x8xf32> -> vector<64x8xf32>
    %144 = vector.extract_strided_slice %104 {offsets = [0, 16], sizes = [64, 8], strides = [1, 1]} : vector<64x32xf32> to vector<64x8xf32>
    %145 = vector.extract_strided_slice %107 {offsets = [16, 0], sizes = [8, 72], strides = [1, 1]} : vector<32x72xf32> to vector<8x72xf32>
    %cst_58 = arith.constant dense<0.000000e+00> : vector<64x72xf32>
    %146 = tpu.matmul %144, %145, %cst_58 {dimension_numbers = #tpu.dot_dimension_numbers<[1], [0], [0], [1], [0, 0, 1, 1], [], []>} : vector<64x8xf32>, vector<8x72xf32>, vector<64x72xf32> -> vector<64x72xf32>
    %cst_59 = arith.constant 0.353553385 : f32
    %147 = vector.broadcast %cst_59 : f32 to vector<64x72xf32>
    %148 = arith.mulf %146, %147 : vector<64x72xf32>
    %149 = arith.addf %148, %3 : vector<64x72xf32>
    %cst_60 = arith.constant dense<0xFF800000> : vector<64xf32>
    %150 = vector.multi_reduction <maximumf>, %149, %cst_60 [1] : vector<64x72xf32> to vector<64xf32>
    %151 = vector.shape_cast %150 : vector<64xf32> to vector<64x1xf32>
    %152 = vector.broadcast %151 : vector<64x1xf32> to vector<64x72xf32>
    %153 = arith.subf %149, %152 : vector<64x72xf32>
    %154 = math.exp %153 : vector<64x72xf32>
    %cst_61 = arith.constant dense<0.000000e+00> : vector<64xf32>
    %155 = vector.multi_reduction <add>, %154, %cst_61 [1] : vector<64x72xf32> to vector<64xf32>
    %156 = vector.shape_cast %155 : vector<64xf32> to vector<64x1xf32>
    %157 = tpu.reciprocal %156 {approx = true} : vector<64x1xf32> -> vector<64x1xf32>
    %158 = vector.broadcast %157 : vector<64x1xf32> to vector<64x72xf32>
    %159 = arith.mulf %154, %158 : vector<64x72xf32>
    %160 = vector.extract_strided_slice %106 {offsets = [0, 16], sizes = [72, 8], strides = [1, 1]} : vector<72x32xf32> to vector<72x8xf32>
    %cst_62 = arith.constant dense<0.000000e+00> : vector<64x8xf32>
    %161 = tpu.matmul %159, %160, %cst_62 {dimension_numbers = #tpu.dot_dimension_numbers<[1], [0], [0], [1], [0, 0, 1, 1], [], []>} : vector<64x72xf32>, vector<72x8xf32>, vector<64x8xf32> -> vector<64x8xf32>
    %162 = vector.extract_strided_slice %104 {offsets = [0, 24], sizes = [64, 8], strides = [1, 1]} : vector<64x32xf32> to vector<64x8xf32>
    %163 = vector.extract_strided_slice %107 {offsets = [24, 0], sizes = [8, 72], strides = [1, 1]} : vector<32x72xf32> to vector<8x72xf32>
    %cst_63 = arith.constant dense<0.000000e+00> : vector<64x72xf32>
    %164 = tpu.matmul %162, %163, %cst_63 {dimension_numbers = #tpu.dot_dimension_numbers<[1], [0], [0], [1], [0, 0, 1, 1], [], []>} : vector<64x8xf32>, vector<8x72xf32>, vector<64x72xf32> -> vector<64x72xf32>
    %cst_64 = arith.constant 0.353553385 : f32
    %165 = vector.broadcast %cst_64 : f32 to vector<64x72xf32>
    %166 = arith.mulf %164, %165 : vector<64x72xf32>
    %167 = arith.addf %166, %3 : vector<64x72xf32>
    %cst_65 = arith.constant dense<0xFF800000> : vector<64xf32>
    %168 = vector.multi_reduction <maximumf>, %167, %cst_65 [1] : vector<64x72xf32> to vector<64xf32>
    %169 = vector.shape_cast %168 : vector<64xf32> to vector<64x1xf32>
    %170 = vector.broadcast %169 : vector<64x1xf32> to vector<64x72xf32>
    %171 = arith.subf %167, %170 : vector<64x72xf32>
    %172 = math.exp %171 : vector<64x72xf32>
    %cst_66 = arith.constant dense<0.000000e+00> : vector<64xf32>
    %173 = vector.multi_reduction <add>, %172, %cst_66 [1] : vector<64x72xf32> to vector<64xf32>
    %174 = vector.shape_cast %173 : vector<64xf32> to vector<64x1xf32>
    %175 = tpu.reciprocal %174 {approx = true} : vector<64x1xf32> -> vector<64x1xf32>
    %176 = vector.broadcast %175 : vector<64x1xf32> to vector<64x72xf32>
    %177 = arith.mulf %172, %176 : vector<64x72xf32>
    %178 = vector.extract_strided_slice %106 {offsets = [0, 24], sizes = [72, 8], strides = [1, 1]} : vector<72x32xf32> to vector<72x8xf32>
    %cst_67 = arith.constant dense<0.000000e+00> : vector<64x8xf32>
    %179 = tpu.matmul %177, %178, %cst_67 {dimension_numbers = #tpu.dot_dimension_numbers<[1], [0], [0], [1], [0, 0, 1, 1], [], []>} : vector<64x72xf32>, vector<72x8xf32>, vector<64x8xf32> -> vector<64x8xf32>
    %180 = tpu.concatenate %125, %143, %161, %179 in 1 : vector<64x8xf32>, vector<64x8xf32>, vector<64x8xf32>, vector<64x8xf32> -> vector<64x32xf32>
    %c0_68 = arith.constant 0 : index
    %c0_69 = arith.constant 0 : index
    %c0_70 = arith.constant 0 : index
    %181 = vector.load %arg12[%c0_68, %c0_69, %c0_70] : memref<2x32x32xf32, #tpu.memory_space<vmem>>, vector<1x32x32xf32>
    %182 = vector.shape_cast %181 : vector<1x32x32xf32> to vector<32x32xf32>
    %cst_71 = arith.constant dense<0.000000e+00> : vector<64x32xf32>
    %183 = tpu.matmul %180, %182, %cst_71 {dimension_numbers = #tpu.dot_dimension_numbers<[1], [0], [0], [1], [0, 0, 1, 1], [], []>} : vector<64x32xf32>, vector<32x32xf32>, vector<64x32xf32> -> vector<64x32xf32>
    %c0_72 = arith.constant 0 : index
    %c0_73 = arith.constant 0 : index
    %c0_74 = arith.constant 0 : index
    %184 = vector.load %arg13[%c0_72, %c0_73, %c0_74] : memref<2x1x32xf32, #tpu.memory_space<vmem>>, vector<1x1x32xf32>
    %185 = vector.shape_cast %184 : vector<1x1x32xf32> to vector<1x32xf32>
    %186 = vector.broadcast %185 : vector<1x32xf32> to vector<64x32xf32>
    %187 = arith.addf %183, %186 : vector<64x32xf32>
    %188 = arith.addf %0, %187 : vector<64x32xf32>
    %c0_75 = arith.constant 0 : index
    %c0_76 = arith.constant 0 : index
    %c0_77 = arith.constant 0 : index
    %189 = vector.load %arg14[%c0_75, %c0_76, %c0_77] : memref<2x1x32xf32, #tpu.memory_space<vmem>>, vector<1x1x32xf32>
    %190 = vector.shape_cast %189 : vector<1x1x32xf32> to vector<1x32xf32>
    %c0_78 = arith.constant 0 : index
    %c0_79 = arith.constant 0 : index
    %c0_80 = arith.constant 0 : index
    %191 = vector.load %arg15[%c0_78, %c0_79, %c0_80] : memref<2x1x32xf32, #tpu.memory_space<vmem>>, vector<1x1x32xf32>
    %192 = vector.shape_cast %191 : vector<1x1x32xf32> to vector<1x32xf32>
    %cst_81 = arith.constant dense<0.000000e+00> : vector<64xf32>
    %193 = vector.multi_reduction <add>, %188, %cst_81 [1] : vector<64x32xf32> to vector<64xf32>
    %194 = vector.shape_cast %193 : vector<64xf32> to vector<64x1xf32>
    %cst_82 = arith.constant 3.200000e+01 : f32
    %195 = vector.broadcast %cst_82 : f32 to vector<64x1xf32>
    %196 = arith.divf %194, %195 : vector<64x1xf32>
    %197 = vector.broadcast %196 : vector<64x1xf32> to vector<64x32xf32>
    %198 = arith.subf %188, %197 : vector<64x32xf32>
    %199 = arith.mulf %198, %198 : vector<64x32xf32>
    %cst_83 = arith.constant dense<0.000000e+00> : vector<64xf32>
    %200 = vector.multi_reduction <add>, %199, %cst_83 [1] : vector<64x32xf32> to vector<64xf32>
    %201 = vector.shape_cast %200 : vector<64xf32> to vector<64x1xf32>
    %cst_84 = arith.constant 3.200000e+01 : f32
    %202 = vector.broadcast %cst_84 : f32 to vector<64x1xf32>
    %203 = arith.divf %201, %202 : vector<64x1xf32>
    %204 = vector.broadcast %196 : vector<64x1xf32> to vector<64x32xf32>
    %205 = arith.subf %188, %204 : vector<64x32xf32>
    %cst_85 = arith.constant 9.99999996E-13 : f32
    %206 = vector.broadcast %cst_85 : f32 to vector<64x1xf32>
    %207 = arith.addf %203, %206 : vector<64x1xf32>
    %208 = math.rsqrt %207 : vector<64x1xf32>
    %209 = vector.broadcast %208 : vector<64x1xf32> to vector<64x32xf32>
    %210 = arith.mulf %205, %209 : vector<64x32xf32>
    %211 = vector.broadcast %190 : vector<1x32xf32> to vector<64x32xf32>
    %212 = arith.mulf %210, %211 : vector<64x32xf32>
    %213 = vector.broadcast %192 : vector<1x32xf32> to vector<64x32xf32>
    %214 = arith.addf %212, %213 : vector<64x32xf32>
    %c0_86 = arith.constant 0 : index
    %c0_87 = arith.constant 0 : index
    %c0_88 = arith.constant 0 : index
    %215 = vector.load %arg16[%c0_86, %c0_87, %c0_88] : memref<2x32x64xf32, #tpu.memory_space<vmem>>, vector<1x32x64xf32>
    %216 = vector.shape_cast %215 : vector<1x32x64xf32> to vector<32x64xf32>
    %cst_89 = arith.constant dense<0.000000e+00> : vector<64x64xf32>
    %217 = tpu.matmul %214, %216, %cst_89 {dimension_numbers = #tpu.dot_dimension_numbers<[1], [0], [0], [1], [0, 0, 1, 1], [], []>} : vector<64x32xf32>, vector<32x64xf32>, vector<64x64xf32> -> vector<64x64xf32>
    %c0_90 = arith.constant 0 : index
    %c0_91 = arith.constant 0 : index
    %c0_92 = arith.constant 0 : index
    %218 = vector.load %arg17[%c0_90, %c0_91, %c0_92] : memref<2x1x64xf32, #tpu.memory_space<vmem>>, vector<1x1x64xf32>
    %219 = vector.shape_cast %218 : vector<1x1x64xf32> to vector<1x64xf32>
    %220 = vector.broadcast %219 : vector<1x64xf32> to vector<64x64xf32>
    %221 = arith.addf %217, %220 : vector<64x64xf32>
    %cst_93 = arith.constant 5.000000e-01 : f32
    %222 = vector.broadcast %cst_93 : f32 to vector<64x64xf32>
    %223 = arith.mulf %222, %221 : vector<64x64xf32>
    %cst_94 = arith.constant 4.471500e-02 : f32
    %224 = vector.broadcast %cst_94 : f32 to vector<64x64xf32>
    %225 = arith.mulf %224, %221 : vector<64x64xf32>
    %226 = arith.mulf %225, %221 : vector<64x64xf32>
    %227 = arith.mulf %226, %221 : vector<64x64xf32>
    %228 = arith.addf %221, %227 : vector<64x64xf32>
    %cst_95 = arith.constant 0.797884583 : f32
    %229 = vector.broadcast %cst_95 : f32 to vector<64x64xf32>
    %230 = arith.mulf %229, %228 : vector<64x64xf32>
    %231 = math.tanh %230 : vector<64x64xf32>
    %cst_96 = arith.constant 1.000000e+00 : f32
    %232 = vector.broadcast %cst_96 : f32 to vector<64x64xf32>
    %233 = arith.addf %232, %231 : vector<64x64xf32>
    %234 = arith.mulf %223, %233 : vector<64x64xf32>
    %c0_97 = arith.constant 0 : index
    %c0_98 = arith.constant 0 : index
    %c0_99 = arith.constant 0 : index
    %235 = vector.load %arg18[%c0_97, %c0_98, %c0_99] : memref<2x64x32xf32, #tpu.memory_space<vmem>>, vector<1x64x32xf32>
    %236 = vector.shape_cast %235 : vector<1x64x32xf32> to vector<64x32xf32>
    %cst_100 = arith.constant dense<0.000000e+00> : vector<64x32xf32>
    %237 = tpu.matmul %234, %236, %cst_100 {dimension_numbers = #tpu.dot_dimension_numbers<[1], [0], [0], [1], [0, 0, 1, 1], [], []>} : vector<64x64xf32>, vector<64x32xf32>, vector<64x32xf32> -> vector<64x32xf32>
    %c0_101 = arith.constant 0 : index
    %c0_102 = arith.constant 0 : index
    %c0_103 = arith.constant 0 : index
    %238 = vector.load %arg19[%c0_101, %c0_102, %c0_103] : memref<2x1x32xf32, #tpu.memory_space<vmem>>, vector<1x1x32xf32>
    %239 = vector.shape_cast %238 : vector<1x1x32xf32> to vector<1x32xf32>
    %240 = vector.broadcast %239 : vector<1x32xf32> to vector<64x32xf32>
    %241 = arith.addf %237, %240 : vector<64x32xf32>
    %242 = arith.addf %214, %241 : vector<64x32xf32>
    %c0_104 = arith.constant 0 : index
    %c0_105 = arith.constant 0 : index
    %c0_106 = arith.constant 0 : index
    %243 = vector.load %arg20[%c0_104, %c0_105, %c0_106] : memref<2x1x32xf32, #tpu.memory_space<vmem>>, vector<1x1x32xf32>
    %244 = vector.shape_cast %243 : vector<1x1x32xf32> to vector<1x32xf32>
    %c0_107 = arith.constant 0 : index
    %c0_108 = arith.constant 0 : index
    %c0_109 = arith.constant 0 : index
    %245 = vector.load %arg21[%c0_107, %c0_108, %c0_109] : memref<2x1x32xf32, #tpu.memory_space<vmem>>, vector<1x1x32xf32>
    %246 = vector.shape_cast %245 : vector<1x1x32xf32> to vector<1x32xf32>
    %cst_110 = arith.constant dense<0.000000e+00> : vector<64xf32>
    %247 = vector.multi_reduction <add>, %242, %cst_110 [1] : vector<64x32xf32> to vector<64xf32>
    %248 = vector.shape_cast %247 : vector<64xf32> to vector<64x1xf32>
    %cst_111 = arith.constant 3.200000e+01 : f32
    %249 = vector.broadcast %cst_111 : f32 to vector<64x1xf32>
    %250 = arith.divf %248, %249 : vector<64x1xf32>
    %251 = vector.broadcast %250 : vector<64x1xf32> to vector<64x32xf32>
    %252 = arith.subf %242, %251 : vector<64x32xf32>
    %253 = arith.mulf %252, %252 : vector<64x32xf32>
    %cst_112 = arith.constant dense<0.000000e+00> : vector<64xf32>
    %254 = vector.multi_reduction <add>, %253, %cst_112 [1] : vector<64x32xf32> to vector<64xf32>
    %255 = vector.shape_cast %254 : vector<64xf32> to vector<64x1xf32>
    %cst_113 = arith.constant 3.200000e+01 : f32
    %256 = vector.broadcast %cst_113 : f32 to vector<64x1xf32>
    %257 = arith.divf %255, %256 : vector<64x1xf32>
    %258 = vector.broadcast %250 : vector<64x1xf32> to vector<64x32xf32>
    %259 = arith.subf %242, %258 : vector<64x32xf32>
    %cst_114 = arith.constant 9.99999996E-13 : f32
    %260 = vector.broadcast %cst_114 : f32 to vector<64x1xf32>
    %261 = arith.addf %257, %260 : vector<64x1xf32>
    %262 = math.rsqrt %261 : vector<64x1xf32>
    %263 = vector.broadcast %262 : vector<64x1xf32> to vector<64x32xf32>
    %264 = arith.mulf %259, %263 : vector<64x32xf32>
    %265 = vector.broadcast %244 : vector<1x32xf32> to vector<64x32xf32>
    %266 = arith.mulf %264, %265 : vector<64x32xf32>
    %267 = vector.broadcast %246 : vector<1x32xf32> to vector<64x32xf32>
    %268 = arith.addf %266, %267 : vector<64x32xf32>
    %cst_115 = arith.constant dense<0.000000e+00> : vector<8x32xf32>
    %269 = tpu.matmul %1, %268, %cst_115 {dimension_numbers = #tpu.dot_dimension_numbers<[1], [0], [0], [1], [0, 0, 1, 1], [], []>} : vector<8x64xf32>, vector<64x32xf32>, vector<8x32xf32> -> vector<8x32xf32>
    %c1 = arith.constant 1 : index
    %c0_116 = arith.constant 0 : index
    %c0_117 = arith.constant 0 : index
    %270 = vector.load %arg6[%c1, %c0_116, %c0_117] : memref<2x32x96xf32, #tpu.memory_space<vmem>>, vector<1x32x96xf32>
    %271 = vector.shape_cast %270 : vector<1x32x96xf32> to vector<32x96xf32>
    %cst_118 = arith.constant dense<0.000000e+00> : vector<8x96xf32>
    %272 = tpu.matmul %269, %271, %cst_118 {dimension_numbers = #tpu.dot_dimension_numbers<[1], [0], [0], [1], [0, 0, 1, 1], [], []>} : vector<8x32xf32>, vector<32x96xf32>, vector<8x96xf32> -> vector<8x96xf32>
    %c1_119 = arith.constant 1 : index
    %c0_120 = arith.constant 0 : index
    %c0_121 = arith.constant 0 : index
    %273 = vector.load %arg7[%c1_119, %c0_120, %c0_121] : memref<2x1x96xf32, #tpu.memory_space<vmem>>, vector<1x1x96xf32>
    %274 = vector.shape_cast %273 : vector<1x1x96xf32> to vector<1x96xf32>
    %275 = vector.broadcast %274 : vector<1x96xf32> to vector<8x96xf32>
    %276 = arith.addf %272, %275 : vector<8x96xf32>
    %277 = vector.extract_strided_slice %276 {offsets = [0, 0], sizes = [8, 32], strides = [1, 1]} : vector<8x96xf32> to vector<8x32xf32>
    %278 = vector.extract_strided_slice %276 {offsets = [0, 32], sizes = [8, 32], strides = [1, 1]} : vector<8x96xf32> to vector<8x32xf32>
    %279 = vector.extract_strided_slice %276 {offsets = [0, 64], sizes = [8, 32], strides = [1, 1]} : vector<8x96xf32> to vector<8x32xf32>
    %280 = tpu.transpose %278, [1, 0] : vector<8x32xf32> -> vector<32x8xf32>
    %281 = vector.extract_strided_slice %277 {offsets = [0, 0], sizes = [8, 8], strides = [1, 1]} : vector<8x32xf32> to vector<8x8xf32>
    %282 = vector.extract_strided_slice %280 {offsets = [0, 0], sizes = [8, 8], strides = [1, 1]} : vector<32x8xf32> to vector<8x8xf32>
    %cst_122 = arith.constant dense<0.000000e+00> : vector<8x8xf32>
    %283 = tpu.matmul %281, %282, %cst_122 {dimension_numbers = #tpu.dot_dimension_numbers<[1], [0], [0], [1], [0, 0, 1, 1], [], []>} : vector<8x8xf32>, vector<8x8xf32>, vector<8x8xf32> -> vector<8x8xf32>
    %cst_123 = arith.constant 0.353553385 : f32
    %284 = vector.broadcast %cst_123 : f32 to vector<8x8xf32>
    %285 = arith.mulf %283, %284 : vector<8x8xf32>
    %286 = arith.addf %285, %2 : vector<8x8xf32>
    %cst_124 = arith.constant dense<0xFF800000> : vector<8xf32>
    %287 = vector.multi_reduction <maximumf>, %286, %cst_124 [1] : vector<8x8xf32> to vector<8xf32>
    %288 = vector.shape_cast %287 : vector<8xf32> to vector<8x1xf32>
    %289 = vector.broadcast %288 : vector<8x1xf32> to vector<8x8xf32>
    %290 = arith.subf %286, %289 : vector<8x8xf32>
    %291 = math.exp %290 : vector<8x8xf32>
    %cst_125 = arith.constant dense<0.000000e+00> : vector<8xf32>
    %292 = vector.multi_reduction <add>, %291, %cst_125 [1] : vector<8x8xf32> to vector<8xf32>
    %293 = vector.shape_cast %292 : vector<8xf32> to vector<8x1xf32>
    %294 = tpu.reciprocal %293 {approx = true} : vector<8x1xf32> -> vector<8x1xf32>
    %295 = vector.broadcast %294 : vector<8x1xf32> to vector<8x8xf32>
    %296 = arith.mulf %291, %295 : vector<8x8xf32>
    %297 = vector.extract_strided_slice %279 {offsets = [0, 0], sizes = [8, 8], strides = [1, 1]} : vector<8x32xf32> to vector<8x8xf32>
    %cst_126 = arith.constant dense<0.000000e+00> : vector<8x8xf32>
    %298 = tpu.matmul %296, %297, %cst_126 {dimension_numbers = #tpu.dot_dimension_numbers<[1], [0], [0], [1], [0, 0, 1, 1], [], []>} : vector<8x8xf32>, vector<8x8xf32>, vector<8x8xf32> -> vector<8x8xf32>
    %299 = vector.extract_strided_slice %277 {offsets = [0, 8], sizes = [8, 8], strides = [1, 1]} : vector<8x32xf32> to vector<8x8xf32>
    %300 = vector.extract_strided_slice %280 {offsets = [8, 0], sizes = [8, 8], strides = [1, 1]} : vector<32x8xf32> to vector<8x8xf32>
    %cst_127 = arith.constant dense<0.000000e+00> : vector<8x8xf32>
    %301 = tpu.matmul %299, %300, %cst_127 {dimension_numbers = #tpu.dot_dimension_numbers<[1], [0], [0], [1], [0, 0, 1, 1], [], []>} : vector<8x8xf32>, vector<8x8xf32>, vector<8x8xf32> -> vector<8x8xf32>
    %cst_128 = arith.constant 0.353553385 : f32
    %302 = vector.broadcast %cst_128 : f32 to vector<8x8xf32>
    %303 = arith.mulf %301, %302 : vector<8x8xf32>
    %304 = arith.addf %303, %2 : vector<8x8xf32>
    %cst_129 = arith.constant dense<0xFF800000> : vector<8xf32>
    %305 = vector.multi_reduction <maximumf>, %304, %cst_129 [1] : vector<8x8xf32> to vector<8xf32>
    %306 = vector.shape_cast %305 : vector<8xf32> to vector<8x1xf32>
    %307 = vector.broadcast %306 : vector<8x1xf32> to vector<8x8xf32>
    %308 = arith.subf %304, %307 : vector<8x8xf32>
    %309 = math.exp %308 : vector<8x8xf32>
    %cst_130 = arith.constant dense<0.000000e+00> : vector<8xf32>
    %310 = vector.multi_reduction <add>, %309, %cst_130 [1] : vector<8x8xf32> to vector<8xf32>
    %311 = vector.shape_cast %310 : vector<8xf32> to vector<8x1xf32>
    %312 = tpu.reciprocal %311 {approx = true} : vector<8x1xf32> -> vector<8x1xf32>
    %313 = vector.broadcast %312 : vector<8x1xf32> to vector<8x8xf32>
    %314 = arith.mulf %309, %313 : vector<8x8xf32>
    %315 = vector.extract_strided_slice %279 {offsets = [0, 8], sizes = [8, 8], strides = [1, 1]} : vector<8x32xf32> to vector<8x8xf32>
    %cst_131 = arith.constant dense<0.000000e+00> : vector<8x8xf32>
    %316 = tpu.matmul %314, %315, %cst_131 {dimension_numbers = #tpu.dot_dimension_numbers<[1], [0], [0], [1], [0, 0, 1, 1], [], []>} : vector<8x8xf32>, vector<8x8xf32>, vector<8x8xf32> -> vector<8x8xf32>
    %317 = vector.extract_strided_slice %277 {offsets = [0, 16], sizes = [8, 8], strides = [1, 1]} : vector<8x32xf32> to vector<8x8xf32>
    %318 = vector.extract_strided_slice %280 {offsets = [16, 0], sizes = [8, 8], strides = [1, 1]} : vector<32x8xf32> to vector<8x8xf32>
    %cst_132 = arith.constant dense<0.000000e+00> : vector<8x8xf32>
    %319 = tpu.matmul %317, %318, %cst_132 {dimension_numbers = #tpu.dot_dimension_numbers<[1], [0], [0], [1], [0, 0, 1, 1], [], []>} : vector<8x8xf32>, vector<8x8xf32>, vector<8x8xf32> -> vector<8x8xf32>
    %cst_133 = arith.constant 0.353553385 : f32
    %320 = vector.broadcast %cst_133 : f32 to vector<8x8xf32>
    %321 = arith.mulf %319, %320 : vector<8x8xf32>
    %322 = arith.addf %321, %2 : vector<8x8xf32>
    %cst_134 = arith.constant dense<0xFF800000> : vector<8xf32>
    %323 = vector.multi_reduction <maximumf>, %322, %cst_134 [1] : vector<8x8xf32> to vector<8xf32>
    %324 = vector.shape_cast %323 : vector<8xf32> to vector<8x1xf32>
    %325 = vector.broadcast %324 : vector<8x1xf32> to vector<8x8xf32>
    %326 = arith.subf %322, %325 : vector<8x8xf32>
    %327 = math.exp %326 : vector<8x8xf32>
    %cst_135 = arith.constant dense<0.000000e+00> : vector<8xf32>
    %328 = vector.multi_reduction <add>, %327, %cst_135 [1] : vector<8x8xf32> to vector<8xf32>
    %329 = vector.shape_cast %328 : vector<8xf32> to vector<8x1xf32>
    %330 = tpu.reciprocal %329 {approx = true} : vector<8x1xf32> -> vector<8x1xf32>
    %331 = vector.broadcast %330 : vector<8x1xf32> to vector<8x8xf32>
    %332 = arith.mulf %327, %331 : vector<8x8xf32>
    %333 = vector.extract_strided_slice %279 {offsets = [0, 16], sizes = [8, 8], strides = [1, 1]} : vector<8x32xf32> to vector<8x8xf32>
    %cst_136 = arith.constant dense<0.000000e+00> : vector<8x8xf32>
    %334 = tpu.matmul %332, %333, %cst_136 {dimension_numbers = #tpu.dot_dimension_numbers<[1], [0], [0], [1], [0, 0, 1, 1], [], []>} : vector<8x8xf32>, vector<8x8xf32>, vector<8x8xf32> -> vector<8x8xf32>
    %335 = vector.extract_strided_slice %277 {offsets = [0, 24], sizes = [8, 8], strides = [1, 1]} : vector<8x32xf32> to vector<8x8xf32>
    %336 = vector.extract_strided_slice %280 {offsets = [24, 0], sizes = [8, 8], strides = [1, 1]} : vector<32x8xf32> to vector<8x8xf32>
    %cst_137 = arith.constant dense<0.000000e+00> : vector<8x8xf32>
    %337 = tpu.matmul %335, %336, %cst_137 {dimension_numbers = #tpu.dot_dimension_numbers<[1], [0], [0], [1], [0, 0, 1, 1], [], []>} : vector<8x8xf32>, vector<8x8xf32>, vector<8x8xf32> -> vector<8x8xf32>
    %cst_138 = arith.constant 0.353553385 : f32
    %338 = vector.broadcast %cst_138 : f32 to vector<8x8xf32>
    %339 = arith.mulf %337, %338 : vector<8x8xf32>
    %340 = arith.addf %339, %2 : vector<8x8xf32>
    %cst_139 = arith.constant dense<0xFF800000> : vector<8xf32>
    %341 = vector.multi_reduction <maximumf>, %340, %cst_139 [1] : vector<8x8xf32> to vector<8xf32>
    %342 = vector.shape_cast %341 : vector<8xf32> to vector<8x1xf32>
    %343 = vector.broadcast %342 : vector<8x1xf32> to vector<8x8xf32>
    %344 = arith.subf %340, %343 : vector<8x8xf32>
    %345 = math.exp %344 : vector<8x8xf32>
    %cst_140 = arith.constant dense<0.000000e+00> : vector<8xf32>
    %346 = vector.multi_reduction <add>, %345, %cst_140 [1] : vector<8x8xf32> to vector<8xf32>
    %347 = vector.shape_cast %346 : vector<8xf32> to vector<8x1xf32>
    %348 = tpu.reciprocal %347 {approx = true} : vector<8x1xf32> -> vector<8x1xf32>
    %349 = vector.broadcast %348 : vector<8x1xf32> to vector<8x8xf32>
    %350 = arith.mulf %345, %349 : vector<8x8xf32>
    %351 = vector.extract_strided_slice %279 {offsets = [0, 24], sizes = [8, 8], strides = [1, 1]} : vector<8x32xf32> to vector<8x8xf32>
    %cst_141 = arith.constant dense<0.000000e+00> : vector<8x8xf32>
    %352 = tpu.matmul %350, %351, %cst_141 {dimension_numbers = #tpu.dot_dimension_numbers<[1], [0], [0], [1], [0, 0, 1, 1], [], []>} : vector<8x8xf32>, vector<8x8xf32>, vector<8x8xf32> -> vector<8x8xf32>
    %353 = tpu.concatenate %298, %316, %334, %352 in 1 : vector<8x8xf32>, vector<8x8xf32>, vector<8x8xf32>, vector<8x8xf32> -> vector<8x32xf32>
    %c1_142 = arith.constant 1 : index
    %c0_143 = arith.constant 0 : index
    %c0_144 = arith.constant 0 : index
    %354 = vector.load %arg8[%c1_142, %c0_143, %c0_144] : memref<2x32x32xf32, #tpu.memory_space<vmem>>, vector<1x32x32xf32>
    %355 = vector.shape_cast %354 : vector<1x32x32xf32> to vector<32x32xf32>
    %cst_145 = arith.constant dense<0.000000e+00> : vector<8x32xf32>
    %356 = tpu.matmul %353, %355, %cst_145 {dimension_numbers = #tpu.dot_dimension_numbers<[1], [0], [0], [1], [0, 0, 1, 1], [], []>} : vector<8x32xf32>, vector<32x32xf32>, vector<8x32xf32> -> vector<8x32xf32>
    %c1_146 = arith.constant 1 : index
    %c0_147 = arith.constant 0 : index
    %c0_148 = arith.constant 0 : index
    %357 = vector.load %arg9[%c1_146, %c0_147, %c0_148] : memref<2x1x32xf32, #tpu.memory_space<vmem>>, vector<1x1x32xf32>
    %358 = vector.shape_cast %357 : vector<1x1x32xf32> to vector<1x32xf32>
    %359 = vector.broadcast %358 : vector<1x32xf32> to vector<8x32xf32>
    %360 = arith.addf %356, %359 : vector<8x32xf32>
    %361 = tpu.concatenate %268, %360 in 0 : vector<64x32xf32>, vector<8x32xf32> -> vector<72x32xf32>
    %c1_149 = arith.constant 1 : index
    %c0_150 = arith.constant 0 : index
    %c0_151 = arith.constant 0 : index
    %362 = vector.load %arg10[%c1_149, %c0_150, %c0_151] : memref<2x32x96xf32, #tpu.memory_space<vmem>>, vector<1x32x96xf32>
    %363 = vector.shape_cast %362 : vector<1x32x96xf32> to vector<32x96xf32>
    %cst_152 = arith.constant dense<0.000000e+00> : vector<72x96xf32>
    %364 = tpu.matmul %361, %363, %cst_152 {dimension_numbers = #tpu.dot_dimension_numbers<[1], [0], [0], [1], [0, 0, 1, 1], [], []>} : vector<72x32xf32>, vector<32x96xf32>, vector<72x96xf32> -> vector<72x96xf32>
    %c1_153 = arith.constant 1 : index
    %c0_154 = arith.constant 0 : index
    %c0_155 = arith.constant 0 : index
    %365 = vector.load %arg11[%c1_153, %c0_154, %c0_155] : memref<2x1x96xf32, #tpu.memory_space<vmem>>, vector<1x1x96xf32>
    %366 = vector.shape_cast %365 : vector<1x1x96xf32> to vector<1x96xf32>
    %367 = vector.broadcast %366 : vector<1x96xf32> to vector<72x96xf32>
    %368 = arith.addf %364, %367 : vector<72x96xf32>
    %369 = vector.extract_strided_slice %368 {offsets = [0, 0], sizes = [64, 32], strides = [1, 1]} : vector<72x96xf32> to vector<64x32xf32>
    %370 = vector.extract_strided_slice %368 {offsets = [0, 32], sizes = [72, 32], strides = [1, 1]} : vector<72x96xf32> to vector<72x32xf32>
    %371 = vector.extract_strided_slice %368 {offsets = [0, 64], sizes = [72, 32], strides = [1, 1]} : vector<72x96xf32> to vector<72x32xf32>
    %372 = tpu.transpose %370, [1, 0] : vector<72x32xf32> -> vector<32x72xf32>
    %373 = vector.extract_strided_slice %369 {offsets = [0, 0], sizes = [64, 8], strides = [1, 1]} : vector<64x32xf32> to vector<64x8xf32>
    %374 = vector.extract_strided_slice %372 {offsets = [0, 0], sizes = [8, 72], strides = [1, 1]} : vector<32x72xf32> to vector<8x72xf32>
    %cst_156 = arith.constant dense<0.000000e+00> : vector<64x72xf32>
    %375 = tpu.matmul %373, %374, %cst_156 {dimension_numbers = #tpu.dot_dimension_numbers<[1], [0], [0], [1], [0, 0, 1, 1], [], []>} : vector<64x8xf32>, vector<8x72xf32>, vector<64x72xf32> -> vector<64x72xf32>
    %cst_157 = arith.constant 0.353553385 : f32
    %376 = vector.broadcast %cst_157 : f32 to vector<64x72xf32>
    %377 = arith.mulf %375, %376 : vector<64x72xf32>
    %378 = arith.addf %377, %3 : vector<64x72xf32>
    %cst_158 = arith.constant dense<0xFF800000> : vector<64xf32>
    %379 = vector.multi_reduction <maximumf>, %378, %cst_158 [1] : vector<64x72xf32> to vector<64xf32>
    %380 = vector.shape_cast %379 : vector<64xf32> to vector<64x1xf32>
    %381 = vector.broadcast %380 : vector<64x1xf32> to vector<64x72xf32>
    %382 = arith.subf %378, %381 : vector<64x72xf32>
    %383 = math.exp %382 : vector<64x72xf32>
    %cst_159 = arith.constant dense<0.000000e+00> : vector<64xf32>
    %384 = vector.multi_reduction <add>, %383, %cst_159 [1] : vector<64x72xf32> to vector<64xf32>
    %385 = vector.shape_cast %384 : vector<64xf32> to vector<64x1xf32>
    %386 = tpu.reciprocal %385 {approx = true} : vector<64x1xf32> -> vector<64x1xf32>
    %387 = vector.broadcast %386 : vector<64x1xf32> to vector<64x72xf32>
    %388 = arith.mulf %383, %387 : vector<64x72xf32>
    %389 = vector.extract_strided_slice %371 {offsets = [0, 0], sizes = [72, 8], strides = [1, 1]} : vector<72x32xf32> to vector<72x8xf32>
    %cst_160 = arith.constant dense<0.000000e+00> : vector<64x8xf32>
    %390 = tpu.matmul %388, %389, %cst_160 {dimension_numbers = #tpu.dot_dimension_numbers<[1], [0], [0], [1], [0, 0, 1, 1], [], []>} : vector<64x72xf32>, vector<72x8xf32>, vector<64x8xf32> -> vector<64x8xf32>
    %391 = vector.extract_strided_slice %369 {offsets = [0, 8], sizes = [64, 8], strides = [1, 1]} : vector<64x32xf32> to vector<64x8xf32>
    %392 = vector.extract_strided_slice %372 {offsets = [8, 0], sizes = [8, 72], strides = [1, 1]} : vector<32x72xf32> to vector<8x72xf32>
    %cst_161 = arith.constant dense<0.000000e+00> : vector<64x72xf32>
    %393 = tpu.matmul %391, %392, %cst_161 {dimension_numbers = #tpu.dot_dimension_numbers<[1], [0], [0], [1], [0, 0, 1, 1], [], []>} : vector<64x8xf32>, vector<8x72xf32>, vector<64x72xf32> -> vector<64x72xf32>
    %cst_162 = arith.constant 0.353553385 : f32
    %394 = vector.broadcast %cst_162 : f32 to vector<64x72xf32>
    %395 = arith.mulf %393, %394 : vector<64x72xf32>
    %396 = arith.addf %395, %3 : vector<64x72xf32>
    %cst_163 = arith.constant dense<0xFF800000> : vector<64xf32>
    %397 = vector.multi_reduction <maximumf>, %396, %cst_163 [1] : vector<64x72xf32> to vector<64xf32>
    %398 = vector.shape_cast %397 : vector<64xf32> to vector<64x1xf32>
    %399 = vector.broadcast %398 : vector<64x1xf32> to vector<64x72xf32>
    %400 = arith.subf %396, %399 : vector<64x72xf32>
    %401 = math.exp %400 : vector<64x72xf32>
    %cst_164 = arith.constant dense<0.000000e+00> : vector<64xf32>
    %402 = vector.multi_reduction <add>, %401, %cst_164 [1] : vector<64x72xf32> to vector<64xf32>
    %403 = vector.shape_cast %402 : vector<64xf32> to vector<64x1xf32>
    %404 = tpu.reciprocal %403 {approx = true} : vector<64x1xf32> -> vector<64x1xf32>
    %405 = vector.broadcast %404 : vector<64x1xf32> to vector<64x72xf32>
    %406 = arith.mulf %401, %405 : vector<64x72xf32>
    %407 = vector.extract_strided_slice %371 {offsets = [0, 8], sizes = [72, 8], strides = [1, 1]} : vector<72x32xf32> to vector<72x8xf32>
    %cst_165 = arith.constant dense<0.000000e+00> : vector<64x8xf32>
    %408 = tpu.matmul %406, %407, %cst_165 {dimension_numbers = #tpu.dot_dimension_numbers<[1], [0], [0], [1], [0, 0, 1, 1], [], []>} : vector<64x72xf32>, vector<72x8xf32>, vector<64x8xf32> -> vector<64x8xf32>
    %409 = vector.extract_strided_slice %369 {offsets = [0, 16], sizes = [64, 8], strides = [1, 1]} : vector<64x32xf32> to vector<64x8xf32>
    %410 = vector.extract_strided_slice %372 {offsets = [16, 0], sizes = [8, 72], strides = [1, 1]} : vector<32x72xf32> to vector<8x72xf32>
    %cst_166 = arith.constant dense<0.000000e+00> : vector<64x72xf32>
    %411 = tpu.matmul %409, %410, %cst_166 {dimension_numbers = #tpu.dot_dimension_numbers<[1], [0], [0], [1], [0, 0, 1, 1], [], []>} : vector<64x8xf32>, vector<8x72xf32>, vector<64x72xf32> -> vector<64x72xf32>
    %cst_167 = arith.constant 0.353553385 : f32
    %412 = vector.broadcast %cst_167 : f32 to vector<64x72xf32>
    %413 = arith.mulf %411, %412 : vector<64x72xf32>
    %414 = arith.addf %413, %3 : vector<64x72xf32>
    %cst_168 = arith.constant dense<0xFF800000> : vector<64xf32>
    %415 = vector.multi_reduction <maximumf>, %414, %cst_168 [1] : vector<64x72xf32> to vector<64xf32>
    %416 = vector.shape_cast %415 : vector<64xf32> to vector<64x1xf32>
    %417 = vector.broadcast %416 : vector<64x1xf32> to vector<64x72xf32>
    %418 = arith.subf %414, %417 : vector<64x72xf32>
    %419 = math.exp %418 : vector<64x72xf32>
    %cst_169 = arith.constant dense<0.000000e+00> : vector<64xf32>
    %420 = vector.multi_reduction <add>, %419, %cst_169 [1] : vector<64x72xf32> to vector<64xf32>
    %421 = vector.shape_cast %420 : vector<64xf32> to vector<64x1xf32>
    %422 = tpu.reciprocal %421 {approx = true} : vector<64x1xf32> -> vector<64x1xf32>
    %423 = vector.broadcast %422 : vector<64x1xf32> to vector<64x72xf32>
    %424 = arith.mulf %419, %423 : vector<64x72xf32>
    %425 = vector.extract_strided_slice %371 {offsets = [0, 16], sizes = [72, 8], strides = [1, 1]} : vector<72x32xf32> to vector<72x8xf32>
    %cst_170 = arith.constant dense<0.000000e+00> : vector<64x8xf32>
    %426 = tpu.matmul %424, %425, %cst_170 {dimension_numbers = #tpu.dot_dimension_numbers<[1], [0], [0], [1], [0, 0, 1, 1], [], []>} : vector<64x72xf32>, vector<72x8xf32>, vector<64x8xf32> -> vector<64x8xf32>
    %427 = vector.extract_strided_slice %369 {offsets = [0, 24], sizes = [64, 8], strides = [1, 1]} : vector<64x32xf32> to vector<64x8xf32>
    %428 = vector.extract_strided_slice %372 {offsets = [24, 0], sizes = [8, 72], strides = [1, 1]} : vector<32x72xf32> to vector<8x72xf32>
    %cst_171 = arith.constant dense<0.000000e+00> : vector<64x72xf32>
    %429 = tpu.matmul %427, %428, %cst_171 {dimension_numbers = #tpu.dot_dimension_numbers<[1], [0], [0], [1], [0, 0, 1, 1], [], []>} : vector<64x8xf32>, vector<8x72xf32>, vector<64x72xf32> -> vector<64x72xf32>
    %cst_172 = arith.constant 0.353553385 : f32
    %430 = vector.broadcast %cst_172 : f32 to vector<64x72xf32>
    %431 = arith.mulf %429, %430 : vector<64x72xf32>
    %432 = arith.addf %431, %3 : vector<64x72xf32>
    %cst_173 = arith.constant dense<0xFF800000> : vector<64xf32>
    %433 = vector.multi_reduction <maximumf>, %432, %cst_173 [1] : vector<64x72xf32> to vector<64xf32>
    %434 = vector.shape_cast %433 : vector<64xf32> to vector<64x1xf32>
    %435 = vector.broadcast %434 : vector<64x1xf32> to vector<64x72xf32>
    %436 = arith.subf %432, %435 : vector<64x72xf32>
    %437 = math.exp %436 : vector<64x72xf32>
    %cst_174 = arith.constant dense<0.000000e+00> : vector<64xf32>
    %438 = vector.multi_reduction <add>, %437, %cst_174 [1] : vector<64x72xf32> to vector<64xf32>
    %439 = vector.shape_cast %438 : vector<64xf32> to vector<64x1xf32>
    %440 = tpu.reciprocal %439 {approx = true} : vector<64x1xf32> -> vector<64x1xf32>
    %441 = vector.broadcast %440 : vector<64x1xf32> to vector<64x72xf32>
    %442 = arith.mulf %437, %441 : vector<64x72xf32>
    %443 = vector.extract_strided_slice %371 {offsets = [0, 24], sizes = [72, 8], strides = [1, 1]} : vector<72x32xf32> to vector<72x8xf32>
    %cst_175 = arith.constant dense<0.000000e+00> : vector<64x8xf32>
    %444 = tpu.matmul %442, %443, %cst_175 {dimension_numbers = #tpu.dot_dimension_numbers<[1], [0], [0], [1], [0, 0, 1, 1], [], []>} : vector<64x72xf32>, vector<72x8xf32>, vector<64x8xf32> -> vector<64x8xf32>
    %445 = tpu.concatenate %390, %408, %426, %444 in 1 : vector<64x8xf32>, vector<64x8xf32>, vector<64x8xf32>, vector<64x8xf32> -> vector<64x32xf32>
    %c1_176 = arith.constant 1 : index
    %c0_177 = arith.constant 0 : index
    %c0_178 = arith.constant 0 : index
    %446 = vector.load %arg12[%c1_176, %c0_177, %c0_178] : memref<2x32x32xf32, #tpu.memory_space<vmem>>, vector<1x32x32xf32>
    %447 = vector.shape_cast %446 : vector<1x32x32xf32> to vector<32x32xf32>
    %cst_179 = arith.constant dense<0.000000e+00> : vector<64x32xf32>
    %448 = tpu.matmul %445, %447, %cst_179 {dimension_numbers = #tpu.dot_dimension_numbers<[1], [0], [0], [1], [0, 0, 1, 1], [], []>} : vector<64x32xf32>, vector<32x32xf32>, vector<64x32xf32> -> vector<64x32xf32>
    %c1_180 = arith.constant 1 : index
    %c0_181 = arith.constant 0 : index
    %c0_182 = arith.constant 0 : index
    %449 = vector.load %arg13[%c1_180, %c0_181, %c0_182] : memref<2x1x32xf32, #tpu.memory_space<vmem>>, vector<1x1x32xf32>
    %450 = vector.shape_cast %449 : vector<1x1x32xf32> to vector<1x32xf32>
    %451 = vector.broadcast %450 : vector<1x32xf32> to vector<64x32xf32>
    %452 = arith.addf %448, %451 : vector<64x32xf32>
    %453 = arith.addf %268, %452 : vector<64x32xf32>
    %c1_183 = arith.constant 1 : index
    %c0_184 = arith.constant 0 : index
    %c0_185 = arith.constant 0 : index
    %454 = vector.load %arg14[%c1_183, %c0_184, %c0_185] : memref<2x1x32xf32, #tpu.memory_space<vmem>>, vector<1x1x32xf32>
    %455 = vector.shape_cast %454 : vector<1x1x32xf32> to vector<1x32xf32>
    %c1_186 = arith.constant 1 : index
    %c0_187 = arith.constant 0 : index
    %c0_188 = arith.constant 0 : index
    %456 = vector.load %arg15[%c1_186, %c0_187, %c0_188] : memref<2x1x32xf32, #tpu.memory_space<vmem>>, vector<1x1x32xf32>
    %457 = vector.shape_cast %456 : vector<1x1x32xf32> to vector<1x32xf32>
    %cst_189 = arith.constant dense<0.000000e+00> : vector<64xf32>
    %458 = vector.multi_reduction <add>, %453, %cst_189 [1] : vector<64x32xf32> to vector<64xf32>
    %459 = vector.shape_cast %458 : vector<64xf32> to vector<64x1xf32>
    %cst_190 = arith.constant 3.200000e+01 : f32
    %460 = vector.broadcast %cst_190 : f32 to vector<64x1xf32>
    %461 = arith.divf %459, %460 : vector<64x1xf32>
    %462 = vector.broadcast %461 : vector<64x1xf32> to vector<64x32xf32>
    %463 = arith.subf %453, %462 : vector<64x32xf32>
    %464 = arith.mulf %463, %463 : vector<64x32xf32>
    %cst_191 = arith.constant dense<0.000000e+00> : vector<64xf32>
    %465 = vector.multi_reduction <add>, %464, %cst_191 [1] : vector<64x32xf32> to vector<64xf32>
    %466 = vector.shape_cast %465 : vector<64xf32> to vector<64x1xf32>
    %cst_192 = arith.constant 3.200000e+01 : f32
    %467 = vector.broadcast %cst_192 : f32 to vector<64x1xf32>
    %468 = arith.divf %466, %467 : vector<64x1xf32>
    %469 = vector.broadcast %461 : vector<64x1xf32> to vector<64x32xf32>
    %470 = arith.subf %453, %469 : vector<64x32xf32>
    %cst_193 = arith.constant 9.99999996E-13 : f32
    %471 = vector.broadcast %cst_193 : f32 to vector<64x1xf32>
    %472 = arith.addf %468, %471 : vector<64x1xf32>
    %473 = math.rsqrt %472 : vector<64x1xf32>
    %474 = vector.broadcast %473 : vector<64x1xf32> to vector<64x32xf32>
    %475 = arith.mulf %470, %474 : vector<64x32xf32>
    %476 = vector.broadcast %455 : vector<1x32xf32> to vector<64x32xf32>
    %477 = arith.mulf %475, %476 : vector<64x32xf32>
    %478 = vector.broadcast %457 : vector<1x32xf32> to vector<64x32xf32>
    %479 = arith.addf %477, %478 : vector<64x32xf32>
    %c1_194 = arith.constant 1 : index
    %c0_195 = arith.constant 0 : index
    %c0_196 = arith.constant 0 : index
    %480 = vector.load %arg16[%c1_194, %c0_195, %c0_196] : memref<2x32x64xf32, #tpu.memory_space<vmem>>, vector<1x32x64xf32>
    %481 = vector.shape_cast %480 : vector<1x32x64xf32> to vector<32x64xf32>
    %cst_197 = arith.constant dense<0.000000e+00> : vector<64x64xf32>
    %482 = tpu.matmul %479, %481, %cst_197 {dimension_numbers = #tpu.dot_dimension_numbers<[1], [0], [0], [1], [0, 0, 1, 1], [], []>} : vector<64x32xf32>, vector<32x64xf32>, vector<64x64xf32> -> vector<64x64xf32>
    %c1_198 = arith.constant 1 : index
    %c0_199 = arith.constant 0 : index
    %c0_200 = arith.constant 0 : index
    %483 = vector.load %arg17[%c1_198, %c0_199, %c0_200] : memref<2x1x64xf32, #tpu.memory_space<vmem>>, vector<1x1x64xf32>
    %484 = vector.shape_cast %483 : vector<1x1x64xf32> to vector<1x64xf32>
    %485 = vector.broadcast %484 : vector<1x64xf32> to vector<64x64xf32>
    %486 = arith.addf %482, %485 : vector<64x64xf32>
    %cst_201 = arith.constant 5.000000e-01 : f32
    %487 = vector.broadcast %cst_201 : f32 to vector<64x64xf32>
    %488 = arith.mulf %487, %486 : vector<64x64xf32>
    %cst_202 = arith.constant 4.471500e-02 : f32
    %489 = vector.broadcast %cst_202 : f32 to vector<64x64xf32>
    %490 = arith.mulf %489, %486 : vector<64x64xf32>
    %491 = arith.mulf %490, %486 : vector<64x64xf32>
    %492 = arith.mulf %491, %486 : vector<64x64xf32>
    %493 = arith.addf %486, %492 : vector<64x64xf32>
    %cst_203 = arith.constant 0.797884583 : f32
    %494 = vector.broadcast %cst_203 : f32 to vector<64x64xf32>
    %495 = arith.mulf %494, %493 : vector<64x64xf32>
    %496 = math.tanh %495 : vector<64x64xf32>
    %cst_204 = arith.constant 1.000000e+00 : f32
    %497 = vector.broadcast %cst_204 : f32 to vector<64x64xf32>
    %498 = arith.addf %497, %496 : vector<64x64xf32>
    %499 = arith.mulf %488, %498 : vector<64x64xf32>
    %c1_205 = arith.constant 1 : index
    %c0_206 = arith.constant 0 : index
    %c0_207 = arith.constant 0 : index
    %500 = vector.load %arg18[%c1_205, %c0_206, %c0_207] : memref<2x64x32xf32, #tpu.memory_space<vmem>>, vector<1x64x32xf32>
    %501 = vector.shape_cast %500 : vector<1x64x32xf32> to vector<64x32xf32>
    %cst_208 = arith.constant dense<0.000000e+00> : vector<64x32xf32>
    %502 = tpu.matmul %499, %501, %cst_208 {dimension_numbers = #tpu.dot_dimension_numbers<[1], [0], [0], [1], [0, 0, 1, 1], [], []>} : vector<64x64xf32>, vector<64x32xf32>, vector<64x32xf32> -> vector<64x32xf32>
    %c1_209 = arith.constant 1 : index
    %c0_210 = arith.constant 0 : index
    %c0_211 = arith.constant 0 : index
    %503 = vector.load %arg19[%c1_209, %c0_210, %c0_211] : memref<2x1x32xf32, #tpu.memory_space<vmem>>, vector<1x1x32xf32>
    %504 = vector.shape_cast %503 : vector<1x1x32xf32> to vector<1x32xf32>
    %505 = vector.broadcast %504 : vector<1x32xf32> to vector<64x32xf32>
    %506 = arith.addf %502, %505 : vector<64x32xf32>
    %507 = arith.addf %479, %506 : vector<64x32xf32>
    %c1_212 = arith.constant 1 : index
    %c0_213 = arith.constant 0 : index
    %c0_214 = arith.constant 0 : index
    %508 = vector.load %arg20[%c1_212, %c0_213, %c0_214] : memref<2x1x32xf32, #tpu.memory_space<vmem>>, vector<1x1x32xf32>
    %509 = vector.shape_cast %508 : vector<1x1x32xf32> to vector<1x32xf32>
    %c1_215 = arith.constant 1 : index
    %c0_216 = arith.constant 0 : index
    %c0_217 = arith.constant 0 : index
    %510 = vector.load %arg21[%c1_215, %c0_216, %c0_217] : memref<2x1x32xf32, #tpu.memory_space<vmem>>, vector<1x1x32xf32>
    %511 = vector.shape_cast %510 : vector<1x1x32xf32> to vector<1x32xf32>
    %cst_218 = arith.constant dense<0.000000e+00> : vector<64xf32>
    %512 = vector.multi_reduction <add>, %507, %cst_218 [1] : vector<64x32xf32> to vector<64xf32>
    %513 = vector.shape_cast %512 : vector<64xf32> to vector<64x1xf32>
    %cst_219 = arith.constant 3.200000e+01 : f32
    %514 = vector.broadcast %cst_219 : f32 to vector<64x1xf32>
    %515 = arith.divf %513, %514 : vector<64x1xf32>
    %516 = vector.broadcast %515 : vector<64x1xf32> to vector<64x32xf32>
    %517 = arith.subf %507, %516 : vector<64x32xf32>
    %518 = arith.mulf %517, %517 : vector<64x32xf32>
    %cst_220 = arith.constant dense<0.000000e+00> : vector<64xf32>
    %519 = vector.multi_reduction <add>, %518, %cst_220 [1] : vector<64x32xf32> to vector<64xf32>
    %520 = vector.shape_cast %519 : vector<64xf32> to vector<64x1xf32>
    %cst_221 = arith.constant 3.200000e+01 : f32
    %521 = vector.broadcast %cst_221 : f32 to vector<64x1xf32>
    %522 = arith.divf %520, %521 : vector<64x1xf32>
    %523 = vector.broadcast %515 : vector<64x1xf32> to vector<64x32xf32>
    %524 = arith.subf %507, %523 : vector<64x32xf32>
    %cst_222 = arith.constant 9.99999996E-13 : f32
    %525 = vector.broadcast %cst_222 : f32 to vector<64x1xf32>
    %526 = arith.addf %522, %525 : vector<64x1xf32>
    %527 = math.rsqrt %526 : vector<64x1xf32>
    %528 = vector.broadcast %527 : vector<64x1xf32> to vector<64x32xf32>
    %529 = arith.mulf %524, %528 : vector<64x32xf32>
    %530 = vector.broadcast %509 : vector<1x32xf32> to vector<64x32xf32>
    %531 = arith.mulf %529, %530 : vector<64x32xf32>
    %532 = vector.broadcast %511 : vector<1x32xf32> to vector<64x32xf32>
    %533 = arith.addf %531, %532 : vector<64x32xf32>
    %c0_223 = arith.constant 0 : index
    %c0_224 = arith.constant 0 : index
    %534 = vector.load %arg3[%c0_223, %c0_224] : memref<2x64xf32, #tpu.memory_space<vmem>>, vector<2x64xf32>
    %cst_225 = arith.constant dense<0.000000e+00> : vector<2x32xf32>
    %535 = tpu.matmul %534, %533, %cst_225 {dimension_numbers = #tpu.dot_dimension_numbers<[1], [0], [0], [1], [0, 0, 1, 1], [], []>} : vector<2x64xf32>, vector<64x32xf32>, vector<2x32xf32> -> vector<2x32xf32>
    %c0_226 = arith.constant 0 : index
    %c0_227 = arith.constant 0 : index
    %536 = vector.load %arg22[%c0_226, %c0_227] : memref<2x32xf32, #tpu.memory_space<vmem>>, vector<2x32xf32>
    tpu.vector_store %arg22[%c0_226, %c0_227], %535 {strides = array<i32>} : memref<2x32xf32, #tpu.memory_space<vmem>>, vector<2x32xf32>,
    return
  }
  func.func @transform_0(%arg0: i32) -> (i32, i32) {
    %c0_i32 = arith.constant 0 : i32
    %c0_i32_0 = arith.constant 0 : i32
    %c0_i32_1 = arith.constant 0 : i32
    return %c0_i32, %c0_i32_0 : i32, i32
  }
  func.func @transform_1(%arg0: i32) -> (i32, i32) {
    %c0_i32 = arith.constant 0 : i32
    %c0_i32_0 = arith.constant 0 : i32
    %c0_i32_1 = arith.constant 0 : i32
    return %c0_i32, %c0_i32_0 : i32, i32
  }
  func.func @transform_2(%arg0: i32) -> (i32, i32) {
    %c0_i32 = arith.constant 0 : i32
    %c0_i32_0 = arith.constant 0 : i32
    %c0_i32_1 = arith.constant 0 : i32
    return %c0_i32, %c0_i32_0 : i32, i32
  }
  func.func @transform_3(%arg0: i32) -> (i32, i32) {
    %c0_i32 = arith.constant 0 : i32
    %c0_i32_0 = arith.constant 0 : i32
    %c0_i32_1 = arith.constant 0 : i32
    return %c0_i32, %c0_i32_0 : i32, i32
  }
  func.func @transform_4(%arg0: i32) -> (i32, i32) {
    %c0_i32 = arith.constant 0 : i32
    %c0_i32_0 = arith.constant 0 : i32
    %c0_i32_1 = arith.constant 0 : i32
    return %c0_i32, %c0_i32_0 : i32, i32
  }
  func.func @transform_5(%arg0: i32) -> (i32, i32, i32) {
    %c0_i32 = arith.constant 0 : i32
    %c0_i32_0 = arith.constant 0 : i32
    %c0_i32_1 = arith.constant 0 : i32
    %c0_i32_2 = arith.constant 0 : i32
    return %c0_i32, %c0_i32_0, %c0_i32_1 : i32, i32, i32
  }
  func.func @transform_6(%arg0: i32) -> (i32, i32, i32) {
    %c0_i32 = arith.constant 0 : i32
    %c0_i32_0 = arith.constant 0 : i32
    %c0_i32_1 = arith.constant 0 : i32
    %c0_i32_2 = arith.constant 0 : i32
    return %c0_i32, %c0_i32_0, %c0_i32_1 : i32, i32, i32
  }
  func.func @transform_7(%arg0: i32) -> (i32, i32, i32) {
    %c0_i32 = arith.constant 0 : i32
    %c0_i32_0 = arith.constant 0 : i32
    %c0_i32_1 = arith.constant 0 : i32
    %c0_i32_2 = arith.constant 0 : i32
    return %c0_i32, %c0_i32_0, %c0_i32_1 : i32, i32, i32
  }
  func.func @transform_8(%arg0: i32) -> (i32, i32, i32) {
    %c0_i32 = arith.constant 0 : i32
    %c0_i32_0 = arith.constant 0 : i32
    %c0_i32_1 = arith.constant 0 : i32
    %c0_i32_2 = arith.constant 0 : i32
    return %c0_i32, %c0_i32_0, %c0_i32_1 : i32, i32, i32
  }
  func.func @transform_9(%arg0: i32) -> (i32, i32, i32) {
    %c0_i32 = arith.constant 0 : i32
    %c0_i32_0 = arith.constant 0 : i32
    %c0_i32_1 = arith.constant 0 : i32
    %c0_i32_2 = arith.constant 0 : i32
    return %c0_i32, %c0_i32_0, %c0_i32_1 : i32, i32, i32
  }
  func.func @transform_10(%arg0: i32) -> (i32, i32, i32) {
    %c0_i32 = arith.constant 0 : i32
    %c0_i32_0 = arith.constant 0 : i32
    %c0_i32_1 = arith.constant 0 : i32
    %c0_i32_2 = arith.constant 0 : i32
    return %c0_i32, %c0_i32_0, %c0_i32_1 : i32, i32, i32
  }
  func.func @transform_11(%arg0: i32) -> (i32, i32, i32) {
    %c0_i32 = arith.constant 0 : i32
    %c0_i32_0 = arith.constant 0 : i32
    %c0_i32_1 = arith.constant 0 : i32
    %c0_i32_2 = arith.constant 0 : i32
    return %c0_i32, %c0_i32_0, %c0_i32_1 : i32, i32, i32
  }
  func.func @transform_12(%arg0: i32) -> (i32, i32, i32) {
    %c0_i32 = arith.constant 0 : i32
    %c0_i32_0 = arith.constant 0 : i32
    %c0_i32_1 = arith.constant 0 : i32
    %c0_i32_2 = arith.constant 0 : i32
    return %c0_i32, %c0_i32_0, %c0_i32_1 : i32, i32, i32
  }
  func.func @transform_13(%arg0: i32) -> (i32, i32, i32) {
    %c0_i32 = arith.constant 0 : i32
    %c0_i32_0 = arith.constant 0 : i32
    %c0_i32_1 = arith.constant 0 : i32
    %c0_i32_2 = arith.constant 0 : i32
    return %c0_i32, %c0_i32_0, %c0_i32_1 : i32, i32, i32
  }
  func.func @transform_14(%arg0: i32) -> (i32, i32, i32) {
    %c0_i32 = arith.constant 0 : i32
    %c0_i32_0 = arith.constant 0 : i32
    %c0_i32_1 = arith.constant 0 : i32
    %c0_i32_2 = arith.constant 0 : i32
    return %c0_i32, %c0_i32_0, %c0_i32_1 : i32, i32, i32
  }
  func.func @transform_15(%arg0: i32) -> (i32, i32, i32) {
    %c0_i32 = arith.constant 0 : i32
    %c0_i32_0 = arith.constant 0 : i32
    %c0_i32_1 = arith.constant 0 : i32
    %c0_i32_2 = arith.constant 0 : i32
    return %c0_i32, %c0_i32_0, %c0_i32_1 : i32, i32, i32
  }
  func.func @transform_16(%arg0: i32) -> (i32, i32, i32) {
    %c0_i32 = arith.constant 0 : i32
    %c0_i32_0 = arith.constant 0 : i32
    %c0_i32_1 = arith.constant 0 : i32
    %c0_i32_2 = arith.constant 0 : i32
    return %c0_i32, %c0_i32_0, %c0_i32_1 : i32, i32, i32
  }
  func.func @transform_17(%arg0: i32) -> (i32, i32, i32) {
    %c0_i32 = arith.constant 0 : i32
    %c0_i32_0 = arith.constant 0 : i32
    %c0_i32_1 = arith.constant 0 : i32
    %c0_i32_2 = arith.constant 0 : i32
    return %c0_i32, %c0_i32_0, %c0_i32_1 : i32, i32, i32
  }
  func.func @transform_18(%arg0: i32) -> (i32, i32, i32) {
    %c0_i32 = arith.constant 0 : i32
    %c0_i32_0 = arith.constant 0 : i32
    %c0_i32_1 = arith.constant 0 : i32
    %c0_i32_2 = arith.constant 0 : i32
    return %c0_i32, %c0_i32_0, %c0_i32_1 : i32, i32, i32
  }
  func.func @transform_19(%arg0: i32) -> (i32, i32, i32) {
    %c0_i32 = arith.constant 0 : i32
    %c0_i32_0 = arith.constant 0 : i32
    %c0_i32_1 = arith.constant 0 : i32
    %c0_i32_2 = arith.constant 0 : i32
    return %c0_i32, %c0_i32_0, %c0_i32_1 : i32, i32, i32
  }
  func.func @transform_20(%arg0: i32) -> (i32, i32, i32) {
    %c0_i32 = arith.constant 0 : i32
    %c0_i32_0 = arith.constant 0 : i32
    %c0_i32_1 = arith.constant 0 : i32
    %c0_i32_2 = arith.constant 0 : i32
    return %c0_i32, %c0_i32_0, %c0_i32_1 : i32, i32, i32
  }
  func.func @transform_21(%arg0: i32) -> (i32, i32) {
    %c0_i32 = arith.constant 0 : i32
    %c0_i32_0 = arith.constant 0 : i32
    %c0_i32_1 = arith.constant 0 : i32
    return %c0_i32, %c0_i32_0 : i32, i32
  }
}

</mosaic_0001>

<bundles_post_ra>
// kernel: graph_encoder_forward.1
= control target key start
LH: loop header
LB: loop body
LE: loop exit
PB: predicated region body
PF: predicated region fallthrough
CT: control target
= control target key end

     0   :  { %s13276_s0 = inlined_call_operand.vmem [shape: f32[64,32], index: 0, kind: input, shape index: {}]   ;;  %s13277_s1 = inlined_call_operand.vmem [shape: f32[8,64], index: 1, kind: input, shape index: {}]   ;;  %s13278_s2 = inlined_call_operand.vmem [shape: f32[2,64], index: 2, kind: input, shape index: {}]   ;;  %s13279_s3 = inlined_call_operand.vmem [shape: f32[8,8], index: 3, kind: input, shape index: {}]   ;;  %s13280_s4 = inlined_call_operand.vmem [shape: f32[64,72], index: 4, kind: input, shape index: {}]   ;;  %s13281_s5 = inlined_call_operand.vmem [shape: f32[2,32,96], index: 5, kind: input, shape index: {}]   ;;  %s13282_s6 = inlined_call_operand.vmem [shape: f32[2,1,96], index: 6, kind: input, shape index: {}]   ;;  %s13283_s7 = inlined_call_operand.vmem [shape: f32[2,32,32], index: 7, kind: input, shape index: {}]   ;;  %s13284_s8 = inlined_call_operand.vmem [shape: f32[2,1,32], index: 8, kind: input, shape index: {}]   ;;  %s13285_s9 = inlined_call_operand.vmem [shape: f32[2,32,96], index: 9, kind: input, shape index: {}]   ;;  %s13286_s10 = inlined_call_operand.vmem [shape: f32[2,1,96], index: 10, kind: input, shape index: {}]   ;;  %s13287_s11 = inlined_call_operand.vmem [shape: f32[2,32,32], index: 11, kind: input, shape index: {}]   ;;  %s13288_s12 = inlined_call_operand.vmem [shape: f32[2,1,32], index: 12, kind: input, shape index: {}]   ;;  %s13289_s13 = inlined_call_operand.vmem [shape: f32[2,1,32], index: 13, kind: input, shape index: {}]   ;;  %s13290_s14 = inlined_call_operand.vmem [shape: f32[2,1,32], index: 14, kind: input, shape index: {}]   ;;  %s13291_s15 = inlined_call_operand.vmem [shape: f32[2,32,64], index: 15, kind: input, shape index: {}]   ;;  %s13292_s16 = inlined_call_operand.vmem [shape: f32[2,1,64], index: 16, kind: input, shape index: {}]   ;;  %s13293_s17 = inlined_call_operand.vmem [shape: f32[2,64,32], index: 17, kind: input, shape index: {}]   ;;  %s13294_s18 = inlined_call_operand.vmem [shape: f32[2,1,32], index: 18, kind: input, shape index: {}]   ;;  %s13295_s19 = inlined_call_operand.vmem [shape: f32[2,1,32], index: 19, kind: input, shape index: {}]   ;;  %s13296_s20 = inlined_call_operand.vmem [shape: f32[2,1,32], index: 20, kind: input, shape index: {}]   ;;  %s13297_s21 = inlined_call_operand.hbm [shape: f32[2,32], index: 21, kind: output, shape index: {}]  }
   0x1   :  { %13348 = sst [smem:[#allocation6_spill]] %s13276_s0 }
   0x2   :  { %13349 = sst [smem:[#allocation7_spill]] %s13277_s1 }
   0x3   :  { %13350 = sst [smem:[#allocation8_spill]] %s13278_s2 }
   0x4   :  { %13351 = sst [smem:[#allocation9_spill]] %s13279_s3 }
   0x5   :  { %13352 = sst [smem:[#allocation10_spill]] %s13280_s4 }
   0x6   :  { %13353 = sst [smem:[#allocation11_spill]] %s13281_s5 }
   0x7   :  { %13354 = sst [smem:[#allocation12_spill]] %s13283_s7 }
   0x8   :  { %13355 = sst [smem:[#allocation13_spill]] %s13284_s8 }
   0x9   :  { %13356 = sst [smem:[#allocation14_spill]] %s13285_s9 }
   0xa   :  { %13357 = sst [smem:[#allocation15_spill]] %s13286_s10 }
   0xb   :  { %13358 = sst [smem:[#allocation16_spill]] %s13296_s20 }
   0xc   :  { %13359 = sst [smem:[#allocation17_spill]] %s13297_s21 }
   0xd   :  { %s13360_s26 = sld [smem:[#allocation6_spill]]  ;;  %v13345_v3 = vmov 0.0|0.0   ;;  %vm10505_vm0 = vmmov 0   ;;  %v13344_v6 = vmov 0.0   ;;  %s13361_s1 = sld [smem:[#allocation11_spill]] }
   0xe   :  { %9268 = vmatprep.subr.bf16.mxu0 %v13345_v3  ;;  %8417 = vmatprep.mubr.msk.f32.mxu0 %vm10505_vm0, %v13344_v6 }
   0xf   :  { %9280 = vmatprep.subr.bf16.mxu1 %v13345_v3  ;;  %8428 = vmatprep.mubr.msk.f32.mxu1 %vm10505_vm0, %v13344_v6 }
  0x13   :  { %v10635_v0 = vld [vmem:[%s13360_s26] sm:$0xff]  ;;  %v10640_v1 = vld [vmem:[%s13360_s26 + $0x8] sm:$0xff]  ;;  %v10645_v2 = vld [vmem:[%s13360_s26 + $0x10] sm:$0xff] }
  0x14   :  { %v9269_v4 = vpack.c.bf16 %v10640_v1, %v10635_v0  ;;  %v10653_v5 = vld [vmem:[%s13360_s26 + $0x18] sm:$0xff]  ;;  %v10660_v7 = vld [vmem:[%s13360_s26 + $0x20] sm:$0xff]  ;;  %v162_v10 = vld [vmem:[%s13361_s1 + $0x8] sm:$0xff] }
  0x15   :  { %v9272_v8 = vpack.c.bf16 %v10653_v5, %v10645_v2  ;;  %v161_v9 = vld [vmem:[%s13361_s1] sm:$0xff]  ;;  %v163_v11 = vld [vmem:[%s13361_s1 + $0x10] sm:$0xff]  ;;  %v10680_v12 = vld [vmem:[%s13360_s26 + $0x28] sm:$0xff] }
  0x16   :  { %9270 = vmatpush3.bf16.msra.mxu0 %v9269_v4  ;;  %v9281_v13 = vpack.c.bf16 %v162_v10, %v161_v9  ;;  %v164_v14 = vld [vmem:[%s13361_s1 + $0x18] sm:$0xff] }
  0x17   :  { %9271 = vmatprep.subr.bf16.mxu0 %v13345_v3 }
  0x18   :  { %26 = vsyncpa [#allocation3], 0  ;;  %9282 = vmatpush3.bf16.msra.mxu1 %v9281_v13  ;;  %v9284_v15 = vpack.c.bf16 %v164_v14, %v163_v11  ;;  %v9275_v16 = vpack.c.bf16 %v10680_v12, %v10660_v7  ;;  %v10692_v17 = vld [vmem:[%s13360_s26 + $0x30] sm:$0xff]  ;;  %v10697_v18 = vld [vmem:[%s13360_s26 + $0x38] sm:$0xff]  ;;  %s13362_s2 = sld [smem:[#allocation7_spill]]  ;;  %vm87_vm1 = vcmask 523264  }
  0x19   :  { %9283 = vmatprep.subr.bf16.mxu1 %v13345_v3  ;;  %v9278_v19 = vpack.c.bf16 %v10697_v18, %v10692_v17  ;;  %vm172_vm2 = vcmask 261120   ;;  %v7590_v23 = vld [vmem:[%s13282_s6] ss:$0 sm:$0xff]  ;;  %s13319_s3 = smov 120   ;;  %s13325_s28 = smov 96   ;;  %vm249_vm3 = vcmask 64512  }
  0x1a   :  { %9273 = vmatpush3.bf16.msra.mxu0 %v9272_v8  ;;  %s13313_s29 = smov 80   ;;  %s13323_s0 = smov 88   ;;  %vm927_vm4 = vcmask 130048   ;;  %vm929_vm5 = vcmask 195584   ;;  %vm10918_vm6 = vmpackc.low %vm249_vm3, %vm249_vm3  ;;  %vm1345_vm7 = vcmask 588800   ;;  %vm7573_vm8 = vcmask 254976  }
  0x1b   :  { %9274 = vmatprep.subr.bf16.mxu0 %v13345_v3  ;;  %s13307_s4 = smov 72   ;;  %s13311_s30 = smov 112  }
  0x1c   :  { %9285 = vmatpush3.bf16.msra.mxu1 %v9284_v15  ;;  %s13305_s5 = smov 104   ;;  %s13363_s24 = sld [smem:[#allocation9_spill]] }
  0x1d   :  { %8431 = vmatprep.subr.mxu1 %v13344_v6  ;;  %s13315_s25 = smov 56   ;;  %s13317_s27 = smov 64  }
  0x1e   :  { %9276 = vmatpush3.bf16.msra.mxu0 %v9275_v16  ;;  %v77_v20 = vld [vmem:[%s13362_s2] sm:$0xff]  ;;  %s13309_s22 = smov 48   ;;  %s13303_s23 = smov 40  }
  0x1f   :  { %9277 = vmatprep.subr.bf16.mxu0 %v13345_v3  ;;  %s13378_s21 = smov 8  }
  0x22   :  { %9279 = vmatpush3.bf16.msra.mxu0 %v9278_v19  ;;  %v78_v35 = vld [vmem:[%s13363_s24] sm:$0xff] }
  0x23   :  { %8441 = vmatprep.subr.mxu0 %v13344_v6 }
  0x25   :  { %8418 = vmatmul.mubr.msk.f32.vlgmr.msra.gmra.mrb[0].mxu0 %vm87_vm1, %v77_v20 }
  0x26   :  { %8443 = vmatprep.mubr.msk.f32.mxu0 %vm10505_vm0, %v13344_v6 }
  0xf8   :  { %v157_v21 = vpop.f32.mrb[0].mxu0 }
  0xf9   :  { %v8419_v22 = vpop.f32.mrb[1].mxu0  ;;  %8429 = vmatmul.mubr.msk.f32.vlgmr.msra.gmra.mrb[0].mxu1 %vm172_vm2, %v157_v21 }
  0xfa   :  { %8433 = vmatprep.mubr.msk.f32.mxu1 %vm10505_vm0, %v13344_v6 }
 0x1cc   :  { %v242_v24 = vpop.f32.mrb[0].mxu1 }
 0x1cd   :  { %v10716_v25 = vadd.f32 %v7590_v23, %v242_v24  ;;  %v8430_v26 = vpop.f32.mrb[1].mxu1 }
 0x1cf   :  { %413 = vrot.lane.b32.xlu1 %v10716_v25, %s13319_s3  ;;  %247 = vrot.lane.b32.xlu0 %v10716_v25, %s13325_s28  ;;  %s13327_s3 = smov 24  }
 0x1d3   :  { %582 = vrot.lane.b32.xlu1 %v10716_v25, %s13313_s29  ;;  %415 = vrot.lane.b32.xlu0 %v10716_v25, %s13323_s0  ;;  %s13368_s29 = smov 64   ;;  %s13370_s0 = smov 56  }
 0x1d7   :  { %749 = vrot.lane.b32.xlu1 %v10716_v25, %s13307_s4  ;;  %580 = vrot.lane.b32.xlu0 %v10716_v25, %s13311_s30  ;;  %s13321_s30 = smov 8   ;;  %s13373_s4 = smov 48  }
 0x1db   :  { %747 = vrot.lane.b32.xlu0 %v10716_v25, %s13305_s5  ;;  %s13329_s5 = smov 16  }
 0x241   :  { %v414_v27 = vpop.permute.xlu1 %413  ;;  %v248_v28 = vpop.permute.xlu0 %247 }
 0x242   :  { %8432 = vmatpush3.xpose.msk.msra.mxu1 %vm249_vm3, %v248_v28 }
 0x243   :  { %8436 = vmatprep.subr.mxu1 %v13344_v6 }
 0x245   :  { %8434 = vmatmul.mubr.msk.f32.vlgmr.msra.gmra.mrb[2].mxu1 %vm249_vm3, %v10716_v25  ;;  %v416_v29 = vpop.permute.xlu0 %415  ;;  %v583_v30 = vpop.permute.xlu1 %582 }
 0x246   :  { %8442 = vmatpush3.xpose.msk.msra.mxu0 %vm249_vm3, %v416_v29  ;;  %8438 = vmatprep.mubr.msk.f32.mxu1 %vm10505_vm0, %v13344_v6 }
 0x247   :  { %8451 = vmatprep.subr.mxu0 %v13344_v6 }
 0x249   :  { %8444 = vmatmul.mubr.msk.f32.vlgmr.msra.gmra.mrb[2].mxu0 %vm249_vm3, %v414_v27  ;;  %v581_v31 = vpop.permute.xlu0 %580  ;;  %v750_v32 = vpop.permute.xlu1 %749 }
 0x24a   :  { %8452 = vmatpush3.xpose.msk.msra.mxu0 %vm249_vm3, %v583_v30  ;;  %8453 = vmatprep.mubr.msk.f32.mxu0 %vm10505_vm0, %v13344_v6 }
 0x24b   :  { %8461 = vmatprep.subr.mxu0 %v13344_v6 }
 0x24d   :  { %8454 = vmatmul.mubr.msk.f32.vlgmr.msra.gmra.mrb[4].mxu0 %vm249_vm3, %v581_v31  ;;  %v748_v33 = vpop.permute.xlu0 %747 }
 0x24e   :  { %8462 = vmatpush3.xpose.msk.msra.mxu0 %vm249_vm3, %v750_v32  ;;  %8463 = vmatprep.mubr.msk.f32.mxu0 %vm10505_vm0, %v13344_v6 }
 0x24f   :  { %9286 = vmatprep.subr.bf16.mxu0 %v13345_v3 }
 0x251   :  { %8464 = vmatmul.mubr.msk.f32.vlgmr.msra.gmra.mrb[6].mxu0 %vm249_vm3, %v748_v33 }
 0x252   :  { %8479 = vmatprep.mubr.msk.f32.mxu0 %vm10505_vm0, %v13344_v6 }
 0x318   :  { %v320_v34 = vpop.f32.mrb[2].mxu1 }
 0x319   :  { %v324_v36 = vmul.f32 0.35355338, %v320_v34  ;;  %v8435_v37 = vpop.f32.mrb[3].mxu1 }
 0x31a   :  { %v931_v37 = vld [vmem:[%s13283_s7] sm:$0xff] }
 0x31b   :  { %v325_v38 = vadd.f32 %v324_v36, %v78_v35 }
 0x31c   :  { %v487_v39 = vpop.f32.mrb[2].mxu0 }
 0x31d   :  { %v491_v40 = vmul.f32 0.35355338, %v487_v39  ;;  %v8445_v41 = vpop.f32.mrb[3].mxu0  ;;  %v326_v42 = vsel %vm249_vm3, %v325_v38, -inf }
 0x31e   :  { %327 = vmax.xlane.f32.xlu1 %v326_v42 }
 0x31f   :  { %v492_v43 = vadd.f32 %v491_v40, %v78_v35 }
 0x320   :  { %v654_v44 = vpop.f32.mrb[4].mxu0 }
 0x321   :  { %v658_v45 = vmul.f32 0.35355338, %v654_v44  ;;  %v8455_v46 = vpop.f32.mrb[5].mxu0  ;;  %v493_v47 = vsel %vm249_vm3, %v492_v43, -inf  ;;  %v933_v44 = vld [vmem:[%s13283_s7 + $0x10] sm:$0xff] }
 0x322   :  { %494 = vmax.xlane.f32.xlu0 %v493_v47  ;;  %v1015_v47 = vld [vmem:[%s13285_s9] sm:$0xff] }
 0x323   :  { %v659_v48 = vadd.f32 %v658_v45, %v78_v35  ;;  %v934_v45 = vld [vmem:[%s13283_s7 + $0x18] sm:$0xff] }
 0x324   :  { %v821_v49 = vpop.f32.mrb[6].mxu0  ;;  %v9290_v46 = vpack.c.bf16 %v934_v45, %v933_v44 }
 0x325   :  { %v825_v50 = vmul.f32 0.35355338, %v821_v49  ;;  %v8465_v51 = vpop.f32.mrb[7].mxu0  ;;  %v660_v52 = vsel %vm249_vm3, %v659_v48, -inf  ;;  %v1017_v49 = vld [vmem:[%s13285_s9 + $0x10] sm:$0xff] }
 0x326   :  { %661 = vmax.xlane.f32.xlu0 %v660_v52  ;;  %v1018_v51 = vld [vmem:[%s13285_s9 + $0x18] sm:$0xff] }
 0x327   :  { %v826_v53 = vadd.f32 %v825_v50, %v78_v35  ;;  %v9296_v52 = vpack.c.bf16 %v1018_v51, %v1017_v49 }
 0x329   :  { %v827_v54 = vsel %vm249_vm3, %v826_v53, -inf }
 0x32a   :  { %828 = vmax.xlane.f32.xlu1 %v827_v54 }
 0x33b   :  { %504 = vrot.lane.b32.xlu1 %v10716_v25, %s13315_s25  ;;  %s13374_s25 = smov 72  }
 0x3ab   :  { %v328_v55 = vpop.xlane.xlu1 %327 }
 0x3ac   :  { %v329_v56 = vsub.f32 %v325_v38, %v328_v55  ;;  %v932_v38 = vld [vmem:[%s13283_s7 + $0x8] sm:$0xff]  ;;  %s13376_s7 = smov 40  }
 0x3ad   :  { %v9287_v39 = vpack.c.bf16 %v932_v38, %v931_v37 }
 0x3ae   :  { %v330_v57 = vmul.f32 1.442695, %v329_v56 }
 0x3af   :  { %v495_v58 = vpop.xlane.xlu0 %494  ;;  %9288 = vmatpush3.bf16.msra.mxu0 %v9287_v39 }
 0x3b0   :  { %10062 = vpow2.f32 %v330_v57  ;;  %v496_v59 = vsub.f32 %v492_v43, %v495_v58  ;;  %9289 = vmatprep.subr.bf16.mxu0 %v13345_v3 }
 0x3b2   :  { %v497_v60 = vmul.f32 1.442695, %v496_v59 }
 0x3b3   :  { %v662_v14 = vpop.xlane.xlu0 %661  ;;  %9291 = vmatpush3.bf16.msra.mxu0 %v9290_v46 }
 0x3b4   :  { %10064 = vpow2.f32 %v497_v60  ;;  %v663_v15 = vsub.f32 %v659_v48, %v662_v14  ;;  %v1016_v48 = vld [vmem:[%s13285_s9 + $0x8] sm:$0xff]  ;;  %s13377_s9 = smov 16  }
 0x3b5   :  { %v9293_v50 = vpack.c.bf16 %v1016_v48, %v1015_v47 }
 0x3b6   :  { %v664_v16 = vmul.f32 1.442695, %v663_v15 }
 0x3b7   :  { %v829_v61 = vpop.xlane.xlu1 %828 }
 0x3b8   :  { %v830_v62 = vsub.f32 %v826_v53, %v829_v61 }
 0x3ba   :  { %v10063_v63 = vpop.eup %10062  ;;  %v831_v4 = vmul.f32 1.442695, %v830_v62 }
 0x3bb   :  { %v332_v8 = vsel %vm249_vm3, %v10063_v63, 0.0  ;;  %v505_v21 = vpop.permute.xlu1 %504 }
 0x3bc   :  { %10066 = vpow2.f32 %v831_v4  ;;  %333 = vadd.xlane.f32.xlu0 %v332_v8 }
 0x3bd   :  { %10068 = vpow2.f32 %v664_v16 }
 0x3be   :  { %v10065_v9 = vpop.eup %10064 }
 0x3bf   :  { %v499_v10 = vsel %vm249_vm3, %v10065_v9, 0.0 }
 0x3c0   :  { %500 = vadd.xlane.f32.xlu1 %v499_v10 }
 0x3c6   :  { %v10067_v11 = vpop.eup %10066 }
 0x3c7   :  { %v833_v13 = vsel %vm249_vm3, %v10067_v11, 0.0  ;;  %v10069_v19 = vpop.eup %10068 }
 0x3c8   :  { %834 = vadd.xlane.f32.xlu1 %v833_v13  ;;  %v666_v20 = vsel %vm249_vm3, %v10069_v19, 0.0 }
 0x3d2   :  { %337 = vrot.lane.b32.xlu0 %v10716_v25, %s13317_s27  ;;  %s13364_s27 = smov 88  }
 0x3d9   :  { %671 = vrot.lane.b32.xlu1 %v10716_v25, %s13309_s22  ;;  %s13367_s22 = smov 120  }
 0x3f1   :  { %667 = vadd.xlane.f32.xlu0 %v666_v20 }
 0x407   :  { %838 = vrot.lane.b32.xlu0 %v10716_v25, %s13303_s23  ;;  %s13371_s23 = smov 80  }
 0x449   :  { %v334_v22 = vpop.xlane.xlu0 %333 }
 0x44a   :  { %10070 = vrcp.f32 %v334_v22 }
 0x44d   :  { %v338_v23 = vpop.permute.xlu0 %337  ;;  %v501_v24 = vpop.xlane.xlu1 %500 }
 0x44e   :  { %10072 = vrcp.f32 %v501_v24  ;;  %8437 = vmatpush3.msra.mxu1 %v338_v23 }
 0x44f   :  { %8446 = vmatprep.subr.mxu1 %v13344_v6 }
 0x454   :  { %v10071_v26 = vpop.eup %10070 }
 0x455   :  { %v835_v27 = vpop.xlane.xlu1 %834  ;;  %v336_v28 = vmul.f32 %v10071_v26, %v10063_v63 }
 0x457   :  { %8439 = vmatmul.mubr.msk.f32.vlgmr.msra.gmra.mrb[4].mxu1 %vm249_vm3, %v336_v28 }
 0x458   :  { %v10073_v29 = vpop.eup %10072  ;;  %8447 = vmatpush3.msra.mxu1 %v505_v21  ;;  %8448 = vmatprep.mubr.msk.f32.mxu1 %vm10505_vm0, %v13344_v6 }
 0x459   :  { %v672_v25 = vpop.permute.xlu1 %671  ;;  %8456 = vmatprep.subr.mxu1 %v13344_v6  ;;  %v503_v30 = vmul.f32 %v10073_v29, %v10065_v9 }
 0x45b   :  { %8449 = vmatmul.mubr.msk.f32.vlgmr.msra.gmra.mrb[6].mxu1 %vm249_vm3, %v503_v30  ;;  %v7604_v30 = vld [vmem:[%s13284_s8] ss:$0 sm:$0xff]  ;;  %s13387_s8 = smov 8  }
 0x45c   :  { %8457 = vmatpush3.msra.mxu1 %v672_v25  ;;  %8458 = vmatprep.mubr.msk.f32.mxu1 %vm10505_vm0, %v13344_v6 }
 0x45d   :  { %8466 = vmatprep.subr.mxu1 %v13344_v6 }
 0x47e   :  { %v668_v31 = vpop.xlane.xlu0 %667 }
 0x47f   :  { %10074 = vrcp.f32 %v668_v31 }
 0x480   :  { %10076 = vrcp.f32 %v835_v27 }
 0x482   :  { %v839_v35 = vpop.permute.xlu0 %838 }
 0x489   :  { %v10075_v32 = vpop.eup %10074 }
 0x48a   :  { %v670_v33 = vmul.f32 %v10075_v32, %v10069_v19  ;;  %v10077_v34 = vpop.eup %10076 }
 0x48b   :  { %v837_v36 = vmul.f32 %v10077_v34, %v10067_v11 }
 0x48c   :  { %8459 = vmatmul.mubr.msk.f32.vlgmr.msra.gmra.mrb[8].mxu1 %vm249_vm3, %v670_v33 }
 0x48d   :  { %8467 = vmatpush3.msra.mxu1 %v839_v35  ;;  %8468 = vmatprep.mubr.msk.f32.mxu1 %vm10505_vm0, %v13344_v6 }
 0x48e   :  { %9292 = vmatprep.subr.bf16.mxu1 %v13345_v3 }
 0x490   :  { %8469 = vmatmul.mubr.msk.f32.vlgmr.msra.gmra.mrb[10].mxu1 %vm249_vm3, %v837_v36 }
 0x491   :  { %8490 = vmatprep.mubr.msk.f32.mxu1 %vm10505_vm0, %v13344_v6  ;;  %9294 = vmatpush3.bf16.msra.mxu1 %v9293_v50 }
 0x492   :  { %9295 = vmatprep.subr.bf16.mxu1 %v13345_v3 }
 0x495   :  { %9297 = vmatpush3.bf16.msra.mxu1 %v9296_v52 }
 0x498   :  { %8491 = vmatmul.mubr.msk.f32.vlgmr.msra.gmra.mrb[12].mxu1 %vm172_vm2, %v10635_v0 }
 0x499   :  { %8493 = vmatprep.mubr.msk.f32.mxu1 %vm10505_vm0, %v13344_v6 }
 0x49c   :  { %8494 = vmatmul.mubr.msk.f32.gmra.mrb[14].mxu1 %vm172_vm2, %v10640_v1 }
 0x49d   :  { %8496 = vmatprep.mubr.msk.f32.mxu1 %vm10505_vm0, %v13344_v6 }
 0x4a0   :  { %8497 = vmatmul.mubr.msk.f32.gmra.mrb[16].mxu1 %vm172_vm2, %v10645_v2 }
 0x4a1   :  { %8499 = vmatprep.mubr.msk.f32.mxu1 %vm10505_vm0, %v13344_v6 }
 0x4a4   :  { %8500 = vmatmul.mubr.msk.f32.gmra.mrb[18].mxu1 %vm172_vm2, %v10653_v5 }
 0x4a5   :  { %8502 = vmatprep.mubr.msk.f32.mxu1 %vm10505_vm0, %v13344_v6 }
 0x4a8   :  { %8503 = vmatmul.mubr.msk.f32.gmra.mrb[20].mxu1 %vm172_vm2, %v10660_v7 }
 0x4a9   :  { %8505 = vmatprep.mubr.msk.f32.mxu1 %vm10505_vm0, %v13344_v6 }
 0x4ac   :  { %8506 = vmatmul.mubr.msk.f32.gmra.mrb[22].mxu1 %vm172_vm2, %v10680_v12 }
 0x4ad   :  { %8508 = vmatprep.mubr.msk.f32.mxu1 %vm10505_vm0, %v13344_v6 }
 0x4b0   :  { %8509 = vmatmul.mubr.msk.f32.gmra.mrb[24].mxu1 %vm172_vm2, %v10692_v17  ;;  %v10856_v17 = vld [vmem:[%s13286_s10] ss:$0 sm:$0xff]  ;;  %s13385_s10 = sld [smem:[#allocation14_spill]] }
 0x4b1   :  { %8511 = vmatprep.mubr.msk.f32.mxu1 %vm10505_vm0, %v13344_v6 }
 0x4b4   :  { %8512 = vmatmul.mubr.msk.f32.gmra.mrb[26].mxu1 %vm172_vm2, %v10697_v18 }
 0x4b5   :  { %8514 = vmatprep.mubr.msk.f32.mxu1 %vm10505_vm0, %v13344_v6 }
 0x52a   :  { %v409_v40 = vpop.f32.mrb[4].mxu1 }
 0x52b   :  { %v8440_v41 = vpop.f32.mrb[5].mxu1 }
 0x52e   :  { %v576_v42 = vpop.f32.mrb[6].mxu1 }
 0x52f   :  { %915 = vrot.lane.b32.xlu1 %v576_v42, %s13321_s30  ;;  %v8450_v43 = vpop.f32.mrb[7].mxu1  ;;  %s13369_s30 = sld [smem:[#allocation10_spill]] }
 0x55f   :  { %v743_v53 = vpop.f32.mrb[8].mxu1 }
 0x560   :  { %919 = vrot.lane.b32.xlu0 %v743_v53, %s13329_s5  ;;  %v8460_v54 = vpop.f32.mrb[9].mxu1  ;;  %s13379_s5 = smov 24  }
 0x563   :  { %v910_v55 = vpop.f32.mrb[10].mxu1 }
 0x564   :  { %923 = vrot.lane.b32.xlu1 %v910_v55, %s13327_s3  ;;  %v8470_v56 = vpop.f32.mrb[11].mxu1  ;;  %s13375_s3 = smov 104  }
 0x56b   :  { %v1119_v18 = vpop.f32.mrb[12].mxu1 }
 0x56c   :  { %v10859_v57 = vadd.f32 %v10856_v17, %v1119_v18  ;;  %v8492_v58 = vpop.f32.mrb[13].mxu1 }
 0x56f   :  { %v1124_v59 = vpop.f32.mrb[14].mxu1 }
 0x570   :  { %v10864_v60 = vadd.f32 %v10856_v17, %v1124_v59  ;;  %v8495_v61 = vpop.f32.mrb[15].mxu1 }
 0x572   :  { %v10868_v62 = vpack.i.bf16 %v10864_v60, %v10859_v57 }
 0x573   :  { %v1129_v63 = vpop.f32.mrb[16].mxu1 }
 0x574   :  { %v8498_v4 = vpop.f32.mrb[17].mxu1  ;;  %9743 = vrot.lane.b32.xlu0 %v10868_v62, %s13325_s28  ;;  %v10873_v8 = vadd.f32 %v10856_v17, %v1129_v63 }
 0x577   :  { %v1134_v9 = vpop.f32.mrb[18].mxu1 }
 0x578   :  { %v10876_v10 = vadd.f32 %v10856_v17, %v1134_v9  ;;  %v8501_v11 = vpop.f32.mrb[19].mxu1 }
 0x57a   :  { %v10880_v13 = vpack.i.bf16 %v10876_v10, %v10873_v8 }
 0x57b   :  { %v1139_v14 = vpop.f32.mrb[20].mxu1 }
 0x57c   :  { %v8504_v15 = vpop.f32.mrb[21].mxu1  ;;  %9748 = vrot.lane.b32.xlu1 %v10880_v13, %s13325_s28  ;;  %v10885_v16 = vadd.f32 %v10856_v17, %v1139_v14 }
 0x57f   :  { %v1144_v19 = vpop.f32.mrb[22].mxu1 }
 0x580   :  { %v10888_v20 = vadd.f32 %v10856_v17, %v1144_v19  ;;  %v8507_v21 = vpop.f32.mrb[23].mxu1 }
 0x582   :  { %v10892_v22 = vpack.i.bf16 %v10888_v20, %v10885_v16 }
 0x583   :  { %v1149_v23 = vpop.f32.mrb[24].mxu1 }
 0x584   :  { %v8510_v24 = vpop.f32.mrb[25].mxu1  ;;  %9753 = vrot.lane.b32.xlu0 %v10892_v22, %s13325_s28  ;;  %v10897_v26 = vadd.f32 %v10856_v17, %v1149_v23 }
 0x587   :  { %v1154_v27 = vpop.f32.mrb[26].mxu1 }
 0x588   :  { %v10900_v28 = vadd.f32 %v10856_v17, %v1154_v27  ;;  %v8513_v29 = vpop.f32.mrb[27].mxu1 }
 0x58a   :  { %v10904_v25 = vpack.i.bf16 %v10900_v28, %v10897_v26 }
 0x58c   :  { %9758 = vrot.lane.b32.xlu1 %v10904_v25, %s13325_s28 }
 0x590   :  { %9763 = vrot.lane.b32.xlu1 %v10868_v62, %s13364_s27 }
 0x594   :  { %9773 = vrot.lane.b32.xlu1 %v10892_v22, %s13364_s27 }
 0x5a1   :  { %v916_v0 = vpop.permute.xlu1 %915 }
 0x5a2   :  { %v926_v2 = vsel %vm249_vm3, %v409_v40, %v916_v0 }
 0x5d2   :  { %v920_v1 = vpop.permute.xlu0 %919 }
 0x5d3   :  { %v928_v5 = vsel %vm927_vm4, %v926_v2, %v920_v1 }
 0x5d6   :  { %v924_v7 = vpop.permute.xlu1 %923 }
 0x5d7   :  { %v930_v12 = vsel %vm929_vm5, %v928_v5, %v924_v7 }
 0x5d8   :  { %8480 = vmatmul.mubr.msk.f32.vlgmr.msra.gmra.mrb[8].mxu0 %vm172_vm2, %v930_v12 }
 0x5d9   :  { %8535 = vmatprep.mubr.msk.f32.mxu0 %vm249_vm3, %v10859_v57 }
 0x5e6   :  { %v9744_v35 = vpop.permute.xlu0 %9743 }
 0x5e7   :  { %v9746_v38 = vunpack.i.h.bf16 %v9744_v35  ;;  %v9745_v39 = vunpack.i.l.bf16 %v9744_v35 }
 0x5e9   :  { %v9298_v42 = vpack.c.bf16 %v9746_v38, %v9745_v39 }
 0x5eb   :  { %9300 = vmatprep.subr.msk.bf16.mxu0 %vm10918_vm6, %v9298_v42 }
 0x5ec   :  { %9303 = vmatpush3.bf16.xpose.msk.msra.mxu0 %vm10918_vm6, %v9298_v42 }
 0x5ee   :  { %v9749_v34 = vpop.permute.xlu1 %9748 }
 0x5ef   :  { %v9751_v36 = vunpack.i.h.bf16 %v9749_v34  ;;  %v9750_v37 = vunpack.i.l.bf16 %v9749_v34 }
 0x5f1   :  { %v9304_v41 = vpack.c.bf16 %v9751_v36, %v9750_v37 }
 0x5f3   :  { %9306 = vmatprep.subr.msk.bf16.mxu0 %vm10918_vm6, %v9304_v41 }
 0x5f4   :  { %9309 = vmatpush3.bf16.xpose.msk.msra.mxu0 %vm10918_vm6, %v9304_v41 }
 0x5f6   :  { %v9754_v43 = vpop.permute.xlu0 %9753 }
 0x5f7   :  { %v9756_v44 = vunpack.i.h.bf16 %v9754_v43  ;;  %v9755_v45 = vunpack.i.l.bf16 %v9754_v43 }
 0x5f9   :  { %v9310_v46 = vpack.c.bf16 %v9756_v44, %v9755_v45 }
 0x5fb   :  { %9312 = vmatprep.subr.msk.bf16.mxu0 %vm10918_vm6, %v9310_v46 }
 0x5fc   :  { %9315 = vmatpush3.bf16.xpose.msk.msra.mxu0 %vm10918_vm6, %v9310_v46 }
 0x5fe   :  { %v9759_v47 = vpop.permute.xlu1 %9758 }
 0x5ff   :  { %v9761_v48 = vunpack.i.h.bf16 %v9759_v47  ;;  %v9760_v49 = vunpack.i.l.bf16 %v9759_v47 }
 0x601   :  { %v9316_v50 = vpack.c.bf16 %v9761_v48, %v9760_v49  ;;  %v11024_v49 = vld [vmem:[%s13369_s30 + $0x8] sm:$0xff] }
 0x602   :  { %v9764_v54 = vpop.permute.xlu1 %9763 }
 0x603   :  { %9318 = vmatprep.subr.msk.bf16.mxu0 %vm10918_vm6, %v9316_v50  ;;  %v9766_v56 = vunpack.i.h.bf16 %v9764_v54  ;;  %v9765_v0 = vunpack.i.l.bf16 %v9764_v54 }
 0x604   :  { %9321 = vmatpush3.bf16.xpose.msk.msra.mxu0 %vm10918_vm6, %v9316_v50 }
 0x605   :  { %v9338_v5 = vpack.c.bf16 %v9766_v56, %v9765_v0 }
 0x606   :  { %v9774_v55 = vpop.permute.xlu1 %9773 }
 0x607   :  { %v9776_v63 = vunpack.i.h.bf16 %v9774_v55  ;;  %v9775_v4 = vunpack.i.l.bf16 %v9774_v55 }
 0x609   :  { %v9350_v14 = vpack.c.bf16 %v9776_v63, %v9775_v4 }
 0x6ab   :  { %v1011_v31 = vpop.f32.mrb[8].mxu0 }
 0x6ac   :  { %v1012_v32 = vadd.f32 %v7604_v30, %v1011_v31  ;;  %v8481_v33 = vpop.f32.mrb[9].mxu0 }
 0x6ae   :  { %8515 = vmatmul.mubr.msk.f32.gmra.mrb[28].mxu1 %vm172_vm2, %v1012_v32 }
 0x781   :  { %v1159_v51 = vpop.f32.mrb[28].mxu1 }
 0x782   :  { %v10939_v52 = vadd.f32 %v10856_v17, %v1159_v51  ;;  %v8516_v53 = vpop.f32.mrb[29].mxu1 }
 0x783   :  { %v11029_v53 = vld [vmem:[%s13369_s30] sm:$0xff] }
 0x784   :  { %1622 = vrot.lane.b32.xlu1 %v10939_v52, %s13364_s27  ;;  %1188 = vrot.lane.b32.xlu0 %v10939_v52, %s13325_s28  ;;  %s13372_s28 = smov 112  }
 0x788   :  { %1592 = vrot.lane.b32.xlu1 %v10864_v60, %s13367_s22  ;;  %9768 = vrot.lane.b32.xlu0 %v10880_v13, %s13364_s27 }
 0x78c   :  { %1596 = vrot.lane.b32.xlu1 %v10876_v10, %s13367_s22  ;;  %9778 = vrot.lane.b32.xlu0 %v10904_v25, %s13364_s27 }
 0x790   :  { %1600 = vrot.lane.b32.xlu1 %v10888_v20, %s13367_s22  ;;  %1590 = vrot.lane.b32.xlu0 %v10859_v57, %s13367_s22 }
 0x794   :  { %1604 = vrot.lane.b32.xlu1 %v10900_v28, %s13367_s22  ;;  %1594 = vrot.lane.b32.xlu0 %v10873_v8, %s13367_s22 }
 0x798   :  { %9783 = vrot.lane.b32.xlu1 %v10868_v62, %s13368_s29  ;;  %1598 = vrot.lane.b32.xlu0 %v10885_v16, %s13367_s22 }
 0x79c   :  { %9793 = vrot.lane.b32.xlu1 %v10892_v22, %s13368_s29  ;;  %1602 = vrot.lane.b32.xlu0 %v10897_v26, %s13367_s22 }
 0x7a0   :  { %1450 = vrot.lane.b32.xlu1 %v10939_v52, %s13368_s29  ;;  %9788 = vrot.lane.b32.xlu0 %v10880_v13, %s13368_s29 }
 0x7a4   :  { %9798 = vrot.lane.b32.xlu0 %v10904_v25, %s13368_s29 }
 0x7f6   :  { %v10975_v1 = vpop.permute.xlu1 %1622  ;;  %v1189_v2 = vpop.permute.xlu0 %1188 }
 0x7f7   :  { %8533 = vmatprep.subr.msk.mxu0 %vm249_vm3, %v1189_v2 }
 0x7f8   :  { %8534 = vmatpush3.xpose.msk.msra.mxu0 %vm249_vm3, %v1189_v2 }
 0x7f9   :  { %9340 = vmatprep.subr.msk.bf16.mxu0 %vm10918_vm6, %v9338_v5 }
 0x7fa   :  { %v1593_v7 = vpop.permute.xlu1 %1592  ;;  %v9769_v12 = vpop.permute.xlu0 %9768 }
 0x7fb   :  { %v9771_v17 = vunpack.i.h.bf16 %v9769_v12  ;;  %v9770_v18 = vunpack.i.l.bf16 %v9769_v12  ;;  %8536 = vmatmul.mubr.msk.f32.vlgmr.msra.gmra.mrb[10].mxu0 %vm249_vm3, %v10864_v60 }
 0x7fc   :  { %8538 = vmatprep.mubr.msk.f32.mxu0 %vm249_vm3, %v10873_v8  ;;  %9343 = vmatpush3.bf16.xpose.msk.msra.mxu0 %vm10918_vm6, %v9338_v5 }
 0x7fd   :  { %v9344_v58 = vpack.c.bf16 %v9771_v17, %v9770_v18  ;;  %v11049_v18 = vld [vmem:[%s13369_s30 + $0x10] sm:$0xff] }
 0x7fe   :  { %v1597_v59 = vpop.permute.xlu1 %1596  ;;  %v9779_v61 = vpop.permute.xlu0 %9778 }
 0x7ff   :  { %8539 = vmatmul.mubr.msk.f32.gmra.mrb[12].mxu0 %vm249_vm3, %v10876_v10  ;;  %9346 = vmatprep.subr.msk.bf16.mxu0 %vm10918_vm6, %v9344_v58  ;;  %v9781_v21 = vunpack.i.h.bf16 %v9779_v61  ;;  %v9780_v23 = vunpack.i.l.bf16 %v9779_v61 }
 0x800   :  { %8541 = vmatprep.mubr.msk.f32.mxu0 %vm249_vm3, %v10885_v16 }
 0x801   :  { %v9356_v29 = vpack.c.bf16 %v9781_v21, %v9780_v23 }
 0x802   :  { %v1601_v9 = vpop.permute.xlu1 %1600  ;;  %v1591_v11 = vpop.permute.xlu0 %1590 }
 0x803   :  { %8542 = vmatmul.mubr.msk.f32.gmra.mrb[14].mxu0 %vm249_vm3, %v10888_v20 }
 0x804   :  { %8544 = vmatprep.mubr.msk.f32.mxu0 %vm249_vm3, %v10897_v26  ;;  %9349 = vmatpush3.bf16.xpose.msk.msra.mxu0 %vm10918_vm6, %v9344_v58 }
 0x805   :  { %9352 = vmatprep.subr.msk.bf16.mxu0 %vm10918_vm6, %v9350_v14 }
 0x806   :  { %v1605_v15 = vpop.permute.xlu1 %1604  ;;  %v1595_v19 = vpop.permute.xlu0 %1594 }
 0x807   :  { %8545 = vmatmul.mubr.msk.f32.gmra.mrb[16].mxu0 %vm249_vm3, %v10900_v28 }
 0x808   :  { %8595 = vmatprep.mubr.msk.f32.mxu0 %vm249_vm3, %v1591_v11 }
 0x80a   :  { %v9784_v24 = vpop.permute.xlu1 %9783  ;;  %v1599_v27 = vpop.permute.xlu0 %1598 }
 0x80b   :  { %v9786_v30 = vunpack.i.h.bf16 %v9784_v24  ;;  %v9785_v31 = vunpack.i.l.bf16 %v9784_v24 }
 0x80c   :  { %9355 = vmatpush3.bf16.xpose.msk.msra.mxu0 %vm10918_vm6, %v9350_v14 }
 0x80d   :  { %9358 = vmatprep.subr.msk.bf16.mxu0 %vm10918_vm6, %v9356_v29  ;;  %v9322_v32 = vpack.c.bf16 %v9786_v30, %v9785_v31 }
 0x80e   :  { %v1603_v33 = vpop.permute.xlu0 %1602  ;;  %v9794_v34 = vpop.permute.xlu1 %9793 }
 0x80f   :  { %9323 = vmatprep.subr.bf16.mxu1 %v9322_v32  ;;  %v9796_v36 = vunpack.i.h.bf16 %v9794_v34  ;;  %v9795_v37 = vunpack.i.l.bf16 %v9794_v34 }
 0x810   :  { %9325 = vmatpush3.bf16.msra.mxu1 %v9322_v32 }
 0x811   :  { %v9330_v45 = vpack.c.bf16 %v9796_v36, %v9795_v37 }
 0x812   :  { %v9789_v35 = vpop.permute.xlu0 %9788  ;;  %v1451_v47 = vpop.permute.xlu1 %1450 }
 0x813   :  { %v9791_v38 = vunpack.i.h.bf16 %v9789_v35  ;;  %v9790_v39 = vunpack.i.l.bf16 %v9789_v35 }
 0x814   :  { %9361 = vmatpush3.bf16.xpose.msk.msra.mxu0 %vm10918_vm6, %v9356_v29 }
 0x815   :  { %8593 = vmatprep.subr.msk.mxu0 %vm249_vm3, %v10975_v1  ;;  %v9326_v41 = vpack.c.bf16 %v9791_v38, %v9790_v39 }
 0x816   :  { %v9799_v42 = vpop.permute.xlu0 %9798 }
 0x817   :  { %v9801_v43 = vunpack.i.h.bf16 %v9799_v42  ;;  %v9800_v44 = vunpack.i.l.bf16 %v9799_v42  ;;  %9327 = vmatprep.subr.bf16.mxu1 %v9326_v41 }
 0x818   :  { %9329 = vmatpush3.bf16.msra.mxu1 %v9326_v41 }
 0x819   :  { %9331 = vmatprep.subr.bf16.mxu1 %v9330_v45  ;;  %v9334_v46 = vpack.c.bf16 %v9801_v43, %v9800_v44 }
 0x81c   :  { %9333 = vmatpush3.bf16.msra.mxu1 %v9330_v45  ;;  %8594 = vmatpush3.xpose.msk.msra.mxu0 %vm249_vm3, %v10975_v1  ;;  %v11040_v1 = vld [vmem:[%s13369_s30 + $0x18] sm:$0xff] }
 0x81d   :  { %9335 = vmatprep.subr.bf16.mxu1 %v9334_v46 }
 0x81f   :  { %8596 = vmatmul.mubr.msk.f32.vlgmr.msra.gmra.mrb[18].mxu0 %vm249_vm3, %v1593_v7 }
 0x820   :  { %9337 = vmatpush3.bf16.msra.mxu1 %v9334_v46  ;;  %8598 = vmatprep.mubr.msk.f32.mxu0 %vm249_vm3, %v1595_v19 }
 0x821   :  { %8563 = vmatprep.subr.mxu1 %v1451_v47 }
 0x823   :  { %8599 = vmatmul.mubr.msk.f32.gmra.mrb[20].mxu0 %vm249_vm3, %v1597_v59 }
 0x824   :  { %8564 = vmatpush3.msra.mxu1 %v1451_v47  ;;  %8601 = vmatprep.mubr.msk.f32.mxu0 %vm249_vm3, %v1599_v27  ;;  %v11077_v27 = vld [vmem:[%s13369_s30 + $0x30] sm:$0xff] }
 0x827   :  { %8602 = vmatmul.mubr.msk.f32.gmra.mrb[22].mxu0 %vm249_vm3, %v1601_v9  ;;  %v11062_v9 = vld [vmem:[%s13369_s30 + $0x20] sm:$0xff] }
 0x828   :  { %8604 = vmatprep.mubr.msk.f32.mxu0 %vm249_vm3, %v1603_v33  ;;  %v11087_v33 = vld [vmem:[%s13369_s30 + $0x38] sm:$0xff] }
 0x82b   :  { %8605 = vmatmul.mubr.msk.f32.gmra.mrb[24].mxu0 %vm249_vm3, %v1605_v15  ;;  %v11067_v15 = vld [vmem:[%s13369_s30 + $0x28] sm:$0xff] }
 0x8ce   :  { %v8537_v48 = vpop.f32.mrb[10].mxu0 }
 0x8cf   :  { %v1330_v50 = vmul.f32 0.35355338, %v8537_v48  ;;  %v1290_v51 = vpop.f32.mrb[11].mxu0 }
 0x8d0   :  { %v1329_v54 = vmul.f32 0.35355338, %v1290_v51 }
 0x8d1   :  { %v11032_v55 = vadd.f32 %v1330_v50, %v11024_v49 }
 0x8d2   :  { %v8540_v56 = vpop.f32.mrb[12].mxu0  ;;  %v11035_v0 = vadd.f32 %v1329_v54, %v11029_v53 }
 0x8d3   :  { %v1332_v2 = vmul.f32 0.35355338, %v8540_v56  ;;  %v1300_v5 = vpop.f32.mrb[13].mxu0  ;;  %v1349_v7 = vsel %vm1345_vm7, %v11032_v55, -inf }
 0x8d4   :  { %v1331_v12 = vmul.f32 0.35355338, %v1300_v5  ;;  %1350 = vmax.xlane.f32.xlu1 %v1349_v7  ;;  %v1346_v17 = vsel %vm1345_vm7, %v11035_v0, -inf }
 0x8d5   :  { %1347 = vmax.xlane.f32.xlu0 %v1346_v17  ;;  %v11052_v58 = vadd.f32 %v1332_v2, %v11040_v1 }
 0x8d6   :  { %v8543_v59 = vpop.f32.mrb[14].mxu0  ;;  %v11057_v4 = vadd.f32 %v1331_v12, %v11049_v18 }
 0x8d7   :  { %v1310_v61 = vpop.f32.mrb[15].mxu0  ;;  %v1355_v63 = vsel %vm1345_vm7, %v11052_v58, -inf  ;;  %v1334_v11 = vmul.f32 0.35355338, %v8543_v59 }
 0x8d8   :  { %v1333_v14 = vmul.f32 0.35355338, %v1310_v61  ;;  %v1352_v24 = vsel %vm1345_vm7, %v11057_v4, -inf }
 0x8d9   :  { %1356 = vmax.xlane.f32.xlu0 %v1355_v63  ;;  %v11082_v32 = vadd.f32 %v1334_v11, %v11067_v15 }
 0x8da   :  { %v8546_v19 = vpop.f32.mrb[16].mxu0  ;;  %v11070_v21 = vadd.f32 %v1333_v14, %v11062_v9 }
 0x8db   :  { %v1320_v23 = vpop.f32.mrb[17].mxu0  ;;  %v1336_v29 = vmul.f32 0.35355338, %v8546_v19  ;;  %v1361_v35 = vsel %vm1345_vm7, %v11082_v32, -inf }
 0x8dc   :  { %v1335_v30 = vmul.f32 0.35355338, %v1320_v23  ;;  %v1358_v31 = vsel %vm1345_vm7, %v11070_v21, -inf }
 0x8dd   :  { %1353 = vmax.xlane.f32.xlu0 %v1352_v24  ;;  %1359 = vmax.xlane.f32.xlu1 %v1358_v31  ;;  %v11097_v37 = vadd.f32 %v1336_v29, %v11087_v33 }
 0x8de   :  { %v11090_v34 = vadd.f32 %v1335_v30, %v11077_v27 }
 0x8df   :  { %v1367_v38 = vsel %vm1345_vm7, %v11097_v37, -inf }
 0x8e0   :  { %v1364_v36 = vsel %vm1345_vm7, %v11090_v34, -inf }
 0x8e1   :  { %1362 = vmax.xlane.f32.xlu0 %v1361_v35  ;;  %1365 = vmax.xlane.f32.xlu1 %v1364_v36 }
 0x8e5   :  { %1368 = vmax.xlane.f32.xlu0 %v1367_v38 }
 0x8f2   :  { %v8597_v39 = vpop.f32.mrb[18].mxu0  ;;  %9808 = vrot.lane.b32.xlu1 %v10880_v13, %s13370_s0 }
 0x8f3   :  { %v1764_v41 = vmul.f32 0.35355338, %v8597_v39  ;;  %v1724_v42 = vpop.f32.mrb[19].mxu0 }
 0x8f4   :  { %v1763_v54 = vmul.f32 0.35355338, %v1724_v42 }
 0x8f5   :  { %v11104_v43 = vadd.f32 %v1764_v41, %v11024_v49 }
 0x8f6   :  { %v8600_v44 = vpop.f32.mrb[20].mxu0  ;;  %9813 = vrot.lane.b32.xlu1 %v10892_v22, %s13370_s0  ;;  %v11115_v2 = vadd.f32 %v1763_v54, %v11029_v53 }
 0x8f7   :  { %v1734_v45 = vpop.f32.mrb[21].mxu0  ;;  %v1782_v46 = vsel %vm1345_vm7, %v11104_v43, -inf  ;;  %v1766_v63 = vmul.f32 0.35355338, %v8600_v44 }
 0x8f8   :  { %1783 = vmax.xlane.f32.xlu0 %v1782_v46  ;;  %v1765_v56 = vmul.f32 0.35355338, %v1734_v45  ;;  %v1779_v7 = vsel %vm1345_vm7, %v11115_v2, -inf }
 0x8f9   :  { %v11133_v23 = vadd.f32 %v1766_v63, %v11040_v1 }
 0x8fa   :  { %v8603_v47 = vpop.f32.mrb[22].mxu0  ;;  %9818 = vrot.lane.b32.xlu1 %v10904_v25, %s13370_s0  ;;  %v11120_v12 = vadd.f32 %v1765_v56, %v11049_v18 }
 0x8fb   :  { %v1744_v48 = vpop.f32.mrb[23].mxu0  ;;  %v1768_v19 = vmul.f32 0.35355338, %v8603_v47  ;;  %v1788_v30 = vsel %vm1345_vm7, %v11133_v23, -inf }
 0x8fc   :  { %v1767_v5 = vmul.f32 0.35355338, %v1744_v48  ;;  %v1785_v59 = vsel %vm1345_vm7, %v11120_v12, -inf }
 0x8fd   :  { %v11140_v31 = vadd.f32 %v1768_v19, %v11067_v15 }
 0x8fe   :  { %v8606_v50 = vpop.f32.mrb[24].mxu0  ;;  %v11125_v61 = vadd.f32 %v1767_v5, %v11062_v9 }
 0x8ff   :  { %v1754_v51 = vpop.f32.mrb[25].mxu0  ;;  %v1770_v29 = vmul.f32 0.35355338, %v8606_v50  ;;  %v1794_v35 = vsel %vm1345_vm7, %v11140_v31, -inf }
 0x900   :  { %v1769_v17 = vmul.f32 0.35355338, %v1754_v51  ;;  %v1791_v11 = vsel %vm1345_vm7, %v11125_v61, -inf }
 0x901   :  { %v11145_v36 = vadd.f32 %v1770_v29, %v11087_v33 }
 0x902   :  { %v11130_v14 = vadd.f32 %v1769_v17, %v11077_v27 }
 0x903   :  { %v1800_v38 = vsel %vm1345_vm7, %v11145_v36, -inf }
 0x904   :  { %v1797_v24 = vsel %vm1345_vm7, %v11130_v14, -inf }
 0x90e   :  { %9803 = vrot.lane.b32.xlu0 %v10868_v62, %s13370_s0 }
 0x91e   :  { %1780 = vmax.xlane.f32.xlu1 %v1779_v7 }
 0x922   :  { %1786 = vmax.xlane.f32.xlu1 %v1785_v59 }
 0x926   :  { %1792 = vmax.xlane.f32.xlu1 %v1791_v11 }
 0x92a   :  { %1798 = vmax.xlane.f32.xlu1 %v1797_v24 }
 0x92d   :  { %1789 = vmax.xlane.f32.xlu0 %v1788_v30 }
 0x931   :  { %1795 = vmax.xlane.f32.xlu0 %v1794_v35 }
 0x935   :  { %1801 = vmax.xlane.f32.xlu0 %v1800_v38 }
 0x93b   :  { %1883 = vrot.lane.b32.xlu1 %v10939_v52, %s13370_s0 }
 0x961   :  { %v1351_v39 = vpop.xlane.xlu1 %1350 }
 0x962   :  { %v1371_v41 = vsub.f32 %v11032_v55, %v1351_v39  ;;  %v1348_v42 = vpop.xlane.xlu0 %1347 }
 0x963   :  { %v1370_v44 = vsub.f32 %v11035_v0, %v1348_v42 }
 0x964   :  { %v1380_v45 = vmul.f32 1.442695, %v1371_v41 }
 0x965   :  { %v1378_v46 = vmul.f32 1.442695, %v1370_v44 }
 0x966   :  { %10078 = vpow2.f32 %v1380_v45  ;;  %v1357_v47 = vpop.xlane.xlu0 %1356 }
 0x967   :  { %10080 = vpow2.f32 %v1378_v46  ;;  %v1373_v48 = vsub.f32 %v11052_v58, %v1357_v47 }
 0x969   :  { %v1384_v50 = vmul.f32 1.442695, %v1373_v48 }
 0x96a   :  { %v1354_v51 = vpop.xlane.xlu0 %1353  ;;  %v1360_v54 = vpop.xlane.xlu1 %1359 }
 0x96b   :  { %10082 = vpow2.f32 %v1384_v50  ;;  %v1372_v56 = vsub.f32 %v11057_v4, %v1354_v51  ;;  %v1374_v7 = vsub.f32 %v11070_v21, %v1360_v54 }
 0x96d   :  { %v1382_v5 = vmul.f32 1.442695, %v1372_v56  ;;  %v1386_v11 = vmul.f32 1.442695, %v1374_v7 }
 0x96e   :  { %v1363_v55 = vpop.xlane.xlu0 %1362  ;;  %v1366_v17 = vpop.xlane.xlu1 %1365 }
 0x96f   :  { %10084 = vpow2.f32 %v1382_v5  ;;  %v1375_v0 = vsub.f32 %v11082_v32, %v1363_v55  ;;  %v1376_v19 = vsub.f32 %v11090_v34, %v1366_v17 }
 0x970   :  { %v11157_v59 = vpop.eup %10078 }
 0x971   :  { %v11159_v63 = vpop.eup %10080  ;;  %v1388_v58 = vmul.f32 1.442695, %v1375_v0  ;;  %v1397_v24 = vsel %vm1345_vm7, %v11157_v59, 0.0  ;;  %v1390_v30 = vmul.f32 1.442695, %v1376_v19 }
 0x972   :  { %v1369_v4 = vpop.xlane.xlu0 %1368  ;;  %1398 = vadd.xlane.f32.xlu0 %v1397_v24  ;;  %v1394_v21 = vsel %vm1345_vm7, %v11159_v63, 0.0 }
 0x973   :  { %10086 = vpow2.f32 %v1388_v58  ;;  %v1377_v29 = vsub.f32 %v11097_v37, %v1369_v4  ;;  %1395 = vadd.xlane.f32.xlu1 %v1394_v21 }
 0x974   :  { %10088 = vpow2.f32 %v1386_v11 }
 0x975   :  { %v11167_v32 = vpop.eup %10082  ;;  %v1392_v35 = vmul.f32 1.442695, %v1377_v29 }
 0x976   :  { %v1403_v34 = vsel %vm1345_vm7, %v11167_v32, 0.0 }
 0x977   :  { %10090 = vpow2.f32 %v1392_v35  ;;  %1404 = vadd.xlane.f32.xlu1 %v1403_v34 }
 0x978   :  { %10092 = vpow2.f32 %v1390_v30 }
 0x979   :  { %v11171_v38 = vpop.eup %10084 }
 0x97a   :  { %v1400_v39 = vsel %vm1345_vm7, %v11171_v38, 0.0 }
 0x97b   :  { %1401 = vadd.xlane.f32.xlu0 %v1400_v39 }
 0x97d   :  { %v11175_v41 = vpop.eup %10086 }
 0x97e   :  { %v1409_v37 = vsel %vm1345_vm7, %v11175_v41, 0.0  ;;  %v11179_v42 = vpop.eup %10088 }
 0x97f   :  { %1410 = vadd.xlane.f32.xlu0 %v1409_v37  ;;  %v1406_v45 = vsel %vm1345_vm7, %v11179_v42, 0.0 }
 0x981   :  { %v11181_v44 = vpop.eup %10090 }
 0x982   :  { %v1415_v46 = vsel %vm1345_vm7, %v11181_v44, 0.0  ;;  %v11187_v47 = vpop.eup %10092 }
 0x983   :  { %1407 = vadd.xlane.f32.xlu0 %v1406_v45  ;;  %1416 = vadd.xlane.f32.xlu1 %v1415_v46  ;;  %v1412_v51 = vsel %vm1345_vm7, %v11187_v47, 0.0 }
 0x985   :  { %v1784_v48 = vpop.xlane.xlu0 %1783 }
 0x986   :  { %v1804_v50 = vsub.f32 %v11104_v43, %v1784_v48  ;;  %v11199_v43 = vpop.permute.xlu1 %9808 }
 0x987   :  { %1413 = vadd.xlane.f32.xlu0 %v1412_v51 }
 0x988   :  { %v1813_v54 = vmul.f32 1.442695, %v1804_v50 }
 0x989   :  { %v9804_v56 = vpop.permute.xlu0 %9803 }
 0x98a   :  { %10094 = vpow2.f32 %v1813_v54  ;;  %v9806_v5 = vunpack.i.h.bf16 %v9804_v56  ;;  %v9805_v7 = vunpack.i.l.bf16 %v9804_v56  ;;  %v11201_v11 = vpop.permute.xlu1 %9813 }
 0x98c   :  { %v11192_v55 = vpack.c.bf16 %v9806_v5, %v9805_v7 }
 0x98e   :  { %9363 = vmatprep.subr.bf16.mxu1 %v11192_v55  ;;  %v11203_v58 = vpop.permute.xlu1 %9818 }
 0x994   :  { %v11195_v17 = vpop.eup %10094 }
 0x995   :  { %v1830_v0 = vsel %vm1345_vm7, %v11195_v17, 0.0 }
 0x996   :  { %1831 = vadd.xlane.f32.xlu1 %v1830_v0 }
 0x9ab   :  { %v1781_v19 = vpop.xlane.xlu1 %1780 }
 0x9ac   :  { %v1803_v24 = vsub.f32 %v11115_v2, %v1781_v19 }
 0x9ae   :  { %v1811_v4 = vmul.f32 1.442695, %v1803_v24 }
 0x9af   :  { %v1787_v21 = vpop.xlane.xlu1 %1786 }
 0x9b0   :  { %10096 = vpow2.f32 %v1811_v4 }
 0x9b3   :  { %v1793_v30 = vpop.xlane.xlu1 %1792 }
 0x9b4   :  { %v1807_v37 = vsub.f32 %v11125_v61, %v1793_v30 }
 0x9b6   :  { %v1819_v48 = vmul.f32 1.442695, %v1807_v37 }
 0x9b7   :  { %v1799_v51 = vpop.xlane.xlu1 %1798 }
 0x9ba   :  { %v11206_v29 = vpop.eup %10096  ;;  %v1790_v35 = vpop.xlane.xlu0 %1789 }
 0x9bb   :  { %v1806_v34 = vsub.f32 %v11133_v23, %v1790_v35  ;;  %v1827_v39 = vsel %vm1345_vm7, %v11206_v29, 0.0  ;;  %v1809_v23 = vsub.f32 %v11130_v14, %v1799_v51 }
 0x9bc   :  { %1828 = vadd.xlane.f32.xlu0 %v1827_v39 }
 0x9bd   :  { %v1817_v45 = vmul.f32 1.442695, %v1806_v34  ;;  %v1823_v0 = vmul.f32 1.442695, %v1809_v23  ;;  %v1805_v34 = vsub.f32 %v11120_v12, %v1787_v21  ;;  %v11250_v12 = vpop.permute.xlu1 %1883 }
 0x9be   :  { %v1796_v46 = vpop.xlane.xlu0 %1795 }
 0x9bf   :  { %10098 = vpow2.f32 %v1817_v45  ;;  %v1808_v2 = vsub.f32 %v11140_v31, %v1796_v46  ;;  %v1815_v39 = vmul.f32 1.442695, %v1805_v34  ;;  %v9820_v34 = vunpack.i.l.bf16 %v11203_v58 }
 0x9c1   :  { %v1821_v50 = vmul.f32 1.442695, %v1808_v2 }
 0x9c2   :  { %v1802_v54 = vpop.xlane.xlu0 %1801 }
 0x9c3   :  { %10100 = vpow2.f32 %v1821_v50  ;;  %v1810_v56 = vsub.f32 %v11145_v36, %v1802_v54  ;;  %v9811_v54 = vunpack.i.h.bf16 %v11199_v43 }
 0x9c4   :  { %10102 = vpow2.f32 %v1819_v48 }
 0x9c5   :  { %v1825_v5 = vmul.f32 1.442695, %v1810_v56  ;;  %v9810_v56 = vunpack.i.l.bf16 %v11199_v43 }
 0x9c7   :  { %10104 = vpow2.f32 %v1825_v5  ;;  %v9366_v43 = vpack.c.bf16 %v9811_v54, %v9810_v56 }
 0x9c8   :  { %10106 = vpow2.f32 %v1823_v0 }
 0x9c9   :  { %v11215_v7 = vpop.eup %10098  ;;  %10108 = vpow2.f32 %v1815_v39 }
 0x9ca   :  { %v1836_v61 = vsel %vm1345_vm7, %v11215_v7, 0.0 }
 0x9cb   :  { %1837 = vadd.xlane.f32.xlu1 %v1836_v61  ;;  %v9816_v61 = vunpack.i.h.bf16 %v11201_v11 }
 0x9cd   :  { %v11219_v31 = vpop.eup %10100 }
 0x9ce   :  { %v1842_v19 = vsel %vm1345_vm7, %v11219_v31, 0.0  ;;  %v11223_v24 = vpop.eup %10102 }
 0x9cf   :  { %1843 = vadd.xlane.f32.xlu1 %v1842_v19  ;;  %v1839_v14 = vsel %vm1345_vm7, %v11223_v24, 0.0  ;;  %v9815_v19 = vunpack.i.l.bf16 %v11201_v11 }
 0x9d1   :  { %v11229_v36 = vpop.eup %10104  ;;  %v9370_v11 = vpack.c.bf16 %v9816_v61, %v9815_v19 }
 0x9d2   :  { %9823 = vrot.lane.b32.xlu0 %v10868_v62, %s13371_s23  ;;  %v1848_v4 = vsel %vm1345_vm7, %v11229_v36, 0.0  ;;  %v11233_v30 = vpop.eup %10106 }
 0x9d3   :  { %1840 = vadd.xlane.f32.xlu1 %v1839_v14  ;;  %v1845_v35 = vsel %vm1345_vm7, %v11233_v30, 0.0  ;;  %v11240_v37 = vpop.eup %10108 }
 0x9d4   :  { %v1833_v45 = vsel %vm1345_vm7, %v11240_v37, 0.0 }
 0x9d7   :  { %1849 = vadd.xlane.f32.xlu1 %v1848_v4 }
 0x9db   :  { %1846 = vadd.xlane.f32.xlu1 %v1845_v35  ;;  %v9821_v35 = vunpack.i.h.bf16 %v11203_v58 }
 0x9dd   :  { %v9374_v58 = vpack.c.bf16 %v9821_v35, %v9820_v34 }
 0x9ec   :  { %9828 = vrot.lane.b32.xlu1 %v10880_v13, %s13371_s23 }
 0x9f0   :  { %2027 = vrot.lane.b32.xlu1 %v10873_v8, %s13372_s28 }
 0x9f1   :  { %1834 = vadd.xlane.f32.xlu0 %v1833_v45 }
 0x9f4   :  { %2031 = vrot.lane.b32.xlu1 %v10885_v16, %s13372_s28 }
 0x9f8   :  { %2035 = vrot.lane.b32.xlu1 %v10897_v26, %s13372_s28 }
 0x9fc   :  { %9848 = vrot.lane.b32.xlu1 %v10880_v13, %s13373_s4 }
 0x9ff   :  { %v1399_v21 = vpop.xlane.xlu0 %1398 }
 0xa00   :  { %10110 = vrcp.f32 %v1399_v21  ;;  %9853 = vrot.lane.b32.xlu1 %v10892_v22, %s13373_s4  ;;  %v1396_v46 = vpop.xlane.xlu1 %1395 }
 0xa01   :  { %10112 = vrcp.f32 %v1396_v46 }
 0xa04   :  { %v1405_v2 = vpop.xlane.xlu1 %1404 }
 0xa05   :  { %10114 = vrcp.f32 %v1405_v2 }
 0xa07   :  { %9833 = vrot.lane.b32.xlu0 %v10892_v22, %s13371_s23 }
 0xa08   :  { %v1402_v48 = vpop.xlane.xlu0 %1401 }
 0xa09   :  { %10116 = vrcp.f32 %v1402_v48 }
 0xa0a   :  { %v10111_v50 = vpop.eup %10110 }
 0xa0b   :  { %v10113_v51 = vpop.eup %10112  ;;  %9838 = vrot.lane.b32.xlu0 %v10904_v25, %s13371_s23  ;;  %v1427_v0 = vmul.f32 %v10111_v50, %v11157_v59 }
 0xa0c   :  { %v1411_v23 = vpop.xlane.xlu0 %1410  ;;  %v1426_v5 = vmul.f32 %v10113_v51, %v11159_v63 }
 0xa0d   :  { %10118 = vrcp.f32 %v1411_v23 }
 0xa0e   :  { %8565 = vmatprep.mubr.msk.f32.mxu1 %vm1345_vm7, %v1426_v5 }
 0xa0f   :  { %2055 = vrot.lane.b32.xlu0 %v10939_v52, %s13371_s23  ;;  %8566 = vmatmul.mubr.msk.f32.vlgmr.msra.gmra.mrb[30].mxu1 %vm1345_vm7, %v1427_v0  ;;  %v10115_v59 = vpop.eup %10114 }
 0xa10   :  { %9365 = vmatpush3.bf16.msra.mxu1 %v11192_v55  ;;  %v1408_v14 = vpop.xlane.xlu0 %1407  ;;  %v1417_v63 = vpop.xlane.xlu1 %1416  ;;  %v1429_v55 = vmul.f32 %v10115_v59, %v11167_v32 }
 0xa11   :  { %10120 = vrcp.f32 %v1408_v14  ;;  %9367 = vmatprep.subr.bf16.mxu1 %v9366_v43 }
 0xa12   :  { %10122 = vrcp.f32 %v1417_v63 }
 0xa13   :  { %v10117_v4 = vpop.eup %10116  ;;  %2023 = vrot.lane.b32.xlu0 %v10859_v57, %s13372_s28 }
 0xa14   :  { %9369 = vmatpush3.bf16.msra.mxu1 %v9366_v43  ;;  %v1414_v39 = vpop.xlane.xlu0 %1413  ;;  %v1428_v45 = vmul.f32 %v10117_v4, %v11171_v38 }
 0xa15   :  { %10124 = vrcp.f32 %v1414_v39  ;;  %9371 = vmatprep.subr.bf16.mxu1 %v9370_v11 }
 0xa16   :  { %8568 = vmatprep.mubr.msk.f32.mxu1 %vm1345_vm7, %v1428_v45 }
 0xa17   :  { %2025 = vrot.lane.b32.xlu0 %v10864_v60, %s13372_s28  ;;  %8569 = vmatmul.mubr.msk.f32.gmra.mrb[32].mxu1 %vm1345_vm7, %v1429_v55  ;;  %v10119_v21 = vpop.eup %10118 }
 0xa18   :  { %9373 = vmatpush3.bf16.msra.mxu1 %v9370_v11  ;;  %v1431_v32 = vmul.f32 %v10119_v21, %v11175_v41 }
 0xa19   :  { %9375 = vmatprep.subr.bf16.mxu1 %v9374_v58 }
 0xa1b   :  { %v10121_v46 = vpop.eup %10120  ;;  %2029 = vrot.lane.b32.xlu0 %v10876_v10, %s13372_s28 }
 0xa1c   :  { %9377 = vmatpush3.bf16.msra.mxu1 %v9374_v58  ;;  %v1430_v38 = vmul.f32 %v10121_v46, %v11179_v42  ;;  %v10123_v2 = vpop.eup %10122 }
 0xa1d   :  { %8623 = vmatprep.subr.mxu1 %v11250_v12  ;;  %v1433_v51 = vmul.f32 %v10123_v2, %v11181_v44 }
 0xa1e   :  { %8571 = vmatprep.mubr.msk.f32.mxu1 %vm1345_vm7, %v1430_v38 }
 0xa1f   :  { %v10125_v48 = vpop.eup %10124  ;;  %2033 = vrot.lane.b32.xlu0 %v10888_v20, %s13372_s28  ;;  %8572 = vmatmul.mubr.msk.f32.gmra.mrb[34].mxu1 %vm1345_vm7, %v1431_v32 }
 0xa20   :  { %8624 = vmatpush3.msra.mxu1 %v11250_v12  ;;  %v1432_v50 = vmul.f32 %v10125_v48, %v11187_v47 }
 0xa22   :  { %8574 = vmatprep.mubr.msk.f32.mxu1 %vm1345_vm7, %v1432_v50 }
 0xa23   :  { %2037 = vrot.lane.b32.xlu0 %v10900_v28, %s13372_s28  ;;  %8575 = vmatmul.mubr.msk.f32.gmra.mrb[36].mxu1 %vm1345_vm7, %v1433_v51  ;;  %v1832_v41 = vpop.xlane.xlu1 %1831 }
 0xa24   :  { %10126 = vrcp.f32 %v1832_v41 }
 0xa27   :  { %9843 = vrot.lane.b32.xlu0 %v10868_v62, %s13373_s4 }
 0xa2b   :  { %9858 = vrot.lane.b32.xlu0 %v10904_v25, %s13373_s4 }
 0xa2e   :  { %v10127_v56 = vpop.eup %10126 }
 0xa2f   :  { %v1860_v0 = vmul.f32 %v10127_v56, %v11195_v17 }
 0xa49   :  { %v1829_v42 = vpop.xlane.xlu0 %1828 }
 0xa4a   :  { %10128 = vrcp.f32 %v1829_v42 }
 0xa4d   :  { %v9824_v47 = vpop.permute.xlu0 %9823 }
 0xa4e   :  { %v9826_v12 = vunpack.i.h.bf16 %v9824_v47  ;;  %v9825_v44 = vunpack.i.l.bf16 %v9824_v47 }
 0xa50   :  { %v9378_v54 = vpack.c.bf16 %v9826_v12, %v9825_v44 }
 0xa52   :  { %9380 = vmatprep.subr.msk.bf16.mxu1 %vm10918_vm6, %v9378_v54 }
 0xa54   :  { %v10129_v23 = vpop.eup %10128 }
 0xa55   :  { %v1859_v5 = vmul.f32 %v10129_v23, %v11206_v29 }
 0xa57   :  { %8625 = vmatprep.mubr.msk.f32.mxu1 %vm1345_vm7, %v1859_v5 }
 0xa58   :  { %v1838_v61 = vpop.xlane.xlu1 %1837  ;;  %8626 = vmatmul.mubr.msk.f32.vlgmr.msra.gmra.mrb[38].mxu1 %vm1345_vm7, %v1860_v0 }
 0xa59   :  { %9383 = vmatpush3.bf16.xpose.msk.msra.mxu1 %vm10918_vm6, %v9378_v54  ;;  %10130 = vrcp.f32 %v1838_v61 }
 0xa5c   :  { %v1844_v19 = vpop.xlane.xlu1 %1843 }
 0xa60   :  { %v1841_v43 = vpop.xlane.xlu1 %1840 }
 0xa61   :  { %10132 = vrcp.f32 %v1841_v43 }
 0xa63   :  { %v10131_v58 = vpop.eup %10130 }
 0xa64   :  { %v1850_v14 = vpop.xlane.xlu1 %1849  ;;  %v1862_v51 = vmul.f32 %v10131_v58, %v11215_v7 }
 0xa68   :  { %v1847_v63 = vpop.xlane.xlu1 %1846 }
 0xa6b   :  { %v10133_v38 = vpop.eup %10132 }
 0xa6c   :  { %v9829_v59 = vpop.permute.xlu1 %9828  ;;  %v1863_v47 = vmul.f32 %v10133_v38, %v11223_v24 }
 0xa6d   :  { %v9831_v4 = vunpack.i.h.bf16 %v9829_v59  ;;  %v9830_v35 = vunpack.i.l.bf16 %v9829_v59 }
 0xa6f   :  { %v9384_v34 = vpack.c.bf16 %v9831_v4, %v9830_v35 }
 0xa70   :  { %v2028_v42 = vpop.permute.xlu1 %2027 }
 0xa71   :  { %9386 = vmatprep.subr.msk.bf16.mxu1 %vm10918_vm6, %v9384_v34 }
 0xa72   :  { %9389 = vmatpush3.bf16.xpose.msk.msra.mxu1 %vm10918_vm6, %v9384_v34 }
 0xa74   :  { %v2032_v56 = vpop.permute.xlu1 %2031 }
 0xa7e   :  { %v1835_v17 = vpop.xlane.xlu0 %1834 }
 0xa7f   :  { %10134 = vrcp.f32 %v1835_v17 }
 0xa80   :  { %10136 = vrcp.f32 %v1844_v19 }
 0xa81   :  { %10138 = vrcp.f32 %v1847_v63 }
 0xa82   :  { %v9834_v29 = vpop.permute.xlu0 %9833  ;;  %10140 = vrcp.f32 %v1850_v14 }
 0xa83   :  { %v9836_v11 = vunpack.i.h.bf16 %v9834_v29  ;;  %v9835_v39 = vunpack.i.l.bf16 %v9834_v29 }
 0xa85   :  { %v9390_v45 = vpack.c.bf16 %v9836_v11, %v9835_v39 }
 0xa86   :  { %v9839_v55 = vpop.permute.xlu0 %9838 }
 0xa87   :  { %v9841_v21 = vunpack.i.h.bf16 %v9839_v55  ;;  %v9840_v46 = vunpack.i.l.bf16 %v9839_v55  ;;  %9392 = vmatprep.subr.msk.bf16.mxu1 %vm10918_vm6, %v9390_v45 }
 0xa88   :  { %9395 = vmatpush3.bf16.xpose.msk.msra.mxu1 %vm10918_vm6, %v9390_v45 }
 0xa89   :  { %v10135_v32 = vpop.eup %10134  ;;  %v9396_v2 = vpack.c.bf16 %v9841_v21, %v9840_v46 }
 0xa8a   :  { %v2056_v48 = vpop.permute.xlu0 %2055  ;;  %v1861_v50 = vmul.f32 %v10135_v32, %v11240_v37  ;;  %v10137_v41 = vpop.eup %10136 }
 0xa8b   :  { %9398 = vmatprep.subr.msk.bf16.mxu1 %vm10918_vm6, %v9396_v2  ;;  %v10139_v12 = vpop.eup %10138  ;;  %v1864_v54 = vmul.f32 %v10137_v41, %v11219_v31  ;;  %v2036_v31 = vpop.permute.xlu1 %2035 }
 0xa8c   :  { %8628 = vmatprep.mubr.msk.f32.mxu1 %vm1345_vm7, %v1861_v50  ;;  %v10141_v37 = vpop.eup %10140  ;;  %v1865_v7 = vmul.f32 %v10139_v12, %v11233_v30 }
 0xa8d   :  { %8629 = vmatmul.mubr.msk.f32.gmra.mrb[40].mxu1 %vm1345_vm7, %v1862_v51  ;;  %v1866_v23 = vmul.f32 %v10141_v37, %v11229_v36 }
 0xa8e   :  { %v2024_v44 = vpop.permute.xlu0 %2023  ;;  %8631 = vmatprep.mubr.msk.f32.mxu1 %vm1345_vm7, %v1863_v47 }
 0xa8f   :  { %v9849_v30 = vpop.permute.xlu1 %9848 }
 0xa90   :  { %9401 = vmatpush3.bf16.xpose.msk.msra.mxu1 %vm10918_vm6, %v9396_v2  ;;  %v9851_v19 = vunpack.i.h.bf16 %v9849_v30  ;;  %v9850_v43 = vunpack.i.l.bf16 %v9849_v30 }
 0xa91   :  { %8632 = vmatmul.mubr.msk.f32.gmra.mrb[42].mxu1 %vm1345_vm7, %v1864_v54  ;;  %8653 = vmatprep.subr.msk.mxu1 %vm249_vm3, %v2056_v48 }
 0xa92   :  { %v2026_v24 = vpop.permute.xlu0 %2025  ;;  %8634 = vmatprep.mubr.msk.f32.mxu1 %vm1345_vm7, %v1865_v7  ;;  %v9406_v17 = vpack.c.bf16 %v9851_v19, %v9850_v43 }
 0xa93   :  { %v9854_v59 = vpop.permute.xlu1 %9853 }
 0xa94   :  { %v9856_v35 = vunpack.i.h.bf16 %v9854_v59  ;;  %v9855_v34 = vunpack.i.l.bf16 %v9854_v59 }
 0xa95   :  { %8635 = vmatmul.mubr.msk.f32.gmra.mrb[44].mxu1 %vm1345_vm7, %v1866_v23 }
 0xa96   :  { %v2030_v5 = vpop.permute.xlu0 %2029  ;;  %8655 = vmatprep.mubr.msk.f32.mxu1 %vm249_vm3, %v2024_v44  ;;  %v9410_v45 = vpack.c.bf16 %v9856_v35, %v9855_v34 }
 0xa98   :  { %8654 = vmatpush3.xpose.msk.msra.mxu1 %vm249_vm3, %v2056_v48 }
 0xa9a   :  { %v2034_v0 = vpop.permute.xlu0 %2033 }
 0xa9b   :  { %8656 = vmatmul.mubr.msk.f32.vlgmr.msra.gmra.mrb[46].mxu1 %vm249_vm3, %v2026_v24 }
 0xa9c   :  { %8658 = vmatprep.mubr.msk.f32.mxu1 %vm249_vm3, %v2028_v42 }
 0xa9e   :  { %v2038_v61 = vpop.permute.xlu0 %2037 }
 0xa9f   :  { %8659 = vmatmul.mubr.msk.f32.gmra.mrb[48].mxu1 %vm249_vm3, %v2030_v5 }
 0xaa0   :  { %8661 = vmatprep.mubr.msk.f32.mxu1 %vm249_vm3, %v2032_v56 }
 0xaa2   :  { %v9844_v36 = vpop.permute.xlu0 %9843 }
 0xaa3   :  { %v9846_v14 = vunpack.i.h.bf16 %v9844_v36  ;;  %v9845_v63 = vunpack.i.l.bf16 %v9844_v36  ;;  %8662 = vmatmul.mubr.msk.f32.gmra.mrb[50].mxu1 %vm249_vm3, %v2034_v0 }
 0xaa4   :  { %8664 = vmatprep.mubr.msk.f32.mxu1 %vm249_vm3, %v2036_v31 }
 0xaa5   :  { %v9402_v4 = vpack.c.bf16 %v9846_v14, %v9845_v63 }
 0xaa6   :  { %v9859_v29 = vpop.permute.xlu0 %9858 }
 0xaa7   :  { %8665 = vmatmul.mubr.msk.f32.gmra.mrb[52].mxu1 %vm249_vm3, %v2038_v61  ;;  %9403 = vmatprep.subr.bf16.mxu0 %v9402_v4  ;;  %v9861_v11 = vunpack.i.h.bf16 %v9859_v29  ;;  %v9860_v39 = vunpack.i.l.bf16 %v9859_v29 }
 0xaa8   :  { %9405 = vmatpush3.bf16.msra.mxu0 %v9402_v4 }
 0xaa9   :  { %9407 = vmatprep.subr.bf16.mxu0 %v9406_v17  ;;  %v9414_v55 = vpack.c.bf16 %v9861_v11, %v9860_v39 }
 0xaac   :  { %9409 = vmatpush3.bf16.msra.mxu0 %v9406_v17 }
 0xaad   :  { %9411 = vmatprep.subr.bf16.mxu0 %v9410_v45 }
 0xab0   :  { %9413 = vmatpush3.bf16.msra.mxu0 %v9410_v45 }
 0xab1   :  { %9415 = vmatprep.subr.bf16.mxu0 %v9414_v55 }
 0xab4   :  { %9417 = vmatpush3.bf16.msra.mxu0 %v9414_v55 }
 0xae2   :  { %v11343_v58 = vpop.f32.mrb[30].mxu1 }
 0xae3   :  { %v11345_v21 = vpop.f32.mrb[31].mxu1 }
 0xaea   :  { %v11347_v46 = vpop.f32.mrb[32].mxu1 }
 0xaeb   :  { %v11349_v38 = vpop.f32.mrb[33].mxu1 }
 0xaf2   :  { %v11351_v32 = vpop.f32.mrb[34].mxu1 }
 0xaf3   :  { %v11353_v2 = vpop.f32.mrb[35].mxu1 }
 0xaf6   :  { %v11355_v48 = vpop.f32.mrb[36].mxu1 }
 0xaf7   :  { %v11357_v50 = vpop.f32.mrb[37].mxu1 }
 0xb2b   :  { %v11359_v51 = vpop.f32.mrb[38].mxu1 }
 0xb2c   :  { %v11361_v41 = vpop.f32.mrb[39].mxu1 }
 0xb60   :  { %v11363_v42 = vpop.f32.mrb[40].mxu1 }
 0xb61   :  { %v11365_v47 = vpop.f32.mrb[41].mxu1 }
 0xb64   :  { %v11367_v12 = vpop.f32.mrb[42].mxu1 }
 0xb65   :  { %v11369_v44 = vpop.f32.mrb[43].mxu1 }
 0xb68   :  { %v11371_v54 = vpop.f32.mrb[44].mxu1 }
 0xb69   :  { %v11373_v37 = vpop.f32.mrb[45].mxu1 }
 0xb6e   :  { %v8657_v7 = vpop.f32.mrb[46].mxu1 }
 0xb6f   :  { %v2197_v56 = vmul.f32 0.35355338, %v8657_v7  ;;  %v2157_v24 = vpop.f32.mrb[47].mxu1 }
 0xb70   :  { %v2196_v23 = vmul.f32 0.35355338, %v2157_v24 }
 0xb71   :  { %v2205_v5 = vadd.f32 %v2197_v56, %v11024_v49 }
 0xb72   :  { %v2204_v31 = vadd.f32 %v2196_v23, %v11029_v53  ;;  %v8660_v0 = vpop.f32.mrb[48].mxu1 }
 0xb73   :  { %v2199_v30 = vmul.f32 0.35355338, %v8660_v0  ;;  %v2167_v61 = vpop.f32.mrb[49].mxu1  ;;  %v2215_v36 = vsel %vm1345_vm7, %v2205_v5, -inf }
 0xb74   :  { %v2198_v19 = vmul.f32 0.35355338, %v2167_v61  ;;  %2216 = vmax.xlane.f32.xlu0 %v2215_v36  ;;  %v2212_v43 = vsel %vm1345_vm7, %v2204_v31, -inf }
 0xb75   :  { %v2207_v14 = vadd.f32 %v2199_v30, %v11040_v1  ;;  %2213 = vmax.xlane.f32.xlu1 %v2212_v43 }
 0xb76   :  { %v2206_v63 = vadd.f32 %v2198_v19, %v11049_v18  ;;  %v8663_v59 = vpop.f32.mrb[50].mxu1 }
 0xb77   :  { %v2201_v4 = vmul.f32 0.35355338, %v8663_v59  ;;  %v2177_v35 = vpop.f32.mrb[51].mxu1  ;;  %v2221_v49 = vsel %vm1345_vm7, %v2207_v14, -inf }
 0xb78   :  { %v2200_v53 = vmul.f32 0.35355338, %v2177_v35  ;;  %v2218_v34 = vsel %vm1345_vm7, %v2206_v63, -inf }
 0xb79   :  { %v2209_v17 = vadd.f32 %v2201_v4, %v11067_v15  ;;  %2222 = vmax.xlane.f32.xlu1 %v2221_v49  ;;  %2219 = vmax.xlane.f32.xlu0 %v2218_v34 }
 0xb7a   :  { %v2208_v29 = vadd.f32 %v2200_v53, %v11062_v9  ;;  %v8666_v11 = vpop.f32.mrb[52].mxu1 }
 0xb7b   :  { %v2203_v39 = vmul.f32 0.35355338, %v8666_v11  ;;  %v2187_v1 = vpop.f32.mrb[53].mxu1  ;;  %v2227_v45 = vsel %vm1345_vm7, %v2209_v17, -inf }
 0xb7c   :  { %v2202_v18 = vmul.f32 0.35355338, %v2187_v1  ;;  %v2224_v55 = vsel %vm1345_vm7, %v2208_v29, -inf }
 0xb7d   :  { %v2211_v7 = vadd.f32 %v2203_v39, %v11087_v33  ;;  %2228 = vmax.xlane.f32.xlu1 %v2227_v45  ;;  %2225 = vmax.xlane.f32.xlu0 %v2224_v55 }
 0xb7e   :  { %v2210_v56 = vadd.f32 %v2202_v18, %v11077_v27 }
 0xb7f   :  { %v2233_v15 = vsel %vm1345_vm7, %v2211_v7, -inf }
 0xb80   :  { %v2230_v24 = vsel %vm1345_vm7, %v2210_v56, -inf }
 0xb81   :  { %2234 = vmax.xlane.f32.xlu1 %v2233_v15  ;;  %2231 = vmax.xlane.f32.xlu0 %v2230_v24 }
 0xb92   :  { %2316 = vrot.lane.b32.xlu1 %v10939_v52, %s13373_s4  ;;  %s10521_s4 = smov [#allocation2]  }
 0xb97   :  { %9863 = vrot.lane.b32.xlu0 %v10868_v62, %s13374_s25 }
 0xc01   :  { %v2217_v9 = vpop.xlane.xlu0 %2216 }
 0xc02   :  { %v2237_v23 = vsub.f32 %v2205_v5, %v2217_v9  ;;  %v2214_v0 = vpop.xlane.xlu1 %2213 }
 0xc03   :  { %v2236_v33 = vsub.f32 %v2204_v31, %v2214_v0 }
 0xc04   :  { %v2246_v30 = vmul.f32 1.442695, %v2237_v23 }
 0xc05   :  { %v2244_v61 = vmul.f32 1.442695, %v2236_v33 }
 0xc06   :  { %10142 = vpow2.f32 %v2246_v30  ;;  %v2223_v27 = vpop.xlane.xlu1 %2222  ;;  %v2220_v36 = vpop.xlane.xlu0 %2219 }
 0xc07   :  { %10144 = vpow2.f32 %v2244_v61  ;;  %v2239_v45 = vsub.f32 %v2207_v14, %v2223_v27  ;;  %v2238_v18 = vsub.f32 %v2206_v63, %v2220_v36 }
 0xc09   :  { %v2250_v55 = vmul.f32 1.442695, %v2239_v45  ;;  %v2248_v24 = vmul.f32 1.442695, %v2238_v18 }
 0xc0a   :  { %v2229_v19 = vpop.xlane.xlu1 %2228  ;;  %v2226_v43 = vpop.xlane.xlu0 %2225 }
 0xc0b   :  { %v2241_v15 = vsub.f32 %v2209_v17, %v2229_v19  ;;  %10146 = vpow2.f32 %v2250_v55  ;;  %v2240_v23 = vsub.f32 %v2208_v29, %v2226_v43 }
 0xc0c   :  { %10148 = vpow2.f32 %v2248_v24 }
 0xc0d   :  { %v2254_v9 = vmul.f32 1.442695, %v2241_v15  ;;  %v2252_v0 = vmul.f32 1.442695, %v2240_v23 }
 0xc0e   :  { %v2235_v59 = vpop.xlane.xlu1 %2234  ;;  %v2232_v4 = vpop.xlane.xlu0 %2231 }
 0xc0f   :  { %10150 = vpow2.f32 %v2254_v9  ;;  %v2243_v33 = vsub.f32 %v2211_v7, %v2235_v59  ;;  %v2242_v61 = vsub.f32 %v2210_v56, %v2232_v4 }
 0xc10   :  { %v11395_v35 = vpop.eup %10142  ;;  %10152 = vpow2.f32 %v2252_v0 }
 0xc11   :  { %v11397_v49 = vpop.eup %10144  ;;  %v2263_v53 = vsel %vm1345_vm7, %v11395_v35, 0.0  ;;  %v2258_v30 = vmul.f32 1.442695, %v2243_v33  ;;  %v2256_v14 = vmul.f32 1.442695, %v2242_v61 }
 0xc12   :  { %2264 = vadd.xlane.f32.xlu1 %v2263_v53  ;;  %v2317_v5 = vpop.permute.xlu1 %2316  ;;  %v9864_v31 = vpop.permute.xlu0 %9863  ;;  %v2260_v34 = vsel %vm1345_vm7, %v11397_v49, 0.0 }
 0xc13   :  { %v9866_v11 = vunpack.i.h.bf16 %v9864_v31  ;;  %v9865_v39 = vunpack.i.l.bf16 %v9864_v31  ;;  %8683 = vmatprep.subr.mxu0 %v2317_v5  ;;  %2261 = vadd.xlane.f32.xlu0 %v2260_v34  ;;  %10154 = vpow2.f32 %v2258_v30 }
 0xc14   :  { %8684 = vmatpush3.msra.mxu0 %v2317_v5  ;;  %10156 = vpow2.f32 %v2256_v14 }
 0xc15   :  { %v11403_v1 = vpack.c.bf16 %v9866_v11, %v9865_v39  ;;  %v11412_v53 = vpop.eup %10146 }
 0xc16   :  { %v11414_v5 = vpop.eup %10148  ;;  %v2269_v63 = vsel %vm1345_vm7, %v11412_v53, 0.0 }
 0xc17   :  { %9420 = vmatprep.subr.msk.bf16.mxu0 %vm10918_vm6, %v11403_v1  ;;  %v2266_v29 = vsel %vm1345_vm7, %v11414_v5, 0.0 }
 0xc19   :  { %v11418_v17 = vpop.eup %10150 }
 0xc1a   :  { %v2275_v7 = vsel %vm1345_vm7, %v11418_v17, 0.0  ;;  %v11424_v56 = vpop.eup %10152 }
 0xc1b   :  { %v2272_v27 = vsel %vm1345_vm7, %v11424_v56, 0.0 }
 0xc1d   :  { %v11428_v36 = vpop.eup %10154 }
 0xc1e   :  { %v2281_v19 = vsel %vm1345_vm7, %v11428_v36, 0.0  ;;  %v11432_v43 = vpop.eup %10156 }
 0xc1f   :  { %v2278_v59 = vsel %vm1345_vm7, %v11432_v43, 0.0 }
 0xc23   :  { %9868 = vrot.lane.b32.xlu1 %v10880_v13, %s13374_s25 }
 0xc29   :  { %9873 = vrot.lane.b32.xlu0 %v10892_v22, %s13374_s25 }
 0xc47   :  { %2270 = vadd.xlane.f32.xlu1 %v2269_v63 }
 0xc48   :  { %2267 = vadd.xlane.f32.xlu0 %v2266_v29 }
 0xc4b   :  { %2276 = vadd.xlane.f32.xlu1 %v2275_v7 }
 0xc4f   :  { %2273 = vadd.xlane.f32.xlu1 %v2272_v27 }
 0xc53   :  { %2282 = vadd.xlane.f32.xlu1 %v2281_v19 }
 0xc57   :  { %2279 = vadd.xlane.f32.xlu1 %v2278_v59 }
 0xc5e   :  { %9878 = vrot.lane.b32.xlu0 %v10904_v25, %s13374_s25 }
 0xc62   :  { %2488 = vrot.lane.b32.xlu0 %v10939_v52, %s13374_s25 }
 0xc66   :  { %2456 = vrot.lane.b32.xlu0 %v10859_v57, %s13375_s3 }
 0xc68   :  { %2460 = vrot.lane.b32.xlu1 %v10873_v8, %s13375_s3 }
 0xc6a   :  { %2458 = vrot.lane.b32.xlu0 %v10864_v60, %s13375_s3 }
 0xc6c   :  { %2464 = vrot.lane.b32.xlu1 %v10885_v16, %s13375_s3 }
 0xc6e   :  { %2462 = vrot.lane.b32.xlu0 %v10876_v10, %s13375_s3 }
 0xc70   :  { %2468 = vrot.lane.b32.xlu1 %v10897_v26, %s13375_s3 }
 0xc72   :  { %2466 = vrot.lane.b32.xlu0 %v10888_v20, %s13375_s3 }
 0xc76   :  { %2470 = vrot.lane.b32.xlu0 %v10900_v28, %s13375_s3 }
 0xc9f   :  { %v2265_v57 = vpop.xlane.xlu1 %2264 }
 0xca0   :  { %10158 = vrcp.f32 %v2265_v57  ;;  %v2262_v8 = vpop.xlane.xlu0 %2261 }
 0xca1   :  { %10160 = vrcp.f32 %v2262_v8 }
 0xca3   :  { %v9869_v60 = vpop.permute.xlu1 %9868 }
 0xca4   :  { %v9871_v16 = vunpack.i.h.bf16 %v9869_v60  ;;  %v9870_v34 = vunpack.i.l.bf16 %v9869_v60  ;;  %v9874_v20 = vpop.permute.xlu0 %9873 }
 0xca5   :  { %v9876_v28 = vunpack.i.h.bf16 %v9874_v20  ;;  %v9875_v39 = vunpack.i.l.bf16 %v9874_v20 }
 0xca6   :  { %v9424_v26 = vpack.c.bf16 %v9871_v16, %v9870_v34 }
 0xca7   :  { %v9430_v45 = vpack.c.bf16 %v9876_v28, %v9875_v39 }
 0xcaa   :  { %v10159_v4 = vpop.eup %10158 }
 0xcab   :  { %v10161_v31 = vpop.eup %10160  ;;  %v2293_v11 = vmul.f32 %v10159_v4, %v11395_v35 }
 0xcac   :  { %v2292_v10 = vmul.f32 %v10161_v31, %v11397_v49 }
 0xcae   :  { %8685 = vmatprep.mubr.msk.f32.mxu0 %vm1345_vm7, %v2292_v10 }
 0xcaf   :  { %8686 = vmatmul.mubr.msk.f32.vlgmr.msra.gmra.mrb[26].mxu0 %vm1345_vm7, %v2293_v11 }
 0xcb0   :  { %9423 = vmatpush3.bf16.xpose.msk.msra.mxu0 %vm10918_vm6, %v11403_v1 }
 0xcb1   :  { %9426 = vmatprep.subr.msk.bf16.mxu0 %vm10918_vm6, %v9424_v26 }
 0xcb8   :  { %9429 = vmatpush3.bf16.xpose.msk.msra.mxu0 %vm10918_vm6, %v9424_v26 }
 0xcb9   :  { %9432 = vmatprep.subr.msk.bf16.mxu0 %vm10918_vm6, %v9430_v45 }
 0xcc0   :  { %9435 = vmatpush3.bf16.xpose.msk.msra.mxu0 %vm10918_vm6, %v9430_v45 }
 0xcd4   :  { %v2271_v35 = vpop.xlane.xlu1 %2270 }
 0xcd5   :  { %10162 = vrcp.f32 %v2271_v35  ;;  %v2268_v49 = vpop.xlane.xlu0 %2267 }
 0xcd6   :  { %10164 = vrcp.f32 %v2268_v49 }
 0xcd8   :  { %v2277_v1 = vpop.xlane.xlu1 %2276 }
 0xcd9   :  { %v9879_v18 = vpop.permute.xlu0 %9878  ;;  %10166 = vrcp.f32 %v2277_v1 }
 0xcda   :  { %v9881_v55 = vunpack.i.h.bf16 %v9879_v18  ;;  %v9880_v15 = vunpack.i.l.bf16 %v9879_v18  ;;  %v10446_v18 = vld [vmem:[%s13369_s30 + $0x8] sm:$0xff] }
 0xcdc   :  { %v9436_v24 = vpack.c.bf16 %v9881_v55, %v9880_v15  ;;  %v2274_v9 = vpop.xlane.xlu1 %2273  ;;  %v10447_v15 = vld [vmem:[%s13369_s30] sm:$0xff] }
 0xcdd   :  { %10168 = vrcp.f32 %v2274_v9  ;;  %v2489_v0 = vpop.permute.xlu0 %2488 }
 0xcde   :  { %9438 = vmatprep.subr.msk.bf16.mxu0 %vm10918_vm6, %v9436_v24 }
 0xcdf   :  { %v10163_v23 = vpop.eup %10162  ;;  %9441 = vmatpush3.bf16.xpose.msk.msra.mxu0 %vm10918_vm6, %v9436_v24 }
 0xce0   :  { %v10165_v33 = vpop.eup %10164  ;;  %v2283_v30 = vpop.xlane.xlu1 %2282  ;;  %8713 = vmatprep.subr.msk.mxu0 %vm249_vm3, %v2489_v0  ;;  %v2295_v14 = vmul.f32 %v10163_v23, %v11412_v53 }
 0xce1   :  { %v2294_v61 = vmul.f32 %v10165_v33, %v11414_v5  ;;  %10170 = vrcp.f32 %v2283_v30  ;;  %v2457_v59 = vpop.permute.xlu0 %2456 }
 0xce3   :  { %8688 = vmatprep.mubr.msk.f32.mxu0 %vm1345_vm7, %v2294_v61  ;;  %v10167_v29 = vpop.eup %10166 }
 0xce4   :  { %v2280_v63 = vpop.xlane.xlu1 %2279  ;;  %8689 = vmatmul.mubr.msk.f32.gmra.mrb[28].mxu0 %vm1345_vm7, %v2295_v14  ;;  %v2297_v19 = vmul.f32 %v10167_v29, %v11418_v17  ;;  %v10448_v14 = vld [vmem:[%s13369_s30 + $0x18] sm:$0xff]  ;;  %v10449_v29 = vld [vmem:[%s13369_s30 + $0x10] sm:$0xff] }
 0xce5   :  { %10172 = vrcp.f32 %v2280_v63  ;;  %v2459_v57 = vpop.permute.xlu0 %2458 }
 0xce7   :  { %v10169_v7 = vpop.eup %10168  ;;  %8714 = vmatpush3.xpose.msk.msra.mxu0 %vm249_vm3, %v2489_v0 }
 0xce8   :  { %v2296_v27 = vmul.f32 %v10169_v7, %v11424_v56  ;;  %v2461_v4 = vpop.permute.xlu1 %2460 }
 0xce9   :  { %v2463_v17 = vpop.permute.xlu0 %2462 }
 0xcea   :  { %8691 = vmatprep.mubr.msk.f32.mxu0 %vm1345_vm7, %v2296_v27 }
 0xceb   :  { %8692 = vmatmul.mubr.msk.f32.gmra.mrb[30].mxu0 %vm1345_vm7, %v2297_v19  ;;  %v10171_v53 = vpop.eup %10170 }
 0xcec   :  { %v2299_v60 = vmul.f32 %v10171_v53, %v11428_v36  ;;  %v2465_v56 = vpop.permute.xlu1 %2464 }
 0xced   :  { %v2467_v31 = vpop.permute.xlu0 %2466 }
 0xcef   :  { %v10173_v5 = vpop.eup %10172 }
 0xcf0   :  { %v2298_v8 = vmul.f32 %v10173_v5, %v11432_v43  ;;  %v2469_v43 = vpop.permute.xlu1 %2468 }
 0xcf1   :  { %v2471_v36 = vpop.permute.xlu0 %2470 }
 0xcf2   :  { %8694 = vmatprep.mubr.msk.f32.mxu0 %vm1345_vm7, %v2298_v8  ;;  %v10450_v8 = vld [vmem:[%s13369_s30 + $0x28] sm:$0xff] }
 0xcf3   :  { %8695 = vmatmul.mubr.msk.f32.gmra.mrb[32].mxu0 %vm1345_vm7, %v2299_v60 }
 0xcf4   :  { %8715 = vmatprep.mubr.msk.f32.mxu0 %vm249_vm3, %v2457_v59 }
 0xcf7   :  { %8716 = vmatmul.mubr.msk.f32.vlgmr.msra.gmra.mrb[34].mxu0 %vm249_vm3, %v2459_v57 }
 0xcf8   :  { %8718 = vmatprep.mubr.msk.f32.mxu0 %vm249_vm3, %v2461_v4  ;;  %v10451_v4 = vld [vmem:[%s13369_s30 + $0x20] sm:$0xff] }
 0xcfb   :  { %8719 = vmatmul.mubr.msk.f32.gmra.mrb[36].mxu0 %vm249_vm3, %v2463_v17 }
 0xcfc   :  { %8721 = vmatprep.mubr.msk.f32.mxu0 %vm249_vm3, %v2465_v56 }
 0xcff   :  { %8722 = vmatmul.mubr.msk.f32.gmra.mrb[38].mxu0 %vm249_vm3, %v2467_v31 }
 0xd00   :  { %8724 = vmatprep.mubr.msk.f32.mxu0 %vm249_vm3, %v2469_v43 }
 0xd03   :  { %8725 = vmatmul.mubr.msk.f32.gmra.mrb[40].mxu0 %vm249_vm3, %v2471_v36 }
 0xd82   :  { %v11497_v16 = vpop.f32.mrb[26].mxu0 }
 0xd83   :  { %v11499_v34 = vpop.f32.mrb[27].mxu0 }
 0xdb7   :  { %v11501_v10 = vpop.f32.mrb[28].mxu0 }
 0xdb8   :  { %v11503_v11 = vpop.f32.mrb[29].mxu0 }
 0xdbe   :  { %v11505_v26 = vpop.f32.mrb[30].mxu0 }
 0xdbf   :  { %v11507_v20 = vpop.f32.mrb[31].mxu0 }
 0xdc6   :  { %v11509_v28 = vpop.f32.mrb[32].mxu0 }
 0xdc7   :  { %v11511_v39 = vpop.f32.mrb[33].mxu0 }
 0xdca   :  { %v8717_v45 = vpop.f32.mrb[34].mxu0 }
 0xdcb   :  { %v2630_v35 = vmul.f32 0.35355338, %v8717_v45  ;;  %v2590_v49 = vpop.f32.mrb[35].mxu0 }
 0xdcc   :  { %v2629_v1 = vmul.f32 0.35355338, %v2590_v49  ;;  %v10452_v49 = vld [vmem:[%s13369_s30 + $0x38] sm:$0xff] }
 0xdcd   :  { %v2638_v55 = vadd.f32 %v10446_v18, %v2630_v35  ;;  %v10453_v18 = vld [vmem:[%s13369_s30 + $0x30] sm:$0xff]  ;;  %s13386_s30 = sld [smem:[#allocation12_spill]] }
 0xdce   :  { %v2637_v24 = vadd.f32 %v10447_v15, %v2629_v1  ;;  %v8720_v9 = vpop.f32.mrb[36].mxu0 }
 0xdcf   :  { %v2632_v23 = vmul.f32 0.35355338, %v8720_v9  ;;  %v2600_v0 = vpop.f32.mrb[37].mxu0  ;;  %v2648_v33 = vsel %vm1345_vm7, %v2638_v55, -inf }
 0xdd0   :  { %v2631_v30 = vmul.f32 0.35355338, %v2600_v0  ;;  %2649 = vmax.xlane.f32.xlu0 %v2648_v33  ;;  %v2645_v61 = vsel %vm1345_vm7, %v2637_v24, -inf }
 0xdd1   :  { %v2640_v63 = vadd.f32 %v10448_v14, %v2632_v23  ;;  %2646 = vmax.xlane.f32.xlu1 %v2645_v61 }
 0xdd2   :  { %v2639_v7 = vadd.f32 %v10449_v29, %v2631_v30  ;;  %v8723_v27 = vpop.f32.mrb[38].mxu0 }
 0xdd3   :  { %v2634_v19 = vmul.f32 0.35355338, %v8723_v27  ;;  %v2610_v59 = vpop.f32.mrb[39].mxu0  ;;  %v2654_v53 = vsel %vm1345_vm7, %v2640_v63, -inf }
 0xdd4   :  { %v2633_v5 = vmul.f32 0.35355338, %v2610_v59  ;;  %v2651_v57 = vsel %vm1345_vm7, %v2639_v7, -inf }
 0xdd5   :  { %v2642_v60 = vadd.f32 %v10450_v8, %v2634_v19  ;;  %2655 = vmax.xlane.f32.xlu1 %v2654_v53  ;;  %2652 = vmax.xlane.f32.xlu0 %v2651_v57 }
 0xdd6   :  { %v2641_v17 = vadd.f32 %v10451_v4, %v2633_v5  ;;  %v8726_v56 = vpop.f32.mrb[40].mxu0 }
 0xdd7   :  { %v2636_v31 = vmul.f32 0.35355338, %v8726_v56  ;;  %v2620_v43 = vpop.f32.mrb[41].mxu0  ;;  %v2660_v36 = vsel %vm1345_vm7, %v2642_v60, -inf }
 0xdd8   :  { %v2635_v45 = vmul.f32 0.35355338, %v2620_v43  ;;  %v2657_v35 = vsel %vm1345_vm7, %v2641_v17, -inf }
 0xdd9   :  { %v2644_v1 = vadd.f32 %v10452_v49, %v2636_v31  ;;  %2661 = vmax.xlane.f32.xlu1 %v2660_v36  ;;  %2658 = vmax.xlane.f32.xlu0 %v2657_v35 }
 0xdda   :  { %v11543_v15 = vadd.f32 %v10453_v18, %v2635_v45 }
 0xddb   :  { %v2666_v9 = vsel %vm1345_vm7, %v2644_v1, -inf }
 0xddc   :  { %v2663_v23 = vsel %vm1345_vm7, %v11543_v15, -inf }
 0xddd   :  { %2667 = vmax.xlane.f32.xlu1 %v2666_v9  ;;  %2664 = vmax.xlane.f32.xlu0 %v2663_v23 }
 0xe5d   :  { %v2650_v0 = vpop.xlane.xlu0 %2649 }
 0xe5e   :  { %v2670_v33 = vsub.f32 %v2638_v55, %v2650_v0  ;;  %v2647_v30 = vpop.xlane.xlu1 %2646 }
 0xe5f   :  { %v2669_v61 = vsub.f32 %v2637_v24, %v2647_v30 }
 0xe60   :  { %v2679_v14 = vmul.f32 1.442695, %v2670_v33 }
 0xe61   :  { %v2677_v29 = vmul.f32 1.442695, %v2669_v61 }
 0xe62   :  { %10174 = vpow2.f32 %v2679_v14  ;;  %v2656_v27 = vpop.xlane.xlu1 %2655  ;;  %v2653_v4 = vpop.xlane.xlu0 %2652 }
 0xe63   :  { %10176 = vpow2.f32 %v2677_v29  ;;  %v2672_v19 = vsub.f32 %v2640_v63, %v2656_v27  ;;  %v2671_v56 = vsub.f32 %v2639_v7, %v2653_v4 }
 0xe65   :  { %v2683_v59 = vmul.f32 1.442695, %v2672_v19  ;;  %v2681_v36 = vmul.f32 1.442695, %v2671_v56 }
 0xe66   :  { %v2662_v63 = vpop.xlane.xlu1 %2661  ;;  %v2659_v35 = vpop.xlane.xlu0 %2658 }
 0xe67   :  { %10178 = vpow2.f32 %v2683_v59  ;;  %v2674_v43 = vsub.f32 %v2642_v60, %v2662_v63  ;;  %v2673_v18 = vsub.f32 %v2641_v17, %v2659_v35 }
 0xe68   :  { %10180 = vpow2.f32 %v2681_v36 }
 0xe69   :  { %v2687_v49 = vmul.f32 1.442695, %v2674_v43  ;;  %v2685_v23 = vmul.f32 1.442695, %v2673_v18 }
 0xe6a   :  { %v2668_v31 = vpop.xlane.xlu1 %2667  ;;  %v2665_v30 = vpop.xlane.xlu0 %2664 }
 0xe6b   :  { %v2676_v45 = vsub.f32 %v2644_v1, %v2668_v31  ;;  %10182 = vpow2.f32 %v2687_v49 }
 0xe6c   :  { %v11548_v53 = vpop.eup %10174 }
 0xe6d   :  { %v11550_v5 = vpop.eup %10176  ;;  %v2696_v57 = vsel %vm1345_vm7, %v11548_v53, 0.0  ;;  %v2691_v9 = vmul.f32 1.442695, %v2676_v45 }
 0xe6e   :  { %2697 = vadd.xlane.f32.xlu1 %v2696_v57  ;;  %v2693_v55 = vsel %vm1345_vm7, %v11550_v5, 0.0 }
 0xe6f   :  { %2694 = vadd.xlane.f32.xlu0 %v2693_v55  ;;  %10184 = vpow2.f32 %v2691_v9 }
 0xe70   :  { %10186 = vpow2.f32 %v2685_v23 }
 0xe71   :  { %v11556_v24 = vpop.eup %10178 }
 0xe72   :  { %v2702_v8 = vsel %vm1345_vm7, %v11556_v24, 0.0 }
 0xe73   :  { %2703 = vadd.xlane.f32.xlu1 %v2702_v8 }
 0xe84   :  { %9883 = vrot.lane.b32.xlu1 %v10868_v62, %s13376_s7  ;;  %v11564_v62 = vpop.eup %10180 }
 0xe85   :  { %9888 = vrot.lane.b32.xlu0 %v10880_v13, %s13376_s7  ;;  %v11566_v0 = vpop.eup %10182  ;;  %v2699_v13 = vsel %vm1345_vm7, %v11564_v62, 0.0 }
 0xe86   :  { %v11570_v7 = vpop.eup %10184  ;;  %v2708_v17 = vsel %vm1345_vm7, %v11566_v0, 0.0 }
 0xe87   :  { %v2714_v60 = vsel %vm1345_vm7, %v11570_v7, 0.0  ;;  %v11576_v1 = vpop.eup %10186 }
 0xe88   :  { %v2705_v33 = vsel %vm1345_vm7, %v11576_v1, 0.0 }
 0xea4   :  { %2700 = vadd.xlane.f32.xlu0 %v2699_v13 }
 0xea8   :  { %2715 = vadd.xlane.f32.xlu1 %v2714_v60  ;;  %2709 = vadd.xlane.f32.xlu0 %v2708_v17  ;;  %v3010_v17 = vld [vmem:[%s13287_s11 + $0x8] sm:$0xff] }
 0xeac   :  { %2706 = vadd.xlane.f32.xlu0 %v2705_v33 }
 0xeb9   :  { %2931 = vrot.lane.b32.xlu1 %v11497_v16, %s13377_s9  ;;  %v2675_v16 = vsub.f32 %v11543_v15, %v2665_v30 }
 0xebd   :  { %2933 = vrot.lane.b32.xlu1 %v11503_v11, %s13377_s9  ;;  %v2689_v11 = vmul.f32 1.442695, %v2675_v16 }
 0xebf   :  { %10188 = vpow2.f32 %v2689_v11 }
 0xec1   :  { %2905 = vrot.lane.b32.xlu1 %v11369_v44, %s13378_s21 }
 0xec2   :  { %9893 = vrot.lane.b32.xlu0 %v10892_v22, %s13376_s7 }
 0xec5   :  { %2937 = vrot.lane.b32.xlu1 %v11507_v20, %s13377_s9 }
 0xec6   :  { %9898 = vrot.lane.b32.xlu0 %v10904_v25, %s13376_s7 }
 0xec9   :  { %2909 = vrot.lane.b32.xlu1 %v11373_v37, %s13378_s21  ;;  %v11597_v44 = vpop.eup %10188 }
 0xeca   :  { %v2711_v22 = vsel %vm1345_vm7, %v11597_v44, 0.0 }
 0xecd   :  { %2941 = vrot.lane.b32.xlu1 %v11511_v39, %s13377_s9 }
 0xee5   :  { %2712 = vadd.xlane.f32.xlu0 %v2711_v22 }
 0xefb   :  { %v2698_v20 = vpop.xlane.xlu1 %2697  ;;  %2749 = vrot.lane.b32.xlu0 %v10939_v52, %s13376_s7 }
 0xefc   :  { %v2695_v25 = vpop.xlane.xlu0 %2694 }
 0xefd   :  { %10190 = vrcp.f32 %v2695_v25 }
 0xefe   :  { %10192 = vrcp.f32 %v2698_v20 }
 0xeff   :  { %2897 = vrot.lane.b32.xlu0 %v11361_v41, %s13378_s21 }
 0xf00   :  { %v2704_v37 = vpop.xlane.xlu1 %2703  ;;  %v9889_v39 = vpop.permute.xlu0 %9888 }
 0xf01   :  { %v9891_v61 = vunpack.i.h.bf16 %v9889_v39  ;;  %v9890_v14 = vunpack.i.l.bf16 %v9889_v39 }
 0xf03   :  { %2899 = vrot.lane.b32.xlu0 %v11359_v51, %s13378_s21  ;;  %v9446_v57 = vpack.c.bf16 %v9891_v61, %v9890_v14 }
 0xf04   :  { %v9884_v15 = vpop.permute.xlu1 %9883 }
 0xf05   :  { %v9886_v29 = vunpack.i.h.bf16 %v9884_v15  ;;  %v9885_v27 = vunpack.i.l.bf16 %v9884_v15 }
 0xf07   :  { %v10191_v19 = vpop.eup %10190  ;;  %2929 = vrot.lane.b32.xlu0 %v11499_v34, %s13377_s9  ;;  %v9442_v52 = vpack.c.bf16 %v9886_v29, %v9885_v27 }
 0xf08   :  { %v2725_v59 = vmul.f32 %v10191_v19, %v11550_v5 }
 0xf09   :  { %9443 = vmatprep.subr.bf16.mxu1 %v9442_v52 }
 0xf0a   :  { %9445 = vmatpush3.bf16.msra.mxu1 %v9442_v52  ;;  %8745 = vmatprep.mubr.msk.f32.mxu1 %vm1345_vm7, %v2725_v59 }
 0xf0b   :  { %2901 = vrot.lane.b32.xlu0 %v11365_v47, %s13378_s21  ;;  %9447 = vmatprep.subr.bf16.mxu1 %v9446_v57 }
 0xf0e   :  { %9449 = vmatpush3.bf16.msra.mxu1 %v9446_v57 }
 0xf0f   :  { %2903 = vrot.lane.b32.xlu0 %v11363_v42, %s13378_s21 }
 0xf13   :  { %2935 = vrot.lane.b32.xlu0 %v11501_v10, %s13377_s9 }
 0xf17   :  { %2907 = vrot.lane.b32.xlu0 %v11367_v12, %s13378_s21 }
 0xf1b   :  { %2939 = vrot.lane.b32.xlu0 %v11505_v26, %s13377_s9  ;;  %v10193_v26 = vpop.eup %10192 }
 0xf1c   :  { %v2726_v43 = vmul.f32 %v10193_v26, %v11548_v53 }
 0xf1f   :  { %2911 = vrot.lane.b32.xlu0 %v11371_v54, %s13378_s21 }
 0xf31   :  { %v2701_v51 = vpop.xlane.xlu0 %2700 }
 0xf32   :  { %10194 = vrcp.f32 %v2701_v51 }
 0xf33   :  { %10196 = vrcp.f32 %v2704_v37 }
 0xf35   :  { %v2710_v41 = vpop.xlane.xlu0 %2709  ;;  %v2716_v54 = vpop.xlane.xlu1 %2715 }
 0xf39   :  { %v2707_v47 = vpop.xlane.xlu0 %2706  ;;  %v2932_v29 = vpop.permute.xlu1 %2931 }
 0xf3a   :  { %10198 = vrcp.f32 %v2707_v47 }
 0xf3b   :  { %10200 = vrcp.f32 %v2710_v41 }
 0xf3c   :  { %v10195_v56 = vpop.eup %10194 }
 0xf3d   :  { %v9894_v34 = vpop.permute.xlu0 %9893  ;;  %v10197_v36 = vpop.eup %10196  ;;  %v2727_v45 = vmul.f32 %v10195_v56, %v11564_v62 }
 0xf3e   :  { %v9896_v5 = vunpack.i.h.bf16 %v9894_v34  ;;  %v9895_v55 = vunpack.i.l.bf16 %v9894_v34  ;;  %v2728_v49 = vmul.f32 %v10197_v36, %v11556_v24  ;;  %v3009_v24 = vld [vmem:[%s13287_s11] sm:$0xff] }
 0xf40   :  { %v9450_v8 = vpack.c.bf16 %v9896_v5, %v9895_v55 }
 0xf41   :  { %v9899_v42 = vpop.permute.xlu0 %9898 }
 0xf42   :  { %v9901_v63 = vunpack.i.h.bf16 %v9899_v42  ;;  %v9900_v4 = vunpack.i.l.bf16 %v9899_v42  ;;  %9451 = vmatprep.subr.bf16.mxu1 %v9450_v8 }
 0xf43   :  { %9453 = vmatpush3.bf16.msra.mxu1 %v9450_v8 }
 0xf44   :  { %v9454_v10 = vpack.c.bf16 %v9901_v63, %v9900_v4  ;;  %v10199_v35 = vpop.eup %10198 }
 0xf45   :  { %v10201_v18 = vpop.eup %10200  ;;  %v2729_v9 = vmul.f32 %v10199_v35, %v11576_v1  ;;  %v3011_v1 = vld [vmem:[%s13287_s11 + $0x10] sm:$0xff] }
 0xf46   :  { %9455 = vmatprep.subr.bf16.mxu1 %v9454_v10  ;;  %v2730_v53 = vmul.f32 %v10201_v18, %v11566_v0  ;;  %v9458_v0 = vpack.c.bf16 %v3010_v17, %v3009_v24 }
 0xf47   :  { %9457 = vmatpush3.bf16.msra.mxu1 %v9454_v10 }
 0xf72   :  { %v2713_v12 = vpop.xlane.xlu0 %2712 }
 0xf73   :  { %10202 = vrcp.f32 %v2713_v12 }
 0xf74   :  { %10204 = vrcp.f32 %v2716_v54 }
 0xf76   :  { %v2750_v31 = vpop.permute.xlu0 %2749 }
 0xf77   :  { %8743 = vmatprep.subr.mxu1 %v2750_v31 }
 0xf78   :  { %8744 = vmatpush3.msra.mxu1 %v2750_v31 }
 0xf79   :  { %8746 = vmatmul.mubr.msk.f32.vlgmr.msra.gmra.mrb[54].mxu1 %vm1345_vm7, %v2726_v43  ;;  %9459 = vmatprep.subr.bf16.mxu1 %v9458_v0 }
 0xf7a   :  { %8748 = vmatprep.mubr.msk.f32.mxu1 %vm1345_vm7, %v2727_v45  ;;  %9461 = vmatpush3.bf16.msra.mxu1 %v9458_v0  ;;  %v2898_v39 = vpop.permute.xlu0 %2897  ;;  %v7716_v0 = vld [vmem:[%s13288_s12] ss:$0 sm:$0xff] }
 0xf7b   :  { %v2985_v42 = vsel %vm249_vm3, %v11345_v21, %v2898_v39 }
 0xf7d   :  { %v10203_v23 = vpop.eup %10202  ;;  %8749 = vmatmul.mubr.msk.f32.gmra.mrb[56].mxu1 %vm1345_vm7, %v2728_v49 }
 0xf7e   :  { %8751 = vmatprep.mubr.msk.f32.mxu1 %vm1345_vm7, %v2729_v9  ;;  %v10205_v13 = vpop.eup %10204  ;;  %v2731_v62 = vmul.f32 %v10203_v23, %v11597_v44  ;;  %v2900_v15 = vpop.permute.xlu0 %2899 }
 0xf7f   :  { %v2732_v60 = vmul.f32 %v10205_v13, %v11570_v7  ;;  %v3012_v7 = vld [vmem:[%s13287_s11 + $0x18] sm:$0xff]  ;;  %v2986_v55 = vsel %vm249_vm3, %v11343_v58, %v2900_v15 }
 0xf80   :  { %v9462_v33 = vpack.c.bf16 %v3012_v7, %v3011_v1  ;;  %v2994_v10 = vsel %vm927_vm4, %v2986_v55, %v2932_v29  ;;  %v10457_v29 = vld [vmem:[%s13360_s26 + $0x10] sm:$0xff] }
 0xf81   :  { %8752 = vmatmul.mubr.msk.f32.gmra.mrb[58].mxu1 %vm1345_vm7, %v2730_v53 }
 0xf82   :  { %8754 = vmatprep.mubr.msk.f32.mxu1 %vm1345_vm7, %v2731_v62  ;;  %9463 = vmatprep.subr.bf16.mxu1 %v9462_v33  ;;  %v2930_v61 = vpop.permute.xlu0 %2929 }
 0xf83   :  { %9465 = vmatpush3.bf16.msra.mxu1 %v9462_v33  ;;  %v2993_v63 = vsel %vm927_vm4, %v2985_v42, %v2930_v61  ;;  %v10456_v61 = vld [vmem:[%s13360_s26 + $0x18] sm:$0xff] }
 0xf85   :  { %8755 = vmatmul.mubr.msk.f32.gmra.mrb[60].mxu1 %vm1345_vm7, %v2732_v60 }
 0xf86   :  { %v2902_v14 = vpop.permute.xlu0 %2901 }
 0xf87   :  { %v2987_v8 = vsel %vm249_vm3, %v11349_v38, %v2902_v14 }
 0xf8a   :  { %v2904_v27 = vpop.permute.xlu0 %2903 }
 0xf8b   :  { %v2988_v31 = vsel %vm249_vm3, %v11347_v46, %v2904_v27 }
 0xf8e   :  { %v2936_v19 = vpop.permute.xlu0 %2935 }
 0xf8f   :  { %v2996_v36 = vsel %vm927_vm4, %v2988_v31, %v2936_v19 }
 0xf92   :  { %v2908_v59 = vpop.permute.xlu0 %2907 }
 0xf93   :  { %v2990_v9 = vsel %vm249_vm3, %v11351_v32, %v2908_v59 }
 0xf96   :  { %v2940_v51 = vpop.permute.xlu0 %2939 }
 0xf9a   :  { %v2912_v47 = vpop.permute.xlu0 %2911 }
 0xf9b   :  { %v2992_v32 = vsel %vm249_vm3, %v11355_v48, %v2912_v47  ;;  %v10454_v48 = vld [vmem:[%s13360_s26 + $0x8] sm:$0xff] }
0x104c   :  { %v8747_v30 = vpop.f32.mrb[54].mxu1 }
0x104d   :  { %2963 = vrot.lane.b32.xlu0 %v8747_v30, %s13379_s5  ;;  %v2850_v16 = vpop.f32.mrb[55].mxu1 }
0x1050   :  { %v8750_v11 = vpop.f32.mrb[56].mxu1 }
0x1051   :  { %2961 = vrot.lane.b32.xlu0 %v2850_v16, %s13379_s5  ;;  %v2860_v44 = vpop.f32.mrb[57].mxu1 }
0x1052   :  { %2965 = vrot.lane.b32.xlu1 %v2860_v44, %s13379_s5 }
0x1054   :  { %v8753_v22 = vpop.f32.mrb[58].mxu1 }
0x1055   :  { %2943 = vrot.lane.b32.xlu0 %v11509_v28, %s13377_s9  ;;  %v2870_v20 = vpop.f32.mrb[59].mxu1  ;;  %v2934_v28 = vpop.permute.xlu1 %2933 }
0x1056   :  { %2969 = vrot.lane.b32.xlu1 %v2870_v20, %s13379_s5  ;;  %v2995_v54 = vsel %vm927_vm4, %v2987_v8, %v2934_v28 }
0x1058   :  { %v8756_v25 = vpop.f32.mrb[60].mxu1 }
0x1059   :  { %2967 = vrot.lane.b32.xlu0 %v8750_v11, %s13379_s5  ;;  %v2880_v37 = vpop.f32.mrb[61].mxu1  ;;  %v2906_v52 = vpop.permute.xlu1 %2905  ;;  %v10455_v11 = vld [vmem:[%s13360_s26] sm:$0xff] }
0x105a   :  { %2973 = vrot.lane.b32.xlu1 %v2880_v37, %s13379_s5  ;;  %v2989_v43 = vsel %vm249_vm3, %v11353_v2, %v2906_v52  ;;  %v2998_v2 = vsel %vm927_vm4, %v2990_v9, %v2940_v51 }
0x105d   :  { %2971 = vrot.lane.b32.xlu0 %v8753_v22, %s13379_s5  ;;  %v2938_v57 = vpop.permute.xlu1 %2937 }
0x105e   :  { %v2997_v35 = vsel %vm927_vm4, %v2989_v43, %v2938_v57 }
0x1061   :  { %2975 = vrot.lane.b32.xlu0 %v8756_v25, %s13379_s5  ;;  %v2910_v41 = vpop.permute.xlu1 %2909 }
0x1062   :  { %v2991_v46 = vsel %vm249_vm3, %v11357_v50, %v2910_v41  ;;  %v10458_v41 = vld [vmem:[%s13360_s26 + $0x28] sm:$0xff] }
0x1065   :  { %v2942_v5 = vpop.permute.xlu1 %2941 }
0x1066   :  { %v2999_v13 = vsel %vm927_vm4, %v2991_v46, %v2942_v5 }
0x10bf   :  { %v2964_v34 = vpop.permute.xlu0 %2963 }
0x10c0   :  { %v3002_v56 = vsel %vm929_vm5, %v2994_v10, %v2964_v34  ;;  %v10459_v34 = vld [vmem:[%s13360_s26 + $0x20] sm:$0xff] }
0x10c3   :  { %v2962_v4 = vpop.permute.xlu0 %2961 }
0x10c4   :  { %v3001_v12 = vsel %vm929_vm5, %v2993_v63, %v2962_v4  ;;  %v2966_v26 = vpop.permute.xlu1 %2965 }
0x10c5   :  { %v3003_v58 = vsel %vm929_vm5, %v2995_v54, %v2966_v26  ;;  %8765 = vmatprep.mubr.msk.f32.mxu1 %vm172_vm2, %v3001_v12  ;;  %v10460_v12 = vld [vmem:[%s13360_s26 + $0x38] sm:$0xff]  ;;  %v10461_v26 = vld [vmem:[%s13360_s26 + $0x30] sm:$0xff]  ;;  %s13384_s26 = smov 56  }
0x10c6   :  { %8766 = vmatmul.mubr.msk.f32.vlgmr.msra.gmra.mrb[62].mxu1 %vm172_vm2, %v3002_v56 }
0x10c7   :  { %v2944_v38 = vpop.permute.xlu0 %2943  ;;  %8768 = vmatprep.mubr.msk.f32.mxu1 %vm172_vm2, %v3003_v58 }
0x10c8   :  { %v2970_v21 = vpop.permute.xlu1 %2969  ;;  %v3000_v24 = vsel %vm927_vm4, %v2992_v32, %v2944_v38 }
0x10c9   :  { %v3005_v18 = vsel %vm929_vm5, %v2997_v35, %v2970_v21 }
0x10cb   :  { %v2968_v45 = vpop.permute.xlu0 %2967 }
0x10cc   :  { %v3004_v49 = vsel %vm929_vm5, %v2996_v36, %v2968_v45  ;;  %v2974_v23 = vpop.permute.xlu1 %2973 }
0x10cd   :  { %8769 = vmatmul.mubr.msk.f32.gmra.mrb[64].mxu1 %vm172_vm2, %v3004_v49  ;;  %v3007_v60 = vsel %vm929_vm5, %v2999_v13, %v2974_v23 }
0x10ce   :  { %8771 = vmatprep.mubr.msk.f32.mxu1 %vm172_vm2, %v3005_v18 }
0x10cf   :  { %v2972_v53 = vpop.permute.xlu0 %2971 }
0x10d0   :  { %v3006_v62 = vsel %vm929_vm5, %v2998_v2, %v2972_v53 }
0x10d1   :  { %8772 = vmatmul.mubr.msk.f32.gmra.mrb[66].mxu1 %vm172_vm2, %v3006_v62 }
0x10d2   :  { %8774 = vmatprep.mubr.msk.f32.mxu1 %vm172_vm2, %v3007_v60 }
0x10d3   :  { %v2976_v17 = vpop.permute.xlu0 %2975 }
0x10d4   :  { %v3008_v50 = vsel %vm929_vm5, %v3000_v24, %v2976_v17 }
0x10d5   :  { %8775 = vmatmul.mubr.msk.f32.gmra.mrb[68].mxu1 %vm172_vm2, %v3008_v50 }
0x1199   :  { %v8767_v1 = vpop.f32.mrb[62].mxu1 }
0x119a   :  { %v3116_v7 = vadd.f32 %v8767_v1, %v7716_v0  ;;  %v3110_v33 = vpop.f32.mrb[63].mxu1 }
0x119b   :  { %v3111_v30 = vadd.f32 %v7716_v0, %v3110_v33 }
0x119c   :  { %v3150_v16 = vadd.f32 %v10454_v48, %v3116_v7 }
0x119d   :  { %v3149_v44 = vadd.f32 %v10455_v11, %v3111_v30 }
0x119e   :  { %v3162_v22 = vsel %vm172_vm2, %v3150_v16, 0.0 }
0x119f   :  { %3163 = vadd.xlane.f32.xlu0 %v3162_v22  ;;  %v3159_v20 = vsel %vm172_vm2, %v3149_v44, 0.0 }
0x11a0   :  { %v8770_v25 = vpop.f32.mrb[64].mxu1  ;;  %3160 = vadd.xlane.f32.xlu1 %v3159_v20 }
0x11a1   :  { %v3126_v37 = vadd.f32 %v8770_v25, %v7716_v0  ;;  %v3120_v39 = vpop.f32.mrb[65].mxu1 }
0x11a2   :  { %v3121_v15 = vadd.f32 %v7716_v0, %v3120_v39 }
0x11a3   :  { %v3152_v14 = vadd.f32 %v10456_v61, %v3126_v37 }
0x11a4   :  { %v3151_v27 = vadd.f32 %v10457_v29, %v3121_v15  ;;  %v8773_v28 = vpop.f32.mrb[66].mxu1 }
0x11a5   :  { %v3136_v19 = vadd.f32 %v8773_v28, %v7716_v0  ;;  %v3130_v52 = vpop.f32.mrb[67].mxu1  ;;  %v3168_v59 = vsel %vm172_vm2, %v3152_v14, 0.0 }
0x11a6   :  { %v3131_v57 = vadd.f32 %v7716_v0, %v3130_v52  ;;  %3169 = vadd.xlane.f32.xlu1 %v3168_v59  ;;  %v3165_v51 = vsel %vm172_vm2, %v3151_v27, 0.0  ;;  %v3293_v52 = vld [vmem:[%s13291_s15 + $0x8] sm:$0xff] }
0x11a7   :  { %v3154_v47 = vadd.f32 %v10458_v41, %v3136_v19  ;;  %3166 = vadd.xlane.f32.xlu0 %v3165_v51  ;;  %v3292_v19 = vld [vmem:[%s13291_s15] sm:$0xff]  ;;  %v3295_v51 = vld [vmem:[%s13291_s15 + $0x18] sm:$0xff] }
0x11a8   :  { %v3153_v5 = vadd.f32 %v10459_v34, %v3131_v57  ;;  %v8776_v55 = vpop.f32.mrb[68].mxu1  ;;  %v9466_v59 = vpack.c.bf16 %v3293_v52, %v3292_v19  ;;  %v3294_v57 = vld [vmem:[%s13291_s15 + $0x10] sm:$0xff] }
0x11a9   :  { %v3146_v8 = vadd.f32 %v8776_v55, %v7716_v0  ;;  %v3140_v42 = vpop.f32.mrb[69].mxu1  ;;  %v3174_v63 = vsel %vm172_vm2, %v3154_v47, 0.0  ;;  %v9470_v41 = vpack.c.bf16 %v3295_v51, %v3294_v57 }
0x11aa   :  { %v3141_v4 = vadd.f32 %v7716_v0, %v3140_v42  ;;  %3175 = vadd.xlane.f32.xlu1 %v3174_v63  ;;  %v3171_v10 = vsel %vm172_vm2, %v3153_v5, 0.0  ;;  %9467 = vmatprep.subr.bf16.mxu1 %v9466_v59 }
0x11ab   :  { %v3156_v54 = vadd.f32 %v10460_v12, %v3146_v8  ;;  %3172 = vadd.xlane.f32.xlu0 %v3171_v10  ;;  %9469 = vmatpush3.bf16.msra.mxu1 %v9466_v59 }
0x11ac   :  { %v3155_v56 = vadd.f32 %v10461_v26, %v3141_v4  ;;  %9471 = vmatprep.subr.bf16.mxu1 %v9470_v41 }
0x11ad   :  { %v3180_v58 = vsel %vm172_vm2, %v3156_v54, 0.0 }
0x11ae   :  { %3181 = vadd.xlane.f32.xlu1 %v3180_v58  ;;  %v3177_v38 = vsel %vm172_vm2, %v3155_v56, 0.0 }
0x11af   :  { %3178 = vadd.xlane.f32.xlu0 %v3177_v38  ;;  %9473 = vmatpush3.bf16.msra.mxu1 %v9470_v41 }
0x11b0   :  { %9490 = vmatprep.subr.bf16.mxu1 %v13345_v3 }
0x122c   :  { %v3164_v21 = vpop.xlane.xlu0 %3163 }
0x122d   :  { %v3185_v31 = vmul.f32 0.03125, %v3164_v21  ;;  %v3161_v43 = vpop.xlane.xlu1 %3160 }
0x122e   :  { %v3184_v36 = vmul.f32 0.03125, %v3161_v43 }
0x122f   :  { %v11734_v45 = vsub.f32 %v3150_v16, %v3185_v31 }
0x1230   :  { %v11736_v35 = vsub.f32 %v3149_v44, %v3184_v36  ;;  %v7725_v36 = vld [vmem:[%s13289_s13] ss:$0 sm:$0xff] }
0x1231   :  { %v3201_v49 = vmul.f32 %v11734_v45, %v11734_v45 }
0x1232   :  { %v3200_v18 = vmul.f32 %v11736_v35, %v11736_v35 }
0x1233   :  { %v3170_v9 = vpop.xlane.xlu1 %3169  ;;  %v3211_v23 = vsel %vm172_vm2, %v3201_v49, 0.0 }
0x1234   :  { %v3187_v46 = vmul.f32 0.03125, %v3170_v9  ;;  %v3167_v2 = vpop.xlane.xlu0 %3166  ;;  %3212 = vadd.xlane.f32.xlu1 %v3211_v23  ;;  %v3208_v53 = vsel %vm172_vm2, %v3200_v18, 0.0 }
0x1235   :  { %v3186_v13 = vmul.f32 0.03125, %v3167_v2  ;;  %3209 = vadd.xlane.f32.xlu0 %v3208_v53 }
0x1236   :  { %v11744_v62 = vsub.f32 %v3152_v14, %v3187_v46 }
0x1237   :  { %v11746_v60 = vsub.f32 %v3151_v27, %v3186_v13  ;;  %v3176_v32 = vpop.xlane.xlu1 %3175 }
0x1238   :  { %v3189_v24 = vmul.f32 0.03125, %v3176_v32  ;;  %v3173_v17 = vpop.xlane.xlu0 %3172  ;;  %v3203_v50 = vmul.f32 %v11744_v62, %v11744_v62 }
0x1239   :  { %v3188_v0 = vmul.f32 0.03125, %v3173_v17  ;;  %v3202_v1 = vmul.f32 %v11746_v60, %v11746_v60  ;;  %v7726_v17 = vld [vmem:[%s13290_s14] ss:$0 sm:$0xff] }
0x123a   :  { %v11752_v7 = vsub.f32 %v3154_v47, %v3189_v24  ;;  %v3217_v33 = vsel %vm172_vm2, %v3203_v50, 0.0 }
0x123b   :  { %v11755_v30 = vsub.f32 %v3153_v5, %v3188_v0  ;;  %3218 = vadd.xlane.f32.xlu1 %v3217_v33  ;;  %v3182_v48 = vpop.xlane.xlu1 %3181  ;;  %v3214_v16 = vsel %vm172_vm2, %v3202_v1, 0.0 }
0x123c   :  { %v3191_v11 = vmul.f32 0.03125, %v3182_v48  ;;  %v3179_v44 = vpop.xlane.xlu0 %3178  ;;  %3215 = vadd.xlane.f32.xlu0 %v3214_v16  ;;  %v3205_v22 = vmul.f32 %v11752_v7, %v11752_v7 }
0x123d   :  { %v3190_v20 = vmul.f32 0.03125, %v3179_v44  ;;  %v3204_v25 = vmul.f32 %v11755_v30, %v11755_v30 }
0x123e   :  { %v11762_v37 = vsub.f32 %v3156_v54, %v3191_v11  ;;  %v3223_v39 = vsel %vm172_vm2, %v3205_v22, 0.0 }
0x123f   :  { %v11765_v15 = vsub.f32 %v3155_v56, %v3190_v20  ;;  %3224 = vadd.xlane.f32.xlu1 %v3223_v39  ;;  %v3220_v61 = vsel %vm172_vm2, %v3204_v25, 0.0 }
0x1240   :  { %3221 = vadd.xlane.f32.xlu0 %v3220_v61  ;;  %v3207_v14 = vmul.f32 %v11762_v37, %v11762_v37 }
0x1241   :  { %v3206_v29 = vmul.f32 %v11765_v15, %v11765_v15 }
0x1242   :  { %v3229_v27 = vsel %vm172_vm2, %v3207_v14, 0.0 }
0x1243   :  { %3230 = vadd.xlane.f32.xlu1 %v3229_v27  ;;  %v3226_v28 = vsel %vm172_vm2, %v3206_v29, 0.0 }
0x1244   :  { %3227 = vadd.xlane.f32.xlu0 %v3226_v28 }
0x12c1   :  { %v3213_v47 = vpop.xlane.xlu1 %3212 }
0x12c2   :  { %v3233_v34 = vmul.f32 0.03125, %v3213_v47  ;;  %v3210_v5 = vpop.xlane.xlu0 %3209  ;;  %v3506_v47 = vld [vmem:[%s13293_s17 + $0x10] sm:$0xff] }
0x12c3   :  { %v3232_v55 = vmul.f32 0.03125, %v3210_v5 }
0x12c4   :  { %v3241_v8 = vadd.f32 1e-12, %v3233_v34  ;;  %v3507_v34 = vld [vmem:[%s13293_s17 + $0x18] sm:$0xff] }
0x12c5   :  { %v3240_v42 = vadd.f32 1e-12, %v3232_v55  ;;  %v9478_v5 = vpack.c.bf16 %v3507_v34, %v3506_v47  ;;  %v3508_v55 = vld [vmem:[%s13293_s17 + $0x20] sm:$0xff] }
0x12c6   :  { %10206 = vrsqrt.f32 %v3241_v8  ;;  %v3509_v8 = vld [vmem:[%s13293_s17 + $0x28] sm:$0xff] }
0x12c7   :  { %10208 = vrsqrt.f32 %v3240_v42  ;;  %v9482_v42 = vpack.c.bf16 %v3509_v8, %v3508_v55 }
0x12c8   :  { %v3219_v63 = vpop.xlane.xlu1 %3218 }
0x12c9   :  { %v3235_v4 = vmul.f32 0.03125, %v3219_v63  ;;  %v3216_v10 = vpop.xlane.xlu0 %3215  ;;  %v3510_v63 = vld [vmem:[%s13293_s17 + $0x30] sm:$0xff] }
0x12ca   :  { %v3234_v12 = vmul.f32 0.03125, %v3216_v10 }
0x12cb   :  { %v3243_v54 = vadd.f32 1e-12, %v3235_v4  ;;  %v3511_v4 = vld [vmem:[%s13293_s17 + $0x38] sm:$0xff] }
0x12cc   :  { %v3242_v26 = vadd.f32 1e-12, %v3234_v12  ;;  %v3225_v56 = vpop.xlane.xlu1 %3224  ;;  %v9486_v10 = vpack.c.bf16 %v3511_v4, %v3510_v63  ;;  %v7727_v12 = vld [vmem:[%s13292_s16] ss:$0 sm:$0xff] }
0x12cd   :  { %10210 = vrsqrt.f32 %v3243_v54  ;;  %v3237_v58 = vmul.f32 0.03125, %v3225_v56  ;;  %v3222_v38 = vpop.xlane.xlu0 %3221 }
0x12ce   :  { %10212 = vrsqrt.f32 %v3242_v26  ;;  %v3236_v21 = vmul.f32 0.03125, %v3222_v38 }
0x12cf   :  { %v3245_v31 = vadd.f32 1e-12, %v3237_v58 }
0x12d0   :  { %v10207_v43 = vpop.eup %10206  ;;  %v3244_v49 = vadd.f32 1e-12, %v3236_v21  ;;  %v3231_v18 = vpop.xlane.xlu1 %3230 }
0x12d1   :  { %v10209_v9 = vpop.eup %10208  ;;  %v3257_v23 = vmul.f32 %v10207_v43, %v11734_v45  ;;  %10214 = vrsqrt.f32 %v3245_v31  ;;  %v3239_v46 = vmul.f32 0.03125, %v3231_v18  ;;  %v3228_v2 = vpop.xlane.xlu0 %3227 }
0x12d2   :  { %10216 = vrsqrt.f32 %v3244_v49  ;;  %v3238_v53 = vmul.f32 0.03125, %v3228_v2  ;;  %v3256_v13 = vmul.f32 %v10209_v9, %v11736_v35 }
0x12d3   :  { %v3271_v32 = vmul.f32 %v7725_v36, %v3257_v23  ;;  %v3247_v24 = vadd.f32 1e-12, %v3239_v46 }
0x12d4   :  { %v3246_v50 = vadd.f32 1e-12, %v3238_v53  ;;  %v3270_v0 = vmul.f32 %v7725_v36, %v3256_v13 }
0x12d5   :  { %10218 = vrsqrt.f32 %v3247_v24  ;;  %v11797_v33 = vadd.f32 %v7726_v17, %v3271_v32 }
0x12d6   :  { %10220 = vrsqrt.f32 %v3246_v50  ;;  %v11795_v1 = vadd.f32 %v7726_v17, %v3270_v0 }
0x12d7   :  { %v10211_v45 = vpop.eup %10210 }
0x12d8   :  { %v10213_v48 = vpop.eup %10212  ;;  %8785 = vmatprep.mubr.msk.f32.mxu1 %vm172_vm2, %v11795_v1  ;;  %v3259_v35 = vmul.f32 %v10211_v45, %v11744_v62 }
0x12d9   :  { %8786 = vmatmul.mubr.msk.f32.vlgmr.msra.gmra.mrb[70].mxu1 %vm172_vm2, %v11797_v33  ;;  %v3258_v16 = vmul.f32 %v10213_v48, %v11746_v60 }
0x12da   :  { %v3273_v11 = vmul.f32 %v7725_v36, %v3259_v35 }
0x12db   :  { %v10215_v44 = vpop.eup %10214  ;;  %v3272_v22 = vmul.f32 %v7725_v36, %v3258_v16 }
0x12dc   :  { %v10217_v20 = vpop.eup %10216  ;;  %v3261_v25 = vmul.f32 %v10215_v44, %v11752_v7  ;;  %v11809_v14 = vadd.f32 %v7726_v17, %v3273_v11 }
0x12dd   :  { %v11806_v39 = vadd.f32 %v7726_v17, %v3272_v22  ;;  %v3260_v61 = vmul.f32 %v10217_v20, %v11755_v30 }
0x12de   :  { %v3275_v29 = vmul.f32 %v7725_v36, %v3261_v25 }
0x12df   :  { %v10219_v27 = vpop.eup %10218  ;;  %8788 = vmatprep.mubr.msk.f32.mxu1 %vm172_vm2, %v11806_v39  ;;  %v3274_v62 = vmul.f32 %v7725_v36, %v3260_v61 }
0x12e0   :  { %v10221_v28 = vpop.eup %10220  ;;  %8789 = vmatmul.mubr.msk.f32.gmra.mrb[72].mxu1 %vm172_vm2, %v11809_v14  ;;  %v3263_v60 = vmul.f32 %v10219_v27, %v11762_v37  ;;  %v11819_v52 = vadd.f32 %v7726_v17, %v3275_v29  ;;  %v3504_v37 = vld [vmem:[%s13293_s17] sm:$0xff] }
0x12e1   :  { %v11816_v19 = vadd.f32 %v7726_v17, %v3274_v62  ;;  %v3262_v7 = vmul.f32 %v10221_v28, %v11765_v15  ;;  %v3505_v15 = vld [vmem:[%s13293_s17 + $0x8] sm:$0xff] }
0x12e2   :  { %v3277_v30 = vmul.f32 %v7725_v36, %v3263_v60  ;;  %v9474_v41 = vpack.c.bf16 %v3505_v15, %v3504_v37 }
0x12e3   :  { %8791 = vmatprep.mubr.msk.f32.mxu1 %vm172_vm2, %v11816_v19  ;;  %v3276_v59 = vmul.f32 %v7725_v36, %v3262_v7 }
0x12e4   :  { %8792 = vmatmul.mubr.msk.f32.gmra.mrb[74].mxu1 %vm172_vm2, %v11819_v52  ;;  %v11827_v51 = vadd.f32 %v7726_v17, %v3277_v30  ;;  %9475 = vmatprep.subr.bf16.mxu0 %v9474_v41 }
0x12e5   :  { %v11825_v57 = vadd.f32 %v7726_v17, %v3276_v59  ;;  %9477 = vmatpush3.bf16.msra.mxu0 %v9474_v41 }
0x12e6   :  { %9479 = vmatprep.subr.bf16.mxu0 %v9478_v5 }
0x12e7   :  { %8794 = vmatprep.mubr.msk.f32.mxu1 %vm172_vm2, %v11825_v57 }
0x12e8   :  { %8795 = vmatmul.mubr.msk.f32.gmra.mrb[76].mxu1 %vm172_vm2, %v11827_v51 }
0x12e9   :  { %8841 = vmatprep.mubr.msk.f32.mxu1 %vm10505_vm0, %v13344_v6  ;;  %9481 = vmatpush3.bf16.msra.mxu0 %v9478_v5 }
0x12ea   :  { %9483 = vmatprep.subr.bf16.mxu0 %v9482_v42 }
0x12ed   :  { %9485 = vmatpush3.bf16.msra.mxu0 %v9482_v42 }
0x12ee   :  { %9487 = vmatprep.subr.bf16.mxu0 %v9486_v10 }
0x12f1   :  { %9489 = vmatpush3.bf16.msra.mxu0 %v9486_v10 }
0x12f2   :  { %9502 = vmatprep.subr.bf16.mxu0 %v13345_v3 }
0x13ac   :  { %v8787_v54 = vpop.f32.mrb[70].mxu1 }
0x13ad   :  { %v11863_v26 = vadd.f32 %v8787_v54, %v7727_v12  ;;  %v3393_v56 = vpop.f32.mrb[71].mxu1 }
0x13ae   :  { %v3394_v58 = vadd.f32 %v7727_v12, %v3393_v56 }
0x13af   :  { %v3441_v38 = vmul.f32 0.044715, %v11863_v26 }
0x13b0   :  { %v3440_v21 = vmul.f32 0.044715, %v3394_v58 }
0x13b1   :  { %v3449_v31 = vmul.f32 %v3441_v38, %v11863_v26 }
0x13b2   :  { %v3448_v43 = vmul.f32 %v3440_v21, %v3394_v58 }
0x13b3   :  { %v3457_v36 = vmul.f32 %v3449_v31, %v11863_v26  ;;  %v8790_v49 = vpop.f32.mrb[72].mxu1  ;;  %v3432_v31 = vmul.f32 0.5, %v3394_v58 }
0x13b4   :  { %v3456_v18 = vmul.f32 %v3448_v43, %v3394_v58  ;;  %v11868_v9 = vadd.f32 %v8790_v49, %v7727_v12  ;;  %v3403_v23 = vpop.f32.mrb[73].mxu1 }
0x13b5   :  { %v3465_v46 = vadd.f32 %v3457_v36, %v11863_v26  ;;  %v3404_v2 = vadd.f32 %v7727_v12, %v3403_v23  ;;  %v3433_v36 = vmul.f32 0.5, %v11863_v26 }
0x13b6   :  { %v3464_v53 = vadd.f32 %v3456_v18, %v3394_v58  ;;  %v3443_v13 = vmul.f32 0.044715, %v11868_v9  ;;  %v3435_v58 = vmul.f32 0.5, %v11868_v9 }
0x13b7   :  { %v3473_v32 = vmul.f32 0.7978846, %v3465_v46  ;;  %v3442_v24 = vmul.f32 0.044715, %v3404_v2  ;;  %v8793_v17 = vpop.f32.mrb[74].mxu1 }
0x13b8   :  { %v3451_v50 = vmul.f32 %v3443_v13, %v11868_v9  ;;  %v11873_v0 = vadd.f32 %v8793_v17, %v7727_v12  ;;  %v3413_v45 = vpop.f32.mrb[75].mxu1  ;;  %v3472_v48 = vmul.f32 0.7978846, %v3464_v53 }
0x13b9   :  { %10222 = vtanh.f32 %v3473_v32  ;;  %v3450_v35 = vmul.f32 %v3442_v24, %v3404_v2  ;;  %v3414_v16 = vadd.f32 %v7727_v12, %v3413_v45  ;;  %v3434_v24 = vmul.f32 0.5, %v3404_v2 }
0x13ba   :  { %v3459_v11 = vmul.f32 %v3451_v50, %v11868_v9  ;;  %v3445_v44 = vmul.f32 0.044715, %v11873_v0  ;;  %10224 = vtanh.f32 %v3472_v48 }
0x13bb   :  { %v3458_v22 = vmul.f32 %v3450_v35, %v3404_v2  ;;  %v3444_v20 = vmul.f32 0.044715, %v3414_v16  ;;  %v8796_v25 = vpop.f32.mrb[76].mxu1 }
0x13bc   :  { %v3467_v61 = vadd.f32 %v3459_v11, %v11868_v9  ;;  %v3453_v29 = vmul.f32 %v3445_v44, %v11873_v0  ;;  %v11879_v27 = vadd.f32 %v8796_v25, %v7727_v12  ;;  %v3423_v62 = vpop.f32.mrb[77].mxu1  ;;  %v3436_v11 = vmul.f32 0.5, %v3414_v16 }
0x13bd   :  { %v3466_v28 = vadd.f32 %v3458_v22, %v3404_v2  ;;  %v3452_v60 = vmul.f32 %v3444_v20, %v3414_v16  ;;  %v3424_v7 = vadd.f32 %v7727_v12, %v3423_v62  ;;  %v3437_v22 = vmul.f32 0.5, %v11873_v0 }
0x13be   :  { %v3461_v30 = vmul.f32 %v3453_v29, %v11873_v0  ;;  %v3447_v59 = vmul.f32 0.044715, %v11879_v27  ;;  %v3475_v37 = vmul.f32 0.7978846, %v3467_v61 }
0x13bf   :  { %v3460_v15 = vmul.f32 %v3452_v60, %v3414_v16  ;;  %v3446_v41 = vmul.f32 0.044715, %v3424_v7  ;;  %v3474_v47 = vmul.f32 0.7978846, %v3466_v28  ;;  %v3438_v9 = vmul.f32 0.5, %v3424_v7 }
0x13c0   :  { %v3469_v34 = vadd.f32 %v3461_v30, %v11873_v0  ;;  %v3455_v5 = vmul.f32 %v3447_v59, %v11879_v27  ;;  %10226 = vtanh.f32 %v3475_v37  ;;  %v3439_v28 = vmul.f32 0.5, %v11879_v27  ;;  %v7736_v0 = vld [vmem:[%s13294_s18] ss:$0 sm:$0xff] }
0x13c1   :  { %v3468_v55 = vadd.f32 %v3460_v15, %v3414_v16  ;;  %v3454_v8 = vmul.f32 %v3446_v41, %v3424_v7  ;;  %10228 = vtanh.f32 %v3474_v47 }
0x13c2   :  { %v3463_v42 = vmul.f32 %v3455_v5, %v11879_v27  ;;  %v3477_v63 = vmul.f32 0.7978846, %v3469_v34 }
0x13c3   :  { %v10223_v4 = vpop.eup %10222  ;;  %v3462_v10 = vmul.f32 %v3454_v8, %v3424_v7  ;;  %v3476_v12 = vmul.f32 0.7978846, %v3468_v55 }
0x13c4   :  { %v10225_v54 = vpop.eup %10224  ;;  %v3489_v56 = vadd.f32 1.0, %v10223_v4  ;;  %v3471_v38 = vadd.f32 %v3463_v42, %v11879_v27  ;;  %10230 = vtanh.f32 %v3477_v63 }
0x13c5   :  { %v3470_v21 = vadd.f32 %v3462_v10, %v3424_v7  ;;  %v3488_v43 = vadd.f32 1.0, %v10225_v54  ;;  %10232 = vtanh.f32 %v3476_v12 }
0x13c6   :  { %v3479_v49 = vmul.f32 0.7978846, %v3471_v38  ;;  %v3497_v46 = vmul.f32 %v3489_v56, %v3433_v36 }
0x13c7   :  { %v3496_v18 = vmul.f32 %v3488_v43, %v3432_v31  ;;  %v3478_v23 = vmul.f32 0.7978846, %v3470_v21 }
0x13c8   :  { %10234 = vtanh.f32 %v3479_v49 }
0x13c9   :  { %8813 = vmatprep.mubr.msk.f32.mxu0 %vm87_vm1, %v3496_v18  ;;  %10236 = vtanh.f32 %v3478_v23 }
0x13ca   :  { %v10227_v53 = vpop.eup %10226  ;;  %8814 = vmatmul.mubr.msk.f32.vlgmr.msra.gmra.mrb[42].mxu0 %vm87_vm1, %v3497_v46 }
0x13cb   :  { %v10229_v13 = vpop.eup %10228  ;;  %v3491_v32 = vadd.f32 1.0, %v10227_v53 }
0x13cc   :  { %v3490_v17 = vadd.f32 1.0, %v10229_v13 }
0x13cd   :  { %v3499_v48 = vmul.f32 %v3491_v32, %v3435_v58 }
0x13ce   :  { %v10231_v50 = vpop.eup %10230  ;;  %v3498_v45 = vmul.f32 %v3490_v17, %v3434_v24 }
0x13cf   :  { %v10233_v26 = vpop.eup %10232  ;;  %v3493_v35 = vadd.f32 1.0, %v10231_v50 }
0x13d0   :  { %8816 = vmatprep.mubr.msk.f32.mxu0 %vm87_vm1, %v3498_v45  ;;  %v3492_v44 = vadd.f32 1.0, %v10233_v26 }
0x13d1   :  { %8817 = vmatmul.mubr.msk.f32.gmra.mrb[44].mxu0 %vm87_vm1, %v3499_v48  ;;  %v3501_v2 = vmul.f32 %v3493_v35, %v3437_v22 }
0x13d2   :  { %v10235_v20 = vpop.eup %10234  ;;  %v3500_v25 = vmul.f32 %v3492_v44, %v3436_v11 }
0x13d3   :  { %v10237_v61 = vpop.eup %10236  ;;  %v3495_v29 = vadd.f32 1.0, %v10235_v20 }
0x13d4   :  { %8819 = vmatprep.mubr.msk.f32.mxu0 %vm87_vm1, %v3500_v25  ;;  %v3494_v62 = vadd.f32 1.0, %v10237_v61 }
0x13d5   :  { %8820 = vmatmul.mubr.msk.f32.gmra.mrb[46].mxu0 %vm87_vm1, %v3501_v2  ;;  %v3503_v16 = vmul.f32 %v3495_v29, %v3439_v28 }
0x13d6   :  { %v3502_v60 = vmul.f32 %v3494_v62, %v3438_v9 }
0x13d8   :  { %8822 = vmatprep.mubr.msk.f32.mxu0 %vm87_vm1, %v3502_v60 }
0x13d9   :  { %8823 = vmatmul.mubr.msk.f32.gmra.mrb[48].mxu0 %vm87_vm1, %v3503_v16 }
0x13da   :  { %8852 = vmatprep.mubr.msk.f32.mxu0 %vm10505_vm0, %v13344_v6 }
0x149d   :  { %v8815_v30 = vpop.f32.mrb[42].mxu0 }
0x149e   :  { %v3615_v7 = vadd.f32 %v8815_v30, %v7736_v0  ;;  %v3609_v59 = vpop.f32.mrb[43].mxu0 }
0x149f   :  { %v3610_v37 = vadd.f32 %v7736_v0, %v3609_v59 }
0x14a0   :  { %v3649_v15 = vadd.f32 %v3615_v7, %v11797_v33 }
0x14a1   :  { %v3648_v27 = vadd.f32 %v3610_v37, %v11795_v1 }
0x14a2   :  { %v3661_v41 = vsel %vm172_vm2, %v3649_v15, 0.0 }
0x14a3   :  { %3662 = vadd.xlane.f32.xlu1 %v3661_v41  ;;  %v3658_v47 = vsel %vm172_vm2, %v3648_v27, 0.0 }
0x14a4   :  { %3659 = vadd.xlane.f32.xlu0 %v3658_v47  ;;  %v8818_v34 = vpop.f32.mrb[44].mxu0 }
0x14a5   :  { %v3625_v5 = vadd.f32 %v8818_v34, %v7736_v0  ;;  %v3619_v55 = vpop.f32.mrb[45].mxu0 }
0x14a6   :  { %v3620_v8 = vadd.f32 %v7736_v0, %v3619_v55 }
0x14a7   :  { %v3651_v42 = vadd.f32 %v3625_v5, %v11809_v14 }
0x14a8   :  { %v3650_v63 = vadd.f32 %v3620_v8, %v11806_v39  ;;  %v8821_v4 = vpop.f32.mrb[46].mxu0  ;;  %v7748_v8 = vld [vmem:[%s13361_s1 + $0x20] sm:$0xff] }
0x14a9   :  { %v3635_v10 = vadd.f32 %v8821_v4, %v7736_v0  ;;  %v3629_v12 = vpop.f32.mrb[47].mxu0  ;;  %v3667_v33 = vsel %vm172_vm2, %v3651_v42, 0.0 }
0x14aa   :  { %v3630_v1 = vadd.f32 %v7736_v0, %v3629_v12  ;;  %3668 = vadd.xlane.f32.xlu1 %v3667_v33  ;;  %v3664_v54 = vsel %vm172_vm2, %v3650_v63, 0.0 }
0x14ab   :  { %v3653_v56 = vadd.f32 %v3635_v10, %v11819_v52  ;;  %3665 = vadd.xlane.f32.xlu0 %v3664_v54  ;;  %v7751_v10 = vld [vmem:[%s13361_s1 + $0x38] sm:$0xff] }
0x14ac   :  { %v3652_v38 = vadd.f32 %v3630_v1, %v11816_v19  ;;  %v8824_v21 = vpop.f32.mrb[48].mxu0 }
0x14ad   :  { %v3645_v31 = vadd.f32 %v8824_v21, %v7736_v0  ;;  %v3639_v43 = vpop.f32.mrb[49].mxu0  ;;  %v3673_v14 = vsel %vm172_vm2, %v3653_v56, 0.0 }
0x14ae   :  { %v3640_v39 = vadd.f32 %v7736_v0, %v3639_v43  ;;  %3674 = vadd.xlane.f32.xlu1 %v3673_v14  ;;  %v3670_v36 = vsel %vm172_vm2, %v3652_v38, 0.0 }
0x14af   :  { %v3655_v49 = vadd.f32 %v3645_v31, %v11827_v51  ;;  %3671 = vadd.xlane.f32.xlu0 %v3670_v36 }
0x14b0   :  { %v3654_v18 = vadd.f32 %v3640_v39, %v11825_v57 }
0x14b1   :  { %v3679_v23 = vsel %vm172_vm2, %v3655_v49, 0.0 }
0x14b2   :  { %3680 = vadd.xlane.f32.xlu1 %v3679_v23  ;;  %v3676_v52 = vsel %vm172_vm2, %v3654_v18, 0.0 }
0x14b3   :  { %3677 = vadd.xlane.f32.xlu0 %v3676_v52 }
0x1530   :  { %v3663_v19 = vpop.xlane.xlu1 %3662 }
0x1531   :  { %v3683_v46 = vmul.f32 0.03125, %v3663_v19  ;;  %v3660_v53 = vpop.xlane.xlu0 %3659 }
0x1532   :  { %v3682_v13 = vmul.f32 0.03125, %v3660_v53 }
0x1533   :  { %v11920_v32 = vsub.f32 %v3649_v15, %v3683_v46 }
0x1534   :  { %v11922_v24 = vsub.f32 %v3648_v27, %v3682_v13 }
0x1535   :  { %v3699_v51 = vmul.f32 %v11920_v32, %v11920_v32 }
0x1536   :  { %v3698_v57 = vmul.f32 %v11922_v24, %v11922_v24 }
0x1537   :  { %v3669_v17 = vpop.xlane.xlu1 %3668  ;;  %v3709_v58 = vsel %vm172_vm2, %v3699_v51, 0.0 }
0x1538   :  { %v3685_v50 = vmul.f32 0.03125, %v3669_v17  ;;  %v3666_v45 = vpop.xlane.xlu0 %3665  ;;  %3710 = vadd.xlane.f32.xlu1 %v3709_v58  ;;  %v3706_v26 = vsel %vm172_vm2, %v3698_v57, 0.0  ;;  %v7745_v57 = vld [vmem:[%s13295_s19] ss:$0 sm:$0xff] }
0x1539   :  { %v3684_v48 = vmul.f32 0.03125, %v3666_v45  ;;  %3707 = vadd.xlane.f32.xlu0 %v3706_v26 }
0x153a   :  { %v11930_v35 = vsub.f32 %v3651_v42, %v3685_v50  ;;  %v7749_v42 = vld [vmem:[%s13361_s1 + $0x28] sm:$0xff] }
0x153b   :  { %v11932_v11 = vsub.f32 %v3650_v63, %v3684_v48  ;;  %v3675_v44 = vpop.xlane.xlu1 %3674  ;;  %v7750_v63 = vld [vmem:[%s13361_s1 + $0x30] sm:$0xff]  ;;  %v9503_v4 = vpack.c.bf16 %v7749_v42, %v7748_v8  ;;  %s13383_s1 = smov 40  }
0x153c   :  { %v3687_v22 = vmul.f32 0.03125, %v3675_v44  ;;  %v3672_v20 = vpop.xlane.xlu0 %3671  ;;  %v3701_v25 = vmul.f32 %v11930_v35, %v11930_v35  ;;  %v9506_v12 = vpack.c.bf16 %v7751_v10, %v7750_v63  ;;  %v7746_v44 = vld [vmem:[%s13296_s20] ss:$0 sm:$0xff] }
0x153d   :  { %v3686_v61 = vmul.f32 0.03125, %v3672_v20  ;;  %v3700_v2 = vmul.f32 %v11932_v11, %v11932_v11  ;;  %9504 = vmatpush3.bf16.msra.mxu0 %v9503_v4 }
0x153e   :  { %v11938_v29 = vsub.f32 %v3653_v56, %v3687_v22  ;;  %v3715_v9 = vsel %vm172_vm2, %v3701_v25, 0.0  ;;  %9505 = vmatprep.subr.bf16.mxu0 %v13345_v3 }
0x153f   :  { %v11941_v62 = vsub.f32 %v3652_v38, %v3686_v61  ;;  %3716 = vadd.xlane.f32.xlu1 %v3715_v9  ;;  %v3681_v28 = vpop.xlane.xlu1 %3680  ;;  %v3712_v60 = vsel %vm172_vm2, %v3700_v2, 0.0 }
0x1540   :  { %v3689_v16 = vmul.f32 0.03125, %v3681_v28  ;;  %3713 = vadd.xlane.f32.xlu0 %v3712_v60  ;;  %v3678_v0 = vpop.xlane.xlu0 %3677  ;;  %v3703_v30 = vmul.f32 %v11938_v29, %v11938_v29 }
0x1541   :  { %v3688_v7 = vmul.f32 0.03125, %v3678_v0  ;;  %v3702_v59 = vmul.f32 %v11941_v62, %v11941_v62  ;;  %9507 = vmatpush3.bf16.msra.mxu0 %v9506_v12 }
0x1542   :  { %v11948_v37 = vsub.f32 %v3655_v49, %v3689_v16  ;;  %v3721_v15 = vsel %vm172_vm2, %v3703_v30, 0.0  ;;  %8860 = vmatprep.subr.mxu0 %v13344_v6 }
0x1543   :  { %v11951_v27 = vsub.f32 %v3654_v18, %v3688_v7  ;;  %3722 = vadd.xlane.f32.xlu1 %v3721_v15  ;;  %v3718_v41 = vsel %vm172_vm2, %v3702_v59, 0.0 }
0x1544   :  { %3719 = vadd.xlane.f32.xlu0 %v3718_v41  ;;  %v3705_v47 = vmul.f32 %v11948_v37, %v11948_v37 }
0x1545   :  { %v3704_v34 = vmul.f32 %v11951_v27, %v11951_v27 }
0x1546   :  { %v3727_v5 = vsel %vm172_vm2, %v3705_v47, 0.0 }
0x1547   :  { %3728 = vadd.xlane.f32.xlu1 %v3727_v5  ;;  %v3724_v55 = vsel %vm172_vm2, %v3704_v34, 0.0 }
0x1548   :  { %3725 = vadd.xlane.f32.xlu0 %v3724_v55 }
0x15c5   :  { %v3711_v33 = vpop.xlane.xlu1 %3710 }
0x15c6   :  { %v3731_v1 = vmul.f32 0.03125, %v3711_v33  ;;  %v3708_v54 = vpop.xlane.xlu0 %3707 }
0x15c7   :  { %v3730_v56 = vmul.f32 0.03125, %v3708_v54 }
0x15c8   :  { %v3739_v38 = vadd.f32 1e-12, %v3731_v1 }
0x15c9   :  { %v3738_v21 = vadd.f32 1e-12, %v3730_v56 }
0x15ca   :  { %10238 = vrsqrt.f32 %v3739_v38  ;;  %v7753_v38 = vld [vmem:[%s13282_s6 + $0x1] ss:$0 sm:$0xff]  ;;  %s13389_s6 = sld [smem:[#allocation13_spill]] }
0x15cb   :  { %10240 = vrsqrt.f32 %v3738_v21 }
0x15cc   :  { %v3717_v31 = vpop.xlane.xlu1 %3716 }
0x15cd   :  { %v3733_v43 = vmul.f32 0.03125, %v3717_v31  ;;  %v3714_v14 = vpop.xlane.xlu0 %3713 }
0x15ce   :  { %v3732_v39 = vmul.f32 0.03125, %v3714_v14 }
0x15cf   :  { %v3741_v36 = vadd.f32 1e-12, %v3733_v43 }
0x15d0   :  { %v3740_v49 = vadd.f32 1e-12, %v3732_v39  ;;  %v3723_v18 = vpop.xlane.xlu1 %3722 }
0x15d1   :  { %10242 = vrsqrt.f32 %v3741_v36  ;;  %v3735_v23 = vmul.f32 0.03125, %v3723_v18  ;;  %v3720_v52 = vpop.xlane.xlu0 %3719 }
0x15d2   :  { %10244 = vrsqrt.f32 %v3740_v49  ;;  %v3734_v19 = vmul.f32 0.03125, %v3720_v52 }
0x15d3   :  { %v3743_v46 = vadd.f32 1e-12, %v3735_v23 }
0x15d4   :  { %v10239_v53 = vpop.eup %10238  ;;  %v3742_v13 = vadd.f32 1e-12, %v3734_v19  ;;  %v3729_v51 = vpop.xlane.xlu1 %3728 }
0x15d5   :  { %v10241_v17 = vpop.eup %10240  ;;  %v3755_v58 = vmul.f32 %v10239_v53, %v11920_v32  ;;  %10246 = vrsqrt.f32 %v3743_v46  ;;  %v3737_v50 = vmul.f32 0.03125, %v3729_v51  ;;  %v3726_v45 = vpop.xlane.xlu0 %3725 }
0x15d6   :  { %v3754_v26 = vmul.f32 %v10241_v17, %v11922_v24  ;;  %10248 = vrsqrt.f32 %v3742_v13  ;;  %v3736_v48 = vmul.f32 0.03125, %v3726_v45  ;;  %v10463_v13 = vld [vmem:[%s13363_s24] sm:$0xff]  ;;  %s13382_s24 = smov 48  }
0x15d7   :  { %v3745_v22 = vadd.f32 1e-12, %v3737_v50  ;;  %v3769_v20 = vmul.f32 %v7745_v57, %v3755_v58 }
0x15d8   :  { %v3744_v25 = vadd.f32 1e-12, %v3736_v48  ;;  %v3768_v61 = vmul.f32 %v7745_v57, %v3754_v26 }
0x15d9   :  { %10250 = vrsqrt.f32 %v3745_v22  ;;  %v11982_v2 = vadd.f32 %v7746_v44, %v3769_v20 }
0x15da   :  { %10252 = vrsqrt.f32 %v3744_v25  ;;  %v11984_v32 = vadd.f32 %v7746_v44, %v3768_v61 }
0x15db   :  { %v10243_v9 = vpop.eup %10242 }
0x15dc   :  { %v10245_v28 = vpop.eup %10244  ;;  %v3757_v24 = vmul.f32 %v10243_v9, %v11930_v35  ;;  %v9491_v60 = vpack.c.bf16 %v11982_v2, %v11984_v32 }
0x15dd   :  { %v3756_v16 = vmul.f32 %v10245_v28, %v11932_v11 }
0x15de   :  { %9492 = vmatpush3.bf16.msra.mxu1 %v9491_v60  ;;  %v3771_v0 = vmul.f32 %v7745_v57, %v3757_v24 }
0x15df   :  { %v10247_v30 = vpop.eup %10246  ;;  %9493 = vmatprep.subr.bf16.mxu1 %v13345_v3  ;;  %v3770_v7 = vmul.f32 %v7745_v57, %v3756_v16 }
0x15e0   :  { %v10249_v59 = vpop.eup %10248  ;;  %v3759_v15 = vmul.f32 %v10247_v30, %v11938_v29  ;;  %v11992_v41 = vadd.f32 %v7746_v44, %v3771_v0 }
0x15e1   :  { %v3758_v47 = vmul.f32 %v10249_v59, %v11941_v62  ;;  %v11995_v34 = vadd.f32 %v7746_v44, %v3770_v7 }
0x15e2   :  { %v3773_v35 = vmul.f32 %v7745_v57, %v3759_v15 }
0x15e3   :  { %v10251_v5 = vpop.eup %10250  ;;  %v9494_v11 = vpack.c.bf16 %v11992_v41, %v11995_v34  ;;  %v3772_v55 = vmul.f32 %v7745_v57, %v3758_v47 }
0x15e4   :  { %v10253_v8 = vpop.eup %10252  ;;  %v3761_v42 = vmul.f32 %v10251_v5, %v11948_v37  ;;  %v12000_v63 = vadd.f32 %v7746_v44, %v3773_v35 }
0x15e5   :  { %v3760_v4 = vmul.f32 %v10253_v8, %v11951_v27  ;;  %9495 = vmatpush3.bf16.msra.mxu1 %v9494_v11  ;;  %v12003_v29 = vadd.f32 %v7746_v44, %v3772_v55  ;;  %v10462_v27 = vld [vmem:[%s13362_s2] sm:$0xff]  ;;  %s13381_s2 = smov 96  }
0x15e6   :  { %9496 = vmatprep.subr.bf16.mxu1 %v13345_v3  ;;  %v3775_v62 = vmul.f32 %v7745_v57, %v3761_v42 }
0x15e7   :  { %v9497_v10 = vpack.c.bf16 %v12000_v63, %v12003_v29  ;;  %v3774_v12 = vmul.f32 %v7745_v57, %v3760_v4 }
0x15e8   :  { %v12008_v33 = vadd.f32 %v7746_v44, %v3775_v62 }
0x15e9   :  { %9498 = vmatpush3.bf16.msra.mxu1 %v9497_v10  ;;  %v12010_v1 = vadd.f32 %v7746_v44, %v3774_v12 }
0x15ea   :  { %13380 = vst [vmem:[#allocation5_spill] sm:$0xff] %v12008_v33  ;;  %9499 = vmatprep.subr.bf16.mxu1 %v13345_v3 }
0x15eb   :  { %v9500_v37 = vpack.c.bf16 %v12008_v33, %v12010_v1 }
0x15ed   :  { %9501 = vmatpush3.bf16.msra.mxu1 %v9500_v37 }
0x15ee   :  { %8855 = vmatprep.subr.mxu1 %v13344_v6 }
0x15f0   :  { %8842 = vmatmul.mubr.msk.f32.vlgmr.msra.gmra.mrb[78].mxu1 %vm87_vm1, %v10462_v27 }
0x15f1   :  { %8857 = vmatprep.mubr.msk.f32.mxu1 %vm10505_vm0, %v13344_v6 }
0x16c3   :  { %v3856_v54 = vpop.f32.mrb[78].mxu1 }
0x16c4   :  { %v8843_v56 = vpop.f32.mrb[79].mxu1  ;;  %8853 = vmatmul.mubr.msk.f32.vlgmr.msra.gmra.mrb[50].mxu0 %vm172_vm2, %v3856_v54 }
0x16c5   :  { %8862 = vmatprep.mubr.msk.f32.mxu0 %vm10505_vm0, %v13344_v6 }
0x1797   :  { %v3942_v21 = vpop.f32.mrb[50].mxu0 }
0x1798   :  { %v12028_v31 = vadd.f32 %v7753_v38, %v3942_v21  ;;  %v8854_v43 = vpop.f32.mrb[51].mxu0 }
0x179a   :  { %4114 = vrot.lane.b32.xlu1 %v12028_v31, %s13364_s27  ;;  %3947 = vrot.lane.b32.xlu0 %v12028_v31, %s13381_s2 }
0x179e   :  { %4112 = vrot.lane.b32.xlu1 %v12028_v31, %s13367_s22  ;;  %4281 = vrot.lane.b32.xlu0 %v12028_v31, %s13371_s23 }
0x17a2   :  { %4279 = vrot.lane.b32.xlu1 %v12028_v31, %s13372_s28  ;;  %4448 = vrot.lane.b32.xlu0 %v12028_v31, %s13374_s25 }
0x17a6   :  { %4446 = vrot.lane.b32.xlu1 %v12028_v31, %s13375_s3 }
0x180c   :  { %v4115_v14 = vpop.permute.xlu1 %4114  ;;  %v3948_v39 = vpop.permute.xlu0 %3947 }
0x180d   :  { %8856 = vmatpush3.xpose.msk.msra.mxu1 %vm249_vm3, %v3948_v39 }
0x180e   :  { %8865 = vmatprep.subr.mxu1 %v13344_v6 }
0x1810   :  { %v4113_v36 = vpop.permute.xlu1 %4112  ;;  %8858 = vmatmul.mubr.msk.f32.vlgmr.msra.gmra.mrb[80].mxu1 %vm249_vm3, %v12028_v31  ;;  %v4282_v49 = vpop.permute.xlu0 %4281 }
0x1811   :  { %8866 = vmatpush3.xpose.msk.msra.mxu1 %vm249_vm3, %v4115_v14  ;;  %8867 = vmatprep.mubr.msk.f32.mxu1 %vm10505_vm0, %v13344_v6 }
0x1812   :  { %8875 = vmatprep.subr.mxu1 %v13344_v6 }
0x1814   :  { %8868 = vmatmul.mubr.msk.f32.vlgmr.msra.gmra.mrb[82].mxu1 %vm249_vm3, %v4113_v36  ;;  %v4280_v18 = vpop.permute.xlu1 %4279  ;;  %v4449_v23 = vpop.permute.xlu0 %4448 }
0x1815   :  { %8876 = vmatpush3.xpose.msk.msra.mxu1 %vm249_vm3, %v4282_v49  ;;  %8877 = vmatprep.mubr.msk.f32.mxu1 %vm10505_vm0, %v13344_v6 }
0x1816   :  { %8885 = vmatprep.subr.mxu1 %v13344_v6 }
0x1818   :  { %8878 = vmatmul.mubr.msk.f32.vlgmr.msra.gmra.mrb[84].mxu1 %vm249_vm3, %v4280_v18  ;;  %v4447_v52 = vpop.permute.xlu1 %4446 }
0x1819   :  { %8886 = vmatpush3.xpose.msk.msra.mxu1 %vm249_vm3, %v4449_v23  ;;  %8887 = vmatprep.mubr.msk.f32.mxu1 %vm10505_vm0, %v13344_v6 }
0x181a   :  { %9508 = vmatprep.subr.bf16.mxu1 %v13345_v3 }
0x181c   :  { %8888 = vmatmul.mubr.msk.f32.vlgmr.msra.gmra.mrb[86].mxu1 %vm249_vm3, %v4447_v52 }
0x181d   :  { %8903 = vmatprep.mubr.msk.f32.mxu1 %vm10505_vm0, %v13344_v6 }
0x18e3   :  { %v4019_v19 = vpop.f32.mrb[80].mxu1 }
0x18e4   :  { %v4023_v46 = vmul.f32 0.35355338, %v4019_v19  ;;  %v8859_v53 = vpop.f32.mrb[81].mxu1 }
0x18e5   :  { %v7775_v53 = vld [vmem:[%s13385_s10 + $0x28] sm:$0xff] }
0x18e6   :  { %v4024_v51 = vadd.f32 %v10463_v13, %v4023_v46  ;;  %v7774_v46 = vld [vmem:[%s13385_s10 + $0x20] sm:$0xff] }
0x18e7   :  { %v4186_v57 = vpop.f32.mrb[82].mxu1 }
0x18e8   :  { %v4190_v17 = vmul.f32 0.35355338, %v4186_v57  ;;  %v8869_v58 = vpop.f32.mrb[83].mxu1  ;;  %v4025_v50 = vsel %vm249_vm3, %v4024_v51, -inf  ;;  %v9515_v57 = vpack.c.bf16 %v7775_v53, %v7774_v46 }
0x18e9   :  { %4026 = vmax.xlane.f32.xlu0 %v4025_v50  ;;  %v7776_v58 = vld [vmem:[%s13385_s10 + $0x30] sm:$0xff]  ;;  %v7777_v50 = vld [vmem:[%s13385_s10 + $0x38] sm:$0xff] }
0x18ea   :  { %v4191_v45 = vadd.f32 %v10463_v13, %v4190_v17 }
0x18eb   :  { %v4353_v26 = vpop.f32.mrb[84].mxu1 }
0x18ec   :  { %v4357_v48 = vmul.f32 0.35355338, %v4353_v26  ;;  %v8879_v44 = vpop.f32.mrb[85].mxu1  ;;  %v4192_v22 = vsel %vm249_vm3, %v4191_v45, -inf  ;;  %v7767_v26 = vld [vmem:[%s13386_s30 + $0x20] sm:$0xff] }
0x18ed   :  { %4193 = vmax.xlane.f32.xlu1 %v4192_v22  ;;  %v7769_v22 = vld [vmem:[%s13386_s30 + $0x30] sm:$0xff] }
0x18ee   :  { %v4358_v20 = vadd.f32 %v10463_v13, %v4357_v48  ;;  %v7768_v48 = vld [vmem:[%s13386_s30 + $0x28] sm:$0xff] }
0x18ef   :  { %v4520_v25 = vpop.f32.mrb[86].mxu1  ;;  %v9509_v44 = vpack.c.bf16 %v7768_v48, %v7767_v26 }
0x18f0   :  { %v4524_v61 = vmul.f32 0.35355338, %v4520_v25  ;;  %v8889_v9 = vpop.f32.mrb[87].mxu1  ;;  %v4359_v28 = vsel %vm249_vm3, %v4358_v20, -inf }
0x18f1   :  { %4360 = vmax.xlane.f32.xlu0 %v4359_v28  ;;  %9510 = vmatpush3.bf16.msra.mxu1 %v9509_v44 }
0x18f2   :  { %v4525_v24 = vadd.f32 %v10463_v13, %v4524_v61  ;;  %9511 = vmatprep.subr.bf16.mxu1 %v13345_v3 }
0x18f4   :  { %v4526_v60 = vsel %vm249_vm3, %v4525_v24, -inf }
0x18f5   :  { %4527 = vmax.xlane.f32.xlu0 %v4526_v60 }
0x18fe   :  { %4036 = vrot.lane.b32.xlu1 %v12028_v31, %s13368_s29 }
0x1976   :  { %v4027_v16 = vpop.xlane.xlu0 %4026 }
0x1977   :  { %v4028_v0 = vsub.f32 %v4024_v51, %v4027_v16 }
0x1979   :  { %v4029_v30 = vmul.f32 1.442695, %v4028_v0 }
0x197a   :  { %v4194_v7 = vpop.xlane.xlu1 %4193 }
0x197b   :  { %10254 = vpow2.f32 %v4029_v30  ;;  %v4195_v59 = vsub.f32 %v4191_v45, %v4194_v7  ;;  %v9518_v45 = vpack.c.bf16 %v7777_v50, %v7776_v58 }
0x197d   :  { %v4196_v15 = vmul.f32 1.442695, %v4195_v59 }
0x197e   :  { %v4037_v47 = vpop.permute.xlu1 %4036  ;;  %v4361_v35 = vpop.xlane.xlu0 %4360 }
0x197f   :  { %10256 = vpow2.f32 %v4196_v15  ;;  %v4362_v5 = vsub.f32 %v4358_v20, %v4361_v35  ;;  %8861 = vmatpush3.msra.mxu0 %v4037_v47  ;;  %v7770_v20 = vld [vmem:[%s13386_s30 + $0x38] sm:$0xff]  ;;  %s13388_s30 = sld [smem:[#allocation15_spill]] }
0x1980   :  { %8870 = vmatprep.subr.mxu0 %v13344_v6  ;;  %v9512_v25 = vpack.c.bf16 %v7770_v20, %v7769_v22 }
0x1981   :  { %v4363_v11 = vmul.f32 1.442695, %v4362_v5 }
0x1982   :  { %v4528_v55 = vpop.xlane.xlu0 %4527  ;;  %9513 = vmatpush3.bf16.msra.mxu1 %v9512_v25 }
0x1983   :  { %10258 = vpow2.f32 %v4363_v11  ;;  %v4529_v8 = vsub.f32 %v4525_v24, %v4528_v55 }
0x1985   :  { %v10255_v42 = vpop.eup %10254  ;;  %v4530_v4 = vmul.f32 1.442695, %v4529_v8  ;;  %v12164_v15 = vld [vmem:[%s13388_s30 + $0x1] ss:$0 sm:$0xff]  ;;  %s13394_s30 = sld [smem:[#allocation16_spill]] }
0x1986   :  { %v4031_v62 = vsel %vm249_vm3, %v10255_v42, 0.0 }
0x1987   :  { %10260 = vpow2.f32 %v4530_v4  ;;  %4032 = vadd.xlane.f32.xlu1 %v4031_v62 }
0x1989   :  { %v10257_v10 = vpop.eup %10256 }
0x198a   :  { %v4198_v12 = vsel %vm249_vm3, %v10257_v10, 0.0 }
0x198b   :  { %4199 = vadd.xlane.f32.xlu0 %v4198_v12 }
0x198d   :  { %v10259_v37 = vpop.eup %10258 }
0x198e   :  { %v4365_v27 = vsel %vm249_vm3, %v10259_v37, 0.0 }
0x198f   :  { %4366 = vadd.xlane.f32.xlu1 %v4365_v27 }
0x1991   :  { %v10261_v54 = vpop.eup %10260 }
0x1992   :  { %v4532_v56 = vsel %vm249_vm3, %v10261_v54, 0.0 }
0x1993   :  { %4533 = vadd.xlane.f32.xlu0 %v4532_v56 }
0x19a0   :  { %4370 = vrot.lane.b32.xlu1 %v12028_v31, %s13382_s24 }
0x19a4   :  { %4537 = vrot.lane.b32.xlu1 %v12028_v31, %s13383_s1 }
0x19a9   :  { %4203 = vrot.lane.b32.xlu0 %v12028_v31, %s13384_s26 }
0x1a14   :  { %v4033_v38 = vpop.xlane.xlu1 %4032 }
0x1a15   :  { %10262 = vrcp.f32 %v4033_v38 }
0x1a18   :  { %v4200_v21 = vpop.xlane.xlu0 %4199 }
0x1a19   :  { %10264 = vrcp.f32 %v4200_v21 }
0x1a1c   :  { %v4367_v43 = vpop.xlane.xlu1 %4366 }
0x1a1d   :  { %10266 = vrcp.f32 %v4367_v43 }
0x1a1f   :  { %v10263_v14 = vpop.eup %10262 }
0x1a20   :  { %v4534_v39 = vpop.xlane.xlu0 %4533  ;;  %v4035_v36 = vmul.f32 %v10263_v14, %v10255_v42  ;;  %v4371_v18 = vpop.permute.xlu1 %4370 }
0x1a21   :  { %10268 = vrcp.f32 %v4534_v39 }
0x1a22   :  { %8863 = vmatmul.mubr.msk.f32.vlgmr.msra.gmra.mrb[52].mxu0 %vm249_vm3, %v4035_v36 }
0x1a23   :  { %v10265_v49 = vpop.eup %10264  ;;  %8872 = vmatprep.mubr.msk.f32.mxu0 %vm10505_vm0, %v13344_v6 }
0x1a24   :  { %v4204_v23 = vpop.permute.xlu0 %4203  ;;  %v4202_v52 = vmul.f32 %v10265_v49, %v10257_v10  ;;  %v4538_v13 = vpop.permute.xlu1 %4537 }
0x1a25   :  { %8871 = vmatpush3.msra.mxu0 %v4204_v23 }
0x1a26   :  { %8873 = vmatmul.mubr.msk.f32.vlgmr.msra.gmra.mrb[54].mxu0 %vm249_vm3, %v4202_v52  ;;  %8880 = vmatprep.subr.mxu0 %v13344_v6 }
0x1a27   :  { %v10267_v31 = vpop.eup %10266  ;;  %8881 = vmatpush3.msra.mxu0 %v4371_v18  ;;  %8882 = vmatprep.mubr.msk.f32.mxu0 %vm10505_vm0, %v13344_v6 }
0x1a28   :  { %8890 = vmatprep.subr.mxu0 %v13344_v6  ;;  %v4369_v19 = vmul.f32 %v10267_v31, %v10259_v37 }
0x1a2a   :  { %8883 = vmatmul.mubr.msk.f32.vlgmr.msra.gmra.mrb[56].mxu0 %vm249_vm3, %v4369_v19 }
0x1a2b   :  { %v10269_v51 = vpop.eup %10268  ;;  %8891 = vmatpush3.msra.mxu0 %v4538_v13  ;;  %8892 = vmatprep.mubr.msk.f32.mxu0 %vm10505_vm0, %v13344_v6 }
0x1a2c   :  { %9514 = vmatprep.subr.bf16.mxu0 %v13345_v3  ;;  %v4536_v17 = vmul.f32 %v10269_v51, %v10261_v54 }
0x1a2e   :  { %8893 = vmatmul.mubr.msk.f32.vlgmr.msra.gmra.mrb[58].mxu0 %vm249_vm3, %v4536_v17 }
0x1a2f   :  { %9516 = vmatpush3.bf16.msra.mxu0 %v9515_v57  ;;  %8914 = vmatprep.mubr.msk.f32.mxu0 %vm10505_vm0, %v13344_v6 }
0x1a30   :  { %9517 = vmatprep.subr.bf16.mxu0 %v13345_v3 }
0x1a33   :  { %9519 = vmatpush3.bf16.msra.mxu0 %v9518_v45 }
0x1a36   :  { %8915 = vmatmul.mubr.msk.f32.vlgmr.msra.gmra.mrb[60].mxu0 %vm172_vm2, %v11984_v32 }
0x1a37   :  { %8917 = vmatprep.mubr.msk.f32.mxu0 %vm10505_vm0, %v13344_v6 }
0x1a3a   :  { %8918 = vmatmul.mubr.msk.f32.gmra.mrb[62].mxu0 %vm172_vm2, %v11982_v2 }
0x1a3b   :  { %8920 = vmatprep.mubr.msk.f32.mxu0 %vm10505_vm0, %v13344_v6 }
0x1a3e   :  { %8921 = vmatmul.mubr.msk.f32.gmra.mrb[64].mxu0 %vm172_vm2, %v11995_v34 }
0x1a3f   :  { %8923 = vmatprep.mubr.msk.f32.mxu0 %vm10505_vm0, %v13344_v6 }
0x1a42   :  { %8924 = vmatmul.mubr.msk.f32.gmra.mrb[66].mxu0 %vm172_vm2, %v11992_v41 }
0x1a43   :  { %8926 = vmatprep.mubr.msk.f32.mxu0 %vm10505_vm0, %v13344_v6 }
0x1a46   :  { %8927 = vmatmul.mubr.msk.f32.gmra.mrb[68].mxu0 %vm172_vm2, %v12003_v29 }
0x1a47   :  { %8929 = vmatprep.mubr.msk.f32.mxu0 %vm10505_vm0, %v13344_v6 }
0x1a4a   :  { %8930 = vmatmul.mubr.msk.f32.gmra.mrb[70].mxu0 %vm172_vm2, %v12000_v63 }
0x1a4b   :  { %8932 = vmatprep.mubr.msk.f32.mxu0 %vm10505_vm0, %v13344_v6 }
0x1a4e   :  { %8933 = vmatmul.mubr.msk.f32.gmra.mrb[72].mxu0 %vm172_vm2, %v12010_v1 }
0x1a4f   :  { %8935 = vmatprep.mubr.msk.f32.mxu0 %vm10505_vm0, %v13344_v6 }
0x1a52   :  { %8936 = vmatmul.mubr.msk.f32.gmra.mrb[74].mxu0 %vm172_vm2, %v12008_v33 }
0x1a53   :  { %8938 = vmatprep.mubr.msk.f32.mxu0 %vm10505_vm0, %v13344_v6 }
0x1af5   :  { %v4108_v61 = vpop.f32.mrb[52].mxu0 }
0x1af6   :  { %v8864_v9 = vpop.f32.mrb[53].mxu0 }
0x1af9   :  { %v4275_v28 = vpop.f32.mrb[54].mxu0 }
0x1afa   :  { %4614 = vrot.lane.b32.xlu0 %v4275_v28, %s13387_s8  ;;  %v8874_v24 = vpop.f32.mrb[55].mxu0 }
0x1afd   :  { %v4442_v60 = vpop.f32.mrb[56].mxu0 }
0x1afe   :  { %4618 = vrot.lane.b32.xlu1 %v4442_v60, %s13377_s9  ;;  %v8884_v16 = vpop.f32.mrb[57].mxu0 }
0x1b01   :  { %v4609_v0 = vpop.f32.mrb[58].mxu0 }
0x1b02   :  { %4622 = vrot.lane.b32.xlu0 %v4609_v0, %s13379_s5  ;;  %v8894_v30 = vpop.f32.mrb[59].mxu0  ;;  %v7772_v0 = vld [vmem:[%s13389_s6 + $0x1] ss:$0 sm:$0xff]  ;;  %s7581_s6 = sshll.u32 %s10521_s4, 4  ;;  %s7582_s6 = int_to_ptr.vmem [resolvable:$true] %s7581_s6 }
0x1b03   :  { %p10485_p1 = scmp.lt.s32.totalorder %s7582_s6, %s7582_s6 }
0x1b09   :  { %v4820_v7 = vpop.f32.mrb[60].mxu0 }
0x1b0a   :  { %v8916_v59 = vpop.f32.mrb[61].mxu0  ;;  %v12167_v35 = vadd.f32 %v12164_v15, %v4820_v7 }
0x1b0d   :  { %v4825_v47 = vpop.f32.mrb[62].mxu0 }
0x1b0e   :  { %v12170_v5 = vadd.f32 %v12164_v15, %v4825_v47  ;;  %v8919_v11 = vpop.f32.mrb[63].mxu0 }
0x1b10   :  { %v12174_v55 = vpack.i.bf16 %v12170_v5, %v12167_v35 }
0x1b11   :  { %v4830_v8 = vpop.f32.mrb[64].mxu0 }
0x1b12   :  { %9903 = vrot.lane.b32.xlu1 %v12174_v55, %s13381_s2  ;;  %v8922_v42 = vpop.f32.mrb[65].mxu0  ;;  %v12179_v62 = vadd.f32 %v12164_v15, %v4830_v8 }
0x1b15   :  { %v4835_v4 = vpop.f32.mrb[66].mxu0 }
0x1b16   :  { %v12182_v10 = vadd.f32 %v12164_v15, %v4835_v4  ;;  %v8925_v12 = vpop.f32.mrb[67].mxu0 }
0x1b18   :  { %v12186_v37 = vpack.i.bf16 %v12182_v10, %v12179_v62 }
0x1b19   :  { %v4840_v27 = vpop.f32.mrb[68].mxu0 }
0x1b1a   :  { %9908 = vrot.lane.b32.xlu0 %v12186_v37, %s13381_s2  ;;  %v8928_v54 = vpop.f32.mrb[69].mxu0  ;;  %v12191_v38 = vadd.f32 %v12164_v15, %v4840_v27 }
0x1b1d   :  { %v4845_v56 = vpop.f32.mrb[70].mxu0 }
0x1b1e   :  { %v12194_v21 = vadd.f32 %v12164_v15, %v4845_v56  ;;  %v8931_v43 = vpop.f32.mrb[71].mxu0 }
0x1b20   :  { %v12198_v14 = vpack.i.bf16 %v12194_v21, %v12191_v38 }
0x1b21   :  { %v4850_v39 = vpop.f32.mrb[72].mxu0 }
0x1b22   :  { %9913 = vrot.lane.b32.xlu1 %v12198_v14, %s13381_s2  ;;  %v8934_v36 = vpop.f32.mrb[73].mxu0  ;;  %v12203_v18 = vadd.f32 %v12164_v15, %v4850_v39 }
0x1b25   :  { %v4855_v49 = vpop.f32.mrb[74].mxu0 }
0x1b26   :  { %v12206_v23 = vadd.f32 %v12164_v15, %v4855_v49  ;;  %v8937_v52 = vpop.f32.mrb[75].mxu0 }
0x1b28   :  { %v12210_v31 = vpack.i.bf16 %v12206_v23, %v12203_v18 }
0x1b2a   :  { %9918 = vrot.lane.b32.xlu0 %v12210_v31, %s13381_s2 }
0x1b2e   :  { %9923 = vrot.lane.b32.xlu0 %v12174_v55, %s13364_s27 }
0x1b32   :  { %9933 = vrot.lane.b32.xlu0 %v12198_v14, %s13364_s27 }
0x1b6c   :  { %v4615_v19 = vpop.permute.xlu0 %4614 }
0x1b6d   :  { %v4625_v53 = vsel %vm249_vm3, %v4108_v61, %v4615_v19 }
0x1b70   :  { %v4619_v46 = vpop.permute.xlu1 %4618 }
0x1b71   :  { %v4626_v13 = vsel %vm927_vm4, %v4625_v53, %v4619_v46 }
0x1b74   :  { %v4623_v51 = vpop.permute.xlu0 %4622 }
0x1b75   :  { %v4627_v57 = vsel %vm929_vm5, %v4626_v13, %v4623_v51 }
0x1b76   :  { %8904 = vmatmul.mubr.msk.f32.vlgmr.msra.gmra.mrb[88].mxu1 %vm172_vm2, %v4627_v57 }
0x1b77   :  { %8959 = vmatprep.mubr.msk.f32.mxu1 %vm249_vm3, %v12167_v35 }
0x1b84   :  { %v9904_v17 = vpop.permute.xlu1 %9903 }
0x1b85   :  { %v9906_v58 = vunpack.i.h.bf16 %v9904_v17  ;;  %v9905_v50 = vunpack.i.l.bf16 %v9904_v17 }
0x1b87   :  { %v9520_v45 = vpack.c.bf16 %v9906_v58, %v9905_v50 }
0x1b89   :  { %9522 = vmatprep.subr.msk.bf16.mxu1 %vm10918_vm6, %v9520_v45 }
0x1b8a   :  { %9525 = vmatpush3.bf16.xpose.msk.msra.mxu1 %vm10918_vm6, %v9520_v45 }
0x1b8c   :  { %v9909_v26 = vpop.permute.xlu0 %9908 }
0x1b8d   :  { %v9911_v48 = vunpack.i.h.bf16 %v9909_v26  ;;  %v9910_v44 = vunpack.i.l.bf16 %v9909_v26 }
0x1b8f   :  { %v9526_v22 = vpack.c.bf16 %v9911_v48, %v9910_v44 }
0x1b91   :  { %9528 = vmatprep.subr.msk.bf16.mxu1 %vm10918_vm6, %v9526_v22 }
0x1b92   :  { %9531 = vmatpush3.bf16.xpose.msk.msra.mxu1 %vm10918_vm6, %v9526_v22 }
0x1b94   :  { %v9914_v20 = vpop.permute.xlu1 %9913 }
0x1b95   :  { %v9916_v25 = vunpack.i.h.bf16 %v9914_v20  ;;  %v9915_v61 = vunpack.i.l.bf16 %v9914_v20 }
0x1b97   :  { %v9532_v9 = vpack.c.bf16 %v9916_v25, %v9915_v61 }
0x1b99   :  { %9534 = vmatprep.subr.msk.bf16.mxu1 %vm10918_vm6, %v9532_v9 }
0x1b9a   :  { %9537 = vmatpush3.bf16.xpose.msk.msra.mxu1 %vm10918_vm6, %v9532_v9 }
0x1b9c   :  { %v9919_v28 = vpop.permute.xlu0 %9918 }
0x1b9d   :  { %v9921_v24 = vunpack.i.h.bf16 %v9919_v28  ;;  %v9920_v60 = vunpack.i.l.bf16 %v9919_v28 }
0x1b9f   :  { %v9538_v16 = vpack.c.bf16 %v9921_v24, %v9920_v60 }
0x1ba1   :  { %9540 = vmatprep.subr.msk.bf16.mxu1 %vm10918_vm6, %v9538_v16 }
0x1ba2   :  { %9543 = vmatpush3.bf16.xpose.msk.msra.mxu1 %vm10918_vm6, %v9538_v16 }
0x1c49   :  { %v4710_v30 = vpop.f32.mrb[88].mxu1 }
0x1c4a   :  { %v4711_v7 = vadd.f32 %v7772_v0, %v4710_v30  ;;  %v8905_v59 = vpop.f32.mrb[89].mxu1 }
0x1c4c   :  { %8939 = vmatmul.mubr.msk.f32.gmra.mrb[76].mxu0 %vm172_vm2, %v4711_v7 }
0x1d1f   :  { %v4860_v47 = vpop.f32.mrb[76].mxu0 }
0x1d20   :  { %v12245_v11 = vadd.f32 %v12164_v15, %v4860_v47  ;;  %v8940_v8 = vpop.f32.mrb[77].mxu0  ;;  %v9924_v15 = vpop.permute.xlu0 %9923 }
0x1d21   :  { %v9926_v4 = vunpack.i.h.bf16 %v9924_v15  ;;  %v9925_v12 = vunpack.i.l.bf16 %v9924_v15 }
0x1d22   :  { %5322 = vrot.lane.b32.xlu0 %v12245_v11, %s13364_s27  ;;  %4889 = vrot.lane.b32.xlu1 %v12245_v11, %s13381_s2 }
0x1d23   :  { %v9560_v56 = vpack.c.bf16 %v9926_v4, %v9925_v12 }
0x1d24   :  { %v9934_v42 = vpop.permute.xlu0 %9933 }
0x1d25   :  { %v9936_v53 = vunpack.i.h.bf16 %v9934_v42  ;;  %v9935_v13 = vunpack.i.l.bf16 %v9934_v42 }
0x1d26   :  { %5292 = vrot.lane.b32.xlu0 %v12170_v5, %s13367_s22  ;;  %9928 = vrot.lane.b32.xlu1 %v12186_v37, %s13364_s27 }
0x1d27   :  { %v9572_v17 = vpack.c.bf16 %v9936_v53, %v9935_v13 }
0x1d2a   :  { %5296 = vrot.lane.b32.xlu0 %v12182_v10, %s13367_s22  ;;  %9938 = vrot.lane.b32.xlu1 %v12210_v31, %s13364_s27  ;;  %s10480_s27 = scalar_lea.vmem %s7582_s6, 32 }
0x1d2b   :  { %p10481_p0 = scmp.ne.s32.totalorder %s7582_s6, %s10480_s27  ;;  %p10486_p2 = scmp.lt.s32.totalorder %s10480_s27, %s10480_s27 }
0x1d2d   :  { %p10487_p3 = por %p10486_p2, %p10485_p1 }
0x1d2e   :  { %5300 = vrot.lane.b32.xlu0 %v12194_v21, %s13367_s22  ;;  %5290 = vrot.lane.b32.xlu1 %v12167_v35, %s13367_s22 }
0x1d2f   :  { %p10488_p4 = pnand %p10487_p3, %p10481_p0 }
0x1d32   :  { %5304 = vrot.lane.b32.xlu0 %v12206_v23, %s13367_s22  ;;  %5294 = vrot.lane.b32.xlu1 %v12179_v62, %s13367_s22 }
0x1d36   :  { %9943 = vrot.lane.b32.xlu0 %v12174_v55, %s13368_s29  ;;  %5298 = vrot.lane.b32.xlu1 %v12191_v38, %s13367_s22 }
0x1d3a   :  { %9953 = vrot.lane.b32.xlu0 %v12198_v14, %s13368_s29  ;;  %5302 = vrot.lane.b32.xlu1 %v12203_v18, %s13367_s22 }
0x1d3e   :  { %9968 = vrot.lane.b32.xlu0 %v12186_v37, %s13384_s26  ;;  %9948 = vrot.lane.b32.xlu1 %v12186_v37, %s13368_s29 }
0x1d42   :  { %9973 = vrot.lane.b32.xlu0 %v12198_v14, %s13384_s26  ;;  %9958 = vrot.lane.b32.xlu1 %v12210_v31, %s13368_s29 }
0x1d46   :  { %5150 = vrot.lane.b32.xlu0 %v12245_v11, %s13368_s29  ;;  %9963 = vrot.lane.b32.xlu1 %v12174_v55, %s13384_s26  ;;  %s13390_s29 = sld [smem:[#allocation10_spill]] }
0x1d4c   :  { %v12354_v13 = vld [vmem:[%s13390_s29] sm:$0xff] }
0x1d94   :  { %v12287_v27 = vpop.permute.xlu0 %5322  ;;  %v4890_v54 = vpop.permute.xlu1 %4889 }
0x1d95   :  { %8957 = vmatprep.subr.msk.mxu1 %vm249_vm3, %v4890_v54 }
0x1d96   :  { %8958 = vmatpush3.xpose.msk.msra.mxu1 %vm249_vm3, %v4890_v54 }
0x1d97   :  { %9562 = vmatprep.subr.msk.bf16.mxu1 %vm10918_vm6, %v9560_v56 }
0x1d98   :  { %v12293_v43 = vpop.permute.xlu0 %5292  ;;  %v9929_v39 = vpop.permute.xlu1 %9928 }
0x1d99   :  { %v9931_v36 = vunpack.i.h.bf16 %v9929_v39  ;;  %v9930_v49 = vunpack.i.l.bf16 %v9929_v39  ;;  %8960 = vmatmul.mubr.msk.f32.vlgmr.msra.gmra.mrb[90].mxu1 %vm249_vm3, %v12170_v5 }
0x1d9a   :  { %8962 = vmatprep.mubr.msk.f32.mxu1 %vm249_vm3, %v12179_v62  ;;  %9565 = vmatpush3.bf16.xpose.msk.msra.mxu1 %vm10918_vm6, %v9560_v56 }
0x1d9b   :  { %v9566_v52 = vpack.c.bf16 %v9931_v36, %v9930_v49 }
0x1d9c   :  { %v5297_v19 = vpop.permute.xlu0 %5296  ;;  %v9939_v46 = vpop.permute.xlu1 %9938 }
0x1d9d   :  { %8963 = vmatmul.mubr.msk.f32.gmra.mrb[92].mxu1 %vm249_vm3, %v12182_v10  ;;  %9568 = vmatprep.subr.msk.bf16.mxu1 %vm10918_vm6, %v9566_v52  ;;  %v9941_v45 = vunpack.i.h.bf16 %v9939_v46  ;;  %v9940_v26 = vunpack.i.l.bf16 %v9939_v46 }
0x1d9e   :  { %8965 = vmatprep.mubr.msk.f32.mxu1 %vm249_vm3, %v12191_v38 }
0x1d9f   :  { %v9578_v22 = vpack.c.bf16 %v9941_v45, %v9940_v26 }
0x1da0   :  { %v5301_v51 = vpop.permute.xlu0 %5300  ;;  %v5291_v57 = vpop.permute.xlu1 %5290 }
0x1da1   :  { %8966 = vmatmul.mubr.msk.f32.gmra.mrb[94].mxu1 %vm249_vm3, %v12194_v21 }
0x1da2   :  { %8968 = vmatprep.mubr.msk.f32.mxu1 %vm249_vm3, %v12203_v18  ;;  %9571 = vmatpush3.bf16.xpose.msk.msra.mxu1 %vm10918_vm6, %v9566_v52 }
0x1da3   :  { %9574 = vmatprep.subr.msk.bf16.mxu1 %vm10918_vm6, %v9572_v17 }
0x1da4   :  { %v5305_v58 = vpop.permute.xlu0 %5304  ;;  %v5295_v50 = vpop.permute.xlu1 %5294 }
0x1da5   :  { %8969 = vmatmul.mubr.msk.f32.gmra.mrb[96].mxu1 %vm249_vm3, %v12206_v23 }
0x1da6   :  { %9019 = vmatprep.mubr.msk.f32.mxu1 %vm249_vm3, %v5291_v57 }
0x1da8   :  { %v9944_v48 = vpop.permute.xlu0 %9943  ;;  %v5299_v44 = vpop.permute.xlu1 %5298 }
0x1da9   :  { %v9946_v20 = vunpack.i.h.bf16 %v9944_v48  ;;  %v9945_v25 = vunpack.i.l.bf16 %v9944_v48  ;;  %v12366_v48 = vld [vmem:[%s13390_s29 + $0x18] sm:$0xff] }
0x1daa   :  { %9577 = vmatpush3.bf16.xpose.msk.msra.mxu1 %vm10918_vm6, %v9572_v17 }
0x1dab   :  { %9580 = vmatprep.subr.msk.bf16.mxu1 %vm10918_vm6, %v9578_v22  ;;  %v9544_v61 = vpack.c.bf16 %v9946_v20, %v9945_v25 }
0x1dac   :  { %v9954_v9 = vpop.permute.xlu0 %9953  ;;  %v5303_v28 = vpop.permute.xlu1 %5302 }
0x1dad   :  { %9545 = vmatprep.subr.bf16.mxu0 %v9544_v61  ;;  %v9956_v60 = vunpack.i.h.bf16 %v9954_v9  ;;  %v9955_v16 = vunpack.i.l.bf16 %v9954_v9 }
0x1dae   :  { %9547 = vmatpush3.bf16.msra.mxu0 %v9544_v61 }
0x1daf   :  { %v9552_v42 = vpack.c.bf16 %v9956_v60, %v9955_v16  ;;  %v12386_v16 = vld [vmem:[%s13390_s29 + $0x28] sm:$0xff] }
0x1db0   :  { %v9949_v24 = vpop.permute.xlu1 %9948  ;;  %v12322_v7 = vpop.permute.xlu0 %9968 }
0x1db1   :  { %v9951_v0 = vunpack.i.h.bf16 %v9949_v24  ;;  %v9950_v30 = vunpack.i.l.bf16 %v9949_v24 }
0x1db2   :  { %9583 = vmatpush3.bf16.xpose.msk.msra.mxu1 %vm10918_vm6, %v9578_v22  ;;  %v12374_v22 = vld [vmem:[%s13390_s29 + $0x10] sm:$0xff] }
0x1db3   :  { %9017 = vmatprep.subr.msk.mxu1 %vm249_vm3, %v12287_v27  ;;  %v9548_v59 = vpack.c.bf16 %v9951_v0, %v9950_v30  ;;  %v12394_v30 = vld [vmem:[%s13390_s29 + $0x20] sm:$0xff] }
0x1db4   :  { %v9959_v47 = vpop.permute.xlu1 %9958  ;;  %v12328_v4 = vpop.permute.xlu0 %9973 }
0x1db5   :  { %v9961_v8 = vunpack.i.h.bf16 %v9959_v47  ;;  %v9960_v15 = vunpack.i.l.bf16 %v9959_v47  ;;  %9549 = vmatprep.subr.bf16.mxu0 %v9548_v59 }
0x1db6   :  { %9551 = vmatpush3.bf16.msra.mxu0 %v9548_v59 }
0x1db7   :  { %9553 = vmatprep.subr.bf16.mxu0 %v9552_v42  ;;  %v9556_v12 = vpack.c.bf16 %v9961_v8, %v9960_v15 }
0x1db8   :  { %v9964_v54 = vpop.permute.xlu1 %9963  ;;  %v5151_v36 = vpop.permute.xlu0 %5150 }
0x1db9   :  { %v9966_v56 = vunpack.i.h.bf16 %v9964_v54  ;;  %v9965_v39 = vunpack.i.l.bf16 %v9964_v54 }
0x1dba   :  { %9555 = vmatpush3.bf16.msra.mxu0 %v9552_v42  ;;  %9018 = vmatpush3.xpose.msk.msra.mxu1 %vm249_vm3, %v12287_v27 }
0x1dbb   :  { %9557 = vmatprep.subr.bf16.mxu0 %v9556_v12  ;;  %v12336_v49 = vpack.c.bf16 %v9966_v56, %v9965_v39  ;;  %v12406_v56 = vld [vmem:[%s13390_s29 + $0x38] sm:$0xff] }
0x1dbd   :  { %9020 = vmatmul.mubr.msk.f32.vlgmr.msra.gmra.mrb[98].mxu1 %vm249_vm3, %v12293_v43 }
0x1dbe   :  { %9559 = vmatpush3.bf16.msra.mxu0 %v9556_v12  ;;  %9022 = vmatprep.mubr.msk.f32.mxu1 %vm249_vm3, %v5295_v50 }
0x1dbf   :  { %8987 = vmatprep.subr.mxu0 %v5151_v36 }
0x1dc1   :  { %9023 = vmatmul.mubr.msk.f32.gmra.mrb[100].mxu1 %vm249_vm3, %v5297_v19  ;;  %v12346_v19 = vld [vmem:[%s13390_s29 + $0x8] sm:$0xff] }
0x1dc2   :  { %8988 = vmatpush3.msra.mxu0 %v5151_v36  ;;  %9025 = vmatprep.mubr.msk.f32.mxu1 %vm249_vm3, %v5299_v44  ;;  %v12414_v36 = vld [vmem:[%s13390_s29 + $0x30] sm:$0xff] }
0x1dc3   :  { %9585 = vmatprep.subr.bf16.mxu0 %v12336_v49 }
0x1dc5   :  { %9026 = vmatmul.mubr.msk.f32.gmra.mrb[102].mxu1 %vm249_vm3, %v5301_v51 }
0x1dc6   :  { %9028 = vmatprep.mubr.msk.f32.mxu1 %vm249_vm3, %v5303_v28 }
0x1dc9   :  { %9029 = vmatmul.mubr.msk.f32.gmra.mrb[104].mxu1 %vm249_vm3, %v5305_v58 }
0x1e6c   :  { %v8961_v27 = vpop.f32.mrb[90].mxu1 }
0x1e6d   :  { %v5031_v43 = vmul.f32 0.35355338, %v8961_v27  ;;  %v4991_v52 = vpop.f32.mrb[91].mxu1 }
0x1e6e   :  { %v5030_v46 = vmul.f32 0.35355338, %v4991_v52 }
0x1e6f   :  { %v12349_v53 = vadd.f32 %v12346_v19, %v5031_v43 }
0x1e70   :  { %v12357_v51 = vadd.f32 %v12354_v13, %v5030_v46  ;;  %v8964_v57 = vpop.f32.mrb[92].mxu1 }
0x1e71   :  { %v5033_v17 = vmul.f32 0.35355338, %v8964_v57  ;;  %v5001_v58 = vpop.f32.mrb[93].mxu1  ;;  %v5049_v50 = vsel %vm1345_vm7, %v12349_v53, -inf }
0x1e72   :  { %v5032_v45 = vmul.f32 0.35355338, %v5001_v58  ;;  %5050 = vmax.xlane.f32.xlu0 %v5049_v50  ;;  %v5046_v26 = vsel %vm1345_vm7, %v12357_v51, -inf }
0x1e73   :  { %v12369_v44 = vadd.f32 %v12366_v48, %v5033_v17  ;;  %5047 = vmax.xlane.f32.xlu1 %v5046_v26 }
0x1e74   :  { %v12377_v20 = vadd.f32 %v12374_v22, %v5032_v45  ;;  %v8967_v25 = vpop.f32.mrb[94].mxu1 }
0x1e75   :  { %v5035_v61 = vmul.f32 0.35355338, %v8967_v25  ;;  %v5011_v9 = vpop.f32.mrb[95].mxu1  ;;  %v5055_v28 = vsel %vm1345_vm7, %v12369_v44, -inf }
0x1e76   :  { %v5034_v24 = vmul.f32 0.35355338, %v5011_v9  ;;  %v5052_v60 = vsel %vm1345_vm7, %v12377_v20, -inf }
0x1e77   :  { %v12389_v0 = vadd.f32 %v12386_v16, %v5035_v61  ;;  %5056 = vmax.xlane.f32.xlu1 %v5055_v28  ;;  %5053 = vmax.xlane.f32.xlu0 %v5052_v60 }
0x1e78   :  { %v12397_v59 = vadd.f32 %v12394_v30, %v5034_v24  ;;  %v8970_v47 = vpop.f32.mrb[96].mxu1 }
0x1e79   :  { %v5037_v8 = vmul.f32 0.35355338, %v8970_v47  ;;  %v5021_v15 = vpop.f32.mrb[97].mxu1  ;;  %v5061_v42 = vsel %vm1345_vm7, %v12389_v0, -inf }
0x1e7a   :  { %v5036_v12 = vmul.f32 0.35355338, %v5021_v15  ;;  %v5058_v54 = vsel %vm1345_vm7, %v12397_v59, -inf }
0x1e7b   :  { %v12409_v39 = vadd.f32 %v12406_v56, %v5037_v8  ;;  %5062 = vmax.xlane.f32.xlu1 %v5061_v42  ;;  %5059 = vmax.xlane.f32.xlu0 %v5058_v54 }
0x1e7c   :  { %v12417_v27 = vadd.f32 %v12414_v36, %v5036_v12 }
0x1e7d   :  { %v5067_v43 = vsel %vm1345_vm7, %v12409_v39, -inf }
0x1e7e   :  { %v5064_v52 = vsel %vm1345_vm7, %v12417_v27, -inf }
0x1e7f   :  { %5068 = vmax.xlane.f32.xlu1 %v5067_v43  ;;  %5065 = vmax.xlane.f32.xlu0 %v5064_v52 }
0x1e90   :  { %v9021_v46 = vpop.f32.mrb[98].mxu1 }
0x1e91   :  { %v5464_v57 = vmul.f32 0.35355338, %v9021_v46  ;;  %v5424_v17 = vpop.f32.mrb[99].mxu1 }
0x1e92   :  { %v5463_v24 = vmul.f32 0.35355338, %v5424_v17 }
0x1e93   :  { %v12424_v58 = vadd.f32 %v12346_v19, %v5464_v57 }
0x1e94   :  { %v9024_v50 = vpop.f32.mrb[100].mxu1  ;;  %v12433_v60 = vadd.f32 %v12354_v13, %v5463_v24 }
0x1e95   :  { %v5434_v45 = vpop.f32.mrb[101].mxu1  ;;  %5583 = vrot.lane.b32.xlu0 %v12245_v11, %s13384_s26  ;;  %v5482_v26 = vsel %vm1345_vm7, %v12424_v58, -inf  ;;  %v5466_v17 = vmul.f32 0.35355338, %v9024_v50 }
0x1e96   :  { %5483 = vmax.xlane.f32.xlu1 %v5482_v26  ;;  %v5465_v47 = vmul.f32 0.35355338, %v5434_v45  ;;  %v5479_v42 = vsel %vm1345_vm7, %v12433_v60, -inf }
0x1e97   :  { %v12453_v45 = vadd.f32 %v12366_v48, %v5466_v17 }
0x1e98   :  { %v9027_v25 = vpop.f32.mrb[102].mxu1  ;;  %v12436_v8 = vadd.f32 %v12374_v22, %v5465_v47 }
0x1e99   :  { %v5444_v61 = vpop.f32.mrb[103].mxu1  ;;  %v5468_v26 = vmul.f32 0.35355338, %v9027_v25  ;;  %v5488_v24 = vsel %vm1345_vm7, %v12453_v45, -inf }
0x1e9a   :  { %v5467_v15 = vmul.f32 0.35355338, %v5444_v61  ;;  %v5485_v43 = vsel %vm1345_vm7, %v12436_v8, -inf }
0x1e9b   :  { %v12456_v61 = vadd.f32 %v12386_v16, %v5468_v26 }
0x1e9c   :  { %v9030_v9 = vpop.f32.mrb[104].mxu1  ;;  %v12441_v12 = vadd.f32 %v12394_v30, %v5467_v15 }
0x1e9d   :  { %v5454_v28 = vpop.f32.mrb[105].mxu1  ;;  %v5494_v15 = vsel %vm1345_vm7, %v12456_v61, -inf }
0x1e9e   :  { %v5469_v54 = vmul.f32 0.35355338, %v5454_v28  ;;  %v5491_v46 = vsel %vm1345_vm7, %v12441_v12, -inf  ;;  %v5470_v28 = vmul.f32 0.35355338, %v9030_v9 }
0x1ea0   :  { %v12446_v52 = vadd.f32 %v12414_v36, %v5469_v54  ;;  %v12461_v47 = vadd.f32 %v12406_v56, %v5470_v28 }
0x1ea2   :  { %v5497_v57 = vsel %vm1345_vm7, %v12446_v52, -inf  ;;  %v5500_v50 = vsel %vm1345_vm7, %v12461_v47, -inf }
0x1ea7   :  { %9978 = vrot.lane.b32.xlu1 %v12210_v31, %s13384_s26 }
0x1eb4   :  { %5480 = vmax.xlane.f32.xlu0 %v5479_v42 }
0x1eb8   :  { %5486 = vmax.xlane.f32.xlu0 %v5485_v43 }
0x1ebc   :  { %5492 = vmax.xlane.f32.xlu0 %v5491_v46 }
0x1ec0   :  { %5498 = vmax.xlane.f32.xlu0 %v5497_v57 }
0x1ecb   :  { %5489 = vmax.xlane.f32.xlu1 %v5488_v24 }
0x1ecf   :  { %5495 = vmax.xlane.f32.xlu1 %v5494_v15 }
0x1ed3   :  { %5501 = vmax.xlane.f32.xlu1 %v5500_v50 }
0x1ed6   :  { %9983 = vrot.lane.b32.xlu0 %v12174_v55, %s13371_s23 }
0x1eff   :  { %v5051_v25 = vpop.xlane.xlu0 %5050 }
0x1f00   :  { %v5071_v9 = vsub.f32 %v12349_v53, %v5051_v25  ;;  %v5048_v42 = vpop.xlane.xlu1 %5047 }
0x1f01   :  { %v5070_v54 = vsub.f32 %v12357_v51, %v5048_v42 }
0x1f02   :  { %v5080_v43 = vmul.f32 1.442695, %v5071_v9 }
0x1f03   :  { %v5078_v46 = vmul.f32 1.442695, %v5070_v54 }
0x1f04   :  { %10270 = vpow2.f32 %v5080_v43  ;;  %v5057_v57 = vpop.xlane.xlu1 %5056  ;;  %v5054_v17 = vpop.xlane.xlu0 %5053 }
0x1f05   :  { %10272 = vpow2.f32 %v5078_v46  ;;  %v5073_v26 = vsub.f32 %v12369_v44, %v5057_v57  ;;  %v5072_v28 = vsub.f32 %v12377_v20, %v5054_v17 }
0x1f07   :  { %v5084_v24 = vmul.f32 1.442695, %v5073_v26  ;;  %v5082_v15 = vmul.f32 1.442695, %v5072_v28 }
0x1f08   :  { %v5063_v50 = vpop.xlane.xlu1 %5062  ;;  %v5060_v6 = vpop.xlane.xlu0 %5059 }
0x1f09   :  { %10274 = vpow2.f32 %v5084_v24  ;;  %v5075_v53 = vsub.f32 %v12389_v0, %v5063_v50  ;;  %v5074_v25 = vsub.f32 %v12397_v59, %v5060_v6 }
0x1f0a   :  { %10276 = vpow2.f32 %v5082_v15 }
0x1f0b   :  { %v5088_v51 = vmul.f32 1.442695, %v5075_v53  ;;  %v5086_v9 = vmul.f32 1.442695, %v5074_v25 }
0x1f0c   :  { %v5069_v42 = vpop.xlane.xlu1 %5068  ;;  %v5066_v54 = vpop.xlane.xlu0 %5065 }
0x1f0d   :  { %10278 = vpow2.f32 %v5088_v51  ;;  %v5077_v43 = vsub.f32 %v12409_v39, %v5069_v42  ;;  %v5076_v44 = vsub.f32 %v12417_v27, %v5066_v54 }
0x1f0e   :  { %v12477_v20 = vpop.eup %10270  ;;  %10280 = vpow2.f32 %v5086_v9 }
0x1f0f   :  { %v12479_v46 = vpop.eup %10272  ;;  %v5092_v57 = vmul.f32 1.442695, %v5077_v43  ;;  %v5097_v0 = vsel %vm1345_vm7, %v12477_v20, 0.0  ;;  %v5090_v6 = vmul.f32 1.442695, %v5076_v44 }
0x1f10   :  { %5098 = vadd.xlane.f32.xlu1 %v5097_v0  ;;  %v5094_v59 = vsel %vm1345_vm7, %v12479_v46, 0.0  ;;  %v12514_v0 = vpop.permute.xlu0 %5583 }
0x1f11   :  { %10282 = vpow2.f32 %v5092_v57  ;;  %5095 = vadd.xlane.f32.xlu0 %v5094_v59 }
0x1f12   :  { %10284 = vpow2.f32 %v5090_v6 }
0x1f13   :  { %v12485_v17 = vpop.eup %10274 }
0x1f14   :  { %v12487_v39 = vpop.eup %10276  ;;  %v5103_v27 = vsel %vm1345_vm7, %v12485_v17, 0.0 }
0x1f15   :  { %v5100_v26 = vsel %vm1345_vm7, %v12487_v39, 0.0  ;;  %5104 = vadd.xlane.f32.xlu0 %v5103_v27 }
0x1f16   :  { %5101 = vadd.xlane.f32.xlu1 %v5100_v26 }
0x1f17   :  { %v12493_v28 = vpop.eup %10278 }
0x1f18   :  { %v5109_v24 = vsel %vm1345_vm7, %v12493_v28, 0.0  ;;  %v12497_v15 = vpop.eup %10280 }
0x1f19   :  { %v5106_v25 = vsel %vm1345_vm7, %v12497_v15, 0.0 }
0x1f1a   :  { %5110 = vadd.xlane.f32.xlu1 %v5109_v24 }
0x1f1b   :  { %v12499_v50 = vpop.eup %10282 }
0x1f1c   :  { %v5115_v53 = vsel %vm1345_vm7, %v12499_v50, 0.0  ;;  %v12505_v51 = vpop.eup %10284 }
0x1f1d   :  { %5116 = vadd.xlane.f32.xlu0 %v5115_v53  ;;  %v5112_v9 = vsel %vm1345_vm7, %v12505_v51, 0.0 }
0x1f1e   :  { %5107 = vadd.xlane.f32.xlu1 %v5106_v25 }
0x1f22   :  { %5113 = vadd.xlane.f32.xlu1 %v5112_v9 }
0x1f23   :  { %v5484_v42 = vpop.xlane.xlu1 %5483 }
0x1f24   :  { %v5504_v54 = vsub.f32 %v12424_v58, %v5484_v42 }
0x1f26   :  { %v5513_v43 = vmul.f32 1.442695, %v5504_v54 }
0x1f27   :  { %v12523_v24 = vpop.permute.xlu1 %9978 }
0x1f28   :  { %10286 = vpow2.f32 %v5513_v43 }
0x1f32   :  { %v12510_v44 = vpop.eup %10286 }
0x1f33   :  { %v5530_v57 = vsel %vm1345_vm7, %v12510_v44, 0.0 }
0x1f34   :  { %5531 = vadd.xlane.f32.xlu0 %v5530_v57 }
0x1f41   :  { %v5481_v6 = vpop.xlane.xlu0 %5480 }
0x1f42   :  { %v5503_v59 = vsub.f32 %v12433_v60, %v5481_v6 }
0x1f44   :  { %v5511_v27 = vmul.f32 1.442695, %v5503_v59 }
0x1f45   :  { %v5487_v54 = vpop.xlane.xlu0 %5486 }
0x1f46   :  { %10288 = vpow2.f32 %v5511_v27  ;;  %v5505_v43 = vsub.f32 %v12436_v8, %v5487_v54 }
0x1f48   :  { %v5515_v6 = vmul.f32 1.442695, %v5505_v43 }
0x1f49   :  { %v5493_v27 = vpop.xlane.xlu0 %5492 }
0x1f4a   :  { %9993 = vrot.lane.b32.xlu0 %v12198_v14, %s13371_s23 }
0x1f4d   :  { %v5499_v3 = vpop.xlane.xlu0 %5498 }
0x1f4e   :  { %v5509_v8 = vsub.f32 %v12446_v52, %v5499_v3 }
0x1f50   :  { %v12519_v26 = vpop.eup %10288 }
0x1f51   :  { %v5527_v58 = vsel %vm1345_vm7, %v12519_v26, 0.0 }
0x1f52   :  { %5528 = vadd.xlane.f32.xlu1 %v5527_v58 }
0x1f58   :  { %v5490_v53 = vpop.xlane.xlu1 %5489 }
0x1f59   :  { %v5506_v25 = vsub.f32 %v12453_v45, %v5490_v53  ;;  %v5507_v45 = vsub.f32 %v12441_v12, %v5493_v27  ;;  %v5523_v12 = vmul.f32 1.442695, %v5509_v8 }
0x1f5b   :  { %v5517_v9 = vmul.f32 1.442695, %v5506_v25  ;;  %v5519_v25 = vmul.f32 1.442695, %v5507_v45  ;;  %v12571_v45 = vpop.permute.xlu0 %9983 }
0x1f5c   :  { %v5496_v57 = vpop.xlane.xlu1 %5495 }
0x1f5d   :  { %10290 = vpow2.f32 %v5517_v9  ;;  %v5508_v59 = vsub.f32 %v12456_v61, %v5496_v57 }
0x1f5e   :  { %10292 = vpow2.f32 %v5515_v6 }
0x1f5f   :  { %v5521_v58 = vmul.f32 1.442695, %v5508_v59 }
0x1f60   :  { %v5502_v53 = vpop.xlane.xlu1 %5501 }
0x1f61   :  { %10294 = vpow2.f32 %v5521_v58  ;;  %v5510_v9 = vsub.f32 %v12461_v47, %v5502_v53 }
0x1f62   :  { %10296 = vpow2.f32 %v5519_v25 }
0x1f63   :  { %9988 = vrot.lane.b32.xlu1 %v12186_v37, %s13371_s23 }
0x1f67   :  { %v12528_v60 = vpop.eup %10290 }
0x1f68   :  { %v5536_v42 = vsel %vm1345_vm7, %v12528_v60, 0.0  ;;  %v12539_v54 = vpop.eup %10292 }
0x1f69   :  { %5537 = vadd.xlane.f32.xlu0 %v5536_v42  ;;  %v5525_v42 = vmul.f32 1.442695, %v5510_v9  ;;  %v5533_v61 = vsel %vm1345_vm7, %v12539_v54, 0.0 }
0x1f6b   :  { %10298 = vpow2.f32 %v5525_v42  ;;  %v12545_v43 = vpop.eup %10294 }
0x1f6c   :  { %10300 = vpow2.f32 %v5523_v12  ;;  %v5542_v3 = vsel %vm1345_vm7, %v12545_v43, 0.0  ;;  %v12551_v52 = vpop.eup %10296 }
0x1f6d   :  { %v5539_v47 = vsel %vm1345_vm7, %v12551_v52, 0.0 }
0x1f75   :  { %v12557_v57 = vpop.eup %10298 }
0x1f76   :  { %v5548_v6 = vsel %vm1345_vm7, %v12557_v57, 0.0  ;;  %v12563_v59 = vpop.eup %10300 }
0x1f77   :  { %v5545_v27 = vsel %vm1345_vm7, %v12563_v59, 0.0 }
0x1f7f   :  { %9998 = vrot.lane.b32.xlu0 %v12210_v31, %s13371_s23 }
0x1f83   :  { %5755 = vrot.lane.b32.xlu0 %v12245_v11, %s13371_s23 }
0x1f87   :  { %5723 = vrot.lane.b32.xlu0 %v12167_v35, %s13372_s28  ;;  %5534 = vadd.xlane.f32.xlu1 %v5533_v61  ;;  %v9971_v61 = vunpack.i.h.bf16 %v12322_v7 }
0x1f8b   :  { %5727 = vrot.lane.b32.xlu0 %v12179_v62, %s13372_s28  ;;  %5543 = vadd.xlane.f32.xlu1 %v5542_v3  ;;  %v9970_v3 = vunpack.i.l.bf16 %v12322_v7  ;;  %v9976_v7 = vunpack.i.h.bf16 %v12328_v4 }
0x1f8f   :  { %5731 = vrot.lane.b32.xlu0 %v12191_v38, %s13372_s28  ;;  %5540 = vadd.xlane.f32.xlu1 %v5539_v47 }
0x1f93   :  { %5735 = vrot.lane.b32.xlu0 %v12203_v18, %s13372_s28  ;;  %5549 = vadd.xlane.f32.xlu1 %v5548_v6 }
0x1f97   :  { %10008 = vrot.lane.b32.xlu0 %v12186_v37, %s13382_s24  ;;  %5546 = vadd.xlane.f32.xlu1 %v5545_v27 }
0x1f9b   :  { %6016 = vrot.lane.b32.xlu0 %v12245_v11, %s13382_s24 }
0x1f9d   :  { %v5099_v58 = vpop.xlane.xlu1 %5098 }
0x1f9e   :  { %10302 = vrcp.f32 %v5099_v58  ;;  %v5096_v53 = vpop.xlane.xlu0 %5095 }
0x1f9f   :  { %10304 = vrcp.f32 %v5096_v53 }
0x1fa2   :  { %v5105_v25 = vpop.xlane.xlu0 %5104 }
0x1fa3   :  { %v5102_v9 = vpop.xlane.xlu1 %5101  ;;  %10306 = vrcp.f32 %v5105_v25  ;;  %v9588_v25 = vpack.c.bf16 %v9971_v61, %v9970_v3  ;;  %v9980_v61 = vunpack.i.l.bf16 %v12523_v24 }
0x1fa4   :  { %10308 = vrcp.f32 %v5102_v9 }
0x1fa7   :  { %v5111_v8 = vpop.xlane.xlu1 %5110 }
0x1fa8   :  { %v10303_v42 = vpop.eup %10302  ;;  %5725 = vrot.lane.b32.xlu1 %v12170_v5, %s13372_s28  ;;  %10310 = vrcp.f32 %v5111_v8 }
0x1fa9   :  { %v10305_v12 = vpop.eup %10304  ;;  %v5127_v6 = vmul.f32 %v10303_v42, %v12477_v20 }
0x1faa   :  { %v5126_v47 = vmul.f32 %v10305_v12, %v12479_v46  ;;  %v5117_v58 = vpop.xlane.xlu0 %5116  ;;  %v9975_v46 = vunpack.i.l.bf16 %v12328_v4  ;;  %v9981_v12 = vunpack.i.h.bf16 %v12523_v24 }
0x1fab   :  { %v5108_v27 = vpop.xlane.xlu1 %5107 }
0x1fac   :  { %10312 = vrcp.f32 %v5108_v27  ;;  %5729 = vrot.lane.b32.xlu1 %v12182_v10, %s13372_s28  ;;  %8989 = vmatprep.mubr.msk.f32.mxu0 %vm1345_vm7, %v5126_v47  ;;  %v9592_v4 = vpack.c.bf16 %v9976_v7, %v9975_v46  ;;  %v9986_v27 = vunpack.i.h.bf16 %v12571_v45 }
0x1fad   :  { %v10307_v53 = vpop.eup %10306  ;;  %8990 = vmatmul.mubr.msk.f32.vlgmr.msra.gmra.mrb[78].mxu0 %vm1345_vm7, %v5127_v6  ;;  %10314 = vrcp.f32 %v5117_v58  ;;  %v9985_v58 = vunpack.i.l.bf16 %v12571_v45 }
0x1fae   :  { %v10309_v9 = vpop.eup %10308  ;;  %9587 = vmatpush3.bf16.msra.mxu0 %v12336_v49  ;;  %v5129_v20 = vmul.f32 %v10307_v53, %v12485_v17 }
0x1faf   :  { %v5114_v8 = vpop.xlane.xlu1 %5113  ;;  %9589 = vmatprep.subr.bf16.mxu0 %v9588_v25  ;;  %v5128_v42 = vmul.f32 %v10309_v9, %v12487_v39  ;;  %v9596_v39 = vpack.c.bf16 %v9981_v12, %v9980_v61 }
0x1fb0   :  { %10316 = vrcp.f32 %v5114_v8  ;;  %5733 = vrot.lane.b32.xlu1 %v12194_v21, %s13372_s28 }
0x1fb1   :  { %8992 = vmatprep.mubr.msk.f32.mxu0 %vm1345_vm7, %v5128_v42 }
0x1fb2   :  { %8993 = vmatmul.mubr.msk.f32.gmra.mrb[80].mxu0 %vm1345_vm7, %v5129_v20  ;;  %v10311_v49 = vpop.eup %10310 }
0x1fb3   :  { %9591 = vmatpush3.bf16.msra.mxu0 %v9588_v25  ;;  %v5131_v24 = vmul.f32 %v10311_v49, %v12493_v28 }
0x1fb4   :  { %9593 = vmatprep.subr.bf16.mxu0 %v9592_v4  ;;  %5737 = vrot.lane.b32.xlu1 %v12206_v23, %s13372_s28 }
0x1fb6   :  { %v10313_v17 = vpop.eup %10312 }
0x1fb7   :  { %9595 = vmatpush3.bf16.msra.mxu0 %v9592_v4  ;;  %v5130_v3 = vmul.f32 %v10313_v17, %v12497_v15  ;;  %v10315_v47 = vpop.eup %10314  ;;  %v9600_v15 = vpack.c.bf16 %v9986_v27, %v9985_v58 }
0x1fb8   :  { %9597 = vmatprep.subr.bf16.mxu0 %v9596_v39  ;;  %10003 = vrot.lane.b32.xlu1 %v12174_v55, %s13382_s24  ;;  %v5133_v28 = vmul.f32 %v10315_v47, %v12499_v50 }
0x1fb9   :  { %8995 = vmatprep.mubr.msk.f32.mxu0 %vm1345_vm7, %v5130_v3 }
0x1fba   :  { %v10317_v6 = vpop.eup %10316  ;;  %8996 = vmatmul.mubr.msk.f32.gmra.mrb[82].mxu0 %vm1345_vm7, %v5131_v24 }
0x1fbb   :  { %9599 = vmatpush3.bf16.msra.mxu0 %v9596_v39  ;;  %v5132_v53 = vmul.f32 %v10317_v6, %v12505_v51 }
0x1fbc   :  { %9047 = vmatprep.subr.mxu0 %v12514_v0  ;;  %10013 = vrot.lane.b32.xlu1 %v12198_v14, %s13382_s24 }
0x1fbd   :  { %8998 = vmatprep.mubr.msk.f32.mxu0 %vm1345_vm7, %v5132_v53 }
0x1fbe   :  { %8999 = vmatmul.mubr.msk.f32.gmra.mrb[84].mxu0 %vm1345_vm7, %v5133_v28 }
0x1fbf   :  { %9048 = vmatpush3.msra.mxu0 %v12514_v0 }
0x1fc0   :  { %9602 = vmatprep.subr.msk.bf16.mxu0 %vm10918_vm6, %v9600_v15  ;;  %10018 = vrot.lane.b32.xlu1 %v12210_v31, %s13382_s24 }
0x1fc1   :  { %v5532_v51 = vpop.xlane.xlu0 %5531 }
0x1fc2   :  { %10318 = vrcp.f32 %v5532_v51 }
0x1fc5   :  { %v9994_v42 = vpop.permute.xlu0 %9993 }
0x1fc6   :  { %v9996_v12 = vunpack.i.h.bf16 %v9994_v42  ;;  %v9995_v61 = vunpack.i.l.bf16 %v9994_v42 }
0x1fc8   :  { %v9612_v4 = vpack.c.bf16 %v9996_v12, %v9995_v61 }
0x1fcc   :  { %v10319_v9 = vpop.eup %10318 }
0x1fcd   :  { %v5560_v8 = vmul.f32 %v10319_v9, %v12510_v44 }
0x1fdf   :  { %v5529_v45 = vpop.xlane.xlu1 %5528 }
0x1fe0   :  { %10320 = vrcp.f32 %v5529_v45 }
0x1fe3   :  { %v9989_v25 = vpop.permute.xlu1 %9988 }
0x1fe4   :  { %v9991_v7 = vunpack.i.h.bf16 %v9989_v25  ;;  %v9990_v46 = vunpack.i.l.bf16 %v9989_v25 }
0x1fe6   :  { %v9606_v0 = vpack.c.bf16 %v9991_v7, %v9990_v46 }
0x1fea   :  { %v10321_v50 = vpop.eup %10320 }
0x1feb   :  { %v5559_v20 = vmul.f32 %v10321_v50, %v12519_v26 }
0x1fed   :  { %9049 = vmatprep.mubr.msk.f32.mxu0 %vm1345_vm7, %v5559_v20 }
0x1fee   :  { %9050 = vmatmul.mubr.msk.f32.vlgmr.msra.gmra.mrb[86].mxu0 %vm1345_vm7, %v5560_v8 }
0x1fef   :  { %9605 = vmatpush3.bf16.xpose.msk.msra.mxu0 %vm10918_vm6, %v9600_v15 }
0x1ff0   :  { %9608 = vmatprep.subr.msk.bf16.mxu0 %vm10918_vm6, %v9606_v0 }
0x1ff6   :  { %v5538_v49 = vpop.xlane.xlu0 %5537 }
0x1ff7   :  { %9611 = vmatpush3.bf16.xpose.msk.msra.mxu0 %vm10918_vm6, %v9606_v0  ;;  %10322 = vrcp.f32 %v5538_v49 }
0x1ff8   :  { %9614 = vmatprep.subr.msk.bf16.mxu0 %vm10918_vm6, %v9612_v4 }
0x1ffa   :  { %v9999_v44 = vpop.permute.xlu0 %9998 }
0x1ffb   :  { %v10001_v26 = vunpack.i.h.bf16 %v9999_v44  ;;  %v10000_v17 = vunpack.i.l.bf16 %v9999_v44 }
0x1ffd   :  { %v9618_v39 = vpack.c.bf16 %v10001_v26, %v10000_v17 }
0x1ffe   :  { %v5756_v3 = vpop.permute.xlu0 %5755 }
0x1fff   :  { %9617 = vmatpush3.bf16.xpose.msk.msra.mxu0 %vm10918_vm6, %v9612_v4 }
0x2000   :  { %9620 = vmatprep.subr.msk.bf16.mxu0 %vm10918_vm6, %v9618_v39 }
0x2001   :  { %v10323_v27 = vpop.eup %10322 }
0x2002   :  { %v5724_v58 = vpop.permute.xlu0 %5723  ;;  %v5562_v51 = vmul.f32 %v10323_v27, %v12528_v60 }
0x2006   :  { %v5728_v45 = vpop.permute.xlu0 %5727 }
0x2007   :  { %9623 = vmatpush3.bf16.xpose.msk.msra.mxu0 %vm10918_vm6, %v9618_v39 }
0x2008   :  { %9077 = vmatprep.subr.msk.mxu0 %vm249_vm3, %v5756_v3 }
0x200a   :  { %v5732_v8 = vpop.permute.xlu0 %5731 }
0x200e   :  { %v5736_v42 = vpop.permute.xlu0 %5735 }
0x200f   :  { %9078 = vmatpush3.xpose.msk.msra.mxu0 %vm249_vm3, %v5756_v3 }
0x2014   :  { %v5535_v24 = vpop.xlane.xlu1 %5534 }
0x2015   :  { %10324 = vrcp.f32 %v5535_v24 }
0x2018   :  { %v5544_v47 = vpop.xlane.xlu1 %5543 }
0x2019   :  { %10326 = vrcp.f32 %v5544_v47 }
0x201c   :  { %v5541_v6 = vpop.xlane.xlu1 %5540 }
0x201d   :  { %10328 = vrcp.f32 %v5541_v6 }
0x201f   :  { %v10325_v53 = vpop.eup %10324 }
0x2020   :  { %v5550_v28 = vpop.xlane.xlu1 %5549  ;;  %v5561_v15 = vmul.f32 %v10325_v53, %v12539_v54 }
0x2021   :  { %10330 = vrcp.f32 %v5550_v28 }
0x2022   :  { %9052 = vmatprep.mubr.msk.f32.mxu0 %vm1345_vm7, %v5561_v15 }
0x2023   :  { %9053 = vmatmul.mubr.msk.f32.gmra.mrb[88].mxu0 %vm1345_vm7, %v5562_v51  ;;  %v10327_v9 = vpop.eup %10326 }
0x2024   :  { %v5547_v25 = vpop.xlane.xlu1 %5546  ;;  %v5564_v20 = vmul.f32 %v10327_v9, %v12545_v43  ;;  %v10009_v43 = vpop.permute.xlu0 %10008 }
0x2025   :  { %10332 = vrcp.f32 %v5547_v25  ;;  %v10011_v44 = vunpack.i.h.bf16 %v10009_v43  ;;  %v10010_v26 = vunpack.i.l.bf16 %v10009_v43 }
0x2027   :  { %v10329_v50 = vpop.eup %10328  ;;  %v9628_v47 = vpack.c.bf16 %v10011_v44, %v10010_v26 }
0x2028   :  { %v5726_v7 = vpop.permute.xlu1 %5725  ;;  %v5563_v46 = vmul.f32 %v10329_v50, %v12551_v52  ;;  %v6017_v15 = vpop.permute.xlu0 %6016 }
0x202a   :  { %9055 = vmatprep.mubr.msk.f32.mxu0 %vm1345_vm7, %v5563_v46 }
0x202b   :  { %9056 = vmatmul.mubr.msk.f32.gmra.mrb[90].mxu0 %vm1345_vm7, %v5564_v20  ;;  %v10331_v54 = vpop.eup %10330 }
0x202c   :  { %v5730_v60 = vpop.permute.xlu1 %5729  ;;  %v5566_v4 = vmul.f32 %v10331_v54, %v12557_v57 }
0x202f   :  { %v10333_v0 = vpop.eup %10332 }
0x2030   :  { %v5734_v12 = vpop.permute.xlu1 %5733  ;;  %v5565_v61 = vmul.f32 %v10333_v0, %v12563_v59 }
0x2032   :  { %9058 = vmatprep.mubr.msk.f32.mxu0 %vm1345_vm7, %v5565_v61 }
0x2033   :  { %9059 = vmatmul.mubr.msk.f32.gmra.mrb[92].mxu0 %vm1345_vm7, %v5566_v4 }
0x2034   :  { %v5738_v52 = vpop.permute.xlu1 %5737  ;;  %9079 = vmatprep.mubr.msk.f32.mxu0 %vm249_vm3, %v5724_v58 }
0x2037   :  { %9080 = vmatmul.mubr.msk.f32.vlgmr.msra.gmra.mrb[94].mxu0 %vm249_vm3, %v5726_v7 }
0x2038   :  { %v10004_v49 = vpop.permute.xlu1 %10003  ;;  %9082 = vmatprep.mubr.msk.f32.mxu0 %vm249_vm3, %v5728_v45 }
0x2039   :  { %v10006_v17 = vunpack.i.h.bf16 %v10004_v49  ;;  %v10005_v39 = vunpack.i.l.bf16 %v10004_v49 }
0x203b   :  { %9083 = vmatmul.mubr.msk.f32.gmra.mrb[96].mxu0 %vm249_vm3, %v5730_v60  ;;  %v9624_v57 = vpack.c.bf16 %v10006_v17, %v10005_v39 }
0x203c   :  { %v10014_v59 = vpop.permute.xlu1 %10013  ;;  %9085 = vmatprep.mubr.msk.f32.mxu0 %vm249_vm3, %v5732_v8 }
0x203d   :  { %v10016_v3 = vunpack.i.h.bf16 %v10014_v59  ;;  %v10015_v24 = vunpack.i.l.bf16 %v10014_v59  ;;  %9625 = vmatprep.subr.bf16.mxu1 %v9624_v57 }
0x203e   :  { %9627 = vmatpush3.bf16.msra.mxu1 %v9624_v57 }
0x203f   :  { %9086 = vmatmul.mubr.msk.f32.gmra.mrb[98].mxu0 %vm249_vm3, %v5734_v12  ;;  %9629 = vmatprep.subr.bf16.mxu1 %v9628_v47  ;;  %v9632_v53 = vpack.c.bf16 %v10016_v3, %v10015_v24 }
0x2040   :  { %v10019_v6 = vpop.permute.xlu1 %10018  ;;  %9088 = vmatprep.mubr.msk.f32.mxu0 %vm249_vm3, %v5736_v42 }
0x2041   :  { %v10021_v27 = vunpack.i.h.bf16 %v10019_v6  ;;  %v10020_v58 = vunpack.i.l.bf16 %v10019_v6 }
0x2042   :  { %9631 = vmatpush3.bf16.msra.mxu1 %v9628_v47 }
0x2043   :  { %9089 = vmatmul.mubr.msk.f32.gmra.mrb[100].mxu0 %vm249_vm3, %v5738_v52  ;;  %9633 = vmatprep.subr.bf16.mxu1 %v9632_v53  ;;  %v9636_v28 = vpack.c.bf16 %v10021_v27, %v10020_v58 }
0x2046   :  { %9635 = vmatpush3.bf16.msra.mxu1 %v9632_v53 }
0x2047   :  { %9637 = vmatprep.subr.bf16.mxu1 %v9636_v28 }
0x204a   :  { %9639 = vmatpush3.bf16.msra.mxu1 %v9636_v28 }
0x204b   :  { %9107 = vmatprep.subr.mxu1 %v6017_v15 }
0x204e   :  { %9108 = vmatpush3.msra.mxu1 %v6017_v15 }
0x2080   :  { %v12658_v51 = vpop.f32.mrb[78].mxu0 }
0x2081   :  { %v12660_v45 = vpop.f32.mrb[79].mxu0 }
0x2085   :  { %v12662_v25 = vpop.f32.mrb[80].mxu0 }
0x2086   :  { %v12664_v9 = vpop.f32.mrb[81].mxu0 }
0x208d   :  { %v12666_v50 = vpop.f32.mrb[82].mxu0 }
0x208e   :  { %v12668_v7 = vpop.f32.mrb[83].mxu0 }
0x2091   :  { %v12670_v46 = vpop.f32.mrb[84].mxu0 }
0x2092   :  { %v12672_v20 = vpop.f32.mrb[85].mxu0 }
0x20c1   :  { %v12674_v8 = vpop.f32.mrb[86].mxu0 }
0x20c2   :  { %v12676_v60 = vpop.f32.mrb[87].mxu0 }
0x20f6   :  { %v12678_v54 = vpop.f32.mrb[88].mxu0 }
0x20f7   :  { %v12680_v0 = vpop.f32.mrb[89].mxu0 }
0x20fe   :  { %v12682_v42 = vpop.f32.mrb[90].mxu0 }
0x20ff   :  { %v12684_v12 = vpop.f32.mrb[91].mxu0 }
0x2106   :  { %v12686_v61 = vpop.f32.mrb[92].mxu0 }
0x2107   :  { %v12688_v4 = vpop.f32.mrb[93].mxu0 }
0x210a   :  { %v9081_v52 = vpop.f32.mrb[94].mxu0 }
0x210b   :  { %v5897_v43 = vmul.f32 0.35355338, %v9081_v52  ;;  %v5857_v49 = vpop.f32.mrb[95].mxu0 }
0x210c   :  { %v5896_v44 = vmul.f32 0.35355338, %v5857_v49 }
0x210d   :  { %v5905_v26 = vadd.f32 %v12346_v19, %v5897_v43 }
0x210e   :  { %v5904_v17 = vadd.f32 %v12354_v13, %v5896_v44  ;;  %v9084_v39 = vpop.f32.mrb[96].mxu0 }
0x210f   :  { %v5899_v57 = vmul.f32 0.35355338, %v9084_v39  ;;  %v5867_v59 = vpop.f32.mrb[97].mxu0  ;;  %v5915_v3 = vsel %vm1345_vm7, %v5905_v26, -inf }
0x2110   :  { %v5898_v24 = vmul.f32 0.35355338, %v5867_v59  ;;  %5916 = vmax.xlane.f32.xlu1 %v5915_v3  ;;  %v5912_v47 = vsel %vm1345_vm7, %v5904_v17, -inf }
0x2111   :  { %v5907_v6 = vadd.f32 %v12366_v48, %v5899_v57  ;;  %5913 = vmax.xlane.f32.xlu0 %v5912_v47 }
0x2112   :  { %v9087_v27 = vpop.f32.mrb[98].mxu0  ;;  %v5906_v58 = vadd.f32 %v12374_v22, %v5898_v24 }
0x2113   :  { %v5877_v53 = vpop.f32.mrb[99].mxu0  ;;  %v5921_v19 = vsel %vm1345_vm7, %v5907_v6, -inf  ;;  %v5901_v28 = vmul.f32 0.35355338, %v9087_v27 }
0x2114   :  { %v5900_v13 = vmul.f32 0.35355338, %v5877_v53  ;;  %v5918_v49 = vsel %vm1345_vm7, %v5906_v58, -inf }
0x2115   :  { %5922 = vmax.xlane.f32.xlu0 %v5921_v19  ;;  %v5909_v44 = vadd.f32 %v12386_v16, %v5901_v28 }
0x2116   :  { %v5908_v15 = vadd.f32 %v12394_v30, %v5900_v13  ;;  %v9090_v52 = vpop.f32.mrb[100].mxu0 }
0x2117   :  { %v5887_v43 = vpop.f32.mrb[101].mxu0  ;;  %v5903_v39 = vmul.f32 0.35355338, %v9090_v52  ;;  %v5927_v3 = vsel %vm1345_vm7, %v5909_v44, -inf }
0x2118   :  { %v5902_v48 = vmul.f32 0.35355338, %v5887_v43  ;;  %v5924_v57 = vsel %vm1345_vm7, %v5908_v15, -inf }
0x2119   :  { %5919 = vmax.xlane.f32.xlu0 %v5918_v49  ;;  %5925 = vmax.xlane.f32.xlu1 %v5924_v57  ;;  %v5911_v59 = vadd.f32 %v12406_v56, %v5903_v39 }
0x211a   :  { %v5910_v22 = vadd.f32 %v12414_v36, %v5902_v48 }
0x211b   :  { %v5933_v24 = vsel %vm1345_vm7, %v5911_v59, -inf }
0x211c   :  { %v5930_v30 = vsel %vm1345_vm7, %v5910_v22, -inf }
0x211d   :  { %5928 = vmax.xlane.f32.xlu0 %v5927_v3  ;;  %5931 = vmax.xlane.f32.xlu1 %v5930_v30 }
0x2121   :  { %5934 = vmax.xlane.f32.xlu0 %v5933_v24 }
0x212e   :  { %10028 = vrot.lane.b32.xlu1 %v12186_v37, %s13374_s25 }
0x2137   :  { %10023 = vrot.lane.b32.xlu0 %v12174_v55, %s13374_s25 }
0x219d   :  { %v5917_v16 = vpop.xlane.xlu1 %5916 }
0x219e   :  { %v5937_v47 = vsub.f32 %v5905_v26, %v5917_v16  ;;  %v5914_v36 = vpop.xlane.xlu0 %5913 }
0x219f   :  { %v5936_v27 = vsub.f32 %v5904_v17, %v5914_v36 }
0x21a0   :  { %v5946_v56 = vmul.f32 1.442695, %v5937_v47 }
0x21a1   :  { %v5944_v53 = vmul.f32 1.442695, %v5936_v27 }
0x21a2   :  { %10334 = vpow2.f32 %v5946_v56  ;;  %v5923_v19 = vpop.xlane.xlu0 %5922 }
0x21a3   :  { %10336 = vpow2.f32 %v5944_v53  ;;  %v5939_v30 = vsub.f32 %v5907_v6, %v5923_v19 }
0x21a5   :  { %v5950_v16 = vmul.f32 1.442695, %v5939_v30 }
0x21a6   :  { %v5920_v28 = vpop.xlane.xlu0 %5919  ;;  %v5926_v27 = vpop.xlane.xlu1 %5925 }
0x21a7   :  { %v5938_v24 = vsub.f32 %v5906_v58, %v5920_v28  ;;  %10338 = vpow2.f32 %v5950_v16  ;;  %v5940_v56 = vsub.f32 %v5908_v15, %v5926_v27 }
0x21a9   :  { %v5948_v47 = vmul.f32 1.442695, %v5938_v24 }
0x21aa   :  { %v5929_v13 = vpop.xlane.xlu0 %5928 }
0x21ab   :  { %v5941_v36 = vsub.f32 %v5909_v44, %v5929_v13  ;;  %10340 = vpow2.f32 %v5948_v47 }
0x21ac   :  { %v12710_v52 = vpop.eup %10334 }
0x21ad   :  { %v12712_v43 = vpop.eup %10336  ;;  %v5963_v49 = vsel %vm1345_vm7, %v12710_v52, 0.0  ;;  %v5954_v53 = vmul.f32 1.442695, %v5941_v36 }
0x21ae   :  { %5964 = vadd.xlane.f32.xlu0 %v5963_v49  ;;  %v5935_v39 = vpop.xlane.xlu0 %5934  ;;  %v5960_v26 = vsel %vm1345_vm7, %v12712_v43, 0.0  ;;  %v5952_v49 = vmul.f32 1.442695, %v5940_v56 }
0x21af   :  { %5961 = vadd.xlane.f32.xlu1 %v5960_v26  ;;  %10342 = vpow2.f32 %v5954_v53  ;;  %v5943_v26 = vsub.f32 %v5911_v59, %v5935_v39 }
0x21b0   :  { %10344 = vpow2.f32 %v5952_v49 }
0x21b2   :  { %v10024_v17 = vpop.permute.xlu0 %10023 }
0x21b3   :  { %v10026_v48 = vunpack.i.h.bf16 %v10024_v17  ;;  %v10025_v57 = vunpack.i.l.bf16 %v10024_v17  ;;  %v5932_v17 = vpop.xlane.xlu1 %5931 }
0x21b5   :  { %v12718_v3 = vpack.c.bf16 %v10026_v48, %v10025_v57  ;;  %v5942_v48 = vsub.f32 %v5910_v22, %v5932_v17  ;;  %v12727_v57 = vpop.eup %10338 }
0x21b6   :  { %v12729_v33 = vpop.eup %10340  ;;  %v5969_v58 = vsel %vm1345_vm7, %v12727_v57, 0.0 }
0x21b7   :  { %9642 = vmatprep.subr.msk.bf16.mxu1 %vm10918_vm6, %v12718_v3  ;;  %v5956_v6 = vmul.f32 1.442695, %v5942_v48  ;;  %v5966_v15 = vsel %vm1345_vm7, %v12729_v33, 0.0  ;;  %v10029_v24 = vpop.permute.xlu1 %10028 }
0x21b8   :  { %v10030_v36 = vunpack.i.l.bf16 %v10029_v24 }
0x21b9   :  { %v12735_v44 = vpop.eup %10342 }
0x21ba   :  { %v5975_v22 = vsel %vm1345_vm7, %v12735_v44, 0.0  ;;  %v12739_v59 = vpop.eup %10344 }
0x21bb   :  { %v5972_v19 = vsel %vm1345_vm7, %v12739_v59, 0.0 }
0x21c0   :  { %6158 = vrot.lane.b32.xlu1 %v12170_v5, %s13375_s3  ;;  %v5958_v5 = vmul.f32 1.442695, %v5943_v26 }
0x21c2   :  { %10346 = vpow2.f32 %v5958_v5 }
0x21c3   :  { %10348 = vpow2.f32 %v5956_v6 }
0x21c4   :  { %10033 = vrot.lane.b32.xlu0 %v12198_v14, %s13374_s25 }
0x21cc   :  { %v12743_v28 = vpop.eup %10346 }
0x21cd   :  { %v5981_v13 = vsel %vm1345_vm7, %v12743_v28, 0.0  ;;  %v12747_v39 = vpop.eup %10348 }
0x21ce   :  { %v5978_v30 = vsel %vm1345_vm7, %v12747_v39, 0.0 }
0x21e3   :  { %5970 = vadd.xlane.f32.xlu0 %v5969_v58 }
0x21e4   :  { %5967 = vadd.xlane.f32.xlu1 %v5966_v15 }
0x21e8   :  { %5976 = vadd.xlane.f32.xlu1 %v5975_v22 }
0x21ec   :  { %5973 = vadd.xlane.f32.xlu1 %v5972_v19 }
0x21f0   :  { %5982 = vadd.xlane.f32.xlu1 %v5981_v13 }
0x21f4   :  { %5979 = vadd.xlane.f32.xlu1 %v5978_v30 }
0x21f9   :  { %10038 = vrot.lane.b32.xlu0 %v12210_v31, %s13374_s25 }
0x21fd   :  { %6188 = vrot.lane.b32.xlu0 %v12245_v11, %s13374_s25 }
0x2201   :  { %6156 = vrot.lane.b32.xlu0 %v12167_v35, %s13375_s3 }
0x2205   :  { %6160 = vrot.lane.b32.xlu0 %v12179_v62, %s13375_s3  ;;  %6162 = vrot.lane.b32.xlu1 %v12182_v10, %s13375_s3  ;;  %v10031_v10 = vunpack.i.h.bf16 %v10029_v24 }
0x2209   :  { %6164 = vrot.lane.b32.xlu0 %v12191_v38, %s13375_s3  ;;  %6166 = vrot.lane.b32.xlu1 %v12194_v21, %s13375_s3  ;;  %v9646_v21 = vpack.c.bf16 %v10031_v10, %v10030_v36 }
0x220d   :  { %6168 = vrot.lane.b32.xlu0 %v12203_v18, %s13375_s3  ;;  %6170 = vrot.lane.b32.xlu1 %v12206_v23, %s13375_s3 }
0x223b   :  { %v5965_v35 = vpop.xlane.xlu0 %5964 }
0x223c   :  { %10350 = vrcp.f32 %v5965_v35  ;;  %v5962_v16 = vpop.xlane.xlu1 %5961 }
0x223d   :  { %10352 = vrcp.f32 %v5962_v16 }
0x223f   :  { %v10034_v18 = vpop.permute.xlu0 %10033 }
0x2240   :  { %v10036_v23 = vunpack.i.h.bf16 %v10034_v18  ;;  %v10035_v56 = vunpack.i.l.bf16 %v10034_v18 }
0x2242   :  { %v9652_v53 = vpack.c.bf16 %v10036_v23, %v10035_v56 }
0x2246   :  { %v10351_v62 = vpop.eup %10350 }
0x2247   :  { %v10353_v47 = vpop.eup %10352  ;;  %v5993_v27 = vmul.f32 %v10351_v62, %v12710_v52  ;;  %v6159_v52 = vpop.permute.xlu1 %6158 }
0x2248   :  { %v5992_v38 = vmul.f32 %v10353_v47, %v12712_v43 }
0x224a   :  { %9109 = vmatprep.mubr.msk.f32.mxu1 %vm1345_vm7, %v5992_v38 }
0x224b   :  { %9110 = vmatmul.mubr.msk.f32.vlgmr.msra.gmra.mrb[106].mxu1 %vm1345_vm7, %v5993_v27 }
0x224c   :  { %9645 = vmatpush3.bf16.xpose.msk.msra.mxu1 %vm10918_vm6, %v12718_v3 }
0x224d   :  { %9648 = vmatprep.subr.msk.bf16.mxu1 %vm10918_vm6, %v9646_v21 }
0x2254   :  { %9651 = vmatpush3.bf16.xpose.msk.msra.mxu1 %vm10918_vm6, %v9646_v21 }
0x2255   :  { %9654 = vmatprep.subr.msk.bf16.mxu1 %vm10918_vm6, %v9652_v53 }
0x225c   :  { %9657 = vmatpush3.bf16.xpose.msk.msra.mxu1 %vm10918_vm6, %v9652_v53 }
0x2270   :  { %v5971_v43 = vpop.xlane.xlu0 %5970 }
0x2271   :  { %10354 = vrcp.f32 %v5971_v43  ;;  %v5968_v49 = vpop.xlane.xlu1 %5967 }
0x2272   :  { %10356 = vrcp.f32 %v5968_v49 }
0x2274   :  { %v10039_v3 = vpop.permute.xlu0 %10038 }
0x2275   :  { %v10041_v26 = vunpack.i.h.bf16 %v10039_v3  ;;  %v10040_v17 = vunpack.i.l.bf16 %v10039_v3  ;;  %v5977_v48 = vpop.xlane.xlu1 %5976 }
0x2276   :  { %10358 = vrcp.f32 %v5977_v48 }
0x2277   :  { %v9658_v5 = vpack.c.bf16 %v10041_v26, %v10040_v17 }
0x2278   :  { %v6189_v58 = vpop.permute.xlu0 %6188 }
0x2279   :  { %v5974_v6 = vpop.xlane.xlu1 %5973  ;;  %9660 = vmatprep.subr.msk.bf16.mxu1 %vm10918_vm6, %v9658_v5 }
0x227a   :  { %10360 = vrcp.f32 %v5974_v6  ;;  %9663 = vmatpush3.bf16.xpose.msk.msra.mxu1 %vm10918_vm6, %v9658_v5  ;;  %v10472_v5 = vld [vmem:[%s13390_s29 + $0x8] sm:$0xff] }
0x227b   :  { %v10355_v15 = vpop.eup %10354  ;;  %9137 = vmatprep.subr.msk.mxu1 %vm249_vm3, %v6189_v58 }
0x227c   :  { %v10357_v22 = vpop.eup %10356  ;;  %v5995_v30 = vmul.f32 %v10355_v15, %v12727_v57 }
0x227d   :  { %v5983_v19 = vpop.xlane.xlu1 %5982  ;;  %v5994_v13 = vmul.f32 %v10357_v22, %v12729_v33  ;;  %v6157_v33 = vpop.permute.xlu0 %6156 }
0x227e   :  { %10362 = vrcp.f32 %v5983_v19 }
0x227f   :  { %9112 = vmatprep.mubr.msk.f32.mxu1 %vm1345_vm7, %v5994_v13 }
0x2280   :  { %9113 = vmatmul.mubr.msk.f32.gmra.mrb[108].mxu1 %vm1345_vm7, %v5995_v30  ;;  %v10359_v40 = vpop.eup %10358 }
0x2281   :  { %v5980_v24 = vpop.xlane.xlu1 %5979  ;;  %v5997_v62 = vmul.f32 %v10359_v40, %v12735_v44  ;;  %v6161_v38 = vpop.permute.xlu0 %6160 }
0x2282   :  { %10364 = vrcp.f32 %v5980_v24  ;;  %9138 = vmatpush3.xpose.msk.msra.mxu1 %vm249_vm3, %v6189_v58  ;;  %v10473_v58 = vld [vmem:[%s13390_s29] sm:$0xff] }
0x2284   :  { %v10361_v35 = vpop.eup %10360 }
0x2285   :  { %v5996_v16 = vmul.f32 %v10361_v35, %v12739_v59  ;;  %v6163_v59 = vpop.permute.xlu1 %6162  ;;  %v6165_v44 = vpop.permute.xlu0 %6164  ;;  %v10474_v35 = vld [vmem:[%s13390_s29 + $0x10] sm:$0xff] }
0x2287   :  { %9115 = vmatprep.mubr.msk.f32.mxu1 %vm1345_vm7, %v5996_v16 }
0x2288   :  { %9116 = vmatmul.mubr.msk.f32.gmra.mrb[110].mxu1 %vm1345_vm7, %v5997_v62  ;;  %v10363_v57 = vpop.eup %10362 }
0x2289   :  { %v5999_v36 = vmul.f32 %v10363_v57, %v12743_v28  ;;  %v6167_v27 = vpop.permute.xlu1 %6166 }
0x228c   :  { %v10365_v47 = vpop.eup %10364 }
0x228d   :  { %v5998_v10 = vmul.f32 %v10365_v47, %v12747_v39  ;;  %v6169_v39 = vpop.permute.xlu0 %6168  ;;  %v6171_v28 = vpop.permute.xlu1 %6170 }
0x228f   :  { %9118 = vmatprep.mubr.msk.f32.mxu1 %vm1345_vm7, %v5998_v10 }
0x2290   :  { %9119 = vmatmul.mubr.msk.f32.gmra.mrb[112].mxu1 %vm1345_vm7, %v5999_v36 }
0x2291   :  { %9139 = vmatprep.mubr.msk.f32.mxu1 %vm249_vm3, %v6157_v33  ;;  %v10475_v33 = vld [vmem:[%s13390_s29 + $0x18] sm:$0xff] }
0x2294   :  { %9140 = vmatmul.mubr.msk.f32.vlgmr.msra.gmra.mrb[114].mxu1 %vm249_vm3, %v6159_v52 }
0x2295   :  { %9142 = vmatprep.mubr.msk.f32.mxu1 %vm249_vm3, %v6161_v38 }
0x2298   :  { %9143 = vmatmul.mubr.msk.f32.gmra.mrb[116].mxu1 %vm249_vm3, %v6163_v59  ;;  %v10476_v59 = vld [vmem:[%s13390_s29 + $0x20] sm:$0xff] }
0x2299   :  { %9145 = vmatprep.mubr.msk.f32.mxu1 %vm249_vm3, %v6165_v44 }
0x229c   :  { %9146 = vmatmul.mubr.msk.f32.gmra.mrb[118].mxu1 %vm249_vm3, %v6167_v27 }
0x229d   :  { %9148 = vmatprep.mubr.msk.f32.mxu1 %vm249_vm3, %v6169_v39 }
0x22a0   :  { %9149 = vmatmul.mubr.msk.f32.gmra.mrb[120].mxu1 %vm249_vm3, %v6171_v28 }
0x231e   :  { %v12810_v21 = vpop.f32.mrb[106].mxu1 }
0x231f   :  { %v12812_v18 = vpop.f32.mrb[107].mxu1 }
0x2353   :  { %v12814_v23 = vpop.f32.mrb[108].mxu1 }
0x2354   :  { %v12816_v56 = vpop.f32.mrb[109].mxu1 }
0x235b   :  { %v12818_v53 = vpop.f32.mrb[110].mxu1 }
0x235c   :  { %v12820_v52 = vpop.f32.mrb[111].mxu1 }
0x2363   :  { %v12822_v43 = vpop.f32.mrb[112].mxu1 }
0x2364   :  { %v12824_v49 = vpop.f32.mrb[113].mxu1 }
0x2367   :  { %v9141_v3 = vpop.f32.mrb[114].mxu1 }
0x2368   :  { %v6330_v26 = vmul.f32 0.35355338, %v9141_v3  ;;  %v6290_v17 = vpop.f32.mrb[115].mxu1  ;;  %v10477_v3 = vld [vmem:[%s13390_s29 + $0x28] sm:$0xff] }
0x2369   :  { %v6329_v48 = vmul.f32 0.35355338, %v6290_v17 }
0x236a   :  { %v6338_v6 = vadd.f32 %v10472_v5, %v6330_v26 }
0x236b   :  { %v6337_v15 = vadd.f32 %v10473_v58, %v6329_v48  ;;  %v9144_v22 = vpop.f32.mrb[116].mxu1  ;;  %v10478_v58 = vld [vmem:[%s13390_s29 + $0x30] sm:$0xff] }
0x236c   :  { %v6332_v19 = vmul.f32 0.35355338, %v9144_v22  ;;  %v6300_v13 = vpop.f32.mrb[117].mxu1  ;;  %v6348_v30 = vsel %vm1345_vm7, %v6338_v6, -inf }
0x236d   :  { %v6331_v24 = vmul.f32 0.35355338, %v6300_v13  ;;  %6349 = vmax.xlane.f32.xlu1 %v6348_v30  ;;  %v6345_v40 = vsel %vm1345_vm7, %v6337_v15, -inf }
0x236e   :  { %6346 = vmax.xlane.f32.xlu0 %v6345_v40  ;;  %v6340_v57 = vadd.f32 %v10475_v33, %v6332_v19  ;;  %v10479_v19 = vld [vmem:[%s13390_s29 + $0x38] sm:$0xff] }
0x236f   :  { %v6339_v16 = vadd.f32 %v10474_v35, %v6331_v24  ;;  %v9147_v62 = vpop.f32.mrb[118].mxu1 }
0x2370   :  { %v6310_v47 = vpop.f32.mrb[119].mxu1  ;;  %v6334_v10 = vmul.f32 0.35355338, %v9147_v62  ;;  %v6354_v28 = vsel %vm1345_vm7, %v6340_v57, -inf }
0x2371   :  { %v6333_v36 = vmul.f32 0.35355338, %v6310_v47  ;;  %v6351_v38 = vsel %vm1345_vm7, %v6339_v16, -inf }
0x2372   :  { %6352 = vmax.xlane.f32.xlu0 %v6351_v38  ;;  %v6342_v26 = vadd.f32 %v10477_v3, %v6334_v10 }
0x2373   :  { %v6341_v44 = vadd.f32 %v10476_v59, %v6333_v36  ;;  %v9150_v27 = vpop.f32.mrb[120].mxu1 }
0x2374   :  { %v6320_v39 = vpop.f32.mrb[121].mxu1  ;;  %v6336_v17 = vmul.f32 0.35355338, %v9150_v27  ;;  %v6360_v30 = vsel %vm1345_vm7, %v6342_v26, -inf }
0x2375   :  { %v6335_v48 = vmul.f32 0.35355338, %v6320_v39  ;;  %v6357_v5 = vsel %vm1345_vm7, %v6341_v44, -inf }
0x2376   :  { %6355 = vmax.xlane.f32.xlu0 %v6354_v28  ;;  %6358 = vmax.xlane.f32.xlu1 %v6357_v5  ;;  %v6344_v13 = vadd.f32 %v10479_v19, %v6336_v17 }
0x2377   :  { %v12852_v22 = vadd.f32 %v10478_v58, %v6335_v48 }
0x2378   :  { %v6366_v40 = vsel %vm1345_vm7, %v6344_v13, -inf }
0x2379   :  { %v6363_v24 = vsel %vm1345_vm7, %v12852_v22, -inf }
0x237a   :  { %6361 = vmax.xlane.f32.xlu0 %v6360_v30  ;;  %6364 = vmax.xlane.f32.xlu1 %v6363_v24 }
0x237e   :  { %6367 = vmax.xlane.f32.xlu0 %v6366_v40 }
0x23fa   :  { %v6350_v35 = vpop.xlane.xlu1 %6349 }
0x23fb   :  { %v6370_v62 = vsub.f32 %v6338_v6, %v6350_v35  ;;  %v6347_v33 = vpop.xlane.xlu0 %6346 }
0x23fc   :  { %v6369_v47 = vsub.f32 %v6337_v15, %v6347_v33 }
0x23fd   :  { %v6379_v10 = vmul.f32 1.442695, %v6370_v62 }
0x23fe   :  { %v6377_v36 = vmul.f32 1.442695, %v6369_v47 }
0x23ff   :  { %10366 = vpow2.f32 %v6379_v10  ;;  %v6353_v38 = vpop.xlane.xlu0 %6352 }
0x2400   :  { %10368 = vpow2.f32 %v6377_v36  ;;  %v6371_v5 = vsub.f32 %v6339_v16, %v6353_v38 }
0x2402   :  { %v6381_v58 = vmul.f32 1.442695, %v6371_v5 }
0x2403   :  { %v6356_v59 = vpop.xlane.xlu0 %6355  ;;  %v6359_v19 = vpop.xlane.xlu1 %6358 }
0x2404   :  { %v6372_v27 = vsub.f32 %v6340_v57, %v6356_v59  ;;  %v6373_v40 = vsub.f32 %v6341_v44, %v6359_v19 }
0x2406   :  { %v6383_v39 = vmul.f32 1.442695, %v6372_v27  ;;  %v6385_v33 = vmul.f32 1.442695, %v6373_v40 }
0x2407   :  { %v6362_v57 = vpop.xlane.xlu0 %6361  ;;  %v6365_v38 = vpop.xlane.xlu1 %6364 }
0x2408   :  { %10370 = vpow2.f32 %v6383_v39  ;;  %v6374_v30 = vsub.f32 %v6342_v26, %v6362_v57  ;;  %v6375_v59 = vsub.f32 %v12852_v22, %v6365_v38 }
0x2409   :  { %v12861_v28 = vpop.eup %10366  ;;  %10372 = vpow2.f32 %v6381_v58 }
0x240a   :  { %v10369_v3 = vpop.eup %10368  ;;  %v6396_v17 = vsel %vm1345_vm7, %v12861_v28, 0.0  ;;  %v6387_v35 = vmul.f32 1.442695, %v6374_v30  ;;  %v6389_v27 = vmul.f32 1.442695, %v6375_v59 }
0x240b   :  { %6397 = vadd.xlane.f32.xlu0 %v6396_v17  ;;  %v6393_v6 = vsel %vm1345_vm7, %v10369_v3, 0.0  ;;  %v6368_v24 = vpop.xlane.xlu0 %6367 }
0x240c   :  { %6394 = vadd.xlane.f32.xlu1 %v6393_v6  ;;  %v6376_v62 = vsub.f32 %v6344_v13, %v6368_v24  ;;  %10374 = vpow2.f32 %v6387_v35 }
0x240d   :  { %10376 = vpow2.f32 %v6385_v33 }
0x240e   :  { %v6391_v47 = vmul.f32 1.442695, %v6376_v62 }
0x2410   :  { %10378 = vpow2.f32 %v6391_v47 }
0x2411   :  { %10380 = vpow2.f32 %v6389_v27  ;;  %v7892_v27 = vld [vmem:[%s13287_s11 + $0x38] sm:$0xff] }
0x2412   :  { %v12866_v15 = vpop.eup %10370 }
0x2413   :  { %v6402_v48 = vsel %vm1345_vm7, %v12866_v15, 0.0  ;;  %v12874_v10 = vpop.eup %10372 }
0x2414   :  { %6403 = vadd.xlane.f32.xlu0 %v6402_v48 }
0x241d   :  { %10048 = vrot.lane.b32.xlu1 %v12186_v37, %s13383_s1  ;;  %v6399_v37 = vsel %vm1345_vm7, %v12874_v10, 0.0 }
0x242a   :  { %10043 = vrot.lane.b32.xlu0 %v12174_v55, %s13383_s1  ;;  %v12878_v55 = vpop.eup %10374 }
0x242b   :  { %v12880_v16 = vpop.eup %10376  ;;  %v6408_v44 = vsel %vm1345_vm7, %v12878_v55, 0.0 }
0x242c   :  { %v12884_v26 = vpop.eup %10378  ;;  %v6405_v36 = vsel %vm1345_vm7, %v12880_v16, 0.0 }
0x242d   :  { %v6414_v13 = vsel %vm1345_vm7, %v12884_v26, 0.0 }
0x2441   :  { %6400 = vadd.xlane.f32.xlu1 %v6399_v37 }
0x2445   :  { %6409 = vadd.xlane.f32.xlu1 %v6408_v44 }
0x2449   :  { %6415 = vadd.xlane.f32.xlu0 %v6414_v13  ;;  %6406 = vadd.xlane.f32.xlu1 %v6405_v36 }
0x245a   :  { %10053 = vrot.lane.b32.xlu1 %v12198_v14, %s13383_s1  ;;  %v12903_v14 = vpop.eup %10380 }
0x245e   :  { %10058 = vrot.lane.b32.xlu1 %v12210_v31, %s13383_s1  ;;  %v6411_v31 = vsel %vm1345_vm7, %v12903_v14, 0.0 }
0x245f   :  { %6605 = vrot.lane.b32.xlu0 %v12684_v12, %s13387_s8 }
0x2463   :  { %6637 = vrot.lane.b32.xlu0 %v12820_v52, %s13377_s9 }
0x2467   :  { %6609 = vrot.lane.b32.xlu0 %v12688_v4, %s13387_s8 }
0x246b   :  { %6641 = vrot.lane.b32.xlu0 %v12824_v49, %s13377_s9 }
0x2482   :  { %6412 = vadd.xlane.f32.xlu1 %v6411_v31 }
0x2493   :  { %6449 = vrot.lane.b32.xlu1 %v12245_v11, %s13383_s1 }
0x2497   :  { %6597 = vrot.lane.b32.xlu1 %v12676_v60, %s13387_s8 }
0x2498   :  { %v6398_v4 = vpop.xlane.xlu0 %6397 }
0x2499   :  { %v6395_v12 = vpop.xlane.xlu1 %6394 }
0x249a   :  { %10382 = vrcp.f32 %v6395_v12 }
0x249b   :  { %6599 = vrot.lane.b32.xlu1 %v12674_v8, %s13387_s8  ;;  %10384 = vrcp.f32 %v6398_v4 }
0x249d   :  { %v10049_v49 = vpop.permute.xlu1 %10048 }
0x249e   :  { %v10051_v17 = vunpack.i.h.bf16 %v10049_v49  ;;  %v10050_v6 = vunpack.i.l.bf16 %v10049_v49 }
0x249f   :  { %6629 = vrot.lane.b32.xlu1 %v12812_v18, %s13377_s9 }
0x24a0   :  { %v9668_v57 = vpack.c.bf16 %v10051_v17, %v10050_v6 }
0x24a1   :  { %v6404_v52 = vpop.xlane.xlu0 %6403 }
0x24a3   :  { %6631 = vrot.lane.b32.xlu1 %v12810_v21, %s13377_s9 }
0x24a4   :  { %v10383_v22 = vpop.eup %10382 }
0x24a5   :  { %v10044_v39 = vpop.permute.xlu0 %10043  ;;  %v6425_v11 = vmul.f32 %v10383_v22, %v10369_v3 }
0x24a6   :  { %v10046_v60 = vunpack.i.h.bf16 %v10044_v39  ;;  %v10045_v48 = vunpack.i.l.bf16 %v10044_v39 }
0x24a7   :  { %6601 = vrot.lane.b32.xlu1 %v12680_v0, %s13387_s8  ;;  %9169 = vmatprep.mubr.msk.f32.mxu0 %vm1345_vm7, %v6425_v11 }
0x24a8   :  { %v9664_v8 = vpack.c.bf16 %v10046_v60, %v10045_v48 }
0x24aa   :  { %9665 = vmatprep.subr.bf16.mxu0 %v9664_v8 }
0x24ab   :  { %9667 = vmatpush3.bf16.msra.mxu0 %v9664_v8  ;;  %6603 = vrot.lane.b32.xlu1 %v12678_v54, %s13387_s8 }
0x24ac   :  { %9669 = vmatprep.subr.bf16.mxu0 %v9668_v57 }
0x24af   :  { %6633 = vrot.lane.b32.xlu1 %v12816_v56, %s13377_s9  ;;  %9671 = vmatpush3.bf16.msra.mxu0 %v9668_v57 }
0x24b3   :  { %6635 = vrot.lane.b32.xlu1 %v12814_v23, %s13377_s9 }
0x24b7   :  { %6607 = vrot.lane.b32.xlu1 %v12682_v42, %s13387_s8 }
0x24bb   :  { %6639 = vrot.lane.b32.xlu1 %v12818_v53, %s13377_s9 }
0x24bf   :  { %6611 = vrot.lane.b32.xlu1 %v12686_v61, %s13387_s8 }
0x24c3   :  { %6643 = vrot.lane.b32.xlu1 %v12822_v43, %s13377_s9  ;;  %v10385_v43 = vpop.eup %10384 }
0x24c4   :  { %v6426_v40 = vmul.f32 %v10385_v43, %v12861_v28 }
0x24ce   :  { %v6401_v54 = vpop.xlane.xlu1 %6400 }
0x24cf   :  { %10386 = vrcp.f32 %v6401_v54 }
0x24d0   :  { %10388 = vrcp.f32 %v6404_v52 }
0x24d2   :  { %v6410_v0 = vpop.xlane.xlu1 %6409 }
0x24d6   :  { %v6407_v21 = vpop.xlane.xlu1 %6406  ;;  %v6416_v53 = vpop.xlane.xlu0 %6415 }
0x24d7   :  { %10390 = vrcp.f32 %v6407_v21 }
0x24d8   :  { %10392 = vrcp.f32 %v6410_v0 }
0x24d9   :  { %v10387_v30 = vpop.eup %10386 }
0x24da   :  { %v10054_v18 = vpop.permute.xlu1 %10053  ;;  %v10389_v35 = vpop.eup %10388  ;;  %v6427_v62 = vmul.f32 %v10387_v30, %v12874_v10 }
0x24db   :  { %v10056_v56 = vunpack.i.h.bf16 %v10054_v18  ;;  %v10055_v3 = vunpack.i.l.bf16 %v10054_v18  ;;  %v6428_v47 = vmul.f32 %v10389_v35, %v12866_v15  ;;  %v7889_v15 = vld [vmem:[%s13287_s11 + $0x20] sm:$0xff]  ;;  %v6606_v21 = vpop.permute.xlu0 %6605 }
0x24dd   :  { %v9672_v5 = vpack.c.bf16 %v10056_v56, %v10055_v3 }
0x24de   :  { %v10059_v23 = vpop.permute.xlu1 %10058 }
0x24df   :  { %v10061_v58 = vunpack.i.h.bf16 %v10059_v23  ;;  %v10060_v19 = vunpack.i.l.bf16 %v10059_v23  ;;  %9673 = vmatprep.subr.bf16.mxu0 %v9672_v5  ;;  %v6638_v56 = vpop.permute.xlu0 %6637 }
0x24e0   :  { %9675 = vmatpush3.bf16.msra.mxu0 %v9672_v5 }
0x24e1   :  { %v9676_v42 = vpack.c.bf16 %v10061_v58, %v10060_v19  ;;  %v10391_v33 = vpop.eup %10390 }
0x24e2   :  { %v10393_v37 = vpop.eup %10392  ;;  %v6429_v44 = vmul.f32 %v10391_v33, %v12880_v16  ;;  %v7890_v16 = vld [vmem:[%s13287_s11 + $0x28] sm:$0xff] }
0x24e3   :  { %9677 = vmatprep.subr.bf16.mxu0 %v9676_v42  ;;  %v6430_v28 = vmul.f32 %v10393_v37, %v12878_v55  ;;  %v7891_v55 = vld [vmem:[%s13287_s11 + $0x30] sm:$0xff]  ;;  %v9680_v59 = vpack.c.bf16 %v7890_v16, %v7889_v15  ;;  %v6610_v5 = vpop.permute.xlu0 %6609 }
0x24e4   :  { %9679 = vmatpush3.bf16.msra.mxu0 %v9676_v42 }
0x24e7   :  { %v6642_v58 = vpop.permute.xlu0 %6641 }
0x250f   :  { %v6413_v61 = vpop.xlane.xlu1 %6412 }
0x2510   :  { %10394 = vrcp.f32 %v6413_v61 }
0x2511   :  { %10396 = vrcp.f32 %v6416_v53 }
0x2513   :  { %v6450_v24 = vpop.permute.xlu1 %6449 }
0x2514   :  { %9167 = vmatprep.subr.mxu0 %v6450_v24 }
0x2515   :  { %9168 = vmatpush3.msra.mxu0 %v6450_v24 }
0x2516   :  { %9170 = vmatmul.mubr.msk.f32.vlgmr.msra.gmra.mrb[102].mxu0 %vm1345_vm7, %v6426_v40  ;;  %9681 = vmatprep.subr.bf16.mxu0 %v9680_v59 }
0x2517   :  { %9172 = vmatprep.mubr.msk.f32.mxu0 %vm1345_vm7, %v6427_v62  ;;  %9683 = vmatpush3.bf16.msra.mxu0 %v9680_v59  ;;  %v6598_v11 = vpop.permute.xlu1 %6597 }
0x2518   :  { %v6685_v19 = vsel %vm249_vm3, %v12660_v45, %v6598_v11 }
0x251a   :  { %v10395_v13 = vpop.eup %10394  ;;  %9173 = vmatmul.mubr.msk.f32.gmra.mrb[104].mxu0 %vm1345_vm7, %v6428_v47 }
0x251b   :  { %9175 = vmatprep.mubr.msk.f32.mxu0 %vm1345_vm7, %v6429_v44  ;;  %v10397_v36 = vpop.eup %10396  ;;  %v6431_v10 = vmul.f32 %v10395_v13, %v12903_v14  ;;  %v6600_v17 = vpop.permute.xlu1 %6599 }
0x251c   :  { %v6432_v38 = vmul.f32 %v10397_v36, %v12884_v26  ;;  %v9684_v26 = vpack.c.bf16 %v7892_v27, %v7891_v55  ;;  %v6686_v61 = vsel %vm249_vm3, %v12658_v51, %v6600_v17 }
0x251e   :  { %9176 = vmatmul.mubr.msk.f32.gmra.mrb[106].mxu0 %vm1345_vm7, %v6430_v28  ;;  %9685 = vmatprep.subr.bf16.mxu0 %v9684_v26 }
0x251f   :  { %9178 = vmatprep.mubr.msk.f32.mxu0 %vm1345_vm7, %v6431_v10  ;;  %9687 = vmatpush3.bf16.msra.mxu0 %v9684_v26  ;;  %v6630_v6 = vpop.permute.xlu1 %6629 }
0x2520   :  { %v6693_v53 = vsel %vm927_vm4, %v6685_v19, %v6630_v6  ;;  %v13391_v19 = vld [vmem:[#allocation5_spill] sm:$0xff] }
0x2522   :  { %9179 = vmatmul.mubr.msk.f32.gmra.mrb[108].mxu0 %vm1345_vm7, %v6432_v38 }
0x2523   :  { %v6632_v60 = vpop.permute.xlu1 %6631 }
0x2524   :  { %v6694_v30 = vsel %vm927_vm4, %v6686_v61, %v6632_v60 }
0x2527   :  { %v6602_v48 = vpop.permute.xlu1 %6601 }
0x2528   :  { %v6687_v35 = vsel %vm249_vm3, %v12664_v9, %v6602_v48  ;;  %v6689_v9 = vsel %vm249_vm3, %v12668_v7, %v6606_v21  ;;  %v6691_v7 = vsel %vm249_vm3, %v12672_v20, %v6610_v5  ;;  %v7894_v20 = vld [vmem:[%s13288_s12 + $0x1] ss:$0 sm:$0xff] }
0x2529   :  { %v6697_v28 = vsel %vm927_vm4, %v6689_v9, %v6638_v56  ;;  %v6699_v55 = vsel %vm927_vm4, %v6691_v7, %v6642_v58 }
0x252b   :  { %v6604_v8 = vpop.permute.xlu1 %6603 }
0x252c   :  { %v6688_v51 = vsel %vm249_vm3, %v12662_v25, %v6604_v8 }
0x252f   :  { %v6634_v57 = vpop.permute.xlu1 %6633 }
0x2530   :  { %v6695_v62 = vsel %vm927_vm4, %v6687_v35, %v6634_v57 }
0x2533   :  { %v6636_v54 = vpop.permute.xlu1 %6635 }
0x2534   :  { %v6696_v47 = vsel %vm927_vm4, %v6688_v51, %v6636_v54 }
0x2537   :  { %v6608_v0 = vpop.permute.xlu1 %6607 }
0x2538   :  { %v6690_v25 = vsel %vm249_vm3, %v12666_v50, %v6608_v0 }
0x253b   :  { %v6640_v18 = vpop.permute.xlu1 %6639 }
0x253c   :  { %v6698_v10 = vsel %vm927_vm4, %v6690_v25, %v6640_v18 }
0x253f   :  { %v6612_v3 = vpop.permute.xlu1 %6611 }
0x2540   :  { %v6692_v50 = vsel %vm249_vm3, %v12670_v46, %v6612_v3 }
0x2543   :  { %v6644_v23 = vpop.permute.xlu1 %6643 }
0x2544   :  { %v6700_v27 = vsel %vm927_vm4, %v6692_v50, %v6644_v23 }
0x25e9   :  { %v9171_v14 = vpop.f32.mrb[102].mxu0 }
0x25ea   :  { %6663 = vrot.lane.b32.xlu1 %v9171_v14, %s13379_s5  ;;  %v6550_v31 = vpop.f32.mrb[103].mxu0 }
0x25eb   :  { %6661 = vrot.lane.b32.xlu0 %v6550_v31, %s13379_s5 }
0x25ed   :  { %v9174_v12 = vpop.f32.mrb[104].mxu0 }
0x25ee   :  { %6667 = vrot.lane.b32.xlu1 %v9174_v12, %s13379_s5  ;;  %v6560_v4 = vpop.f32.mrb[105].mxu0 }
0x25ef   :  { %6665 = vrot.lane.b32.xlu0 %v6560_v4, %s13379_s5 }
0x25f1   :  { %v9177_v52 = vpop.f32.mrb[106].mxu0 }
0x25f2   :  { %6671 = vrot.lane.b32.xlu1 %v9177_v52, %s13379_s5  ;;  %v6570_v49 = vpop.f32.mrb[107].mxu0 }
0x25f3   :  { %6669 = vrot.lane.b32.xlu0 %v6570_v49, %s13379_s5 }
0x25f5   :  { %v9180_v22 = vpop.f32.mrb[108].mxu0 }
0x25f6   :  { %6675 = vrot.lane.b32.xlu1 %v9180_v22, %s13379_s5  ;;  %v6580_v39 = vpop.f32.mrb[109].mxu0 }
0x25f7   :  { %6673 = vrot.lane.b32.xlu0 %v6580_v39, %s13379_s5 }
0x265c   :  { %v6664_v42 = vpop.permute.xlu1 %6663 }
0x265d   :  { %v6662_v43 = vpop.permute.xlu0 %6661  ;;  %v6702_v40 = vsel %vm929_vm5, %v6694_v30, %v6664_v42 }
0x265e   :  { %v6701_v24 = vsel %vm929_vm5, %v6693_v53, %v6662_v43 }
0x265f   :  { %9189 = vmatprep.mubr.msk.f32.mxu0 %vm172_vm2, %v6701_v24 }
0x2660   :  { %9190 = vmatmul.mubr.msk.f32.vlgmr.msra.gmra.mrb[110].mxu0 %vm172_vm2, %v6702_v40  ;;  %v6668_v45 = vpop.permute.xlu1 %6667 }
0x2661   :  { %v6666_v33 = vpop.permute.xlu0 %6665  ;;  %v6704_v44 = vsel %vm929_vm5, %v6696_v47, %v6668_v45 }
0x2662   :  { %v6703_v37 = vsel %vm929_vm5, %v6695_v62, %v6666_v33 }
0x2663   :  { %9192 = vmatprep.mubr.msk.f32.mxu0 %vm172_vm2, %v6703_v37 }
0x2664   :  { %9193 = vmatmul.mubr.msk.f32.gmra.mrb[112].mxu0 %vm172_vm2, %v6704_v44  ;;  %v6672_v13 = vpop.permute.xlu1 %6671 }
0x2665   :  { %v6670_v36 = vpop.permute.xlu0 %6669  ;;  %v6706_v15 = vsel %vm929_vm5, %v6698_v10, %v6672_v13 }
0x2666   :  { %v6705_v38 = vsel %vm929_vm5, %v6697_v28, %v6670_v36 }
0x2667   :  { %9195 = vmatprep.mubr.msk.f32.mxu0 %vm172_vm2, %v6705_v38 }
0x2668   :  { %9196 = vmatmul.mubr.msk.f32.gmra.mrb[114].mxu0 %vm172_vm2, %v6706_v15  ;;  %v6676_v16 = vpop.permute.xlu1 %6675 }
0x2669   :  { %v6674_v59 = vpop.permute.xlu0 %6673  ;;  %v6708_v14 = vsel %vm929_vm5, %v6700_v27, %v6676_v16 }
0x266a   :  { %v6707_v26 = vsel %vm929_vm5, %v6699_v55, %v6674_v59 }
0x266b   :  { %9198 = vmatprep.mubr.msk.f32.mxu0 %vm172_vm2, %v6707_v26 }
0x266c   :  { %9199 = vmatmul.mubr.msk.f32.gmra.mrb[116].mxu0 %vm172_vm2, %v6708_v14 }
0x2733   :  { %v9191_v31 = vpop.f32.mrb[110].mxu0 }
0x2734   :  { %v6818_v12 = vadd.f32 %v9191_v31, %v7894_v20  ;;  %v6812_v4 = vpop.f32.mrb[111].mxu0 }
0x2735   :  { %v6813_v52 = vadd.f32 %v7894_v20, %v6812_v4 }
0x2736   :  { %v6852_v46 = vadd.f32 %v6818_v12, %v11982_v2 }
0x2737   :  { %v6851_v49 = vadd.f32 %v6813_v52, %v11984_v32  ;;  %v9194_v22 = vpop.f32.mrb[112].mxu0 }
0x2738   :  { %v6828_v39 = vadd.f32 %v9194_v22, %v7894_v20  ;;  %v6822_v11 = vpop.f32.mrb[113].mxu0  ;;  %v6866_v17 = vsel %vm172_vm2, %v6852_v46, 0.0 }
0x2739   :  { %v6823_v6 = vadd.f32 %v7894_v20, %v6822_v11  ;;  %6867 = vadd.xlane.f32.xlu1 %v6866_v17  ;;  %v6863_v60 = vsel %vm172_vm2, %v6851_v49, 0.0  ;;  %v7907_v17 = vld [vmem:[%s13291_s15 + $0x20] sm:$0xff] }
0x273a   :  { %6864 = vadd.xlane.f32.xlu0 %v6863_v60  ;;  %v6854_v57 = vadd.f32 %v6828_v39, %v11992_v41 }
0x273b   :  { %v6853_v48 = vadd.f32 %v6823_v6, %v11995_v34  ;;  %v9197_v8 = vpop.f32.mrb[114].mxu0  ;;  %v7908_v6 = vld [vmem:[%s13291_s15 + $0x28] sm:$0xff] }
0x273c   :  { %v6832_v54 = vpop.f32.mrb[115].mxu0  ;;  %v6838_v0 = vadd.f32 %v9197_v8, %v7894_v20  ;;  %v6872_v3 = vsel %vm172_vm2, %v6854_v57, 0.0  ;;  %v9688_v60 = vpack.c.bf16 %v7908_v6, %v7907_v17  ;;  %v7910_v8 = vld [vmem:[%s13291_s15 + $0x38] sm:$0xff] }
0x273d   :  { %v6833_v2 = vadd.f32 %v7894_v20, %v6832_v54  ;;  %v6869_v32 = vsel %vm172_vm2, %v6853_v48, 0.0  ;;  %v13392_v54 = vmov 0.0|0.0  }
0x273e   :  { %6870 = vadd.xlane.f32.xlu0 %v6869_v32  ;;  %v6856_v5 = vadd.f32 %v6838_v0, %v12000_v63  ;;  %9689 = vmatprep.subr.bf16.mxu0 %v9688_v60 }
0x273f   :  { %v6855_v21 = vadd.f32 %v6833_v2, %v12003_v29  ;;  %v9200_v18 = vpop.f32.mrb[116].mxu0  ;;  %9691 = vmatpush3.bf16.msra.mxu0 %v9688_v60  ;;  %v13393_v60 = vmov 0.0  }
0x2740   :  { %v6842_v56 = vpop.f32.mrb[117].mxu0  ;;  %v6848_v23 = vadd.f32 %v9200_v18, %v7894_v20  ;;  %v6878_v29 = vsel %vm172_vm2, %v6856_v5, 0.0 }
0x2741   :  { %v6843_v58 = vadd.f32 %v7894_v20, %v6842_v56  ;;  %v6875_v34 = vsel %vm172_vm2, %v6855_v21, 0.0 }
0x2742   :  { %6876 = vadd.xlane.f32.xlu1 %v6875_v34  ;;  %6873 = vadd.xlane.f32.xlu0 %v6872_v3  ;;  %v6858_v42 = vadd.f32 %v6848_v23, %v13391_v19 }
0x2743   :  { %v6857_v41 = vadd.f32 %v6843_v58, %v12010_v1 }
0x2744   :  { %v6884_v53 = vsel %vm172_vm2, %v6858_v42, 0.0 }
0x2745   :  { %v6881_v61 = vsel %vm172_vm2, %v6857_v41, 0.0 }
0x2746   :  { %6882 = vadd.xlane.f32.xlu1 %v6881_v61  ;;  %6879 = vadd.xlane.f32.xlu0 %v6878_v29 }
0x274a   :  { %6885 = vadd.xlane.f32.xlu0 %v6884_v53 }
0x27c6   :  { %v6868_v63 = vpop.xlane.xlu1 %6867 }
0x27c7   :  { %v6888_v43 = vmul.f32 0.03125, %v6868_v63  ;;  %v6865_v30 = vpop.xlane.xlu0 %6864 }
0x27c8   :  { %v6887_v24 = vmul.f32 0.03125, %v6865_v30 }
0x27c9   :  { %v13027_v40 = vsub.f32 %v6852_v46, %v6888_v43 }
0x27ca   :  { %v13029_v35 = vsub.f32 %v6851_v49, %v6887_v24  ;;  %v7905_v24 = vld [vmem:[%s13289_s13 + $0x1] ss:$0 sm:$0xff] }
0x27cb   :  { %v6871_v1 = vpop.xlane.xlu0 %6870  ;;  %v6904_v45 = vmul.f32 %v13027_v40, %v13027_v40 }
0x27cc   :  { %v6889_v51 = vmul.f32 0.03125, %v6871_v1  ;;  %v6903_v62 = vmul.f32 %v13029_v35, %v13029_v35 }
0x27cd   :  { %v6914_v33 = vsel %vm172_vm2, %v6904_v45, 0.0 }
0x27ce   :  { %v13036_v47 = vsub.f32 %v6853_v48, %v6889_v51  ;;  %6915 = vadd.xlane.f32.xlu0 %v6914_v33  ;;  %v6911_v37 = vsel %vm172_vm2, %v6903_v62, 0.0  ;;  %v7909_v48 = vld [vmem:[%s13291_s15 + $0x30] sm:$0xff]  ;;  %s13395_s15 = sld [smem:[#allocation8_spill]] }
0x27cf   :  { %v6877_v44 = vpop.xlane.xlu1 %6876  ;;  %6912 = vadd.xlane.f32.xlu1 %v6911_v37  ;;  %v6874_v9 = vpop.xlane.xlu0 %6873 }
0x27d0   :  { %v6891_v13 = vmul.f32 0.03125, %v6877_v44  ;;  %v6890_v28 = vmul.f32 0.03125, %v6874_v9  ;;  %v6905_v25 = vmul.f32 %v13036_v47, %v13036_v47  ;;  %v7906_v44 = vld [vmem:[%s13290_s14 + $0x1] ss:$0 sm:$0xff] }
0x27d2   :  { %v13041_v36 = vsub.f32 %v6855_v21, %v6891_v13  ;;  %v13043_v10 = vsub.f32 %v6854_v57, %v6890_v28  ;;  %v6917_v38 = vsel %vm172_vm2, %v6905_v25, 0.0  ;;  %v9692_v57 = vpack.c.bf16 %v7910_v8, %v7909_v48  ;;  %v7922_v48 = vld [vmem:[%s13293_s17 + $0x48] sm:$0xff] }
0x27d3   :  { %v6883_v15 = vpop.xlane.xlu1 %6882  ;;  %6918 = vadd.xlane.f32.xlu1 %v6917_v38  ;;  %v6880_v7 = vpop.xlane.xlu0 %6879 }
0x27d4   :  { %v6893_v16 = vmul.f32 0.03125, %v6883_v15  ;;  %v6892_v55 = vmul.f32 0.03125, %v6880_v7  ;;  %v6907_v50 = vmul.f32 %v13041_v36, %v13041_v36  ;;  %v6906_v59 = vmul.f32 %v13043_v10, %v13043_v10  ;;  %9693 = vmatprep.subr.bf16.mxu0 %v9692_v57 }
0x27d5   :  { %9695 = vmatpush3.bf16.msra.mxu0 %v9692_v57  ;;  %v7923_v57 = vld [vmem:[%s13293_s17 + $0x50] sm:$0xff] }
0x27d6   :  { %v13050_v27 = vsub.f32 %v6857_v41, %v6893_v16  ;;  %v13052_v26 = vsub.f32 %v6856_v5, %v6892_v55  ;;  %v6923_v14 = vsel %vm172_vm2, %v6907_v50, 0.0  ;;  %v6920_v20 = vsel %vm172_vm2, %v6906_v59, 0.0  ;;  %9712 = vmatprep.subr.bf16.mxu0 %v13392_v54 }
0x27d7   :  { %6924 = vadd.xlane.f32.xlu1 %v6923_v14  ;;  %6921 = vadd.xlane.f32.xlu0 %v6920_v20  ;;  %v6886_v31 = vpop.xlane.xlu0 %6885 }
0x27d8   :  { %v6894_v12 = vmul.f32 0.03125, %v6886_v31  ;;  %v6909_v4 = vmul.f32 %v13050_v27, %v13050_v27  ;;  %v6908_v52 = vmul.f32 %v13052_v26, %v13052_v26 }
0x27da   :  { %v13060_v46 = vsub.f32 %v6858_v42, %v6894_v12  ;;  %v6929_v49 = vsel %vm172_vm2, %v6909_v4, 0.0  ;;  %v6926_v22 = vsel %vm172_vm2, %v6908_v52, 0.0 }
0x27db   :  { %6930 = vadd.xlane.f32.xlu1 %v6929_v49  ;;  %6927 = vadd.xlane.f32.xlu0 %v6926_v22 }
0x27dc   :  { %v6910_v39 = vmul.f32 %v13060_v46, %v13060_v46 }
0x27de   :  { %v6932_v11 = vsel %vm172_vm2, %v6910_v39, 0.0 }
0x27df   :  { %6933 = vadd.xlane.f32.xlu0 %v6932_v11 }
0x285b   :  { %v6916_v0 = vpop.xlane.xlu0 %6915 }
0x285c   :  { %v6936_v2 = vmul.f32 0.03125, %v6916_v0  ;;  %v6913_v32 = vpop.xlane.xlu1 %6912  ;;  %v7924_v0 = vld [vmem:[%s13293_s17 + $0x58] sm:$0xff] }
0x285d   :  { %v6935_v21 = vmul.f32 0.03125, %v6913_v32  ;;  %v7925_v32 = vld [vmem:[%s13293_s17 + $0x60] sm:$0xff] }
0x285e   :  { %v6944_v18 = vadd.f32 1e-12, %v6936_v2  ;;  %v9700_v2 = vpack.c.bf16 %v7924_v0, %v7923_v57 }
0x285f   :  { %v6943_v56 = vadd.f32 1e-12, %v6935_v21  ;;  %v7926_v21 = vld [vmem:[%s13293_s17 + $0x68] sm:$0xff] }
0x2860   :  { %10398 = vrsqrt.f32 %v6944_v18  ;;  %v6919_v3 = vpop.xlane.xlu1 %6918  ;;  %v9704_v18 = vpack.c.bf16 %v7926_v21, %v7925_v32 }
0x2861   :  { %10400 = vrsqrt.f32 %v6943_v56  ;;  %v6937_v5 = vmul.f32 0.03125, %v6919_v3  ;;  %v7927_v56 = vld [vmem:[%s13293_s17 + $0x70] sm:$0xff]  ;;  %v7928_v3 = vld [vmem:[%s13293_s17 + $0x78] sm:$0xff] }
0x2863   :  { %v6945_v23 = vadd.f32 1e-12, %v6937_v5  ;;  %v9708_v5 = vpack.c.bf16 %v7928_v3, %v7927_v56 }
0x2864   :  { %v6925_v58 = vpop.xlane.xlu1 %6924  ;;  %v6922_v34 = vpop.xlane.xlu0 %6921 }
0x2865   :  { %10402 = vrsqrt.f32 %v6945_v23  ;;  %v6939_v41 = vmul.f32 0.03125, %v6925_v58  ;;  %v6938_v19 = vmul.f32 0.03125, %v6922_v34  ;;  %v7912_v23 = vld [vmem:[%s13292_s16 + $0x1] ss:$0 sm:$0xff] }
0x2867   :  { %v6947_v42 = vadd.f32 1e-12, %v6939_v41  ;;  %v6946_v61 = vadd.f32 1e-12, %v6938_v19 }
0x2868   :  { %v6931_v29 = vpop.xlane.xlu1 %6930  ;;  %v6928_v53 = vpop.xlane.xlu0 %6927 }
0x2869   :  { %10404 = vrsqrt.f32 %v6947_v42  ;;  %v6941_v63 = vmul.f32 0.03125, %v6931_v29  ;;  %v6940_v43 = vmul.f32 0.03125, %v6928_v53 }
0x286a   :  { %v10399_v30 = vpop.eup %10398  ;;  %10406 = vrsqrt.f32 %v6946_v61 }
0x286b   :  { %v10401_v1 = vpop.eup %10400  ;;  %v6960_v45 = vmul.f32 %v10399_v30, %v13027_v40  ;;  %v6949_v51 = vadd.f32 1e-12, %v6941_v63  ;;  %v6948_v62 = vadd.f32 1e-12, %v6940_v43 }
0x286c   :  { %v6934_v33 = vpop.xlane.xlu0 %6933  ;;  %v6959_v37 = vmul.f32 %v10401_v1, %v13029_v35 }
0x286d   :  { %v6974_v9 = vmul.f32 %v7905_v24, %v6960_v45  ;;  %10408 = vrsqrt.f32 %v6949_v51  ;;  %v6942_v13 = vmul.f32 0.03125, %v6934_v33 }
0x286e   :  { %10410 = vrsqrt.f32 %v6948_v62  ;;  %v6973_v28 = vmul.f32 %v7905_v24, %v6959_v37 }
0x286f   :  { %v10403_v25 = vpop.eup %10402  ;;  %v6950_v38 = vadd.f32 1e-12, %v6942_v13  ;;  %v13091_v7 = vadd.f32 %v7906_v44, %v6974_v9 }
0x2870   :  { %v13088_v15 = vadd.f32 %v7906_v44, %v6973_v28  ;;  %v6961_v40 = vmul.f32 %v10403_v25, %v13036_v47 }
0x2871   :  { %10412 = vrsqrt.f32 %v6950_v38 }
0x2872   :  { %9209 = vmatprep.mubr.msk.f32.mxu0 %vm172_vm2, %v13088_v15  ;;  %v6975_v35 = vmul.f32 %v7905_v24, %v6961_v40 }
0x2873   :  { %v10405_v16 = vpop.eup %10404  ;;  %9210 = vmatmul.mubr.msk.f32.vlgmr.msra.gmra.mrb[118].mxu0 %vm172_vm2, %v13091_v7 }
0x2874   :  { %v10407_v55 = vpop.eup %10406  ;;  %v13097_v50 = vadd.f32 %v7906_v44, %v6975_v35  ;;  %v6963_v59 = vmul.f32 %v10405_v16, %v13041_v36 }
0x2875   :  { %v6962_v14 = vmul.f32 %v10407_v55, %v13043_v10 }
0x2876   :  { %9212 = vmatprep.mubr.msk.f32.mxu0 %vm172_vm2, %v13097_v50  ;;  %v6977_v47 = vmul.f32 %v7905_v24, %v6963_v59 }
0x2877   :  { %v10409_v20 = vpop.eup %10408  ;;  %v6976_v31 = vmul.f32 %v7905_v24, %v6962_v14 }
0x2878   :  { %v10411_v12 = vpop.eup %10410  ;;  %v13103_v4 = vadd.f32 %v7906_v44, %v6977_v47  ;;  %v6965_v52 = vmul.f32 %v10409_v20, %v13050_v27 }
0x2879   :  { %v13106_v49 = vadd.f32 %v7906_v44, %v6976_v31  ;;  %v6964_v22 = vmul.f32 %v10411_v12, %v13052_v26 }
0x287a   :  { %v6979_v39 = vmul.f32 %v7905_v24, %v6965_v52 }
0x287b   :  { %v10413_v11 = vpop.eup %10412  ;;  %9213 = vmatmul.mubr.msk.f32.gmra.mrb[120].mxu0 %vm172_vm2, %v13106_v49  ;;  %v6978_v36 = vmul.f32 %v7905_v24, %v6964_v22 }
0x287c   :  { %9215 = vmatprep.mubr.msk.f32.mxu0 %vm172_vm2, %v13103_v4  ;;  %v13113_v10 = vadd.f32 %v7906_v44, %v6979_v39  ;;  %v6966_v17 = vmul.f32 %v10413_v11, %v13060_v46  ;;  %v7921_v46 = vld [vmem:[%s13293_s17 + $0x40] sm:$0xff] }
0x287d   :  { %v13116_v6 = vadd.f32 %v7906_v44, %v6978_v36  ;;  %v9696_v8 = vpack.c.bf16 %v7922_v48, %v7921_v46 }
0x287e   :  { %v6980_v27 = vmul.f32 %v7905_v24, %v6966_v17 }
0x287f   :  { %9216 = vmatmul.mubr.msk.f32.gmra.mrb[122].mxu0 %vm172_vm2, %v13116_v6  ;;  %9697 = vmatprep.subr.bf16.mxu1 %v9696_v8 }
0x2880   :  { %9218 = vmatprep.mubr.msk.f32.mxu0 %vm172_vm2, %v13113_v10  ;;  %v13122_v26 = vadd.f32 %v7906_v44, %v6980_v27  ;;  %9699 = vmatpush3.bf16.msra.mxu1 %v9696_v8 }
0x2881   :  { %9701 = vmatprep.subr.bf16.mxu1 %v9700_v2 }
0x2883   :  { %9219 = vmatmul.mubr.msk.f32.gmra.mrb[124].mxu0 %vm172_vm2, %v13122_v26 }
0x2884   :  { %9265 = vmatprep.mubr.msk.f32.mxu0 %vm10505_vm0, %v13393_v60  ;;  %9703 = vmatpush3.bf16.msra.mxu1 %v9700_v2 }
0x2885   :  { %9705 = vmatprep.subr.bf16.mxu1 %v9704_v18 }
0x2888   :  { %9707 = vmatpush3.bf16.msra.mxu1 %v9704_v18 }
0x2889   :  { %9709 = vmatprep.subr.bf16.mxu1 %v9708_v5 }
0x288c   :  { %9711 = vmatpush3.bf16.msra.mxu1 %v9708_v5 }
0x2946   :  { %v9211_v58 = vpop.f32.mrb[118].mxu0 }
0x2947   :  { %v7104_v34 = vadd.f32 %v9211_v58, %v7912_v23  ;;  %v7098_v41 = vpop.f32.mrb[119].mxu0 }
0x2948   :  { %v7099_v19 = vadd.f32 %v7912_v23, %v7098_v41 }
0x2949   :  { %v7146_v42 = vmul.f32 0.044715, %v7104_v34 }
0x294a   :  { %v7145_v61 = vmul.f32 0.044715, %v7099_v19  ;;  %v7137_v41 = vmul.f32 0.5, %v7099_v19 }
0x294b   :  { %v7154_v29 = vmul.f32 %v7146_v42, %v7104_v34 }
0x294c   :  { %v7153_v53 = vmul.f32 %v7145_v61, %v7099_v19  ;;  %v7138_v61 = vmul.f32 0.5, %v7104_v34 }
0x294d   :  { %v7162_v63 = vmul.f32 %v7154_v29, %v7104_v34 }
0x294e   :  { %v7161_v43 = vmul.f32 %v7153_v53, %v7099_v19  ;;  %v9214_v30 = vpop.f32.mrb[120].mxu0 }
0x294f   :  { %v7170_v24 = vadd.f32 %v7162_v63, %v7104_v34  ;;  %v13155_v1 = vadd.f32 %v9214_v30, %v7912_v23  ;;  %v7108_v45 = vpop.f32.mrb[121].mxu0 }
0x2950   :  { %v7169_v51 = vadd.f32 %v7161_v43, %v7099_v19  ;;  %v7109_v62 = vadd.f32 %v7912_v23, %v7108_v45 }
0x2951   :  { %v7178_v33 = vmul.f32 0.7978846, %v7170_v24  ;;  %v7148_v37 = vmul.f32 0.044715, %v13155_v1 }
0x2952   :  { %v7147_v44 = vmul.f32 0.044715, %v7109_v62  ;;  %v9217_v9 = vpop.f32.mrb[122].mxu0  ;;  %v7177_v13 = vmul.f32 0.7978846, %v7169_v51 }
0x2953   :  { %10414 = vtanh.f32 %v7178_v33  ;;  %v7156_v28 = vmul.f32 %v7148_v37, %v13155_v1  ;;  %v13159_v25 = vadd.f32 %v9217_v9, %v7912_v23  ;;  %v7118_v38 = vpop.f32.mrb[123].mxu0  ;;  %v7139_v33 = vmul.f32 0.5, %v7109_v62 }
0x2954   :  { %v7155_v40 = vmul.f32 %v7147_v44, %v7109_v62  ;;  %v7119_v35 = vadd.f32 %v7912_v23, %v7118_v38  ;;  %10416 = vtanh.f32 %v7177_v13  ;;  %v7140_v37 = vmul.f32 0.5, %v13155_v1 }
0x2955   :  { %v7164_v16 = vmul.f32 %v7156_v28, %v13155_v1  ;;  %v7150_v55 = vmul.f32 0.044715, %v13159_v25 }
0x2956   :  { %v7163_v59 = vmul.f32 %v7155_v40, %v7109_v62  ;;  %v7149_v14 = vmul.f32 0.044715, %v7119_v35  ;;  %v9220_v47 = vpop.f32.mrb[124].mxu0  ;;  %v7141_v38 = vmul.f32 0.5, %v7119_v35 }
0x2957   :  { %v7172_v20 = vadd.f32 %v7164_v16, %v13155_v1  ;;  %v7158_v31 = vmul.f32 %v7150_v55, %v13159_v25  ;;  %v13165_v12 = vadd.f32 %v9220_v47, %v7912_v23  ;;  %v7128_v52 = vpop.f32.mrb[125].mxu0  ;;  %v7142_v16 = vmul.f32 0.5, %v13159_v25 }
0x2958   :  { %v7171_v22 = vadd.f32 %v7163_v59, %v7109_v62  ;;  %v7157_v39 = vmul.f32 %v7149_v14, %v7119_v35  ;;  %v7129_v11 = vadd.f32 %v7912_v23, %v7128_v52 }
0x2959   :  { %v7166_v36 = vmul.f32 %v7158_v31, %v13159_v25  ;;  %v7152_v17 = vmul.f32 0.044715, %v13165_v12  ;;  %v7180_v27 = vmul.f32 0.7978846, %v7172_v20  ;;  %v7144_v31 = vmul.f32 0.5, %v13165_v12 }
0x295a   :  { %v7165_v60 = vmul.f32 %v7157_v39, %v7119_v35  ;;  %v7151_v46 = vmul.f32 0.044715, %v7129_v11  ;;  %v7179_v48 = vmul.f32 0.7978846, %v7171_v22  ;;  %v7143_v1 = vmul.f32 0.5, %v7129_v11 }
0x295b   :  { %v7174_v8 = vadd.f32 %v7166_v36, %v13159_v25  ;;  %v7160_v57 = vmul.f32 %v7152_v17, %v13165_v12  ;;  %10418 = vtanh.f32 %v7180_v27  ;;  %v7930_v25 = vld [vmem:[%s13294_s18 + $0x1] ss:$0 sm:$0xff] }
0x295c   :  { %v7173_v0 = vadd.f32 %v7165_v60, %v7119_v35  ;;  %v7159_v2 = vmul.f32 %v7151_v46, %v7129_v11  ;;  %10420 = vtanh.f32 %v7179_v48 }
0x295d   :  { %v10415_v32 = vpop.eup %10414  ;;  %v7168_v21 = vmul.f32 %v7160_v57, %v13165_v12  ;;  %v7182_v18 = vmul.f32 0.7978846, %v7174_v8 }
0x295e   :  { %v10417_v56 = vpop.eup %10416  ;;  %v7194_v3 = vadd.f32 1.0, %v10415_v32  ;;  %v7167_v5 = vmul.f32 %v7159_v2, %v7129_v11  ;;  %v7181_v23 = vmul.f32 0.7978846, %v7173_v0 }
0x295f   :  { %v7176_v58 = vadd.f32 %v7168_v21, %v13165_v12  ;;  %v7193_v42 = vadd.f32 1.0, %v10417_v56  ;;  %10422 = vtanh.f32 %v7182_v18 }
0x2960   :  { %v7175_v29 = vadd.f32 %v7167_v5, %v7129_v11  ;;  %10424 = vtanh.f32 %v7181_v23  ;;  %v7202_v43 = vmul.f32 %v7194_v3, %v7138_v61 }
0x2961   :  { %v7201_v53 = vmul.f32 %v7193_v42, %v7137_v41  ;;  %v7184_v63 = vmul.f32 0.7978846, %v7176_v58 }
0x2962   :  { %v7183_v30 = vmul.f32 0.7978846, %v7175_v29 }
0x2963   :  { %9237 = vmatprep.mubr.msk.f32.mxu1 %vm87_vm1, %v7201_v53  ;;  %10426 = vtanh.f32 %v7184_v63 }
0x2964   :  { %9238 = vmatmul.mubr.msk.f32.vlgmr.msra.gmra.mrb[122].mxu1 %vm87_vm1, %v7202_v43  ;;  %10428 = vtanh.f32 %v7183_v30 }
0x2965   :  { %v10419_v24 = vpop.eup %10418 }
0x2966   :  { %v10421_v45 = vpop.eup %10420  ;;  %v7196_v51 = vadd.f32 1.0, %v10419_v24 }
0x2967   :  { %v7195_v19 = vadd.f32 1.0, %v10421_v45 }
0x2968   :  { %v7204_v13 = vmul.f32 %v7196_v51, %v7140_v37 }
0x2969   :  { %v10423_v34 = vpop.eup %10422  ;;  %v7203_v44 = vmul.f32 %v7195_v19, %v7139_v33 }
0x296a   :  { %v10425_v9 = vpop.eup %10424  ;;  %v7198_v28 = vadd.f32 1.0, %v10423_v34 }
0x296b   :  { %9240 = vmatprep.mubr.msk.f32.mxu1 %vm87_vm1, %v7203_v44  ;;  %v7197_v40 = vadd.f32 1.0, %v10425_v9 }
0x296c   :  { %9241 = vmatmul.mubr.msk.f32.gmra.mrb[124].mxu1 %vm87_vm1, %v7204_v13  ;;  %v7206_v62 = vmul.f32 %v7198_v28, %v7142_v16 }
0x296d   :  { %v10427_v55 = vpop.eup %10426  ;;  %v7205_v59 = vmul.f32 %v7197_v40, %v7141_v38 }
0x296e   :  { %v10429_v14 = vpop.eup %10428  ;;  %v7200_v47 = vadd.f32 1.0, %v10427_v55 }
0x296f   :  { %9243 = vmatprep.mubr.msk.f32.mxu1 %vm87_vm1, %v7205_v59  ;;  %v7199_v20 = vadd.f32 1.0, %v10429_v14 }
0x2970   :  { %9244 = vmatmul.mubr.msk.f32.gmra.mrb[126].mxu1 %vm87_vm1, %v7206_v62  ;;  %v7208_v35 = vmul.f32 %v7200_v47, %v7144_v31 }
0x2971   :  { %v7207_v52 = vmul.f32 %v7199_v20, %v7143_v1 }
0x2973   :  { %9246 = vmatprep.mubr.msk.f32.mxu1 %vm87_vm1, %v7207_v52 }
0x2974   :  { %9247 = vmatmul.mubr.msk.f32.gmra.mrb[128].mxu1 %vm87_vm1, %v7208_v35 }
0x2a37   :  { %v9239_v22 = vpop.f32.mrb[122].mxu1 }
0x2a38   :  { %v7322_v39 = vadd.f32 %v9239_v22, %v7930_v25  ;;  %v7316_v36 = vpop.f32.mrb[123].mxu1 }
0x2a39   :  { %v7317_v17 = vadd.f32 %v7930_v25, %v7316_v36 }
0x2a3a   :  { %v7356_v11 = vadd.f32 %v7322_v39, %v13091_v7 }
0x2a3b   :  { %v7355_v27 = vadd.f32 %v7317_v17, %v13088_v15 }
0x2a3c   :  { %v7370_v12 = vsel %vm172_vm2, %v7356_v11, 0.0 }
0x2a3d   :  { %7371 = vadd.xlane.f32.xlu0 %v7370_v12  ;;  %v7367_v60 = vsel %vm172_vm2, %v7355_v27, 0.0 }
0x2a3e   :  { %7368 = vadd.xlane.f32.xlu1 %v7367_v60 }
0x2a3f   :  { %v9242_v46 = vpop.f32.mrb[124].mxu1 }
0x2a40   :  { %v7332_v48 = vadd.f32 %v9242_v46, %v7930_v25  ;;  %v7326_v8 = vpop.f32.mrb[125].mxu1 }
0x2a41   :  { %v7327_v57 = vadd.f32 %v7930_v25, %v7326_v8 }
0x2a42   :  { %v7358_v0 = vadd.f32 %v7332_v48, %v13106_v49 }
0x2a43   :  { %v7357_v2 = vadd.f32 %v7327_v57, %v13097_v50  ;;  %v9245_v32 = vpop.f32.mrb[126].mxu1 }
0x2a44   :  { %v7342_v21 = vadd.f32 %v9245_v32, %v7930_v25  ;;  %v7336_v18 = vpop.f32.mrb[127].mxu1  ;;  %v7376_v7 = vsel %vm172_vm2, %v7358_v0, 0.0 }
0x2a45   :  { %v7337_v15 = vadd.f32 %v7930_v25, %v7336_v18  ;;  %7377 = vadd.xlane.f32.xlu0 %v7376_v7  ;;  %v7373_v56 = vsel %vm172_vm2, %v7357_v2, 0.0 }
0x2a46   :  { %v7360_v3 = vadd.f32 %v7342_v21, %v13116_v6  ;;  %7374 = vadd.xlane.f32.xlu1 %v7373_v56 }
0x2a47   :  { %v7359_v5 = vadd.f32 %v7337_v15, %v13103_v4  ;;  %v9248_v23 = vpop.f32.mrb[128].mxu1 }
0x2a48   :  { %v7352_v58 = vadd.f32 %v9248_v23, %v7930_v25  ;;  %v7346_v41 = vpop.f32.mrb[129].mxu1  ;;  %v7382_v49 = vsel %vm172_vm2, %v7360_v3, 0.0 }
0x2a49   :  { %v7347_v50 = vadd.f32 %v7930_v25, %v7346_v41  ;;  %7383 = vadd.xlane.f32.xlu0 %v7382_v49  ;;  %v7379_v42 = vsel %vm172_vm2, %v7359_v5, 0.0 }
0x2a4a   :  { %v7362_v61 = vadd.f32 %v7352_v58, %v13122_v26  ;;  %7380 = vadd.xlane.f32.xlu1 %v7379_v42  ;;  %v7941_v42 = vld [vmem:[%s13295_s19 + $0x1] ss:$0 sm:$0xff] }
0x2a4b   :  { %v7361_v29 = vadd.f32 %v7347_v50, %v13113_v10 }
0x2a4c   :  { %v7388_v53 = vsel %vm172_vm2, %v7362_v61, 0.0 }
0x2a4d   :  { %7389 = vadd.xlane.f32.xlu0 %v7388_v53  ;;  %v7385_v6 = vsel %vm172_vm2, %v7361_v29, 0.0 }
0x2a4e   :  { %7386 = vadd.xlane.f32.xlu1 %v7385_v6 }
0x2aca   :  { %v7372_v4 = vpop.xlane.xlu0 %7371 }
0x2acb   :  { %v7392_v63 = vmul.f32 0.03125, %v7372_v4  ;;  %v7369_v43 = vpop.xlane.xlu1 %7368 }
0x2acc   :  { %v7391_v30 = vmul.f32 0.03125, %v7369_v43 }
0x2acd   :  { %v13203_v24 = vsub.f32 %v7356_v11, %v7392_v63 }
0x2ace   :  { %v13205_v45 = vsub.f32 %v7355_v27, %v7391_v30  ;;  %v7942_v30 = vld [vmem:[%s13394_s30 + $0x1] ss:$0 sm:$0xff] }
0x2acf   :  { %v7408_v26 = vmul.f32 %v13203_v24, %v13203_v24 }
0x2ad0   :  { %v7407_v10 = vmul.f32 %v13205_v45, %v13205_v45 }
0x2ad1   :  { %v7418_v51 = vsel %vm172_vm2, %v7408_v26, 0.0 }
0x2ad2   :  { %v7378_v33 = vpop.xlane.xlu0 %7377  ;;  %7419 = vadd.xlane.f32.xlu0 %v7418_v51  ;;  %v7415_v19 = vsel %vm172_vm2, %v7407_v10, 0.0 }
0x2ad3   :  { %v7394_v37 = vmul.f32 0.03125, %v7378_v33  ;;  %v7375_v34 = vpop.xlane.xlu1 %7374  ;;  %7416 = vadd.xlane.f32.xlu1 %v7415_v19 }
0x2ad4   :  { %v7393_v44 = vmul.f32 0.03125, %v7375_v34 }
0x2ad5   :  { %v13213_v9 = vsub.f32 %v7358_v0, %v7394_v37 }
0x2ad6   :  { %v13215_v13 = vsub.f32 %v7357_v2, %v7393_v44  ;;  %v7384_v28 = vpop.xlane.xlu0 %7383 }
0x2ad7   :  { %v7396_v38 = vmul.f32 0.03125, %v7384_v28  ;;  %v7381_v40 = vpop.xlane.xlu1 %7380  ;;  %v7410_v16 = vmul.f32 %v13213_v9, %v13213_v9 }
0x2ad8   :  { %v7395_v55 = vmul.f32 0.03125, %v7381_v40  ;;  %v7409_v59 = vmul.f32 %v13215_v13, %v13215_v13 }
0x2ad9   :  { %v13221_v14 = vsub.f32 %v7360_v3, %v7396_v38  ;;  %v7424_v62 = vsel %vm172_vm2, %v7410_v16, 0.0 }
0x2ada   :  { %v13224_v47 = vsub.f32 %v7359_v5, %v7395_v55  ;;  %7425 = vadd.xlane.f32.xlu0 %v7424_v62  ;;  %v7390_v1 = vpop.xlane.xlu0 %7389  ;;  %v7421_v20 = vsel %vm172_vm2, %v7409_v59, 0.0 }
0x2adb   :  { %v7398_v31 = vmul.f32 0.03125, %v7390_v1  ;;  %7422 = vadd.xlane.f32.xlu1 %v7421_v20  ;;  %v7387_v52 = vpop.xlane.xlu1 %7386  ;;  %v7412_v35 = vmul.f32 %v13221_v14, %v13221_v14 }
0x2adc   :  { %v7397_v25 = vmul.f32 0.03125, %v7387_v52  ;;  %v7411_v22 = vmul.f32 %v13224_v47, %v13224_v47 }
0x2add   :  { %v13231_v39 = vsub.f32 %v7362_v61, %v7398_v31  ;;  %v7430_v36 = vsel %vm172_vm2, %v7412_v35, 0.0 }
0x2ade   :  { %v13234_v17 = vsub.f32 %v7361_v29, %v7397_v25  ;;  %7431 = vadd.xlane.f32.xlu0 %v7430_v36  ;;  %v7427_v11 = vsel %vm172_vm2, %v7411_v22, 0.0 }
0x2adf   :  { %7428 = vadd.xlane.f32.xlu1 %v7427_v11  ;;  %v7414_v27 = vmul.f32 %v13231_v39, %v13231_v39 }
0x2ae0   :  { %v7413_v12 = vmul.f32 %v13234_v17, %v13234_v17 }
0x2ae1   :  { %v7436_v60 = vsel %vm172_vm2, %v7414_v27, 0.0 }
0x2ae2   :  { %7437 = vadd.xlane.f32.xlu0 %v7436_v60  ;;  %v7433_v46 = vsel %vm172_vm2, %v7413_v12, 0.0 }
0x2ae3   :  { %7434 = vadd.xlane.f32.xlu1 %v7433_v46 }
0x2b5f   :  { %v7420_v48 = vpop.xlane.xlu0 %7419 }
0x2b60   :  { %v7440_v8 = vmul.f32 0.03125, %v7420_v48  ;;  %v7417_v57 = vpop.xlane.xlu1 %7416 }
0x2b61   :  { %v7439_v0 = vmul.f32 0.03125, %v7417_v57 }
0x2b62   :  { %v7448_v2 = vadd.f32 1e-12, %v7440_v8 }
0x2b63   :  { %v7447_v32 = vadd.f32 1e-12, %v7439_v0 }
0x2b64   :  { %10430 = vrsqrt.f32 %v7448_v2 }
0x2b65   :  { %10432 = vrsqrt.f32 %v7447_v32 }
0x2b67   :  { %v7426_v21 = vpop.xlane.xlu0 %7425 }
0x2b68   :  { %v7442_v18 = vmul.f32 0.03125, %v7426_v21  ;;  %v7423_v7 = vpop.xlane.xlu1 %7422 }
0x2b69   :  { %v7441_v15 = vmul.f32 0.03125, %v7423_v7 }
0x2b6a   :  { %v7450_v56 = vadd.f32 1e-12, %v7442_v18 }
0x2b6b   :  { %v7449_v3 = vadd.f32 1e-12, %v7441_v15  ;;  %v7432_v5 = vpop.xlane.xlu0 %7431 }
0x2b6c   :  { %10434 = vrsqrt.f32 %v7450_v56  ;;  %v7444_v23 = vmul.f32 0.03125, %v7432_v5  ;;  %v7429_v58 = vpop.xlane.xlu1 %7428 }
0x2b6d   :  { %10436 = vrsqrt.f32 %v7449_v3  ;;  %v7443_v41 = vmul.f32 0.03125, %v7429_v58 }
0x2b6e   :  { %v10431_v49 = vpop.eup %10430  ;;  %v7452_v50 = vadd.f32 1e-12, %v7444_v23 }
0x2b6f   :  { %v10433_v61 = vpop.eup %10432  ;;  %v7464_v29 = vmul.f32 %v10431_v49, %v13203_v24  ;;  %v7451_v53 = vadd.f32 1e-12, %v7443_v41  ;;  %v7438_v6 = vpop.xlane.xlu0 %7437 }
0x2b70   :  { %v7463_v4 = vmul.f32 %v10433_v61, %v13205_v45  ;;  %10438 = vrsqrt.f32 %v7452_v50  ;;  %v7446_v63 = vmul.f32 0.03125, %v7438_v6  ;;  %v7435_v43 = vpop.xlane.xlu1 %7434 }
0x2b71   :  { %10440 = vrsqrt.f32 %v7451_v53  ;;  %v7445_v26 = vmul.f32 0.03125, %v7435_v43  ;;  %v7478_v10 = vmul.f32 %v7941_v42, %v7464_v29 }
0x2b72   :  { %v7454_v51 = vadd.f32 1e-12, %v7446_v63  ;;  %v7477_v33 = vmul.f32 %v7941_v42, %v7463_v4 }
0x2b73   :  { %v7453_v19 = vadd.f32 1e-12, %v7445_v26  ;;  %v7492_v37 = vadd.f32 %v7942_v30, %v7478_v10 }
0x2b74   :  { %10442 = vrsqrt.f32 %v7454_v51  ;;  %v7491_v24 = vadd.f32 %v7942_v30, %v7477_v33 }
0x2b75   :  { %10444 = vrsqrt.f32 %v7453_v19 }
0x2b76   :  { %v10435_v34 = vpop.eup %10434  ;;  %v9713_v44 = vpack.c.bf16 %v7492_v37, %v7491_v24 }
0x2b77   :  { %v10437_v45 = vpop.eup %10436  ;;  %v7466_v28 = vmul.f32 %v10435_v34, %v13213_v9 }
0x2b78   :  { %v7465_v38 = vmul.f32 %v10437_v45, %v13215_v13  ;;  %9714 = vmatpush3.bf16.msra.mxu0 %v9713_v44 }
0x2b79   :  { %9715 = vmatprep.subr.bf16.mxu0 %v13392_v54  ;;  %v7480_v40 = vmul.f32 %v7941_v42, %v7466_v28 }
0x2b7a   :  { %v10439_v16 = vpop.eup %10438  ;;  %v7479_v55 = vmul.f32 %v7941_v42, %v7465_v38 }
0x2b7b   :  { %v10441_v59 = vpop.eup %10440  ;;  %v7468_v62 = vmul.f32 %v10439_v16, %v13221_v14  ;;  %v7494_v1 = vadd.f32 %v7942_v30, %v7480_v40 }
0x2b7c   :  { %v7467_v20 = vmul.f32 %v10441_v59, %v13224_v47  ;;  %v7493_v31 = vadd.f32 %v7942_v30, %v7479_v55 }
0x2b7d   :  { %v7482_v52 = vmul.f32 %v7941_v42, %v7468_v62 }
0x2b7e   :  { %v10443_v35 = vpop.eup %10442  ;;  %v9716_v25 = vpack.c.bf16 %v7494_v1, %v7493_v31  ;;  %v7481_v22 = vmul.f32 %v7941_v42, %v7467_v20 }
0x2b7f   :  { %v10445_v9 = vpop.eup %10444  ;;  %v7470_v13 = vmul.f32 %v10443_v35, %v13231_v39  ;;  %v7496_v36 = vadd.f32 %v7942_v30, %v7482_v52  ;;  %v7499_v39 = vld [vmem:[%s13395_s15] sm:$0x3] }
0x2b80   :  { %v7469_v11 = vmul.f32 %v10445_v9, %v13234_v17  ;;  %9717 = vmatpush3.bf16.msra.mxu0 %v9716_v25  ;;  %v7495_v27 = vadd.f32 %v7942_v30, %v7481_v22 }
0x2b81   :  { %9718 = vmatprep.subr.bf16.mxu0 %v13392_v54  ;;  %v7484_v12 = vmul.f32 %v7941_v42, %v7470_v13 }
0x2b82   :  { %v9719_v14 = vpack.c.bf16 %v7496_v36, %v7495_v27  ;;  %v7483_v60 = vmul.f32 %v7941_v42, %v7469_v11 }
0x2b83   :  { %v7498_v46 = vadd.f32 %v7942_v30, %v7484_v12 }
0x2b84   :  { %9720 = vmatpush3.bf16.msra.mxu0 %v9719_v14  ;;  %v7497_v47 = vadd.f32 %v7942_v30, %v7483_v60 }
0x2b85   :  { %9721 = vmatprep.subr.bf16.mxu0 %v13392_v54 }
0x2b86   :  { %v9722_v48 = vpack.c.bf16 %v7498_v46, %v7497_v47 }
0x2b88   :  { %9723 = vmatpush3.bf16.msra.mxu0 %v9722_v48 }
0x2b8b   :  { %9266 = vmatmul.mubr.msk.f32.vlgmr.msra.gmra.mrb[126].mxu0 %vm87_vm1, %v7499_v39 }
0x2c5e   :  { %v7569_v17 = vpop.f32.mrb[126].mxu0 }
0x2c5f   :  { %7574 = vst.msk [vmem:[#allocation2] sm:$0x3] %vm7573_vm8, %v7569_v17  ;;  %v9267_v8 = vpop.f32.mrb[127].mxu0 }
0x2c60   :  { %10491 = shalt.err (!%p10488_p4)
}
0x2c61   :  { %s13396_s22 = sld [smem:[#allocation17_spill]] }
0x2c67   :  { %s10492_s2 = scalar_lea.hbm %s13396_s22, 32 }
0x2c68   :  { %p10493_p5 = scmp.ne.s32.totalorder %s13396_s22, %s10492_s2  ;;  %p10496_p6 = scmp.lt.u32.totalorder %s10492_s2, %s13396_s22 }
0x2c6a   :  { %p10498_p7 = pnand %p10496_p6, %p10493_p5 }
0x2c6c   :  { %10501 = shalt.err (!%p10498_p7)
}
0x2c6d   :  { %7584 = dma.vmem_to_hbm [thread:$0]  %s7582_s6, 32, %s13396_s22, [#allocation3]  }
0x2c6e   :  { %10502 = dma.done.wait [#allocation3], 32  }
0x2c6f   :  { %10503 = vsyncadd [#allocation3], 4294967264 }
0x2c70   :  { %7588 = vsyncpa [#allocation3], 1 }

</bundles_post_ra>
